<compile_context>
chip_gen: v7x
topology: tpu7x:2x2x1
jax: 0.10.0
libtpu: 0.0.40
codegen_flags: <defaults>
</compile_context>

<pallas_src>
import functools

import jax
import jax.numpy as jnp
from jax.experimental import pallas as pl
from jax.experimental.pallas import tpu as pltpu

BN_EPS = 1e-5
CP = 128                         # lane-padded channel count (real channels <= 64)
VMEM_LIMIT = 32 * 1024 * 1024    # explicit scoped-VMEM budget (fits v5e/v6e/v7x)


def _pick_tile_m(m):
    """Largest row tile that divides M (keeps blocks (8,128)-legal)."""
    for t in (512, 256, 128, 64, 32, 16, 8):
        if m % t == 0:
            return t
    return m  # tiny M: a full-dim block is always legal


# ------------------------------ Pallas kernels ------------------------------ #

def _conv_kernel(taps_ref, w_ref, y_ref, stats_ref):
    """One row-tile of the 3x3 conv as a single MXU matmul + BN partial stats.

    taps_ref : (tm, 9*CP)  bf16   lane-contiguous im2col rows
    w_ref    : (9*CP, CP)  bf16   weights, channels zero-padded to 128 lanes
    y_ref    : (tm, CP)    f32    conv output (lane-dense store)
    stats_ref: (1, 2, CP)  f32    per-tile [sum, sum_of_squares] per channel
    """
    acc = jnp.dot(taps_ref[...], w_ref[...],
                  preferred_element_type=jnp.float32)            # (tm, CP) f32
    y_ref[...] = acc
    # per-channel partial statistics for train-mode BatchNorm (f32, pre-cast)
    stats_ref[0, 0:1, :] = jnp.sum(acc, axis=0, keepdims=True)
    stats_ref[0, 1:2, :] = jnp.sum(acc * acc, axis=0, keepdims=True)


def _bn_relu_kernel(y_ref, scale_ref, shift_ref, o_ref):
    """o = relu(y * scale + shift); all f32, lane-dense CP channels."""
    o_ref[...] = jnp.maximum(y_ref[...] * scale_ref[...] + shift_ref[...], 0.0)


# ----------------------------- kernel wrappers ------------------------------ #

def conv3x3_pallas(taps, w):
    """taps: (M, 9*CP) bf16; w: (9*CP, CP) bf16.
    Returns (y: (M, CP) f32, stats: (num_tiles, 2, CP) f32)."""
    m, k = taps.shape
    cp = w.shape[1]
    tm = _pick_tile_m(m)
    nt = m // tm
    return pl.pallas_call(
        _conv_kernel,
        out_shape=(jax.ShapeDtypeStruct((m, cp), jnp.float32),
                   jax.ShapeDtypeStruct((nt, 2, cp), jnp.float32)),
        grid_spec=pltpu.PrefetchScalarGridSpec(
            num_scalar_prefetch=0,
            grid=(nt,),
            in_specs=[
                pl.BlockSpec((tm, k), lambda i: (i, 0)),
                pl.BlockSpec((k, cp), lambda i: (0, 0)),
            ],
            out_specs=(
                pl.BlockSpec((tm, cp), lambda i: (i, 0)),
                pl.BlockSpec((1, 2, cp), lambda i: (i, 0, 0)),
            ),
        ),
        compiler_params=pltpu.CompilerParams(
            dimension_semantics=("parallel",),
            vmem_limit_bytes=VMEM_LIMIT),
    )(taps, w)


def bn_relu_pallas(y, scale, shift):
    """y: (M, CP) f32; scale/shift: (1, CP) f32.  Output overwrites y (alias)."""
    m, cp = y.shape
    tm = _pick_tile_m(m)
    nt = m // tm
    return pl.pallas_call(
        _bn_relu_kernel,
        out_shape=jax.ShapeDtypeStruct((m, cp), jnp.float32),
        grid_spec=pltpu.PrefetchScalarGridSpec(
            num_scalar_prefetch=0,
            grid=(nt,),
            in_specs=[
                pl.BlockSpec((tm, cp), lambda i: (i, 0)),
                pl.BlockSpec((1, cp), lambda i: (0, 0)),
                pl.BlockSpec((1, cp), lambda i: (0, 0)),
            ],
            out_specs=pl.BlockSpec((tm, cp), lambda i: (i, 0)),
        ),
        input_output_aliases={0: 0},
        compiler_params=pltpu.CompilerParams(
            dimension_semantics=("parallel",),
            vmem_limit_bytes=VMEM_LIMIT),
    )(y, scale, shift)


# ------------------------------ model pieces ------------------------------- #

def conv_bn_relu(x_nhwc, layer_params):
    """x_nhwc: (N, H, W, CP) f32 with zero-padded channels."""
    n, h, w, cp = x_nhwc.shape
    hw = h * w
    m = n * hw
    # im2col glue: 9 shifted views folded into one lane-contiguous K = 9*CP
    # operand (single MXU contraction), cast to bf16 for the matmul.
    xp = jnp.pad(x_nhwc, ((0, 0), (1, 1), (1, 1), (0, 0)))
    taps = jnp.concatenate(
        [xp[:, dy:dy + h, dx:dx + w, :].reshape(n, hw, cp)
         for dy in range(3) for dx in range(3)],
        axis=-1,
    ).reshape(m, 9 * cp).astype(jnp.bfloat16)

    y, stats = conv3x3_pallas(taps, layer_params["w"])

    # tiny host-side reduction of the per-tile partials (never re-reads y)
    tot = jnp.sum(stats, axis=0)                      # (2, CP)
    cnt = jnp.float32(m)
    mean = tot[0] / cnt
    var = jnp.maximum(tot[1] / cnt - mean * mean, 0.0)  # clamp cancellation
    scale = layer_params["gamma"] * jax.lax.rsqrt(var + BN_EPS)
    shift = layer_params["beta"] - mean * scale

    cout_p = layer_params["w"].shape[1]
    z = bn_relu_pallas(y, scale.reshape(1, cout_p), shift.reshape(1, cout_p))
    return z.reshape(n, h, w, cout_p)


def block(x_nhwc, block_params):
    x = conv_bn_relu(x_nhwc, block_params[0])
    x = conv_bn_relu(x, block_params[1])
    return x


def maxpool2(x_nhwc):
    n, h, w, c = x_nhwc.shape
    return x_nhwc.reshape(n, h // 2, 2, w // 2, 2, c).max(axis=(2, 4))


@functools.partial(jax.jit, static_argnames=("couts",))
def encoder_forward(params, x_nchw, couts):
    x = jnp.transpose(x_nchw, (0, 2, 3, 1)).astype(jnp.float32)  # NCHW -> NHWC
    cin = x.shape[-1]
    x = jnp.pad(x, ((0, 0), (0, 0), (0, 0), (0, CP - cin)))       # lane-pad C

    b1 = block(x, params["block1"])
    mp1 = maxpool2(b1)
    b2 = block(mp1, params["block2"])
    mp2 = maxpool2(b2)            # torch code reuses mp3; identical op
    b3 = block(mp2, params["block3"])
    mp3 = maxpool2(b3)
    b4 = block(mp3, params["block4"])
    mp4 = maxpool2(b4)
    b5 = block(mp4, params["block5"])
    mp5 = maxpool2(b5)
    b6 = block(mp5, params["block6"])

    def to_nchw(t, c_real):
        return jnp.transpose(t[..., :c_real], (0, 3, 1, 2))

    return tuple(to_nchw(t, c) for t, c in zip((b1, b2, b3, b4, b5, b6), couts))


# --------------------------- deterministic params --------------------------- #

def make_layer_params(key, cin, cout):
    k_w, k_g, k_bt = jax.random.split(key, 3)
    fan_in = cin * 9
    bound = 1.0 / (fan_in ** 0.5)
    w_torch = jax.random.uniform(k_w, (cout, cin, 3, 3), jnp.float32,
                                 -bound, bound)                 # PyTorch layout
    # (Cout,Cin,ky,kx) -> (ky,kx,Cin,Cout), zero-pad channels to CP lanes,
    # flatten the 3x3 taps into the contraction dim, cast to bf16 operands.
    w = jnp.transpose(w_torch, (2, 3, 1, 0))
    w = jnp.pad(w, ((0, 0), (0, 0), (0, CP - cin), (0, CP - cout)))
    w = w.reshape(9 * CP, CP).astype(jnp.bfloat16)
    gamma = 1.0 + 0.1 * jax.random.normal(k_g, (cout,), jnp.float32)
    beta = 0.1 * jax.random.normal(k_bt, (cout,), jnp.float32)
    gamma = jnp.pad(gamma, (0, CP - cout))   # padded channels -> scale/shift 0
    beta = jnp.pad(beta, (0, CP - cout))
    # NOTE: conv bias omitted on purpose: train-mode BatchNorm subtracts the
    # batch mean, which cancels any per-channel constant bias exactly.
    return {"w": w, "gamma": gamma, "beta": beta}


def make_params(key, in_channels, base_width):
    bw = base_width
    dims = {
        "block1": [(in_channels, bw), (bw, bw)],
        "block2": [(bw, bw * 2), (bw * 2, bw * 2)],
        "block3": [(bw * 2, bw * 4), (bw * 4, bw * 4)],
        "block4": [(bw * 4, bw * 8), (bw * 8, bw * 8)],
        "block5": [(bw * 8, bw * 8), (bw * 8, bw * 8)],
        "block6": [(bw * 8, bw * 8), (bw * 8, bw * 8)],
    }
    params = {}
    for name, layer_dims in dims.items():
        layers = []
        for (cin, cout) in layer_dims:
            key, sub = jax.random.split(key)
            layers.append(make_layer_params(sub, cin, cout))
        params[name] = layers
    return params


# ---------------------------------- main ------------------------------------ #

if __name__ == "__main__":
    in_channels = 4
    base_width = 8
    # spatial 32 so that 5 maxpool(2) stages remain valid (32->16->8->4->2->1)
    N, H, W = 2, 32, 32

    key = jax.random.PRNGKey(0)
    k_params, k_x = jax.random.split(key)
    params = make_params(k_params, in_channels, base_width)
    x = jax.random.normal(k_x, (N, in_channels, H, W), jnp.float32)  # NCHW

    couts = (base_width, base_width * 2, base_width * 4,
             base_width * 8, base_width * 8, base_width * 8)

    outs = encoder_forward(params, x, couts)
    outs = jax.block_until_ready(outs)

    expected = [
        (N, base_width, 32, 32),
        (N, base_width * 2, 16, 16),
        (N, base_width * 4, 8, 8),
        (N, base_width * 8, 4, 4),
        (N, base_width * 8, 2, 2),
        (N, base_width * 8, 1, 1),
    ]
    assert len(outs) == 6
    for o, es in zip(outs, expected):
        assert o.shape == es, (o.shape, es)
        assert bool(jnp.all(jnp.isfinite(o)))

    print("KERNEL_OK")
</pallas_src>

<mosaic_0001>
module attributes {stable_mosaic.version = 11 : i64} {
  func.func @_conv_kernel(%arg0: i32, %arg1: memref<512x1152xbf16, #tpu.memory_space<vmem>>, %arg2: memref<1152x128xbf16, #tpu.memory_space<vmem>>, %arg3: memref<512x128xf32, #tpu.memory_space<vmem>>, %arg4: memref<1x2x128xf32, #tpu.memory_space<vmem>>) attributes {dimension_semantics = [#tpu.dimension_semantics<parallel>], iteration_bounds = array<i64: 4>, scalar_prefetch = 0 : i64, scratch_operands = 0 : i64, tpu.core_type = #tpu.core_type<tc>, window_params = [{transform_indices = @transform_0, window_bounds = array<i64: 512, 1152>}, {pipeline_mode = #tpu.pipeline_mode<synchronous>, transform_indices = @transform_1, window_bounds = array<i64: 1152, 128>}, {transform_indices = @transform_2, window_bounds = array<i64: 512, 128>}, {transform_indices = @transform_3, window_bounds = array<i64: 1, 2, 128>}]} {
    %c0 = arith.constant 0 : index
    %c0_0 = arith.constant 0 : index
    %0 = vector.load %arg1[%c0, %c0_0] : memref<512x1152xbf16, #tpu.memory_space<vmem>>, vector<512x1152xbf16>
    %c0_1 = arith.constant 0 : index
    %c0_2 = arith.constant 0 : index
    %1 = vector.load %arg2[%c0_1, %c0_2] : memref<1152x128xbf16, #tpu.memory_space<vmem>>, vector<1152x128xbf16>
    %cst = arith.constant dense<0.000000e+00> : vector<512x128xf32>
    %2 = tpu.matmul %0, %1, %cst {dimension_numbers = #tpu.dot_dimension_numbers<[1], [0], [0], [1], [0, 0, 1, 1], [], []>} : vector<512x1152xbf16>, vector<1152x128xbf16>, vector<512x128xf32> -> vector<512x128xf32>
    %c0_3 = arith.constant 0 : index
    %c0_4 = arith.constant 0 : index
    %3 = vector.load %arg3[%c0_3, %c0_4] : memref<512x128xf32, #tpu.memory_space<vmem>>, vector<512x128xf32>
    tpu.vector_store %arg3[%c0_3, %c0_4], %2 {strides = array<i32>} : memref<512x128xf32, #tpu.memory_space<vmem>>, vector<512x128xf32>,
    %cst_5 = arith.constant dense<0.000000e+00> : vector<128xf32>
    %4 = vector.multi_reduction <add>, %2, %cst_5 [0] : vector<512x128xf32> to vector<128xf32>
    %5 = vector.shape_cast %4 : vector<128xf32> to vector<1x128xf32>
    %c0_6 = arith.constant 0 : index
    %c0_7 = arith.constant 0 : index
    %c0_8 = arith.constant 0 : index
    %6 = vector.load %arg4[%c0_6, %c0_7, %c0_8] : memref<1x2x128xf32, #tpu.memory_space<vmem>>, vector<1x1x128xf32>
    %7 = vector.shape_cast %6 : vector<1x1x128xf32> to vector<1x128xf32>
    %8 = vector.shape_cast %5 : vector<1x128xf32> to vector<1x1x128xf32>
    tpu.vector_store %arg4[%c0_6, %c0_7, %c0_8], %8 {strides = array<i32>} : memref<1x2x128xf32, #tpu.memory_space<vmem>>, vector<1x1x128xf32>,
    %9 = arith.mulf %2, %2 : vector<512x128xf32>
    %cst_9 = arith.constant dense<0.000000e+00> : vector<128xf32>
    %10 = vector.multi_reduction <add>, %9, %cst_9 [0] : vector<512x128xf32> to vector<128xf32>
    %11 = vector.shape_cast %10 : vector<128xf32> to vector<1x128xf32>
    %c0_10 = arith.constant 0 : index
    %c1 = arith.constant 1 : index
    %c0_11 = arith.constant 0 : index
    %12 = vector.load %arg4[%c0_10, %c1, %c0_11] : memref<1x2x128xf32, #tpu.memory_space<vmem>>, vector<1x1x128xf32>
    %13 = vector.shape_cast %12 : vector<1x1x128xf32> to vector<1x128xf32>
    %14 = vector.shape_cast %11 : vector<1x128xf32> to vector<1x1x128xf32>
    tpu.vector_store %arg4[%c0_10, %c1, %c0_11], %14 {strides = array<i32>} : memref<1x2x128xf32, #tpu.memory_space<vmem>>, vector<1x1x128xf32>,
    return
  }
  func.func @transform_0(%arg0: i32) -> (i32, i32) {
    %c0_i32 = arith.constant 0 : i32
    %c0_i32_0 = arith.constant 0 : i32
    return %arg0, %c0_i32 : i32, i32
  }
  func.func @transform_1(%arg0: i32) -> (i32, i32) {
    %c0_i32 = arith.constant 0 : i32
    %c0_i32_0 = arith.constant 0 : i32
    %c0_i32_1 = arith.constant 0 : i32
    return %c0_i32, %c0_i32_0 : i32, i32
  }
  func.func @transform_2(%arg0: i32) -> (i32, i32) {
    %c0_i32 = arith.constant 0 : i32
    %c0_i32_0 = arith.constant 0 : i32
    return %arg0, %c0_i32 : i32, i32
  }
  func.func @transform_3(%arg0: i32) -> (i32, i32, i32) {
    %c0_i32 = arith.constant 0 : i32
    %c0_i32_0 = arith.constant 0 : i32
    %c0_i32_1 = arith.constant 0 : i32
    return %arg0, %c0_i32, %c0_i32_0 : i32, i32, i32
  }
}

module attributes {stable_mosaic.version = 11 : i64} {
  func.func @_bn_relu_kernel(%arg0: i32, %arg1: memref<512x128xf32, #tpu.memory_space<vmem>>, %arg2: memref<1x128xf32, #tpu.memory_space<vmem>>, %arg3: memref<1x128xf32, #tpu.memory_space<vmem>>, %arg4: memref<512x128xf32, #tpu.memory_space<vmem>>) attributes {dimension_semantics = [#tpu.dimension_semantics<parallel>], iteration_bounds = array<i64: 4>, scalar_prefetch = 0 : i64, scratch_operands = 0 : i64, tpu.core_type = #tpu.core_type<tc>, window_params = [{transform_indices = @transform_0, window_bounds = array<i64: 512, 128>}, {pipeline_mode = #tpu.pipeline_mode<synchronous>, transform_indices = @transform_1, window_bounds = array<i64: 1, 128>}, {pipeline_mode = #tpu.pipeline_mode<synchronous>, transform_indices = @transform_2, window_bounds = array<i64: 1, 128>}, {transform_indices = @transform_3, window_bounds = array<i64: 512, 128>}]} {
    %c0 = arith.constant 0 : index
    %c0_0 = arith.constant 0 : index
    %0 = vector.load %arg1[%c0, %c0_0] : memref<512x128xf32, #tpu.memory_space<vmem>>, vector<512x128xf32>
    %c0_1 = arith.constant 0 : index
    %c0_2 = arith.constant 0 : index
    %1 = vector.load %arg2[%c0_1, %c0_2] : memref<1x128xf32, #tpu.memory_space<vmem>>, vector<1x128xf32>
    %2 = vector.broadcast %1 : vector<1x128xf32> to vector<512x128xf32>
    %3 = arith.mulf %0, %2 : vector<512x128xf32>
    %c0_3 = arith.constant 0 : index
    %c0_4 = arith.constant 0 : index
    %4 = vector.load %arg3[%c0_3, %c0_4] : memref<1x128xf32, #tpu.memory_space<vmem>>, vector<1x128xf32>
    %5 = vector.broadcast %4 : vector<1x128xf32> to vector<512x128xf32>
    %6 = arith.addf %3, %5 : vector<512x128xf32>
    %cst = arith.constant 0.000000e+00 : f32
    %7 = vector.broadcast %cst : f32 to vector<512x128xf32>
    %8 = arith.maximumf %6, %7 : vector<512x128xf32>
    %c0_5 = arith.constant 0 : index
    %c0_6 = arith.constant 0 : index
    %9 = vector.load %arg4[%c0_5, %c0_6] : memref<512x128xf32, #tpu.memory_space<vmem>>, vector<512x128xf32>
    tpu.vector_store %arg4[%c0_5, %c0_6], %8 {strides = array<i32>} : memref<512x128xf32, #tpu.memory_space<vmem>>, vector<512x128xf32>,
    return
  }
  func.func @transform_0(%arg0: i32) -> (i32, i32) {
    %c0_i32 = arith.constant 0 : i32
    %c0_i32_0 = arith.constant 0 : i32
    return %arg0, %c0_i32 : i32, i32
  }
  func.func @transform_1(%arg0: i32) -> (i32, i32) {
    %c0_i32 = arith.constant 0 : i32
    %c0_i32_0 = arith.constant 0 : i32
    %c0_i32_1 = arith.constant 0 : i32
    return %c0_i32, %c0_i32_0 : i32, i32
  }
  func.func @transform_2(%arg0: i32) -> (i32, i32) {
    %c0_i32 = arith.constant 0 : i32
    %c0_i32_0 = arith.constant 0 : i32
    %c0_i32_1 = arith.constant 0 : i32
    return %c0_i32, %c0_i32_0 : i32, i32
  }
  func.func @transform_3(%arg0: i32) -> (i32, i32) {
    %c0_i32 = arith.constant 0 : i32
    %c0_i32_0 = arith.constant 0 : i32
    return %arg0, %c0_i32 : i32, i32
  }
}

module attributes {stable_mosaic.version = 11 : i64} {
  func.func @_conv_kernel(%arg0: i32, %arg1: memref<512x1152xbf16, #tpu.memory_space<vmem>>, %arg2: memref<1152x128xbf16, #tpu.memory_space<vmem>>, %arg3: memref<512x128xf32, #tpu.memory_space<vmem>>, %arg4: memref<1x2x128xf32, #tpu.memory_space<vmem>>) attributes {dimension_semantics = [#tpu.dimension_semantics<parallel>], iteration_bounds = array<i64: 1>, scalar_prefetch = 0 : i64, scratch_operands = 0 : i64, tpu.core_type = #tpu.core_type<tc>, window_params = [{transform_indices = @transform_0, window_bounds = array<i64: 512, 1152>}, {pipeline_mode = #tpu.pipeline_mode<synchronous>, transform_indices = @transform_1, window_bounds = array<i64: 1152, 128>}, {transform_indices = @transform_2, window_bounds = array<i64: 512, 128>}, {transform_indices = @transform_3, window_bounds = array<i64: 1, 2, 128>}]} {
    %c0 = arith.constant 0 : index
    %c0_0 = arith.constant 0 : index
    %0 = vector.load %arg1[%c0, %c0_0] : memref<512x1152xbf16, #tpu.memory_space<vmem>>, vector<512x1152xbf16>
    %c0_1 = arith.constant 0 : index
    %c0_2 = arith.constant 0 : index
    %1 = vector.load %arg2[%c0_1, %c0_2] : memref<1152x128xbf16, #tpu.memory_space<vmem>>, vector<1152x128xbf16>
    %cst = arith.constant dense<0.000000e+00> : vector<512x128xf32>
    %2 = tpu.matmul %0, %1, %cst {dimension_numbers = #tpu.dot_dimension_numbers<[1], [0], [0], [1], [0, 0, 1, 1], [], []>} : vector<512x1152xbf16>, vector<1152x128xbf16>, vector<512x128xf32> -> vector<512x128xf32>
    %c0_3 = arith.constant 0 : index
    %c0_4 = arith.constant 0 : index
    %3 = vector.load %arg3[%c0_3, %c0_4] : memref<512x128xf32, #tpu.memory_space<vmem>>, vector<512x128xf32>
    tpu.vector_store %arg3[%c0_3, %c0_4], %2 {strides = array<i32>} : memref<512x128xf32, #tpu.memory_space<vmem>>, vector<512x128xf32>,
    %cst_5 = arith.constant dense<0.000000e+00> : vector<128xf32>
    %4 = vector.multi_reduction <add>, %2, %cst_5 [0] : vector<512x128xf32> to vector<128xf32>
    %5 = vector.shape_cast %4 : vector<128xf32> to vector<1x128xf32>
    %c0_6 = arith.constant 0 : index
    %c0_7 = arith.constant 0 : index
    %c0_8 = arith.constant 0 : index
    %6 = vector.load %arg4[%c0_6, %c0_7, %c0_8] : memref<1x2x128xf32, #tpu.memory_space<vmem>>, vector<1x1x128xf32>
    %7 = vector.shape_cast %6 : vector<1x1x128xf32> to vector<1x128xf32>
    %8 = vector.shape_cast %5 : vector<1x128xf32> to vector<1x1x128xf32>
    tpu.vector_store %arg4[%c0_6, %c0_7, %c0_8], %8 {strides = array<i32>} : memref<1x2x128xf32, #tpu.memory_space<vmem>>, vector<1x1x128xf32>,
    %9 = arith.mulf %2, %2 : vector<512x128xf32>
    %cst_9 = arith.constant dense<0.000000e+00> : vector<128xf32>
    %10 = vector.multi_reduction <add>, %9, %cst_9 [0] : vector<512x128xf32> to vector<128xf32>
    %11 = vector.shape_cast %10 : vector<128xf32> to vector<1x128xf32>
    %c0_10 = arith.constant 0 : index
    %c1 = arith.constant 1 : index
    %c0_11 = arith.constant 0 : index
    %12 = vector.load %arg4[%c0_10, %c1, %c0_11] : memref<1x2x128xf32, #tpu.memory_space<vmem>>, vector<1x1x128xf32>
    %13 = vector.shape_cast %12 : vector<1x1x128xf32> to vector<1x128xf32>
    %14 = vector.shape_cast %11 : vector<1x128xf32> to vector<1x1x128xf32>
    tpu.vector_store %arg4[%c0_10, %c1, %c0_11], %14 {strides = array<i32>} : memref<1x2x128xf32, #tpu.memory_space<vmem>>, vector<1x1x128xf32>,
    return
  }
  func.func @transform_0(%arg0: i32) -> (i32, i32) {
    %c0_i32 = arith.constant 0 : i32
    %c0_i32_0 = arith.constant 0 : i32
    return %arg0, %c0_i32 : i32, i32
  }
  func.func @transform_1(%arg0: i32) -> (i32, i32) {
    %c0_i32 = arith.constant 0 : i32
    %c0_i32_0 = arith.constant 0 : i32
    %c0_i32_1 = arith.constant 0 : i32
    return %c0_i32, %c0_i32_0 : i32, i32
  }
  func.func @transform_2(%arg0: i32) -> (i32, i32) {
    %c0_i32 = arith.constant 0 : i32
    %c0_i32_0 = arith.constant 0 : i32
    return %arg0, %c0_i32 : i32, i32
  }
  func.func @transform_3(%arg0: i32) -> (i32, i32, i32) {
    %c0_i32 = arith.constant 0 : i32
    %c0_i32_0 = arith.constant 0 : i32
    %c0_i32_1 = arith.constant 0 : i32
    return %arg0, %c0_i32, %c0_i32_0 : i32, i32, i32
  }
}

module attributes {stable_mosaic.version = 11 : i64} {
  func.func @_bn_relu_kernel(%arg0: i32, %arg1: memref<512x128xf32, #tpu.memory_space<vmem>>, %arg2: memref<1x128xf32, #tpu.memory_space<vmem>>, %arg3: memref<1x128xf32, #tpu.memory_space<vmem>>, %arg4: memref<512x128xf32, #tpu.memory_space<vmem>>) attributes {dimension_semantics = [#tpu.dimension_semantics<parallel>], iteration_bounds = array<i64: 1>, scalar_prefetch = 0 : i64, scratch_operands = 0 : i64, tpu.core_type = #tpu.core_type<tc>, window_params = [{transform_indices = @transform_0, window_bounds = array<i64: 512, 128>}, {pipeline_mode = #tpu.pipeline_mode<synchronous>, transform_indices = @transform_1, window_bounds = array<i64: 1, 128>}, {pipeline_mode = #tpu.pipeline_mode<synchronous>, transform_indices = @transform_2, window_bounds = array<i64: 1, 128>}, {transform_indices = @transform_3, window_bounds = array<i64: 512, 128>}]} {
    %c0 = arith.constant 0 : index
    %c0_0 = arith.constant 0 : index
    %0 = vector.load %arg1[%c0, %c0_0] : memref<512x128xf32, #tpu.memory_space<vmem>>, vector<512x128xf32>
    %c0_1 = arith.constant 0 : index
    %c0_2 = arith.constant 0 : index
    %1 = vector.load %arg2[%c0_1, %c0_2] : memref<1x128xf32, #tpu.memory_space<vmem>>, vector<1x128xf32>
    %2 = vector.broadcast %1 : vector<1x128xf32> to vector<512x128xf32>
    %3 = arith.mulf %0, %2 : vector<512x128xf32>
    %c0_3 = arith.constant 0 : index
    %c0_4 = arith.constant 0 : index
    %4 = vector.load %arg3[%c0_3, %c0_4] : memref<1x128xf32, #tpu.memory_space<vmem>>, vector<1x128xf32>
    %5 = vector.broadcast %4 : vector<1x128xf32> to vector<512x128xf32>
    %6 = arith.addf %3, %5 : vector<512x128xf32>
    %cst = arith.constant 0.000000e+00 : f32
    %7 = vector.broadcast %cst : f32 to vector<512x128xf32>
    %8 = arith.maximumf %6, %7 : vector<512x128xf32>
    %c0_5 = arith.constant 0 : index
    %c0_6 = arith.constant 0 : index
    %9 = vector.load %arg4[%c0_5, %c0_6] : memref<512x128xf32, #tpu.memory_space<vmem>>, vector<512x128xf32>
    tpu.vector_store %arg4[%c0_5, %c0_6], %8 {strides = array<i32>} : memref<512x128xf32, #tpu.memory_space<vmem>>, vector<512x128xf32>,
    return
  }
  func.func @transform_0(%arg0: i32) -> (i32, i32) {
    %c0_i32 = arith.constant 0 : i32
    %c0_i32_0 = arith.constant 0 : i32
    return %arg0, %c0_i32 : i32, i32
  }
  func.func @transform_1(%arg0: i32) -> (i32, i32) {
    %c0_i32 = arith.constant 0 : i32
    %c0_i32_0 = arith.constant 0 : i32
    %c0_i32_1 = arith.constant 0 : i32
    return %c0_i32, %c0_i32_0 : i32, i32
  }
  func.func @transform_2(%arg0: i32) -> (i32, i32) {
    %c0_i32 = arith.constant 0 : i32
    %c0_i32_0 = arith.constant 0 : i32
    %c0_i32_1 = arith.constant 0 : i32
    return %c0_i32, %c0_i32_0 : i32, i32
  }
  func.func @transform_3(%arg0: i32) -> (i32, i32) {
    %c0_i32 = arith.constant 0 : i32
    %c0_i32_0 = arith.constant 0 : i32
    return %arg0, %c0_i32 : i32, i32
  }
}

module attributes {stable_mosaic.version = 11 : i64} {
  func.func @_conv_kernel(%arg0: i32, %arg1: memref<128x1152xbf16, #tpu.memory_space<vmem>>, %arg2: memref<1152x128xbf16, #tpu.memory_space<vmem>>, %arg3: memref<128x128xf32, #tpu.memory_space<vmem>>, %arg4: memref<1x2x128xf32, #tpu.memory_space<vmem>>) attributes {dimension_semantics = [#tpu.dimension_semantics<parallel>], iteration_bounds = array<i64: 1>, scalar_prefetch = 0 : i64, scratch_operands = 0 : i64, tpu.core_type = #tpu.core_type<tc>, window_params = [{transform_indices = @transform_0, window_bounds = array<i64: 128, 1152>}, {pipeline_mode = #tpu.pipeline_mode<synchronous>, transform_indices = @transform_1, window_bounds = array<i64: 1152, 128>}, {transform_indices = @transform_2, window_bounds = array<i64: 128, 128>}, {transform_indices = @transform_3, window_bounds = array<i64: 1, 2, 128>}]} {
    %c0 = arith.constant 0 : index
    %c0_0 = arith.constant 0 : index
    %0 = vector.load %arg1[%c0, %c0_0] : memref<128x1152xbf16, #tpu.memory_space<vmem>>, vector<128x1152xbf16>
    %c0_1 = arith.constant 0 : index
    %c0_2 = arith.constant 0 : index
    %1 = vector.load %arg2[%c0_1, %c0_2] : memref<1152x128xbf16, #tpu.memory_space<vmem>>, vector<1152x128xbf16>
    %cst = arith.constant dense<0.000000e+00> : vector<128x128xf32>
    %2 = tpu.matmul %0, %1, %cst {dimension_numbers = #tpu.dot_dimension_numbers<[1], [0], [0], [1], [0, 0, 1, 1], [], []>} : vector<128x1152xbf16>, vector<1152x128xbf16>, vector<128x128xf32> -> vector<128x128xf32>
    %c0_3 = arith.constant 0 : index
    %c0_4 = arith.constant 0 : index
    %3 = vector.load %arg3[%c0_3, %c0_4] : memref<128x128xf32, #tpu.memory_space<vmem>>, vector<128x128xf32>
    tpu.vector_store %arg3[%c0_3, %c0_4], %2 {strides = array<i32>} : memref<128x128xf32, #tpu.memory_space<vmem>>, vector<128x128xf32>,
    %cst_5 = arith.constant dense<0.000000e+00> : vector<128xf32>
    %4 = vector.multi_reduction <add>, %2, %cst_5 [0] : vector<128x128xf32> to vector<128xf32>
    %5 = vector.shape_cast %4 : vector<128xf32> to vector<1x128xf32>
    %c0_6 = arith.constant 0 : index
    %c0_7 = arith.constant 0 : index
    %c0_8 = arith.constant 0 : index
    %6 = vector.load %arg4[%c0_6, %c0_7, %c0_8] : memref<1x2x128xf32, #tpu.memory_space<vmem>>, vector<1x1x128xf32>
    %7 = vector.shape_cast %6 : vector<1x1x128xf32> to vector<1x128xf32>
    %8 = vector.shape_cast %5 : vector<1x128xf32> to vector<1x1x128xf32>
    tpu.vector_store %arg4[%c0_6, %c0_7, %c0_8], %8 {strides = array<i32>} : memref<1x2x128xf32, #tpu.memory_space<vmem>>, vector<1x1x128xf32>,
    %9 = arith.mulf %2, %2 : vector<128x128xf32>
    %cst_9 = arith.constant dense<0.000000e+00> : vector<128xf32>
    %10 = vector.multi_reduction <add>, %9, %cst_9 [0] : vector<128x128xf32> to vector<128xf32>
    %11 = vector.shape_cast %10 : vector<128xf32> to vector<1x128xf32>
    %c0_10 = arith.constant 0 : index
    %c1 = arith.constant 1 : index
    %c0_11 = arith.constant 0 : index
    %12 = vector.load %arg4[%c0_10, %c1, %c0_11] : memref<1x2x128xf32, #tpu.memory_space<vmem>>, vector<1x1x128xf32>
    %13 = vector.shape_cast %12 : vector<1x1x128xf32> to vector<1x128xf32>
    %14 = vector.shape_cast %11 : vector<1x128xf32> to vector<1x1x128xf32>
    tpu.vector_store %arg4[%c0_10, %c1, %c0_11], %14 {strides = array<i32>} : memref<1x2x128xf32, #tpu.memory_space<vmem>>, vector<1x1x128xf32>,
    return
  }
  func.func @transform_0(%arg0: i32) -> (i32, i32) {
    %c0_i32 = arith.constant 0 : i32
    %c0_i32_0 = arith.constant 0 : i32
    return %arg0, %c0_i32 : i32, i32
  }
  func.func @transform_1(%arg0: i32) -> (i32, i32) {
    %c0_i32 = arith.constant 0 : i32
    %c0_i32_0 = arith.constant 0 : i32
    %c0_i32_1 = arith.constant 0 : i32
    return %c0_i32, %c0_i32_0 : i32, i32
  }
  func.func @transform_2(%arg0: i32) -> (i32, i32) {
    %c0_i32 = arith.constant 0 : i32
    %c0_i32_0 = arith.constant 0 : i32
    return %arg0, %c0_i32 : i32, i32
  }
  func.func @transform_3(%arg0: i32) -> (i32, i32, i32) {
    %c0_i32 = arith.constant 0 : i32
    %c0_i32_0 = arith.constant 0 : i32
    %c0_i32_1 = arith.constant 0 : i32
    return %arg0, %c0_i32, %c0_i32_0 : i32, i32, i32
  }
}

module attributes {stable_mosaic.version = 11 : i64} {
  func.func @_bn_relu_kernel(%arg0: i32, %arg1: memref<128x128xf32, #tpu.memory_space<vmem>>, %arg2: memref<1x128xf32, #tpu.memory_space<vmem>>, %arg3: memref<1x128xf32, #tpu.memory_space<vmem>>, %arg4: memref<128x128xf32, #tpu.memory_space<vmem>>) attributes {dimension_semantics = [#tpu.dimension_semantics<parallel>], iteration_bounds = array<i64: 1>, scalar_prefetch = 0 : i64, scratch_operands = 0 : i64, tpu.core_type = #tpu.core_type<tc>, window_params = [{transform_indices = @transform_0, window_bounds = array<i64: 128, 128>}, {pipeline_mode = #tpu.pipeline_mode<synchronous>, transform_indices = @transform_1, window_bounds = array<i64: 1, 128>}, {pipeline_mode = #tpu.pipeline_mode<synchronous>, transform_indices = @transform_2, window_bounds = array<i64: 1, 128>}, {transform_indices = @transform_3, window_bounds = array<i64: 128, 128>}]} {
    %c0 = arith.constant 0 : index
    %c0_0 = arith.constant 0 : index
    %0 = vector.load %arg1[%c0, %c0_0] : memref<128x128xf32, #tpu.memory_space<vmem>>, vector<128x128xf32>
    %c0_1 = arith.constant 0 : index
    %c0_2 = arith.constant 0 : index
    %1 = vector.load %arg2[%c0_1, %c0_2] : memref<1x128xf32, #tpu.memory_space<vmem>>, vector<1x128xf32>
    %2 = vector.broadcast %1 : vector<1x128xf32> to vector<128x128xf32>
    %3 = arith.mulf %0, %2 : vector<128x128xf32>
    %c0_3 = arith.constant 0 : index
    %c0_4 = arith.constant 0 : index
    %4 = vector.load %arg3[%c0_3, %c0_4] : memref<1x128xf32, #tpu.memory_space<vmem>>, vector<1x128xf32>
    %5 = vector.broadcast %4 : vector<1x128xf32> to vector<128x128xf32>
    %6 = arith.addf %3, %5 : vector<128x128xf32>
    %cst = arith.constant 0.000000e+00 : f32
    %7 = vector.broadcast %cst : f32 to vector<128x128xf32>
    %8 = arith.maximumf %6, %7 : vector<128x128xf32>
    %c0_5 = arith.constant 0 : index
    %c0_6 = arith.constant 0 : index
    %9 = vector.load %arg4[%c0_5, %c0_6] : memref<128x128xf32, #tpu.memory_space<vmem>>, vector<128x128xf32>
    tpu.vector_store %arg4[%c0_5, %c0_6], %8 {strides = array<i32>} : memref<128x128xf32, #tpu.memory_space<vmem>>, vector<128x128xf32>,
    return
  }
  func.func @transform_0(%arg0: i32) -> (i32, i32) {
    %c0_i32 = arith.constant 0 : i32
    %c0_i32_0 = arith.constant 0 : i32
    return %arg0, %c0_i32 : i32, i32
  }
  func.func @transform_1(%arg0: i32) -> (i32, i32) {
    %c0_i32 = arith.constant 0 : i32
    %c0_i32_0 = arith.constant 0 : i32
    %c0_i32_1 = arith.constant 0 : i32
    return %c0_i32, %c0_i32_0 : i32, i32
  }
  func.func @transform_2(%arg0: i32) -> (i32, i32) {
    %c0_i32 = arith.constant 0 : i32
    %c0_i32_0 = arith.constant 0 : i32
    %c0_i32_1 = arith.constant 0 : i32
    return %c0_i32, %c0_i32_0 : i32, i32
  }
  func.func @transform_3(%arg0: i32) -> (i32, i32) {
    %c0_i32 = arith.constant 0 : i32
    %c0_i32_0 = arith.constant 0 : i32
    return %arg0, %c0_i32 : i32, i32
  }
}

module attributes {stable_mosaic.version = 11 : i64} {
  func.func @_conv_kernel(%arg0: i32, %arg1: memref<32x1152xbf16, #tpu.memory_space<vmem>>, %arg2: memref<1152x128xbf16, #tpu.memory_space<vmem>>, %arg3: memref<32x128xf32, #tpu.memory_space<vmem>>, %arg4: memref<1x2x128xf32, #tpu.memory_space<vmem>>) attributes {dimension_semantics = [#tpu.dimension_semantics<parallel>], iteration_bounds = array<i64: 1>, scalar_prefetch = 0 : i64, scratch_operands = 0 : i64, tpu.core_type = #tpu.core_type<tc>, window_params = [{transform_indices = @transform_0, window_bounds = array<i64: 32, 1152>}, {pipeline_mode = #tpu.pipeline_mode<synchronous>, transform_indices = @transform_1, window_bounds = array<i64: 1152, 128>}, {transform_indices = @transform_2, window_bounds = array<i64: 32, 128>}, {transform_indices = @transform_3, window_bounds = array<i64: 1, 2, 128>}]} {
    %c0 = arith.constant 0 : index
    %c0_0 = arith.constant 0 : index
    %0 = vector.load %arg1[%c0, %c0_0] : memref<32x1152xbf16, #tpu.memory_space<vmem>>, vector<32x1152xbf16>
    %c0_1 = arith.constant 0 : index
    %c0_2 = arith.constant 0 : index
    %1 = vector.load %arg2[%c0_1, %c0_2] : memref<1152x128xbf16, #tpu.memory_space<vmem>>, vector<1152x128xbf16>
    %cst = arith.constant dense<0.000000e+00> : vector<32x128xf32>
    %2 = tpu.matmul %0, %1, %cst {dimension_numbers = #tpu.dot_dimension_numbers<[1], [0], [0], [1], [0, 0, 1, 1], [], []>} : vector<32x1152xbf16>, vector<1152x128xbf16>, vector<32x128xf32> -> vector<32x128xf32>
    %c0_3 = arith.constant 0 : index
    %c0_4 = arith.constant 0 : index
    %3 = vector.load %arg3[%c0_3, %c0_4] : memref<32x128xf32, #tpu.memory_space<vmem>>, vector<32x128xf32>
    tpu.vector_store %arg3[%c0_3, %c0_4], %2 {strides = array<i32>} : memref<32x128xf32, #tpu.memory_space<vmem>>, vector<32x128xf32>,
    %cst_5 = arith.constant dense<0.000000e+00> : vector<128xf32>
    %4 = vector.multi_reduction <add>, %2, %cst_5 [0] : vector<32x128xf32> to vector<128xf32>
    %5 = vector.shape_cast %4 : vector<128xf32> to vector<1x128xf32>
    %c0_6 = arith.constant 0 : index
    %c0_7 = arith.constant 0 : index
    %c0_8 = arith.constant 0 : index
    %6 = vector.load %arg4[%c0_6, %c0_7, %c0_8] : memref<1x2x128xf32, #tpu.memory_space<vmem>>, vector<1x1x128xf32>
    %7 = vector.shape_cast %6 : vector<1x1x128xf32> to vector<1x128xf32>
    %8 = vector.shape_cast %5 : vector<1x128xf32> to vector<1x1x128xf32>
    tpu.vector_store %arg4[%c0_6, %c0_7, %c0_8], %8 {strides = array<i32>} : memref<1x2x128xf32, #tpu.memory_space<vmem>>, vector<1x1x128xf32>,
    %9 = arith.mulf %2, %2 : vector<32x128xf32>
    %cst_9 = arith.constant dense<0.000000e+00> : vector<128xf32>
    %10 = vector.multi_reduction <add>, %9, %cst_9 [0] : vector<32x128xf32> to vector<128xf32>
    %11 = vector.shape_cast %10 : vector<128xf32> to vector<1x128xf32>
    %c0_10 = arith.constant 0 : index
    %c1 = arith.constant 1 : index
    %c0_11 = arith.constant 0 : index
    %12 = vector.load %arg4[%c0_10, %c1, %c0_11] : memref<1x2x128xf32, #tpu.memory_space<vmem>>, vector<1x1x128xf32>
    %13 = vector.shape_cast %12 : vector<1x1x128xf32> to vector<1x128xf32>
    %14 = vector.shape_cast %11 : vector<1x128xf32> to vector<1x1x128xf32>
    tpu.vector_store %arg4[%c0_10, %c1, %c0_11], %14 {strides = array<i32>} : memref<1x2x128xf32, #tpu.memory_space<vmem>>, vector<1x1x128xf32>,
    return
  }
  func.func @transform_0(%arg0: i32) -> (i32, i32) {
    %c0_i32 = arith.constant 0 : i32
    %c0_i32_0 = arith.constant 0 : i32
    return %arg0, %c0_i32 : i32, i32
  }
  func.func @transform_1(%arg0: i32) -> (i32, i32) {
    %c0_i32 = arith.constant 0 : i32
    %c0_i32_0 = arith.constant 0 : i32
    %c0_i32_1 = arith.constant 0 : i32
    return %c0_i32, %c0_i32_0 : i32, i32
  }
  func.func @transform_2(%arg0: i32) -> (i32, i32) {
    %c0_i32 = arith.constant 0 : i32
    %c0_i32_0 = arith.constant 0 : i32
    return %arg0, %c0_i32 : i32, i32
  }
  func.func @transform_3(%arg0: i32) -> (i32, i32, i32) {
    %c0_i32 = arith.constant 0 : i32
    %c0_i32_0 = arith.constant 0 : i32
    %c0_i32_1 = arith.constant 0 : i32
    return %arg0, %c0_i32, %c0_i32_0 : i32, i32, i32
  }
}

module attributes {stable_mosaic.version = 11 : i64} {
  func.func @_bn_relu_kernel(%arg0: i32, %arg1: memref<32x128xf32, #tpu.memory_space<vmem>>, %arg2: memref<1x128xf32, #tpu.memory_space<vmem>>, %arg3: memref<1x128xf32, #tpu.memory_space<vmem>>, %arg4: memref<32x128xf32, #tpu.memory_space<vmem>>) attributes {dimension_semantics = [#tpu.dimension_semantics<parallel>], iteration_bounds = array<i64: 1>, scalar_prefetch = 0 : i64, scratch_operands = 0 : i64, tpu.core_type = #tpu.core_type<tc>, window_params = [{transform_indices = @transform_0, window_bounds = array<i64: 32, 128>}, {pipeline_mode = #tpu.pipeline_mode<synchronous>, transform_indices = @transform_1, window_bounds = array<i64: 1, 128>}, {pipeline_mode = #tpu.pipeline_mode<synchronous>, transform_indices = @transform_2, window_bounds = array<i64: 1, 128>}, {transform_indices = @transform_3, window_bounds = array<i64: 32, 128>}]} {
    %c0 = arith.constant 0 : index
    %c0_0 = arith.constant 0 : index
    %0 = vector.load %arg1[%c0, %c0_0] : memref<32x128xf32, #tpu.memory_space<vmem>>, vector<32x128xf32>
    %c0_1 = arith.constant 0 : index
    %c0_2 = arith.constant 0 : index
    %1 = vector.load %arg2[%c0_1, %c0_2] : memref<1x128xf32, #tpu.memory_space<vmem>>, vector<1x128xf32>
    %2 = vector.broadcast %1 : vector<1x128xf32> to vector<32x128xf32>
    %3 = arith.mulf %0, %2 : vector<32x128xf32>
    %c0_3 = arith.constant 0 : index
    %c0_4 = arith.constant 0 : index
    %4 = vector.load %arg3[%c0_3, %c0_4] : memref<1x128xf32, #tpu.memory_space<vmem>>, vector<1x128xf32>
    %5 = vector.broadcast %4 : vector<1x128xf32> to vector<32x128xf32>
    %6 = arith.addf %3, %5 : vector<32x128xf32>
    %cst = arith.constant 0.000000e+00 : f32
    %7 = vector.broadcast %cst : f32 to vector<32x128xf32>
    %8 = arith.maximumf %6, %7 : vector<32x128xf32>
    %c0_5 = arith.constant 0 : index
    %c0_6 = arith.constant 0 : index
    %9 = vector.load %arg4[%c0_5, %c0_6] : memref<32x128xf32, #tpu.memory_space<vmem>>, vector<32x128xf32>
    tpu.vector_store %arg4[%c0_5, %c0_6], %8 {strides = array<i32>} : memref<32x128xf32, #tpu.memory_space<vmem>>, vector<32x128xf32>,
    return
  }
  func.func @transform_0(%arg0: i32) -> (i32, i32) {
    %c0_i32 = arith.constant 0 : i32
    %c0_i32_0 = arith.constant 0 : i32
    return %arg0, %c0_i32 : i32, i32
  }
  func.func @transform_1(%arg0: i32) -> (i32, i32) {
    %c0_i32 = arith.constant 0 : i32
    %c0_i32_0 = arith.constant 0 : i32
    %c0_i32_1 = arith.constant 0 : i32
    return %c0_i32, %c0_i32_0 : i32, i32
  }
  func.func @transform_2(%arg0: i32) -> (i32, i32) {
    %c0_i32 = arith.constant 0 : i32
    %c0_i32_0 = arith.constant 0 : i32
    %c0_i32_1 = arith.constant 0 : i32
    return %c0_i32, %c0_i32_0 : i32, i32
  }
  func.func @transform_3(%arg0: i32) -> (i32, i32) {
    %c0_i32 = arith.constant 0 : i32
    %c0_i32_0 = arith.constant 0 : i32
    return %arg0, %c0_i32 : i32, i32
  }
}

module attributes {stable_mosaic.version = 11 : i64} {
  func.func @_conv_kernel(%arg0: i32, %arg1: memref<8x1152xbf16, #tpu.memory_space<vmem>>, %arg2: memref<1152x128xbf16, #tpu.memory_space<vmem>>, %arg3: memref<8x128xf32, #tpu.memory_space<vmem>>, %arg4: memref<1x2x128xf32, #tpu.memory_space<vmem>>) attributes {dimension_semantics = [#tpu.dimension_semantics<parallel>], iteration_bounds = array<i64: 1>, scalar_prefetch = 0 : i64, scratch_operands = 0 : i64, tpu.core_type = #tpu.core_type<tc>, window_params = [{transform_indices = @transform_0, window_bounds = array<i64: 8, 1152>}, {pipeline_mode = #tpu.pipeline_mode<synchronous>, transform_indices = @transform_1, window_bounds = array<i64: 1152, 128>}, {transform_indices = @transform_2, window_bounds = array<i64: 8, 128>}, {transform_indices = @transform_3, window_bounds = array<i64: 1, 2, 128>}]} {
    %c0 = arith.constant 0 : index
    %c0_0 = arith.constant 0 : index
    %0 = vector.load %arg1[%c0, %c0_0] : memref<8x1152xbf16, #tpu.memory_space<vmem>>, vector<8x1152xbf16>
    %c0_1 = arith.constant 0 : index
    %c0_2 = arith.constant 0 : index
    %1 = vector.load %arg2[%c0_1, %c0_2] : memref<1152x128xbf16, #tpu.memory_space<vmem>>, vector<1152x128xbf16>
    %cst = arith.constant dense<0.000000e+00> : vector<8x128xf32>
    %2 = tpu.matmul %0, %1, %cst {dimension_numbers = #tpu.dot_dimension_numbers<[1], [0], [0], [1], [0, 0, 1, 1], [], []>} : vector<8x1152xbf16>, vector<1152x128xbf16>, vector<8x128xf32> -> vector<8x128xf32>
    %c0_3 = arith.constant 0 : index
    %c0_4 = arith.constant 0 : index
    %3 = vector.load %arg3[%c0_3, %c0_4] : memref<8x128xf32, #tpu.memory_space<vmem>>, vector<8x128xf32>
    tpu.vector_store %arg3[%c0_3, %c0_4], %2 {strides = array<i32>} : memref<8x128xf32, #tpu.memory_space<vmem>>, vector<8x128xf32>,
    %cst_5 = arith.constant dense<0.000000e+00> : vector<128xf32>
    %4 = vector.multi_reduction <add>, %2, %cst_5 [0] : vector<8x128xf32> to vector<128xf32>
    %5 = vector.shape_cast %4 : vector<128xf32> to vector<1x128xf32>
    %c0_6 = arith.constant 0 : index
    %c0_7 = arith.constant 0 : index
    %c0_8 = arith.constant 0 : index
    %6 = vector.load %arg4[%c0_6, %c0_7, %c0_8] : memref<1x2x128xf32, #tpu.memory_space<vmem>>, vector<1x1x128xf32>
    %7 = vector.shape_cast %6 : vector<1x1x128xf32> to vector<1x128xf32>
    %8 = vector.shape_cast %5 : vector<1x128xf32> to vector<1x1x128xf32>
    tpu.vector_store %arg4[%c0_6, %c0_7, %c0_8], %8 {strides = array<i32>} : memref<1x2x128xf32, #tpu.memory_space<vmem>>, vector<1x1x128xf32>,
    %9 = arith.mulf %2, %2 : vector<8x128xf32>
    %cst_9 = arith.constant dense<0.000000e+00> : vector<128xf32>
    %10 = vector.multi_reduction <add>, %9, %cst_9 [0] : vector<8x128xf32> to vector<128xf32>
    %11 = vector.shape_cast %10 : vector<128xf32> to vector<1x128xf32>
    %c0_10 = arith.constant 0 : index
    %c1 = arith.constant 1 : index
    %c0_11 = arith.constant 0 : index
    %12 = vector.load %arg4[%c0_10, %c1, %c0_11] : memref<1x2x128xf32, #tpu.memory_space<vmem>>, vector<1x1x128xf32>
    %13 = vector.shape_cast %12 : vector<1x1x128xf32> to vector<1x128xf32>
    %14 = vector.shape_cast %11 : vector<1x128xf32> to vector<1x1x128xf32>
    tpu.vector_store %arg4[%c0_10, %c1, %c0_11], %14 {strides = array<i32>} : memref<1x2x128xf32, #tpu.memory_space<vmem>>, vector<1x1x128xf32>,
    return
  }
  func.func @transform_0(%arg0: i32) -> (i32, i32) {
    %c0_i32 = arith.constant 0 : i32
    %c0_i32_0 = arith.constant 0 : i32
    return %arg0, %c0_i32 : i32, i32
  }
  func.func @transform_1(%arg0: i32) -> (i32, i32) {
    %c0_i32 = arith.constant 0 : i32
    %c0_i32_0 = arith.constant 0 : i32
    %c0_i32_1 = arith.constant 0 : i32
    return %c0_i32, %c0_i32_0 : i32, i32
  }
  func.func @transform_2(%arg0: i32) -> (i32, i32) {
    %c0_i32 = arith.constant 0 : i32
    %c0_i32_0 = arith.constant 0 : i32
    return %arg0, %c0_i32 : i32, i32
  }
  func.func @transform_3(%arg0: i32) -> (i32, i32, i32) {
    %c0_i32 = arith.constant 0 : i32
    %c0_i32_0 = arith.constant 0 : i32
    %c0_i32_1 = arith.constant 0 : i32
    return %arg0, %c0_i32, %c0_i32_0 : i32, i32, i32
  }
}

module attributes {stable_mosaic.version = 11 : i64} {
  func.func @_bn_relu_kernel(%arg0: i32, %arg1: memref<8x128xf32, #tpu.memory_space<vmem>>, %arg2: memref<1x128xf32, #tpu.memory_space<vmem>>, %arg3: memref<1x128xf32, #tpu.memory_space<vmem>>, %arg4: memref<8x128xf32, #tpu.memory_space<vmem>>) attributes {dimension_semantics = [#tpu.dimension_semantics<parallel>], iteration_bounds = array<i64: 1>, scalar_prefetch = 0 : i64, scratch_operands = 0 : i64, tpu.core_type = #tpu.core_type<tc>, window_params = [{transform_indices = @transform_0, window_bounds = array<i64: 8, 128>}, {pipeline_mode = #tpu.pipeline_mode<synchronous>, transform_indices = @transform_1, window_bounds = array<i64: 1, 128>}, {pipeline_mode = #tpu.pipeline_mode<synchronous>, transform_indices = @transform_2, window_bounds = array<i64: 1, 128>}, {transform_indices = @transform_3, window_bounds = array<i64: 8, 128>}]} {
    %c0 = arith.constant 0 : index
    %c0_0 = arith.constant 0 : index
    %0 = vector.load %arg1[%c0, %c0_0] : memref<8x128xf32, #tpu.memory_space<vmem>>, vector<8x128xf32>
    %c0_1 = arith.constant 0 : index
    %c0_2 = arith.constant 0 : index
    %1 = vector.load %arg2[%c0_1, %c0_2] : memref<1x128xf32, #tpu.memory_space<vmem>>, vector<1x128xf32>
    %2 = vector.broadcast %1 : vector<1x128xf32> to vector<8x128xf32>
    %3 = arith.mulf %0, %2 : vector<8x128xf32>
    %c0_3 = arith.constant 0 : index
    %c0_4 = arith.constant 0 : index
    %4 = vector.load %arg3[%c0_3, %c0_4] : memref<1x128xf32, #tpu.memory_space<vmem>>, vector<1x128xf32>
    %5 = vector.broadcast %4 : vector<1x128xf32> to vector<8x128xf32>
    %6 = arith.addf %3, %5 : vector<8x128xf32>
    %cst = arith.constant 0.000000e+00 : f32
    %7 = vector.broadcast %cst : f32 to vector<8x128xf32>
    %8 = arith.maximumf %6, %7 : vector<8x128xf32>
    %c0_5 = arith.constant 0 : index
    %c0_6 = arith.constant 0 : index
    %9 = vector.load %arg4[%c0_5, %c0_6] : memref<8x128xf32, #tpu.memory_space<vmem>>, vector<8x128xf32>
    tpu.vector_store %arg4[%c0_5, %c0_6], %8 {strides = array<i32>} : memref<8x128xf32, #tpu.memory_space<vmem>>, vector<8x128xf32>,
    return
  }
  func.func @transform_0(%arg0: i32) -> (i32, i32) {
    %c0_i32 = arith.constant 0 : i32
    %c0_i32_0 = arith.constant 0 : i32
    return %arg0, %c0_i32 : i32, i32
  }
  func.func @transform_1(%arg0: i32) -> (i32, i32) {
    %c0_i32 = arith.constant 0 : i32
    %c0_i32_0 = arith.constant 0 : i32
    %c0_i32_1 = arith.constant 0 : i32
    return %c0_i32, %c0_i32_0 : i32, i32
  }
  func.func @transform_2(%arg0: i32) -> (i32, i32) {
    %c0_i32 = arith.constant 0 : i32
    %c0_i32_0 = arith.constant 0 : i32
    %c0_i32_1 = arith.constant 0 : i32
    return %c0_i32, %c0_i32_0 : i32, i32
  }
  func.func @transform_3(%arg0: i32) -> (i32, i32) {
    %c0_i32 = arith.constant 0 : i32
    %c0_i32_0 = arith.constant 0 : i32
    return %arg0, %c0_i32 : i32, i32
  }
}

module attributes {stable_mosaic.version = 11 : i64} {
  func.func @_conv_kernel(%arg0: i32, %arg1: memref<2x1152xbf16, #tpu.memory_space<vmem>>, %arg2: memref<1152x128xbf16, #tpu.memory_space<vmem>>, %arg3: memref<2x128xf32, #tpu.memory_space<vmem>>, %arg4: memref<1x2x128xf32, #tpu.memory_space<vmem>>) attributes {dimension_semantics = [#tpu.dimension_semantics<parallel>], iteration_bounds = array<i64: 1>, scalar_prefetch = 0 : i64, scratch_operands = 0 : i64, tpu.core_type = #tpu.core_type<tc>, window_params = [{transform_indices = @transform_0, window_bounds = array<i64: 2, 1152>}, {pipeline_mode = #tpu.pipeline_mode<synchronous>, transform_indices = @transform_1, window_bounds = array<i64: 1152, 128>}, {transform_indices = @transform_2, window_bounds = array<i64: 2, 128>}, {transform_indices = @transform_3, window_bounds = array<i64: 1, 2, 128>}]} {
    %c0 = arith.constant 0 : index
    %c0_0 = arith.constant 0 : index
    %0 = vector.load %arg1[%c0, %c0_0] : memref<2x1152xbf16, #tpu.memory_space<vmem>>, vector<2x1152xbf16>
    %c0_1 = arith.constant 0 : index
    %c0_2 = arith.constant 0 : index
    %1 = vector.load %arg2[%c0_1, %c0_2] : memref<1152x128xbf16, #tpu.memory_space<vmem>>, vector<1152x128xbf16>
    %cst = arith.constant dense<0.000000e+00> : vector<2x128xf32>
    %2 = tpu.matmul %0, %1, %cst {dimension_numbers = #tpu.dot_dimension_numbers<[1], [0], [0], [1], [0, 0, 1, 1], [], []>} : vector<2x1152xbf16>, vector<1152x128xbf16>, vector<2x128xf32> -> vector<2x128xf32>
    %c0_3 = arith.constant 0 : index
    %c0_4 = arith.constant 0 : index
    %3 = vector.load %arg3[%c0_3, %c0_4] : memref<2x128xf32, #tpu.memory_space<vmem>>, vector<2x128xf32>
    tpu.vector_store %arg3[%c0_3, %c0_4], %2 {strides = array<i32>} : memref<2x128xf32, #tpu.memory_space<vmem>>, vector<2x128xf32>,
    %cst_5 = arith.constant dense<0.000000e+00> : vector<128xf32>
    %4 = vector.multi_reduction <add>, %2, %cst_5 [0] : vector<2x128xf32> to vector<128xf32>
    %5 = vector.shape_cast %4 : vector<128xf32> to vector<1x128xf32>
    %c0_6 = arith.constant 0 : index
    %c0_7 = arith.constant 0 : index
    %c0_8 = arith.constant 0 : index
    %6 = vector.load %arg4[%c0_6, %c0_7, %c0_8] : memref<1x2x128xf32, #tpu.memory_space<vmem>>, vector<1x1x128xf32>
    %7 = vector.shape_cast %6 : vector<1x1x128xf32> to vector<1x128xf32>
    %8 = vector.shape_cast %5 : vector<1x128xf32> to vector<1x1x128xf32>
    tpu.vector_store %arg4[%c0_6, %c0_7, %c0_8], %8 {strides = array<i32>} : memref<1x2x128xf32, #tpu.memory_space<vmem>>, vector<1x1x128xf32>,
    %9 = arith.mulf %2, %2 : vector<2x128xf32>
    %cst_9 = arith.constant dense<0.000000e+00> : vector<128xf32>
    %10 = vector.multi_reduction <add>, %9, %cst_9 [0] : vector<2x128xf32> to vector<128xf32>
    %11 = vector.shape_cast %10 : vector<128xf32> to vector<1x128xf32>
    %c0_10 = arith.constant 0 : index
    %c1 = arith.constant 1 : index
    %c0_11 = arith.constant 0 : index
    %12 = vector.load %arg4[%c0_10, %c1, %c0_11] : memref<1x2x128xf32, #tpu.memory_space<vmem>>, vector<1x1x128xf32>
    %13 = vector.shape_cast %12 : vector<1x1x128xf32> to vector<1x128xf32>
    %14 = vector.shape_cast %11 : vector<1x128xf32> to vector<1x1x128xf32>
    tpu.vector_store %arg4[%c0_10, %c1, %c0_11], %14 {strides = array<i32>} : memref<1x2x128xf32, #tpu.memory_space<vmem>>, vector<1x1x128xf32>,
    return
  }
  func.func @transform_0(%arg0: i32) -> (i32, i32) {
    %c0_i32 = arith.constant 0 : i32
    %c0_i32_0 = arith.constant 0 : i32
    return %arg0, %c0_i32 : i32, i32
  }
  func.func @transform_1(%arg0: i32) -> (i32, i32) {
    %c0_i32 = arith.constant 0 : i32
    %c0_i32_0 = arith.constant 0 : i32
    %c0_i32_1 = arith.constant 0 : i32
    return %c0_i32, %c0_i32_0 : i32, i32
  }
  func.func @transform_2(%arg0: i32) -> (i32, i32) {
    %c0_i32 = arith.constant 0 : i32
    %c0_i32_0 = arith.constant 0 : i32
    return %arg0, %c0_i32 : i32, i32
  }
  func.func @transform_3(%arg0: i32) -> (i32, i32, i32) {
    %c0_i32 = arith.constant 0 : i32
    %c0_i32_0 = arith.constant 0 : i32
    %c0_i32_1 = arith.constant 0 : i32
    return %arg0, %c0_i32, %c0_i32_0 : i32, i32, i32
  }
}

module attributes {stable_mosaic.version = 11 : i64} {
  func.func @_bn_relu_kernel(%arg0: i32, %arg1: memref<2x128xf32, #tpu.memory_space<vmem>>, %arg2: memref<1x128xf32, #tpu.memory_space<vmem>>, %arg3: memref<1x128xf32, #tpu.memory_space<vmem>>, %arg4: memref<2x128xf32, #tpu.memory_space<vmem>>) attributes {dimension_semantics = [#tpu.dimension_semantics<parallel>], iteration_bounds = array<i64: 1>, scalar_prefetch = 0 : i64, scratch_operands = 0 : i64, tpu.core_type = #tpu.core_type<tc>, window_params = [{transform_indices = @transform_0, window_bounds = array<i64: 2, 128>}, {pipeline_mode = #tpu.pipeline_mode<synchronous>, transform_indices = @transform_1, window_bounds = array<i64: 1, 128>}, {pipeline_mode = #tpu.pipeline_mode<synchronous>, transform_indices = @transform_2, window_bounds = array<i64: 1, 128>}, {transform_indices = @transform_3, window_bounds = array<i64: 2, 128>}]} {
    %c0 = arith.constant 0 : index
    %c0_0 = arith.constant 0 : index
    %0 = vector.load %arg1[%c0, %c0_0] : memref<2x128xf32, #tpu.memory_space<vmem>>, vector<2x128xf32>
    %c0_1 = arith.constant 0 : index
    %c0_2 = arith.constant 0 : index
    %1 = vector.load %arg2[%c0_1, %c0_2] : memref<1x128xf32, #tpu.memory_space<vmem>>, vector<1x128xf32>
    %2 = vector.broadcast %1 : vector<1x128xf32> to vector<2x128xf32>
    %3 = arith.mulf %0, %2 : vector<2x128xf32>
    %c0_3 = arith.constant 0 : index
    %c0_4 = arith.constant 0 : index
    %4 = vector.load %arg3[%c0_3, %c0_4] : memref<1x128xf32, #tpu.memory_space<vmem>>, vector<1x128xf32>
    %5 = vector.broadcast %4 : vector<1x128xf32> to vector<2x128xf32>
    %6 = arith.addf %3, %5 : vector<2x128xf32>
    %cst = arith.constant 0.000000e+00 : f32
    %7 = vector.broadcast %cst : f32 to vector<2x128xf32>
    %8 = arith.maximumf %6, %7 : vector<2x128xf32>
    %c0_5 = arith.constant 0 : index
    %c0_6 = arith.constant 0 : index
    %9 = vector.load %arg4[%c0_5, %c0_6] : memref<2x128xf32, #tpu.memory_space<vmem>>, vector<2x128xf32>
    tpu.vector_store %arg4[%c0_5, %c0_6], %8 {strides = array<i32>} : memref<2x128xf32, #tpu.memory_space<vmem>>, vector<2x128xf32>,
    return
  }
  func.func @transform_0(%arg0: i32) -> (i32, i32) {
    %c0_i32 = arith.constant 0 : i32
    %c0_i32_0 = arith.constant 0 : i32
    return %arg0, %c0_i32 : i32, i32
  }
  func.func @transform_1(%arg0: i32) -> (i32, i32) {
    %c0_i32 = arith.constant 0 : i32
    %c0_i32_0 = arith.constant 0 : i32
    %c0_i32_1 = arith.constant 0 : i32
    return %c0_i32, %c0_i32_0 : i32, i32
  }
  func.func @transform_2(%arg0: i32) -> (i32, i32) {
    %c0_i32 = arith.constant 0 : i32
    %c0_i32_0 = arith.constant 0 : i32
    %c0_i32_1 = arith.constant 0 : i32
    return %c0_i32, %c0_i32_0 : i32, i32
  }
  func.func @transform_3(%arg0: i32) -> (i32, i32) {
    %c0_i32 = arith.constant 0 : i32
    %c0_i32_0 = arith.constant 0 : i32
    return %arg0, %c0_i32 : i32, i32
  }
}

</mosaic_0001>

<bundles_post_ra>
// kernel: encoder_forward.25
= control target key start
LH: loop header
LB: loop body
LE: loop exit
PB: predicated region body
PF: predicated region fallthrough
CT: control target
= control target key end

     0   :  { %s613_s12 = smov 0   ;;  %s1122_s0 = inlined_call_operand.vmem [shape: f32[2048,128], index: 0, kind: input, shape index: {}, may-alias: {0,3}]   ;;  %s1123_s1 = inlined_call_operand.vmem [shape: f32[1,128], index: 1, kind: input, shape index: {}]   ;;  %s1124_s2 = inlined_call_operand.vmem [shape: f32[1,128], index: 2, kind: input, shape index: {}]   ;;  %s1125_s3 = inlined_call_operand.vmem [shape: f32[2048,128], index: 3, kind: output, shape index: {}, may-alias: {0,3}]  }
   0x1 LB: > { %s564_s13 = sadd.s32 4294967295, %s591_s12   ;;  %p568_p0 = scmp.ge.s32.totalorder %s591_s12, 1  ;;  %s591_s12 = sphi %s613_s12, %s13_s12  }
   0x2   : > { %p138_p1 = scmp.lt.s32.totalorder %s591_s12, 5 }
   0x4   : > { %p139_p2 = pnand %p568_p0, %p138_p1 }
   0x6   : > { %142 = sbr.rel (%p139_p2) target bundleno = 75 (0x4b), region = 32 }
   0xd   : > { %s569_s14 = sshll.u32 %s564_s13, 6  ;;  %v627_v0 = vld [vmem:[%s1123_s1] ss:$0 sm:$0xff] }
   0xe   : > { %p163_p3 = scmp.lt.s32.totalorder %s569_s14, 255  ;;  %v639_v1 = vld [vmem:[%s1124_s2] ss:$0 sm:$0xff] }
  0x10   : > { %s1167_s14 = smov (!%p163_p3, %s569_s14), 255 }
  0x11   : > { %s570_s15 = sshll.u32 %s1167_s14, 3 }
  0x12   : > { %s634_s20 = scalar_lea.vmem %s1122_s0, %s570_s15  ;;  %s798_s25 = scalar_lea.vmem %s1125_s3, %s570_s15 }
  0x13   : > { %v174_v2 = vld [vmem:[%s634_s20] sm:$0xff]  ;;  %v175_v3 = vld [vmem:[%s634_s20 + $0x8] sm:$0xff]  ;;  %v176_v4 = vld [vmem:[%s634_s20 + $0x10] sm:$0xff] }
  0x14   : > { %v177_v5 = vld [vmem:[%s634_s20 + $0x18] sm:$0xff]  ;;  %v178_v6 = vld [vmem:[%s634_s20 + $0x20] sm:$0xff]  ;;  %v179_v7 = vld [vmem:[%s634_s20 + $0x28] sm:$0xff]  ;;  %v245_v8 = vmul.f32 %v627_v0, %v174_v2  ;;  %v246_v9 = vmul.f32 %v627_v0, %v175_v3  ;;  %v247_v10 = vmul.f32 %v627_v0, %v176_v4 }
  0x15   : > { %v180_v11 = vld [vmem:[%s634_s20 + $0x30] sm:$0xff]  ;;  %v181_v12 = vld [vmem:[%s634_s20 + $0x38] sm:$0xff]  ;;  %v248_v13 = vmul.f32 %v627_v0, %v177_v5  ;;  %v249_v14 = vmul.f32 %v627_v0, %v178_v6  ;;  %v250_v15 = vmul.f32 %v627_v0, %v179_v7  ;;  %v182_v20 = vld [vmem:[%s634_s20 + $0x40] sm:$0xff] }
  0x16   : > { %v656_v16 = vadd.f32 %v639_v1, %v245_v8  ;;  %v659_v17 = vadd.f32 %v639_v1, %v246_v9  ;;  %v662_v18 = vadd.f32 %v639_v1, %v247_v10  ;;  %v251_v19 = vmul.f32 %v627_v0, %v180_v11  ;;  %v183_v21 = vld [vmem:[%s634_s20 + $0x48] sm:$0xff]  ;;  %v184_v22 = vld [vmem:[%s634_s20 + $0x50] sm:$0xff]  ;;  %v185_v27 = vld [vmem:[%s634_s20 + $0x58] sm:$0xff] }
  0x17   : > { %v669_v23 = vadd.f32 %v639_v1, %v248_v13  ;;  %v672_v24 = vadd.f32 %v639_v1, %v249_v14  ;;  %v675_v25 = vadd.f32 %v639_v1, %v250_v15  ;;  %v252_v26 = vmul.f32 %v627_v0, %v181_v12  ;;  %v186_v28 = vld [vmem:[%s634_s20 + $0x60] sm:$0xff]  ;;  %v187_v29 = vld [vmem:[%s634_s20 + $0x68] sm:$0xff]  ;;  %v188_v34 = vld [vmem:[%s634_s20 + $0x70] sm:$0xff] }
  0x18   : > { %v685_v33 = vadd.f32 %v639_v1, %v251_v19  ;;  %v189_v39 = vld [vmem:[%s634_s20 + $0x78] sm:$0xff]  ;;  %v253_v41 = vmul.f32 %v627_v0, %v182_v20  ;;  %v254_v42 = vmul.f32 %v627_v0, %v183_v21  ;;  %v255_v43 = vmul.f32 %v627_v0, %v184_v22  ;;  %v190_v52 = vld [vmem:[%s634_s20 + $0x80] sm:$0xff]  ;;  %v191_v53 = vld [vmem:[%s634_s20 + $0x88] sm:$0xff] }
  0x19   : > { %v692_v38 = vadd.f32 %v639_v1, %v252_v26  ;;  %v256_v45 = vmul.f32 %v627_v0, %v185_v27  ;;  %v257_v46 = vmul.f32 %v627_v0, %v186_v28  ;;  %v258_v47 = vmul.f32 %v627_v0, %v187_v29  ;;  %v192_v54 = vld [vmem:[%s634_s20 + $0x90] sm:$0xff]  ;;  %v193_v59 = vld [vmem:[%s634_s20 + $0x98] sm:$0xff]  ;;  %v194_v60 = vld [vmem:[%s634_s20 + $0xa0] sm:$0xff] }
  0x1a   : > { %v704_v48 = vadd.f32 %v639_v1, %v253_v41  ;;  %v707_v49 = vadd.f32 %v639_v1, %v254_v42  ;;  %v710_v50 = vadd.f32 %v639_v1, %v255_v43  ;;  %v259_v51 = vmul.f32 %v627_v0, %v188_v34  ;;  %v195_v61 = vld [vmem:[%s634_s20 + $0xa8] sm:$0xff]  ;;  %v196_v4 = vld [vmem:[%s634_s20 + $0xb0] sm:$0xff]  ;;  %v197_v9 = vld [vmem:[%s634_s20 + $0xb8] sm:$0xff] }
  0x1b   : > { %v717_v55 = vadd.f32 %v639_v1, %v256_v45  ;;  %v720_v56 = vadd.f32 %v639_v1, %v257_v46  ;;  %v723_v57 = vadd.f32 %v639_v1, %v258_v47  ;;  %v260_v58 = vmul.f32 %v627_v0, %v189_v39  ;;  %v198_v28 = vld [vmem:[%s634_s20 + $0xc0] sm:$0xff]  ;;  %v199_v29 = vld [vmem:[%s634_s20 + $0xc8] sm:$0xff]  ;;  %v200_v34 = vld [vmem:[%s634_s20 + $0xd0] sm:$0xff] }
  0x1c   : > { %v733_v3 = vadd.f32 %v639_v1, %v259_v51  ;;  %v261_v11 = vmul.f32 %v627_v0, %v190_v52  ;;  %v262_v12 = vmul.f32 %v627_v0, %v191_v53  ;;  %v263_v13 = vmul.f32 %v627_v0, %v192_v54  ;;  %v201_v45 = vld [vmem:[%s634_s20 + $0xd8] sm:$0xff]  ;;  %v202_v46 = vld [vmem:[%s634_s20 + $0xe0] sm:$0xff]  ;;  %v203_v47 = vld [vmem:[%s634_s20 + $0xe8] sm:$0xff] }
  0x1d   : > { %v740_v8 = vadd.f32 %v639_v1, %v260_v58  ;;  %v264_v15 = vmul.f32 %v627_v0, %v193_v59  ;;  %v265_v19 = vmul.f32 %v627_v0, %v194_v60  ;;  %v266_v20 = vmul.f32 %v627_v0, %v195_v61  ;;  %v204_v58 = vld [vmem:[%s634_s20 + $0xf0] sm:$0xff]  ;;  %v785_v59 = vld [vmem:[%s634_s20 + $0xf8] sm:$0xff]  ;;  %v828_v61 = vld [vmem:[%s634_s20 + $0x148] sm:$0xff] }
  0x1e   : > { %v752_v21 = vadd.f32 %v639_v1, %v261_v11  ;;  %v755_v22 = vadd.f32 %v639_v1, %v262_v12  ;;  %v758_v26 = vadd.f32 %v639_v1, %v263_v13  ;;  %v267_v27 = vmul.f32 %v627_v0, %v196_v4  ;;  %v801_v11 = vld [vmem:[%s634_s20 + $0x100] sm:$0xff]  ;;  %v804_v12 = vld [vmem:[%s634_s20 + $0x108] sm:$0xff]  ;;  %v807_v13 = vld [vmem:[%s634_s20 + $0x110] sm:$0xff] }
  0x1f   : > { %v765_v39 = vadd.f32 %v639_v1, %v264_v15  ;;  %v768_v41 = vadd.f32 %v639_v1, %v265_v19  ;;  %v771_v42 = vadd.f32 %v639_v1, %v266_v20  ;;  %v268_v43 = vmul.f32 %v627_v0, %v197_v9  ;;  %v810_v15 = vld [vmem:[%s634_s20 + $0x118] sm:$0xff]  ;;  %v813_v19 = vld [vmem:[%s634_s20 + $0x120] sm:$0xff]  ;;  %v816_v20 = vld [vmem:[%s634_s20 + $0x128] sm:$0xff] }
  0x20   : > { %v781_v54 = vadd.f32 %v639_v1, %v267_v27  ;;  %v819_v27 = vld [vmem:[%s634_s20 + $0x130] sm:$0xff]  ;;  %v825_v4 = vld [vmem:[%s634_s20 + $0x140] sm:$0xff]  ;;  %v834_v53 = vld [vmem:[%s634_s20 + $0x158] sm:$0xff]  ;;  %v269_v32 = vmul.f32 %v627_v0, %v198_v28  ;;  %v270_v31 = vmul.f32 %v627_v0, %v199_v29  ;;  %v271_v30 = vmul.f32 %v627_v0, %v200_v34 }
  0x21   : > { %v791_v9 = vadd.f32 %v639_v1, %v268_v43  ;;  %v822_v43 = vld [vmem:[%s634_s20 + $0x138] sm:$0xff]  ;;  %v831_v60 = vld [vmem:[%s634_s20 + $0x150] sm:$0xff]  ;;  %v837_v52 = vld [vmem:[%s634_s20 + $0x160] sm:$0xff]  ;;  %v272_v28 = vmul.f32 %v627_v0, %v201_v45  ;;  %v273_v29 = vmul.f32 %v627_v0, %v202_v46  ;;  %v274_v34 = vmul.f32 %v627_v0, %v203_v47 }
  0x22   : > { %v840_v51 = vld [vmem:[%s634_s20 + $0x168] sm:$0xff]  ;;  %v843_v14 = vld [vmem:[%s634_s20 + $0x170] sm:$0xff]  ;;  %v846_v10 = vld [vmem:[%s634_s20 + $0x178] sm:$0xff]  ;;  %v402_v35 = vmax.f32 %v781_v54, 0.0  ;;  %v341_v45 = vadd.f32 %v639_v1, %v270_v31  ;;  %v342_v46 = vadd.f32 %v639_v1, %v271_v30  ;;  %v275_v47 = vmul.f32 %v627_v0, %v204_v58 }
  0x23   : > { %v849_v7 = vld [vmem:[%s634_s20 + $0x180] sm:$0xff]  ;;  %v852_v6 = vld [vmem:[%s634_s20 + $0x188] sm:$0xff]  ;;  %v855_v5 = vld [vmem:[%s634_s20 + $0x190] sm:$0xff]  ;;  %v1138_v31 = vmax.f32 %v669_v23, 0.0  ;;  %v1139_v30 = vmax.f32 %v672_v24, 0.0  ;;  %v1143_v23 = vmax.f32 %v704_v48, 0.0 }
  0x24   : > { %v858_v2 = vld [vmem:[%s634_s20 + $0x198] sm:$0xff]  ;;  %v861_v63 = vld [vmem:[%s634_s20 + $0x1a0] sm:$0xff]  ;;  %v864_v62 = vld [vmem:[%s634_s20 + $0x1a8] sm:$0xff]  ;;  %v1144_v24 = vmax.f32 %v707_v49, 0.0  ;;  %v1151_v48 = vmax.f32 %v752_v21, 0.0  ;;  %v1152_v49 = vmax.f32 %v755_v22, 0.0  ;;  %v345_v21 = vadd.f32 %v639_v1, %v274_v34 }
  0x25   : > { %1126 = vst [vmem:[#allocation2_spill] sm:$0xff] %v864_v62  ;;  %v867_v44 = vld [vmem:[%s634_s20 + $0x1b0] sm:$0xff]  ;;  %v870_v40 = vld [vmem:[%s634_s20 + $0x1b8] sm:$0xff]  ;;  %v873_v37 = vld [vmem:[%s634_s20 + $0x1c0] sm:$0xff]  ;;  %v276_v22 = vmul.f32 %v627_v0, %v785_v59  ;;  %v277_v59 = vmul.f32 %v627_v0, %v801_v11  ;;  %v278_v34 = vmul.f32 %v627_v0, %v804_v12 }
  0x26   : > { %1127 = vst [vmem:[#allocation3_spill] sm:$0xff] %v867_v44  ;;  %1128 = vst [vmem:[#allocation4_spill] sm:$0xff] %v870_v40  ;;  %v876_v36 = vld [vmem:[%s634_s20 + $0x1c8] sm:$0xff]  ;;  %v883_v62 = vld [vmem:[%s634_s20 + $0x1d0] sm:$0xff] }
  0x27   : > { %1129 = vst [vmem:[#allocation5_spill] sm:$0xff] %v876_v36  ;;  %v886_v44 = vld [vmem:[%s634_s20 + $0x1d8] sm:$0xff]  ;;  %v889_v40 = vld [vmem:[%s634_s20 + $0x1e0] sm:$0xff]  ;;  %v403_v36 = vmax.f32 %v791_v9, 0.0  ;;  %v896_v54 = vld [vmem:[%s634_s20 + $0x1e8] sm:$0xff]  ;;  %v340_v9 = vadd.f32 %v639_v1, %v269_v32  ;;  %v1145_v32 = vmax.f32 %v710_v50, 0.0  ;;  %v348_v11 = vadd.f32 %v639_v1, %v277_v59 }
  0x28   : > { %1130 = vst [vmem:[#allocation6_spill] sm:$0xff] %v886_v44  ;;  %1131 = vst [vmem:[#allocation7_spill] sm:$0xff] %v889_v40  ;;  %v899_v44 = vld [vmem:[%s634_s20 + $0x1f0] sm:$0xff]  ;;  %v902_v40 = vld [vmem:[%s634_s20 + $0x1f8] sm:$0xff]  ;;  %v1153_v50 = vmax.f32 %v758_v26, 0.0  ;;  %v349_v12 = vadd.f32 %v639_v1, %v278_v34 }
  0x29   : > { %1132 = vst [vmem:[#allocation8_spill] sm:$0xff] %v896_v54  ;;  %1133 = vst [vmem:[#allocation9_spill] sm:$0xff] %v899_v44  ;;  %v1135_v54 = vmax.f32 %v656_v16, 0.0  ;;  %v1136_v44 = vmax.f32 %v659_v17, 0.0  ;;  %v1140_v16 = vmax.f32 %v675_v25, 0.0  ;;  %v1141_v17 = vmax.f32 %v685_v33, 0.0 }
  0x2a   : > { %1134 = vst [vmem:[#allocation10_spill] sm:$0xff] %v902_v40  ;;  %v1137_v40 = vmax.f32 %v662_v18, 0.0  ;;  %447 = vst [vmem:[%s798_s25 + $0x18] sm:$0xff] %v1138_v31  ;;  %v1142_v18 = vmax.f32 %v692_v38, 0.0  ;;  %v1146_v25 = vmax.f32 %v717_v55, 0.0  ;;  %v1147_v33 = vmax.f32 %v720_v56, 0.0 }
  0x2b   : > { %444 = vst [vmem:[%s798_s25] sm:$0xff] %v1135_v54  ;;  %445 = vst [vmem:[%s798_s25 + $0x8] sm:$0xff] %v1136_v44  ;;  %v1148_v38 = vmax.f32 %v723_v57, 0.0  ;;  %v1150_v44 = vmax.f32 %v740_v8, 0.0  ;;  %v1154_v55 = vmax.f32 %v765_v39, 0.0  ;;  %v1155_v56 = vmax.f32 %v768_v41, 0.0 }
  0x2c   : > { %446 = vst [vmem:[%s798_s25 + $0x10] sm:$0xff] %v1137_v40  ;;  %448 = vst [vmem:[%s798_s25 + $0x20] sm:$0xff] %v1139_v30  ;;  %v1149_v40 = vmax.f32 %v733_v3, 0.0  ;;  %v1156_v57 = vmax.f32 %v771_v42, 0.0  ;;  %v343_v3 = vadd.f32 %v639_v1, %v272_v28  ;;  %v344_v8 = vadd.f32 %v639_v1, %v273_v29 }
  0x2d   : > { %449 = vst [vmem:[%s798_s25 + $0x28] sm:$0xff] %v1140_v16  ;;  %450 = vst [vmem:[%s798_s25 + $0x30] sm:$0xff] %v1141_v17  ;;  %v404_v26 = vmax.f32 %v340_v9, 0.0  ;;  %v405_v39 = vmax.f32 %v341_v45, 0.0  ;;  %v406_v41 = vmax.f32 %v342_v46, 0.0  ;;  %v346_v42 = vadd.f32 %v639_v1, %v275_v47  ;;  %v1158_v34 = vld [vmem:[#allocation3_spill] sm:$0xff] }
  0x2e   : > { %451 = vst [vmem:[%s798_s25 + $0x38] sm:$0xff] %v1142_v18  ;;  %452 = vst [vmem:[%s798_s25 + $0x40] sm:$0xff] %v1143_v23  ;;  %v408_v58 = vmax.f32 %v344_v8, 0.0  ;;  %v347_v28 = vadd.f32 %v639_v1, %v276_v22  ;;  %v279_v54 = vmul.f32 %v627_v0, %v807_v13  ;;  %v280_v45 = vmul.f32 %v627_v0, %v810_v15 }
  0x2f   : > { %453 = vst [vmem:[%s798_s25 + $0x48] sm:$0xff] %v1144_v24  ;;  %454 = vst [vmem:[%s798_s25 + $0x50] sm:$0xff] %v1145_v32  ;;  %v410_v29 = vmax.f32 %v346_v42, 0.0  ;;  %v281_v46 = vmul.f32 %v627_v0, %v813_v19  ;;  %v282_v47 = vmul.f32 %v627_v0, %v816_v20  ;;  %v283_v31 = vmul.f32 %v627_v0, %v819_v27 }
  0x30   : > { %455 = vst [vmem:[%s798_s25 + $0x58] sm:$0xff] %v1146_v25  ;;  %456 = vst [vmem:[%s798_s25 + $0x60] sm:$0xff] %v1147_v33  ;;  %v411_v9 = vmax.f32 %v347_v28, 0.0  ;;  %v350_v13 = vadd.f32 %v639_v1, %v279_v54  ;;  %v351_v15 = vadd.f32 %v639_v1, %v280_v45  ;;  %v284_v30 = vmul.f32 %v627_v0, %v822_v43  ;;  %v1159_v45 = vld [vmem:[#allocation4_spill] sm:$0xff] }
  0x31   : > { %457 = vst [vmem:[%s798_s25 + $0x68] sm:$0xff] %v1148_v38  ;;  %458 = vst [vmem:[%s798_s25 + $0x70] sm:$0xff] %v1149_v40  ;;  %v352_v19 = vadd.f32 %v639_v1, %v281_v46  ;;  %v353_v20 = vadd.f32 %v639_v1, %v282_v47  ;;  %v412_v16 = vmax.f32 %v348_v11, 0.0  ;;  %v413_v17 = vmax.f32 %v349_v12, 0.0 }
  0x32   : > { %459 = vst [vmem:[%s798_s25 + $0x78] sm:$0xff] %v1150_v44  ;;  %460 = vst [vmem:[%s798_s25 + $0x80] sm:$0xff] %v1151_v48  ;;  %v414_v18 = vmax.f32 %v350_v13, 0.0  ;;  %v354_v23 = vadd.f32 %v639_v1, %v283_v31  ;;  %v415_v27 = vmax.f32 %v351_v15, 0.0  ;;  %v355_v25 = vadd.f32 %v639_v1, %v284_v30 }
  0x33   : > { %461 = vst [vmem:[%s798_s25 + $0x88] sm:$0xff] %v1152_v49  ;;  %462 = vst [vmem:[%s798_s25 + $0x90] sm:$0xff] %v1153_v50  ;;  %v416_v24 = vmax.f32 %v352_v19, 0.0  ;;  %v417_v32 = vmax.f32 %v353_v20, 0.0  ;;  %v285_v43 = vmul.f32 %v627_v0, %v825_v4  ;;  %v286_v38 = vmul.f32 %v627_v0, %v828_v61 }
  0x34   : > { %463 = vst [vmem:[%s798_s25 + $0x98] sm:$0xff] %v1154_v55  ;;  %464 = vst [vmem:[%s798_s25 + $0xa0] sm:$0xff] %v1155_v56  ;;  %v418_v33 = vmax.f32 %v354_v23, 0.0  ;;  %v287_v40 = vmul.f32 %v627_v0, %v831_v60  ;;  %v419_v44 = vmax.f32 %v355_v25, 0.0  ;;  %v288_v48 = vmul.f32 %v627_v0, %v834_v53  ;;  %v1162_v25 = vld [vmem:[#allocation7_spill] sm:$0xff] }
  0x35   : > { %465 = vst [vmem:[%s798_s25 + $0xa8] sm:$0xff] %v1156_v57  ;;  %466 = vst [vmem:[%s798_s25 + $0xb0] sm:$0xff] %v402_v35  ;;  %v407_v35 = vmax.f32 %v343_v3, 0.0  ;;  %v289_v49 = vmul.f32 %v627_v0, %v837_v52  ;;  %v290_v50 = vmul.f32 %v627_v0, %v840_v51  ;;  %v356_v4 = vadd.f32 %v639_v1, %v285_v43  ;;  %v1163_v43 = vld [vmem:[#allocation8_spill] sm:$0xff] }
  0x36   : > { %467 = vst [vmem:[%s798_s25 + $0xb8] sm:$0xff] %v403_v36  ;;  %v409_v36 = vmax.f32 %v345_v21, 0.0  ;;  %468 = vst [vmem:[%s798_s25 + $0xc0] sm:$0xff] %v404_v26  ;;  %v357_v61 = vadd.f32 %v639_v1, %v286_v38  ;;  %v358_v60 = vadd.f32 %v639_v1, %v287_v40  ;;  %v291_v55 = vmul.f32 %v627_v0, %v843_v14 }
  0x37   : > { %469 = vst [vmem:[%s798_s25 + $0xc8] sm:$0xff] %v405_v39  ;;  %470 = vst [vmem:[%s798_s25 + $0xd0] sm:$0xff] %v406_v41  ;;  %v359_v53 = vadd.f32 %v639_v1, %v288_v48  ;;  %v360_v52 = vadd.f32 %v639_v1, %v289_v49  ;;  %v361_v51 = vadd.f32 %v639_v1, %v290_v50  ;;  %v420_v57 = vmax.f32 %v356_v4, 0.0 }
  0x38   : > { %471 = vst [vmem:[%s798_s25 + $0xd8] sm:$0xff] %v407_v35  ;;  %472 = vst [vmem:[%s798_s25 + $0xe0] sm:$0xff] %v408_v58  ;;  %v292_v56 = vmul.f32 %v627_v0, %v846_v10  ;;  %v421_v3 = vmax.f32 %v357_v61, 0.0  ;;  %v422_v8 = vmax.f32 %v358_v60, 0.0  ;;  %v362_v21 = vadd.f32 %v639_v1, %v291_v55  ;;  %v1165_v61 = vld [vmem:[#allocation10_spill] sm:$0xff] }
  0x39   : > { %473 = vst [vmem:[%s798_s25 + $0xe8] sm:$0xff] %v409_v36  ;;  %474 = vst [vmem:[%s798_s25 + $0xf0] sm:$0xff] %v410_v29  ;;  %v423_v14 = vmax.f32 %v359_v53, 0.0  ;;  %v424_v22 = vmax.f32 %v360_v52, 0.0  ;;  %v425_v26 = vmax.f32 %v361_v51, 0.0  ;;  %v293_v10 = vmul.f32 %v627_v0, %v849_v7  ;;  %v1157_v29 = vld [vmem:[#allocation2_spill] sm:$0xff] }
  0x3a   : > { %475 = vst [vmem:[%s798_s25 + $0xf8] sm:$0xff] %v411_v9  ;;  %476 = vst [vmem:[%s798_s25 + $0x100] sm:$0xff] %v412_v16  ;;  %v363_v39 = vadd.f32 %v639_v1, %v292_v56  ;;  %v426_v41 = vmax.f32 %v362_v21, 0.0  ;;  %v294_v42 = vmul.f32 %v627_v0, %v852_v6  ;;  %v295_v35 = vmul.f32 %v627_v0, %v855_v5 }
  0x3b   : > { %477 = vst [vmem:[%s798_s25 + $0x108] sm:$0xff] %v413_v17  ;;  %478 = vst [vmem:[%s798_s25 + $0x110] sm:$0xff] %v414_v18  ;;  %v296_v36 = vmul.f32 %v627_v0, %v858_v2  ;;  %v297_v28 = vmul.f32 %v627_v0, %v861_v63  ;;  %v298_v59 = vmul.f32 %v627_v0, %v1157_v29  ;;  %v1160_v17 = vld [vmem:[#allocation5_spill] sm:$0xff] }
  0x3c   : > { %479 = vst [vmem:[%s798_s25 + $0x118] sm:$0xff] %v415_v27  ;;  %480 = vst [vmem:[%s798_s25 + $0x120] sm:$0xff] %v416_v24  ;;  %v427_v58 = vmax.f32 %v363_v39, 0.0  ;;  %v364_v7 = vadd.f32 %v639_v1, %v293_v10  ;;  %v365_v6 = vadd.f32 %v639_v1, %v294_v42  ;;  %v366_v5 = vadd.f32 %v639_v1, %v295_v35  ;;  %v1161_v24 = vld [vmem:[#allocation6_spill] sm:$0xff] }
  0x3d   : > { %481 = vst [vmem:[%s798_s25 + $0x128] sm:$0xff] %v417_v32  ;;  %482 = vst [vmem:[%s798_s25 + $0x130] sm:$0xff] %v418_v33  ;;  %v299_v54 = vmul.f32 %v627_v0, %v1158_v34  ;;  %v367_v2 = vadd.f32 %v639_v1, %v296_v36  ;;  %v368_v63 = vadd.f32 %v639_v1, %v297_v28 }
  0x3e   : > { %483 = vst [vmem:[%s798_s25 + $0x138] sm:$0xff] %v419_v44  ;;  %484 = vst [vmem:[%s798_s25 + $0x140] sm:$0xff] %v420_v57  ;;  %v369_v9 = vadd.f32 %v639_v1, %v298_v59  ;;  %v300_v46 = vmul.f32 %v627_v0, %v1159_v45  ;;  %v428_v47 = vmax.f32 %v364_v7, 0.0  ;;  %v429_v11 = vmax.f32 %v365_v6, 0.0  ;;  %v1164_v44 = vld [vmem:[#allocation9_spill] sm:$0xff] }
  0x3f   : > { %485 = vst [vmem:[%s798_s25 + $0x148] sm:$0xff] %v421_v3  ;;  %486 = vst [vmem:[%s798_s25 + $0x150] sm:$0xff] %v422_v8  ;;  %v430_v12 = vmax.f32 %v366_v5, 0.0  ;;  %v370_v13 = vadd.f32 %v639_v1, %v299_v54  ;;  %v431_v31 = vmax.f32 %v367_v2, 0.0  ;;  %v432_v15 = vmax.f32 %v368_v63, 0.0 }
  0x40   : > { %487 = vst [vmem:[%s798_s25 + $0x158] sm:$0xff] %v423_v14  ;;  %488 = vst [vmem:[%s798_s25 + $0x160] sm:$0xff] %v424_v22  ;;  %v433_v19 = vmax.f32 %v369_v9, 0.0  ;;  %v371_v20 = vadd.f32 %v639_v1, %v300_v46  ;;  %v301_v16 = vmul.f32 %v627_v0, %v873_v37  ;;  %v302_v18 = vmul.f32 %v627_v0, %v1160_v17 }
  0x41   : > { %489 = vst [vmem:[%s798_s25 + $0x168] sm:$0xff] %v425_v26  ;;  %490 = vst [vmem:[%s798_s25 + $0x170] sm:$0xff] %v426_v41  ;;  %v434_v30 = vmax.f32 %v370_v13, 0.0  ;;  %v303_v23 = vmul.f32 %v627_v0, %v883_v62  ;;  %v304_v32 = vmul.f32 %v627_v0, %v1161_v24  ;;  %v305_v33 = vmul.f32 %v627_v0, %v1162_v25 }
  0x42   : > { %491 = vst [vmem:[%s798_s25 + $0x178] sm:$0xff] %v427_v58  ;;  %492 = vst [vmem:[%s798_s25 + $0x180] sm:$0xff] %v428_v47  ;;  %v435_v27 = vmax.f32 %v371_v20, 0.0  ;;  %v306_v38 = vmul.f32 %v627_v0, %v1163_v43  ;;  %v372_v37 = vadd.f32 %v639_v1, %v301_v16  ;;  %v373_v40 = vadd.f32 %v639_v1, %v302_v18 }
  0x43   : > { %493 = vst [vmem:[%s798_s25 + $0x188] sm:$0xff] %v429_v11  ;;  %494 = vst [vmem:[%s798_s25 + $0x190] sm:$0xff] %v430_v12  ;;  %v374_v62 = vadd.f32 %v639_v1, %v303_v23  ;;  %v307_v48 = vmul.f32 %v627_v0, %v1164_v44  ;;  %v375_v49 = vadd.f32 %v639_v1, %v304_v32 }
  0x44   : > { %495 = vst [vmem:[%s798_s25 + $0x198] sm:$0xff] %v431_v31  ;;  %496 = vst [vmem:[%s798_s25 + $0x1a0] sm:$0xff] %v432_v15  ;;  %v376_v50 = vadd.f32 %v639_v1, %v305_v33  ;;  %v377_v4 = vadd.f32 %v639_v1, %v306_v38  ;;  %v308_v60 = vmul.f32 %v627_v0, %v1165_v61  ;;  %v436_v55 = vmax.f32 %v372_v37, 0.0 }
  0x45   : > { %497 = vst [vmem:[%s798_s25 + $0x1a8] sm:$0xff] %v433_v19  ;;  %498 = vst [vmem:[%s798_s25 + $0x1b0] sm:$0xff] %v434_v30  ;;  %v437_v53 = vmax.f32 %v373_v40, 0.0  ;;  %v438_v52 = vmax.f32 %v374_v62, 0.0  ;;  %v378_v51 = vadd.f32 %v639_v1, %v307_v48  ;;  %v439_v56 = vmax.f32 %v375_v49, 0.0 }
  0x46   : > { %499 = vst [vmem:[%s798_s25 + $0x1b8] sm:$0xff] %v435_v27  ;;  %v440_v57 = vmax.f32 %v376_v50, 0.0  ;;  %v441_v3 = vmax.f32 %v377_v4, 0.0  ;;  %v379_v8 = vadd.f32 %v639_v1, %v308_v60  ;;  %500 = vst [vmem:[%s798_s25 + $0x1c0] sm:$0xff] %v436_v55 }
  0x47   : > { %501 = vst [vmem:[%s798_s25 + $0x1c8] sm:$0xff] %v437_v53  ;;  %502 = vst [vmem:[%s798_s25 + $0x1d0] sm:$0xff] %v438_v52  ;;  %v442_v21 = vmax.f32 %v378_v51, 0.0 }
  0x48   : > { %503 = vst [vmem:[%s798_s25 + $0x1d8] sm:$0xff] %v439_v56  ;;  %504 = vst [vmem:[%s798_s25 + $0x1e0] sm:$0xff] %v440_v57  ;;  %v443_v0 = vmax.f32 %v379_v8, 0.0 }
  0x49   : > { %505 = vst [vmem:[%s798_s25 + $0x1e8] sm:$0xff] %v441_v3  ;;  %506 = vst [vmem:[%s798_s25 + $0x1f0] sm:$0xff] %v442_v21 }
  0x4a   : > { %507 = vst [vmem:[%s798_s25 + $0x1f8] sm:$0xff] %v443_v0 }
  0x4b PF: > { %s13_s12 = sadd.s32 1, %s591_s12  }
  0x4c   : > { %p10_p4 = scmp.ge.s32.totalorder %s13_s12, 6  }
  0x4e   :  { %12 = sbr.rel (!%p10_p4) target bundleno = 1 (0x1), region = 62 }

// kernel: encoder_forward.24
= control target key start
LH: loop header
LB: loop body
LE: loop exit
PB: predicated region body
PF: predicated region fallthrough
CT: control target
= control target key end

     0   :  { %s5728_s12 = smov 0   ;;  %s6831_s0 = inlined_call_operand.vmem [shape: bf16[2048,1152], index: 0, kind: input, shape index: {}]   ;;  %s6832_s1 = inlined_call_operand.vmem [shape: bf16[1152,128], index: 1, kind: input, shape index: {}]   ;;  %s6833_s2 = inlined_call_operand.vmem [shape: f32[2048,128], index: 2, kind: output, shape index: {0}]   ;;  %s6834_s3 = inlined_call_operand.vmem [shape: f32[4,2,128], index: 3, kind: output, shape index: {1}]  }
   0x1 LB: > { %s5734_s13 = sadd.s32 4294967295, %s5705_s12   ;;  %p4361_p0 = scmp.ge.s32.totalorder %s5705_s12, 1  ;;  %s5705_s12 = sphi %s5728_s12, %s14_s12  }
   0x2   : > { %p142_p1 = scmp.lt.s32.totalorder %s5705_s12, 5 }
   0x4   : > { %p143_p2 = pnand %p4361_p0, %p142_p1 }
   0x6   : > { %146 = sbr.rel (%p143_p2) target bundleno = 885 (0x375), region = 28 }
   0xd   : > { %v5211_v0 = vld [vmem:[%s6832_s1] sm:$0xff]   ;;  %v5707_v1 = vmov 0   ;;  %v5213_v3 = vld [vmem:[%s6832_s1 + $0x8] sm:$0xff]   ;;  %v5215_v5 = vld [vmem:[%s6832_s1 + $0x10] sm:$0xff]   ;;  %s4362_s7 = sshll.u32 %s5734_s13, 6  ;;  %p184_p4 = scmp.lt.s32.totalorder %s5734_s13, 3 }
   0xe   : > { %2557 = vmatprep.subr.bf16.mxu1 %v5707_v1  ;;  %2846 = vmatprep.subr.bf16.mxu0 %v5707_v1  ;;  %v5746_v2 = vld [vmem:[%s6832_s1 + $0x80] sm:$0xff]   ;;  %v5756_v4 = vld [vmem:[%s6832_s1 + $0x88] sm:$0xff]   ;;  %v5767_v6 = vld [vmem:[%s6832_s1 + $0x90] sm:$0xff]   ;;  %p172_p3 = scmp.lt.s32.totalorder %s4362_s7, 255 }
   0xf   : > { %2558 = vmatpush1.bf16.msra.mxu1 %v5211_v0  ;;  %2847 = vmatpush1.bf16.msra.mxu0 %v5746_v2  ;;  %v5217_v7 = vld [vmem:[%s6832_s1 + $0x18] sm:$0xff]   ;;  %v5219_v9 = vld [vmem:[%s6832_s1 + $0x20] sm:$0xff]   ;;  %v5221_v11 = vld [vmem:[%s6832_s1 + $0x28] sm:$0xff]   ;;  %s6868_s13 = smov (!%p184_p4, %s5734_s13), 3 }
  0x10   : > { %2559 = vmatprep.subr.bf16.mxu1 %v5707_v1  ;;  %2848 = vmatprep.subr.bf16.mxu0 %v5707_v1  ;;  %v5778_v8 = vld [vmem:[%s6832_s1 + $0x98] sm:$0xff]   ;;  %v5789_v10 = vld [vmem:[%s6832_s1 + $0xa0] sm:$0xff]   ;;  %v5801_v12 = vld [vmem:[%s6832_s1 + $0xa8] sm:$0xff]   ;;  %s6866_s7 = smov (!%p172_p3, %s4362_s7), 255 }
  0x11   : > { %v5223_v13 = vld [vmem:[%s6832_s1 + $0x30] sm:$0xff]   ;;  %v5225_v15 = vld [vmem:[%s6832_s1 + $0x38] sm:$0xff]   ;;  %s5201_s20 = smul.u32 36, %s6866_s7  ;;  %v5227_v17 = vld [vmem:[%s6832_s1 + $0x40] sm:$0xff]  }
  0x12   : > { %v5814_v14 = vld [vmem:[%s6832_s1 + $0xb0] sm:$0xff]   ;;  %v5826_v16 = vld [vmem:[%s6832_s1 + $0xb8] sm:$0xff]   ;;  %v5842_v18 = vld [vmem:[%s6832_s1 + $0xc0] sm:$0xff]  }
  0x13   : > { %2560 = vmatpush1.bf16.msra.mxu1 %v5213_v3  ;;  %2849 = vmatpush1.bf16.msra.mxu0 %v5756_v4  ;;  %s5835_s27 = scalar_lea.vmem %s6831_s0, %s5201_s20  ;;  %v5229_v20 = vld [vmem:[%s6832_s1 + $0x48] sm:$0xff]   ;;  %v5231_v23 = vld [vmem:[%s6832_s1 + $0x50] sm:$0xff]   ;;  %v5233_v25 = vld [vmem:[%s6832_s1 + $0x58] sm:$0xff]  }
  0x14   : > { %2561 = vmatprep.subr.bf16.mxu1 %v5707_v1  ;;  %2850 = vmatprep.subr.bf16.mxu0 %v5707_v1  ;;  %v5245_v19 = vld [vmem:[%s5835_s27 + $0x4] ss:$36 sps:$4 sm:$0xff]   ;;  %v5248_v21 = vld [vmem:[%s5835_s27 + $0xc] ss:$36 sps:$4 sm:$0xff]   ;;  %v5877_v26 = vld [vmem:[%s6832_s1 + $0xd8] sm:$0xff]  }
  0x15   : > { %v5855_v22 = vld [vmem:[%s6832_s1 + $0xc8] sm:$0xff]   ;;  %2589 = vmatprep.mubr.bf16.mxu1 %v5245_v19  ;;  %2878 = vmatprep.mubr.bf16.mxu0 %v5248_v21  ;;  %v5866_v24 = vld [vmem:[%s6832_s1 + $0xd0] sm:$0xff]   ;;  %v5235_v27 = vld [vmem:[%s6832_s1 + $0x60] sm:$0xff]  }
  0x16   : > { %v5888_v28 = vld [vmem:[%s6832_s1 + $0xe0] sm:$0xff]   ;;  %v5237_v29 = vld [vmem:[%s6832_s1 + $0x68] sm:$0xff]   ;;  %v5239_v31 = vld [vmem:[%s6832_s1 + $0x70] sm:$0xff]  }
  0x17   : > { %2562 = vmatpush1.bf16.msra.mxu1 %v5215_v5  ;;  %2851 = vmatpush1.bf16.msra.mxu0 %v5767_v6  ;;  %v5899_v30 = vld [vmem:[%s6832_s1 + $0xe8] sm:$0xff]   ;;  %v5910_v32 = vld [vmem:[%s6832_s1 + $0xf0] sm:$0xff]   ;;  %v5241_v33 = vld [vmem:[%s6832_s1 + $0x78] sm:$0xff]  }
  0x18   : > { %2563 = vmatprep.subr.bf16.mxu1 %v5707_v1  ;;  %2852 = vmatprep.subr.bf16.mxu0 %v5707_v1  ;;  %v5921_v34 = vld [vmem:[%s6832_s1 + $0xf8] sm:$0xff]   ;;  %v5243_v35 = vld [vmem:[%s5835_s27] ss:$36 sps:$4 sm:$0xff]   ;;  %v5246_v36 = vld [vmem:[%s5835_s27 + $0x8] ss:$36 sps:$4 sm:$0xff]  }
  0x19   : > { %v5249_v37 = vld [vmem:[%s6832_s1 + $0x100] sm:$0xff]   ;;  %v5251_v38 = vld [vmem:[%s5835_s27 + $0x4c] ss:$36 sps:$4 sm:$0xff]   ;;  %v5253_v39 = vld [vmem:[%s5835_s27 + $0x54] ss:$36 sps:$4 sm:$0xff]  }
  0x1a   : > { %v5250_v40 = vld [vmem:[%s6832_s1 + $0x108] sm:$0xff]   ;;  %v5256_v42 = vld [vmem:[%s5835_s27 + $0x50] ss:$36 sps:$4 sm:$0xff]   ;;  %v5261_v45 = vld [vmem:[%s5835_s27 + $0x9c] ss:$36 sps:$4 sm:$0xff]  }
  0x1b   : > { %2564 = vmatpush1.bf16.msra.mxu1 %v5217_v7  ;;  %2853 = vmatpush1.bf16.msra.mxu0 %v5778_v8  ;;  %v5255_v41 = vld [vmem:[%s5835_s27 + $0x48] ss:$36 sps:$4 sm:$0xff]   ;;  %v5259_v43 = vld [vmem:[%s5835_s27 + $0x94] ss:$36 sps:$4 sm:$0xff]   ;;  %v5265_v49 = vld [vmem:[%s6832_s1 + $0x120] sm:$0xff]  }
  0x1c   : > { %2565 = vmatprep.subr.bf16.mxu1 %v5707_v1  ;;  %2854 = vmatprep.subr.bf16.mxu0 %v5707_v1  ;;  %v5257_v44 = vld [vmem:[%s6832_s1 + $0x110] sm:$0xff]   ;;  %v5258_v46 = vld [vmem:[%s6832_s1 + $0x118] sm:$0xff]   ;;  %v5269_v51 = vld [vmem:[%s5835_s27 + $0xe4] ss:$36 sps:$4 sm:$0xff]  }
  0x1d   : > { %v5263_v47 = vld [vmem:[%s5835_s27 + $0x90] ss:$36 sps:$4 sm:$0xff]   ;;  %v5264_v48 = vld [vmem:[%s5835_s27 + $0x98] ss:$36 sps:$4 sm:$0xff]   ;;  %v5266_v52 = vld [vmem:[%s6832_s1 + $0x128] sm:$0xff]  }
  0x1e   : > { %v5267_v50 = vld [vmem:[%s5835_s27 + $0xdc] ss:$36 sps:$4 sm:$0xff]   ;;  %v5275_v55 = vld [vmem:[%s5835_s27 + $0x124] ss:$36 sps:$4 sm:$0xff]   ;;  %v5273_v56 = vld [vmem:[%s6832_s1 + $0x130] sm:$0xff]  }
  0x1f   : > { %2566 = vmatpush1.bf16.msra.mxu1 %v5219_v9  ;;  %2855 = vmatpush1.bf16.msra.mxu0 %v5789_v10  ;;  %v5271_v53 = vld [vmem:[%s5835_s27 + $0xd8] ss:$36 sps:$4 sm:$0xff]   ;;  %v5272_v54 = vld [vmem:[%s5835_s27 + $0xe0] ss:$36 sps:$4 sm:$0xff]   ;;  %v5277_v57 = vld [vmem:[%s5835_s27 + $0x12c] ss:$36 sps:$4 sm:$0xff]  }
  0x20   : > { %2567 = vmatprep.subr.bf16.mxu1 %v5707_v1  ;;  %2856 = vmatprep.subr.bf16.mxu0 %v5707_v1  ;;  %v5274_v58 = vld [vmem:[%s6832_s1 + $0x138] sm:$0xff]   ;;  %v5279_v59 = vld [vmem:[%s5835_s27 + $0x120] ss:$36 sps:$4 sm:$0xff]   ;;  %v5280_v60 = vld [vmem:[%s5835_s27 + $0x128] ss:$36 sps:$4 sm:$0xff]  }
  0x21   : > { %v5281_v61 = vld [vmem:[%s6832_s1 + $0x140] sm:$0xff]   ;;  %v5283_v62 = vld [vmem:[%s5835_s27 + $0x16c] ss:$36 sps:$4 sm:$0xff]   ;;  %v5285_v63 = vld [vmem:[%s5835_s27 + $0x174] ss:$36 sps:$4 sm:$0xff]  }
  0x22   : > { %v5282_v0 = vld [vmem:[%s6832_s1 + $0x148] sm:$0xff]   ;;  %v5288_v3 = vld [vmem:[%s5835_s27 + $0x170] ss:$36 sps:$4 sm:$0xff]   ;;  %v5290_v7 = vld [vmem:[%s6832_s1 + $0x158] sm:$0xff]  }
  0x23   : > { %2568 = vmatpush1.bf16.msra.mxu1 %v5221_v11  ;;  %2857 = vmatpush1.bf16.msra.mxu0 %v5801_v12  ;;  %v5289_v5 = vld [vmem:[%s6832_s1 + $0x150] sm:$0xff]   ;;  %v5296_v9 = vld [vmem:[%s5835_s27 + $0x1b8] ss:$36 sps:$4 sm:$0xff]  }
  0x24   : > { %2569 = vmatprep.subr.bf16.mxu1 %v5707_v1  ;;  %2858 = vmatprep.subr.bf16.mxu0 %v5707_v1  ;;  %v5299_v11 = vld [vmem:[%s5835_s27 + $0x1fc] ss:$36 sps:$4 sm:$0xff]   ;;  %v5309_v21 = vld [vmem:[%s5835_s27 + $0x10] ss:$36 sps:$4 sm:$0xff]  }
  0x25   : > { %v5306_v19 = vld [vmem:[%s6832_s1 + $0x178] sm:$0xff]  }
  0x27   : > { %2570 = vmatpush1.bf16.msra.mxu1 %v5223_v13  ;;  %2859 = vmatpush1.bf16.msra.mxu0 %v5814_v14  ;;  %v5298_v13 = vld [vmem:[%s6832_s1 + $0x168] sm:$0xff]  }
  0x28   : > { %2571 = vmatprep.subr.bf16.mxu1 %v5707_v1  ;;  %2860 = vmatprep.subr.bf16.mxu0 %v5707_v1 }
  0x2b   : > { %2572 = vmatpush1.bf16.msra.mxu1 %v5225_v15  ;;  %2861 = vmatpush1.bf16.msra.mxu0 %v5826_v16  ;;  %v5304_v15 = vld [vmem:[%s5835_s27 + $0x200] ss:$36 sps:$4 sm:$0xff]  }
  0x2c   : > { %2573 = vmatprep.subr.bf16.mxu1 %v5707_v1  ;;  %2862 = vmatprep.subr.bf16.mxu0 %v5707_v1 }
  0x2f   : > { %2574 = vmatpush1.bf16.msra.mxu1 %v5227_v17  ;;  %2863 = vmatpush1.bf16.msra.mxu0 %v5842_v18  ;;  %v5305_v17 = vld [vmem:[%s6832_s1 + $0x170] sm:$0xff]  }
  0x30   : > { %2575 = vmatprep.subr.bf16.mxu1 %v5707_v1  ;;  %2864 = vmatprep.subr.bf16.mxu0 %v5707_v1 }
  0x33   : > { %2576 = vmatpush1.bf16.msra.mxu1 %v5229_v20  ;;  %2865 = vmatpush1.bf16.msra.mxu0 %v5855_v22  ;;  %v5312_v20 = vld [vmem:[%s5835_s27 + $0x240] ss:$36 sps:$4 sm:$0xff]  }
  0x34   : > { %2577 = vmatprep.subr.bf16.mxu1 %v5707_v1  ;;  %2866 = vmatprep.subr.bf16.mxu0 %v5707_v1 }
  0x37   : > { %2578 = vmatpush1.bf16.msra.mxu1 %v5231_v23  ;;  %2867 = vmatpush1.bf16.msra.mxu0 %v5866_v24  ;;  %v5313_v23 = vld [vmem:[%s6832_s1 + $0x180] sm:$0xff]  }
  0x38   : > { %2579 = vmatprep.subr.bf16.mxu1 %v5707_v1  ;;  %2868 = vmatprep.subr.bf16.mxu0 %v5707_v1 }
  0x3b   : > { %2580 = vmatpush1.bf16.msra.mxu1 %v5233_v25  ;;  %2869 = vmatpush1.bf16.msra.mxu0 %v5877_v26  ;;  %v5318_v25 = vld [vmem:[%s5835_s27 + $0x288] ss:$36 sps:$4 sm:$0xff]  }
  0x3c   : > { %2581 = vmatprep.subr.bf16.mxu1 %v5707_v1  ;;  %2870 = vmatprep.subr.bf16.mxu0 %v5707_v1 }
  0x3f   : > { %2582 = vmatpush1.bf16.msra.mxu1 %v5235_v27  ;;  %2871 = vmatpush1.bf16.msra.mxu0 %v5888_v28  ;;  %v5319_v27 = vld [vmem:[%s5835_s27 + $0x58] ss:$36 sps:$4 sm:$0xff]  }
  0x40   : > { %2583 = vmatprep.subr.bf16.mxu1 %v5707_v1  ;;  %2872 = vmatprep.subr.bf16.mxu0 %v5707_v1 }
  0x43   : > { %2584 = vmatpush1.bf16.msra.mxu1 %v5237_v29  ;;  %2873 = vmatpush1.bf16.msra.mxu0 %v5899_v30  ;;  %v5322_v29 = vld [vmem:[%s5835_s27 + $0xa4] ss:$36 sps:$4 sm:$0xff]  }
  0x44   : > { %2585 = vmatprep.subr.bf16.mxu1 %v5707_v1  ;;  %2874 = vmatprep.subr.bf16.mxu0 %v5707_v1 }
  0x47   : > { %2586 = vmatpush1.bf16.msra.mxu1 %v5239_v31  ;;  %2875 = vmatpush1.bf16.msra.mxu0 %v5910_v32  ;;  %v5324_v31 = vld [vmem:[%s5835_s27 + $0x2d0] ss:$36 sps:$4 sm:$0xff]  }
  0x48   : > { %2587 = vmatprep.subr.bf16.mxu1 %v5707_v1  ;;  %2876 = vmatprep.subr.bf16.mxu0 %v5707_v1 }
  0x4b   : > { %2588 = vmatpush1.bf16.msra.mxu1 %v5241_v33  ;;  %2877 = vmatpush1.bf16.msra.mxu0 %v5921_v34  ;;  %v5325_v33 = vld [vmem:[%s5835_s27 + $0xa0] ss:$36 sps:$4 sm:$0xff]  }
  0x4c   : > { %4849 = vmatprep.subr.bf16.mxu1 %v5707_v1  ;;  %3135 = vmatprep.subr.bf16.mxu0 %v5707_v1 }
  0x4e   : > { %2590 = vmatmul.mubr.bf16.vlgmr.msra.gmra.mrb[0].mxu1 %v5243_v35  ;;  %2879 = vmatmul.mubr.bf16.vlgmr.msra.gmra.mrb[0].mxu0 %v5246_v36  ;;  %v5329_v35 = vld [vmem:[%s5835_s27 + $0xec] ss:$36 sps:$4 sm:$0xff]   ;;  %v5365_v36 = vld [vmem:[%s6832_s1 + $0x1a0] sm:$0xff]  }
  0x4f   : > { %4865 = vmatpush1.bf16.msra.mxu1 %v5746_v2  ;;  %3136 = vmatpush1.bf16.msra.mxu0 %v5249_v37  ;;  %v5287_v2 = vld [vmem:[%s5835_s27 + $0x168] ss:$36 sps:$4 sm:$0xff]  }
  0x50   : > { %2597 = vmatprep.mubr.bf16.mxu1 %v5251_v38  ;;  %3137 = vmatprep.subr.bf16.mxu0 %v5707_v1  ;;  %v5378_v37 = vld [vmem:[%s6832_s1 + $0x1a8] sm:$0xff]   ;;  %v5331_v38 = vld [vmem:[%s5835_s27 + $0x318] ss:$36 sps:$4 sm:$0xff]  }
  0x51   : > { %2886 = vmatprep.mubr.bf16.mxu0 %v5253_v39  ;;  %4850 = vmatprep.subr.bf16.mxu1 %v5707_v1  ;;  %v5332_v39 = vld [vmem:[%s5835_s27 + $0xe8] ss:$36 sps:$4 sm:$0xff]  }
  0x53   : > { %4866 = vmatpush1.bf16.msra.mxu1 %v5756_v4  ;;  %3138 = vmatpush1.bf16.msra.mxu0 %v5250_v40  ;;  %v5291_v4 = vld [vmem:[%s5835_s27 + $0x1b4] ss:$36 sps:$4 sm:$0xff]   ;;  %v5333_v40 = vld [vmem:[%s5835_s27 + $0x364] ss:$36 sps:$4 sm:$0xff]  }
  0x54   : > { %4851 = vmatprep.subr.bf16.mxu1 %v5707_v1  ;;  %3139 = vmatprep.subr.bf16.mxu0 %v5707_v1 }
  0x56   : > { %2598 = vmatmul.mubr.bf16.gmra.mrb[4].mxu1 %v5255_v41  ;;  %2887 = vmatmul.mubr.bf16.gmra.mrb[4].mxu0 %v5256_v42  ;;  %v5335_v41 = vld [vmem:[%s5835_s27 + $0x134] ss:$36 sps:$4 sm:$0xff]  }
  0x57   : > { %2605 = vmatprep.mubr.bf16.mxu1 %v5259_v43  ;;  %3140 = vmatpush1.bf16.msra.mxu0 %v5257_v44  ;;  %v5391_v42 = vld [vmem:[%s6832_s1 + $0x1b0] sm:$0xff]   ;;  %v5404_v43 = vld [vmem:[%s6832_s1 + $0x1b8] sm:$0xff]   ;;  %v5337_v44 = vld [vmem:[%s5835_s27 + $0x360] ss:$36 sps:$4 sm:$0xff]  }
  0x58   : > { %2894 = vmatprep.mubr.bf16.mxu0 %v5261_v45  ;;  %3141 = vmatprep.subr.bf16.mxu0 %v5707_v1  ;;  %v5338_v45 = vld [vmem:[%s5835_s27 + $0x130] ss:$36 sps:$4 sm:$0xff]  }
  0x59   : > { %4867 = vmatpush1.bf16.msra.mxu1 %v5767_v6  ;;  %v5293_v6 = vld [vmem:[%s5835_s27 + $0x1bc] ss:$36 sps:$4 sm:$0xff]  }
  0x5a   : > { %4852 = vmatprep.subr.bf16.mxu1 %v5707_v1 }
  0x5b   : > { %3142 = vmatpush1.bf16.msra.mxu0 %v5258_v46  ;;  %v5340_v46 = vld [vmem:[%s5835_s27 + $0x3ac] ss:$36 sps:$4 sm:$0xff]  }
  0x5c   : > { %3143 = vmatprep.subr.bf16.mxu0 %v5707_v1 }
  0x5d   : > { %4868 = vmatpush1.bf16.msra.mxu1 %v5778_v8  ;;  %v5295_v8 = vld [vmem:[%s5835_s27 + $0x1b0] ss:$36 sps:$4 sm:$0xff]  }
  0x5e   : > { %2606 = vmatmul.mubr.bf16.gmra.mrb[8].mxu1 %v5263_v47  ;;  %4853 = vmatprep.subr.bf16.mxu1 %v5707_v1  ;;  %v5342_v47 = vld [vmem:[%s5835_s27 + $0x17c] ss:$36 sps:$4 sm:$0xff]  }
  0x5f   : > { %2895 = vmatmul.mubr.bf16.gmra.mrb[8].mxu0 %v5264_v48  ;;  %2613 = vmatprep.mubr.bf16.mxu1 %v5267_v50  ;;  %v5417_v48 = vld [vmem:[%s6832_s1 + $0x1c0] sm:$0xff]   ;;  %v5344_v50 = vld [vmem:[%s5835_s27 + $0x3a8] ss:$36 sps:$4 sm:$0xff]  }
  0x60   : > { %3144 = vmatpush1.bf16.msra.mxu0 %v5265_v49  ;;  %2902 = vmatprep.mubr.bf16.mxu0 %v5269_v51  ;;  %v5430_v49 = vld [vmem:[%s6832_s1 + $0x1c8] sm:$0xff]   ;;  %v5345_v51 = vld [vmem:[%s5835_s27 + $0x178] ss:$36 sps:$4 sm:$0xff]  }
  0x61   : > { %3145 = vmatprep.subr.bf16.mxu0 %v5707_v1  ;;  %4869 = vmatpush1.bf16.msra.mxu1 %v5789_v10  ;;  %v5297_v10 = vld [vmem:[%s6832_s1 + $0x160] sm:$0xff]  }
  0x62   : > { %4854 = vmatprep.subr.bf16.mxu1 %v5707_v1 }
  0x64   : > { %3146 = vmatpush1.bf16.msra.mxu0 %v5266_v52  ;;  %v5346_v52 = vld [vmem:[%s5835_s27 + $0x3f4] ss:$36 sps:$4 sm:$0xff]  }
  0x65   : > { %3147 = vmatprep.subr.bf16.mxu0 %v5707_v1  ;;  %4870 = vmatpush1.bf16.msra.mxu1 %v5801_v12  ;;  %v5301_v12 = vld [vmem:[%s5835_s27 + $0x204] ss:$36 sps:$4 sm:$0xff]  }
  0x66   : > { %2614 = vmatmul.mubr.bf16.gmra.mrb[12].mxu1 %v5271_v53  ;;  %4855 = vmatprep.subr.bf16.mxu1 %v5707_v1  ;;  %v5348_v53 = vld [vmem:[%s5835_s27 + $0x1c4] ss:$36 sps:$4 sm:$0xff]  }
  0x67   : > { %2903 = vmatmul.mubr.bf16.gmra.mrb[12].mxu0 %v5272_v54  ;;  %2621 = vmatprep.mubr.bf16.mxu1 %v5275_v55  ;;  %v5443_v54 = vld [vmem:[%s6832_s1 + $0x1d0] sm:$0xff]  }
  0x68   : > { %3148 = vmatpush1.bf16.msra.mxu0 %v5273_v56  ;;  %2910 = vmatprep.mubr.bf16.mxu0 %v5277_v57  ;;  %v5350_v55 = vld [vmem:[%s5835_s27 + $0x3f0] ss:$36 sps:$4 sm:$0xff]   ;;  %v5351_v56 = vld [vmem:[%s5835_s27 + $0x1c0] ss:$36 sps:$4 sm:$0xff]  }
  0x69   : > { %3149 = vmatprep.subr.bf16.mxu0 %v5707_v1  ;;  %4871 = vmatpush1.bf16.msra.mxu1 %v5814_v14  ;;  %v5303_v14 = vld [vmem:[%s5835_s27 + $0x1f8] ss:$36 sps:$4 sm:$0xff]  }
  0x6a   : > { %4856 = vmatprep.subr.bf16.mxu1 %v5707_v1  ;;  %v5353_v57 = vld [vmem:[%s5835_s27 + $0x43c] ss:$36 sps:$4 sm:$0xff]  }
  0x6c   : > { %3150 = vmatpush1.bf16.msra.mxu0 %v5274_v58  ;;  %v5355_v58 = vld [vmem:[%s5835_s27 + $0x20c] ss:$36 sps:$4 sm:$0xff]  }
  0x6d   : > { %3151 = vmatprep.subr.bf16.mxu0 %v5707_v1  ;;  %4872 = vmatpush1.bf16.msra.mxu1 %v5826_v16  ;;  %v5307_v16 = vld [vmem:[%s5835_s27 + $0x244] ss:$36 sps:$4 sm:$0xff]  }
  0x6e   : > { %2622 = vmatmul.mubr.bf16.gmra.mrb[16].mxu1 %v5279_v59  ;;  %4857 = vmatprep.subr.bf16.mxu1 %v5707_v1  ;;  %v5357_v59 = vld [vmem:[%s5835_s27 + $0x438] ss:$36 sps:$4 sm:$0xff]  }
  0x6f   : > { %2911 = vmatmul.mubr.bf16.gmra.mrb[16].mxu0 %v5280_v60  ;;  %2629 = vmatprep.mubr.bf16.mxu1 %v5283_v62  ;;  %v5358_v60 = vld [vmem:[%s5835_s27 + $0x208] ss:$36 sps:$4 sm:$0xff]   ;;  %v5456_v62 = vld [vmem:[%s6832_s1 + $0x1d8] sm:$0xff]  }
  0x70   : > { %3152 = vmatpush1.bf16.msra.mxu0 %v5281_v61  ;;  %2918 = vmatprep.mubr.bf16.mxu0 %v5285_v63  ;;  %v5359_v61 = vld [vmem:[%s5835_s27 + $0x484] ss:$36 sps:$4 sm:$0xff]   ;;  %v5361_v63 = vld [vmem:[%s5835_s27 + $0x254] ss:$36 sps:$4 sm:$0xff]  }
  0x71   : > { %3153 = vmatprep.subr.bf16.mxu0 %v5707_v1  ;;  %4873 = vmatpush1.bf16.msra.mxu1 %v5842_v18  ;;  %v5311_v18 = vld [vmem:[%s5835_s27 + $0x14] ss:$36 sps:$4 sm:$0xff]  }
  0x72   : > { %4858 = vmatprep.subr.bf16.mxu1 %v5707_v1 }
  0x74   : > { %3154 = vmatpush1.bf16.msra.mxu0 %v5282_v0  ;;  %v5363_v0 = vld [vmem:[%s5835_s27 + $0x480] ss:$36 sps:$4 sm:$0xff]  }
  0x75   : > { %3155 = vmatprep.subr.bf16.mxu0 %v5707_v1  ;;  %4874 = vmatpush1.bf16.msra.mxu1 %v5855_v22  ;;  %v5314_v22 = vld [vmem:[%s5835_s27 + $0x28c] ss:$36 sps:$4 sm:$0xff]  }
  0x76   : > { %2630 = vmatmul.mubr.bf16.gmra.mrb[20].mxu1 %v5287_v2  ;;  %4859 = vmatprep.subr.bf16.mxu1 %v5707_v1  ;;  %v5364_v2 = vld [vmem:[%s5835_s27 + $0x250] ss:$36 sps:$4 sm:$0xff]  }
  0x77   : > { %2919 = vmatmul.mubr.bf16.gmra.mrb[20].mxu0 %v5288_v3  ;;  %2637 = vmatprep.mubr.bf16.mxu1 %v5291_v4  ;;  %v5366_v3 = vld [vmem:[%s5835_s27 + $0x4cc] ss:$36 sps:$4 sm:$0xff]   ;;  %v5368_v4 = vld [vmem:[%s5835_s27 + $0x29c] ss:$36 sps:$4 sm:$0xff]  }
  0x78   : > { %3156 = vmatpush1.bf16.msra.mxu0 %v5289_v5  ;;  %2926 = vmatprep.mubr.bf16.mxu0 %v5293_v6  ;;  %v6141_v5 = vld [vmem:[%s6832_s1 + $0x200] sm:$0xff]   ;;  %v5370_v6 = vld [vmem:[%s5835_s27 + $0x4c8] ss:$36 sps:$4 sm:$0xff]  }
  0x79   : > { %3157 = vmatprep.subr.bf16.mxu0 %v5707_v1  ;;  %4875 = vmatpush1.bf16.msra.mxu1 %v5866_v24  ;;  %v5316_v24 = vld [vmem:[%s5835_s27 + $0x5c] ss:$36 sps:$4 sm:$0xff]  }
  0x7a   : > { %4860 = vmatprep.subr.bf16.mxu1 %v5707_v1 }
  0x7c   : > { %3158 = vmatpush1.bf16.msra.mxu0 %v5290_v7  ;;  %v5371_v7 = vld [vmem:[%s5835_s27 + $0x298] ss:$36 sps:$4 sm:$0xff]  }
  0x7d   : > { %3159 = vmatprep.subr.bf16.mxu0 %v5707_v1  ;;  %4876 = vmatpush1.bf16.msra.mxu1 %v5877_v26  ;;  %v5326_v26 = vld [vmem:[%s6832_s1 + $0x188] sm:$0xff]  }
  0x7e   : > { %2638 = vmatmul.mubr.bf16.gmra.mrb[24].mxu1 %v5295_v8  ;;  %4861 = vmatprep.subr.bf16.mxu1 %v5707_v1  ;;  %v5372_v8 = vld [vmem:[%s5835_s27 + $0x514] ss:$36 sps:$4 sm:$0xff]  }
  0x7f   : > { %2927 = vmatmul.mubr.bf16.gmra.mrb[24].mxu0 %v5296_v9  ;;  %2645 = vmatprep.mubr.bf16.mxu1 %v5299_v11  ;;  %v5470_v9 = vld [vmem:[%s6832_s1 + $0x1e0] sm:$0xff]   ;;  %v5376_v11 = vld [vmem:[%s5835_s27 + $0x510] ss:$36 sps:$4 sm:$0xff]  }
  0x80   : > { %3160 = vmatpush1.bf16.msra.mxu0 %v5297_v10  ;;  %2934 = vmatprep.mubr.bf16.mxu0 %v5301_v12  ;;  %v5374_v10 = vld [vmem:[%s5835_s27 + $0x2e4] ss:$36 sps:$4 sm:$0xff]  }
  0x81   : > { %3161 = vmatprep.subr.bf16.mxu0 %v5707_v1  ;;  %4877 = vmatpush1.bf16.msra.mxu1 %v5888_v28  ;;  %v5320_v28 = vld [vmem:[%s5835_s27 + $0x2d4] ss:$36 sps:$4 sm:$0xff]   ;;  %v5377_v12 = vld [vmem:[%s5835_s27 + $0x2e0] ss:$36 sps:$4 sm:$0xff]  }
  0x82   : > { %4862 = vmatprep.subr.bf16.mxu1 %v5707_v1 }
  0x84   : > { %3162 = vmatpush1.bf16.msra.mxu0 %v5298_v13  ;;  %v5379_v13 = vld [vmem:[%s5835_s27 + $0x55c] ss:$36 sps:$4 sm:$0xff]  }
  0x85   : > { %3163 = vmatprep.subr.bf16.mxu0 %v5707_v1  ;;  %4878 = vmatpush1.bf16.msra.mxu1 %v5899_v30  ;;  %v5339_v30 = vld [vmem:[%s6832_s1 + $0x190] sm:$0xff]  }
  0x86   : > { %2646 = vmatmul.mubr.bf16.gmra.mrb[28].mxu1 %v5303_v14  ;;  %4863 = vmatprep.subr.bf16.mxu1 %v5707_v1  ;;  %v5381_v14 = vld [vmem:[%s5835_s27 + $0x32c] ss:$36 sps:$4 sm:$0xff]  }
  0x87   : > { %2935 = vmatmul.mubr.bf16.gmra.mrb[28].mxu0 %v5304_v15  ;;  %2653 = vmatprep.mubr.bf16.mxu1 %v5307_v16  ;;  %v5483_v15 = vld [vmem:[%s6832_s1 + $0x1e8] sm:$0xff]   ;;  %v5383_v16 = vld [vmem:[%s5835_s27 + $0x558] ss:$36 sps:$4 sm:$0xff]  }
  0x88   : > { %3164 = vmatpush1.bf16.msra.mxu0 %v5305_v17  ;;  %3167 = vmatprep.mubr.bf16.mxu0 %v5311_v18  ;;  %v5384_v17 = vld [vmem:[%s5835_s27 + $0x328] ss:$36 sps:$4 sm:$0xff]  }
  0x89   : > { %3165 = vmatprep.subr.bf16.mxu0 %v5707_v1  ;;  %4879 = vmatpush1.bf16.msra.mxu1 %v5910_v32  ;;  %v5352_v32 = vld [vmem:[%s6832_s1 + $0x198] sm:$0xff]   ;;  %v5385_v18 = vld [vmem:[%s5835_s27 + $0x5a4] ss:$36 sps:$4 sm:$0xff]  }
  0x8a   : > { %4864 = vmatprep.subr.bf16.mxu1 %v5707_v1 }
  0x8c   : > { %3166 = vmatpush1.bf16.msra.mxu0 %v5306_v19  ;;  %v5387_v19 = vld [vmem:[%s5835_s27 + $0x374] ss:$36 sps:$4 sm:$0xff]  }
  0x8d   : > { %3424 = vmatprep.subr.bf16.mxu0 %v5707_v1  ;;  %4880 = vmatpush1.bf16.msra.mxu1 %v5921_v34  ;;  %v5327_v34 = vld [vmem:[%s5835_s27 + $0x31c] ss:$36 sps:$4 sm:$0xff]  }
  0x8e   : > { %2654 = vmatmul.mubr.bf16.gmra.mrb[32].mxu1 %v5312_v20  ;;  %4769 = vmatprep.subr.bf16.mxu1 %v6141_v5  ;;  %v5389_v20 = vld [vmem:[%s5835_s27 + $0x5a0] ss:$36 sps:$4 sm:$0xff]  }
  0x8f   : > { %3168 = vmatmul.mubr.bf16.vlgmr.msra.gmra.mrb[0].mxu0 %v5309_v21  ;;  %2661 = vmatprep.mubr.bf16.mxu1 %v5314_v22  ;;  %v5390_v21 = vld [vmem:[%s5835_s27 + $0x370] ss:$36 sps:$4 sm:$0xff]  }
  0x90   : > { %3425 = vmatpush1.bf16.msra.mxu0 %v5313_v23  ;;  %3175 = vmatprep.mubr.bf16.mxu0 %v5316_v24  ;;  %v5392_v22 = vld [vmem:[%s5835_s27 + $0x5ec] ss:$36 sps:$4 sm:$0xff]   ;;  %v5394_v23 = vld [vmem:[%s5835_s27 + $0x3bc] ss:$36 sps:$4 sm:$0xff]  }
  0x91   : > { %3426 = vmatprep.subr.bf16.mxu0 %v5707_v1  ;;  %v5497_v24 = vld [vmem:[%s6832_s1 + $0x1f0] sm:$0xff]  }
  0x94   : > { %3427 = vmatpush1.bf16.msra.mxu0 %v5326_v26  ;;  %v5397_v26 = vld [vmem:[%s5835_s27 + $0x3b8] ss:$36 sps:$4 sm:$0xff]  }
  0x95   : > { %3428 = vmatprep.subr.bf16.mxu0 %v5707_v1 }
  0x96   : > { %2662 = vmatmul.mubr.bf16.gmra.mrb[36].mxu1 %v5318_v25  ;;  %v5396_v25 = vld [vmem:[%s5835_s27 + $0x5e8] ss:$36 sps:$4 sm:$0xff]  }
  0x97   : > { %3176 = vmatmul.mubr.bf16.gmra.mrb[4].mxu0 %v5319_v27  ;;  %2669 = vmatprep.mubr.bf16.mxu1 %v5320_v28  ;;  %v5398_v27 = vld [vmem:[%s5835_s27 + $0x634] ss:$36 sps:$4 sm:$0xff]   ;;  %v5400_v28 = vld [vmem:[%s5835_s27 + $0x404] ss:$36 sps:$4 sm:$0xff]  }
  0x98   : > { %3183 = vmatprep.mubr.bf16.mxu0 %v5322_v29  ;;  %3429 = vmatpush1.bf16.msra.mxu0 %v5339_v30  ;;  %v5402_v29 = vld [vmem:[%s5835_s27 + $0x630] ss:$36 sps:$4 sm:$0xff]   ;;  %v5403_v30 = vld [vmem:[%s5835_s27 + $0x400] ss:$36 sps:$4 sm:$0xff]  }
  0x99   : > { %3430 = vmatprep.subr.bf16.mxu0 %v5707_v1 }
  0x9c   : > { %3431 = vmatpush1.bf16.msra.mxu0 %v5352_v32  ;;  %v5407_v32 = vld [vmem:[%s5835_s27 + $0x44c] ss:$36 sps:$4 sm:$0xff]  }
  0x9d   : > { %3432 = vmatprep.subr.bf16.mxu0 %v5707_v1 }
  0x9e   : > { %2670 = vmatmul.mubr.bf16.gmra.mrb[40].mxu1 %v5324_v31  ;;  %v5405_v31 = vld [vmem:[%s5835_s27 + $0x67c] ss:$36 sps:$4 sm:$0xff]  }
  0x9f   : > { %3184 = vmatmul.mubr.bf16.gmra.mrb[8].mxu0 %v5325_v33  ;;  %2677 = vmatprep.mubr.bf16.mxu1 %v5327_v34  ;;  %v5409_v33 = vld [vmem:[%s5835_s27 + $0x678] ss:$36 sps:$4 sm:$0xff]   ;;  %v5410_v34 = vld [vmem:[%s5835_s27 + $0x448] ss:$36 sps:$4 sm:$0xff]  }
  0xa0   : > { %3191 = vmatprep.mubr.bf16.mxu0 %v5329_v35  ;;  %3433 = vmatpush1.bf16.msra.mxu0 %v5365_v36  ;;  %v5411_v35 = vld [vmem:[%s5835_s27 + $0x6c4] ss:$36 sps:$4 sm:$0xff]   ;;  %v5413_v36 = vld [vmem:[%s5835_s27 + $0x494] ss:$36 sps:$4 sm:$0xff]  }
  0xa1   : > { %3434 = vmatprep.subr.bf16.mxu0 %v5707_v1 }
  0xa4   : > { %3435 = vmatpush1.bf16.msra.mxu0 %v5378_v37  ;;  %v5415_v37 = vld [vmem:[%s5835_s27 + $0x6c0] ss:$36 sps:$4 sm:$0xff]  }
  0xa5   : > { %3436 = vmatprep.subr.bf16.mxu0 %v5707_v1 }
  0xa6   : > { %2678 = vmatmul.mubr.bf16.gmra.mrb[44].mxu1 %v5331_v38  ;;  %v5416_v38 = vld [vmem:[%s5835_s27 + $0x490] ss:$36 sps:$4 sm:$0xff]  }
  0xa7   : > { %3192 = vmatmul.mubr.bf16.gmra.mrb[12].mxu0 %v5332_v39  ;;  %2685 = vmatprep.mubr.bf16.mxu1 %v5333_v40  ;;  %v5418_v39 = vld [vmem:[%s5835_s27 + $0x70c] ss:$36 sps:$4 sm:$0xff]   ;;  %v5420_v40 = vld [vmem:[%s5835_s27 + $0x4dc] ss:$36 sps:$4 sm:$0xff]  }
  0xa8   : > { %3199 = vmatprep.mubr.bf16.mxu0 %v5335_v41  ;;  %3437 = vmatpush1.bf16.msra.mxu0 %v5391_v42  ;;  %v5422_v41 = vld [vmem:[%s5835_s27 + $0x708] ss:$36 sps:$4 sm:$0xff]   ;;  %v5423_v42 = vld [vmem:[%s5835_s27 + $0x4d8] ss:$36 sps:$4 sm:$0xff]  }
  0xa9   : > { %3438 = vmatprep.subr.bf16.mxu0 %v5707_v1 }
  0xac   : > { %3439 = vmatpush1.bf16.msra.mxu0 %v5404_v43  ;;  %v5424_v43 = vld [vmem:[%s5835_s27 + $0x754] ss:$36 sps:$4 sm:$0xff]  }
  0xad   : > { %3440 = vmatprep.subr.bf16.mxu0 %v5707_v1 }
  0xae   : > { %2686 = vmatmul.mubr.bf16.gmra.mrb[48].mxu1 %v5337_v44  ;;  %v5426_v44 = vld [vmem:[%s5835_s27 + $0x524] ss:$36 sps:$4 sm:$0xff]  }
  0xaf   : > { %3200 = vmatmul.mubr.bf16.gmra.mrb[16].mxu0 %v5338_v45  ;;  %2693 = vmatprep.mubr.bf16.mxu1 %v5340_v46  ;;  %v5428_v45 = vld [vmem:[%s5835_s27 + $0x750] ss:$36 sps:$4 sm:$0xff]   ;;  %v5429_v46 = vld [vmem:[%s5835_s27 + $0x520] ss:$36 sps:$4 sm:$0xff]  }
  0xb0   : > { %3207 = vmatprep.mubr.bf16.mxu0 %v5342_v47  ;;  %3441 = vmatpush1.bf16.msra.mxu0 %v5417_v48  ;;  %v5431_v47 = vld [vmem:[%s5835_s27 + $0x79c] ss:$36 sps:$4 sm:$0xff]   ;;  %v5433_v48 = vld [vmem:[%s5835_s27 + $0x56c] ss:$36 sps:$4 sm:$0xff]  }
  0xb1   : > { %3442 = vmatprep.subr.bf16.mxu0 %v5707_v1 }
  0xb4   : > { %3443 = vmatpush1.bf16.msra.mxu0 %v5430_v49 }
  0xb5   : > { %3444 = vmatprep.subr.bf16.mxu0 %v5707_v1 }
  0xb6   : > { %2694 = vmatmul.mubr.bf16.gmra.mrb[52].mxu1 %v5344_v50 }
  0xb7   : > { %3208 = vmatmul.mubr.bf16.gmra.mrb[20].mxu0 %v5345_v51  ;;  %2701 = vmatprep.mubr.bf16.mxu1 %v5346_v52  ;;  %v5435_v51 = vld [vmem:[%s5835_s27 + $0x798] ss:$36 sps:$4 sm:$0xff]  }
  0xb8   : > { %3215 = vmatprep.mubr.bf16.mxu0 %v5348_v53  ;;  %3445 = vmatpush1.bf16.msra.mxu0 %v5443_v54  ;;  %v5436_v53 = vld [vmem:[%s5835_s27 + $0x568] ss:$36 sps:$4 sm:$0xff]  }
  0xb9   : > { %3446 = vmatprep.subr.bf16.mxu0 %v5707_v1  ;;  %v5437_v54 = vld [vmem:[%s5835_s27 + $0x7e4] ss:$36 sps:$4 sm:$0xff]  }
  0xbc   : > { %3447 = vmatpush1.bf16.msra.mxu0 %v5456_v62  ;;  %v5444_v62 = vld [vmem:[%s5835_s27 + $0x82c] ss:$36 sps:$4 sm:$0xff]  }
  0xbd   : > { %3448 = vmatprep.subr.bf16.mxu0 %v5707_v1 }
  0xbe   : > { %2702 = vmatmul.mubr.bf16.gmra.mrb[56].mxu1 %v5350_v55 }
  0xbf   : > { %3216 = vmatmul.mubr.bf16.gmra.mrb[24].mxu0 %v5351_v56  ;;  %2709 = vmatprep.mubr.bf16.mxu1 %v5353_v57  ;;  %v5439_v56 = vld [vmem:[%s5835_s27 + $0x5b4] ss:$36 sps:$4 sm:$0xff]  }
  0xc0   : > { %3223 = vmatprep.mubr.bf16.mxu0 %v5355_v58  ;;  %3449 = vmatpush1.bf16.msra.mxu0 %v5470_v9 }
  0xc1   : > { %3450 = vmatprep.subr.bf16.mxu0 %v5707_v1 }
  0xc4   : > { %3451 = vmatpush1.bf16.msra.mxu0 %v5483_v15  ;;  %v5455_v15 = vld [vmem:[%s5835_s27 + $0x640] ss:$36 sps:$4 sm:$0xff]  }
  0xc5   : > { %3452 = vmatprep.subr.bf16.mxu0 %v5707_v1 }
  0xc6   : > { %2710 = vmatmul.mubr.bf16.gmra.mrb[60].mxu1 %v5357_v59  ;;  %v5441_v59 = vld [vmem:[%s5835_s27 + $0x7e0] ss:$36 sps:$4 sm:$0xff]  }
  0xc7   : > { %3224 = vmatmul.mubr.bf16.gmra.mrb[28].mxu0 %v5358_v60  ;;  %2717 = vmatprep.mubr.bf16.mxu1 %v5359_v61  ;;  %v5442_v61 = vld [vmem:[%s5835_s27 + $0x5b0] ss:$36 sps:$4 sm:$0xff]  }
  0xc8   : > { %3231 = vmatprep.mubr.bf16.mxu0 %v5361_v63  ;;  %3453 = vmatpush1.bf16.msra.mxu0 %v5497_v24  ;;  %v5465_v24 = vld [vmem:[%s5835_s27 + $0x24c] ss:$36 sps:$4 sm:$0xff]  }
  0xc9   : > { %3454 = vmatprep.subr.bf16.mxu0 %v5707_v1  ;;  %v5511_v1 = vld [vmem:[%s6832_s1 + $0x1f8] sm:$0xff]  }
  0xcc   : > { %3455 = vmatpush1.bf16.msra.mxu0 %v5511_v1  ;;  %v5471_v1 = vld [vmem:[%s5835_s27 + $0x294] ss:$36 sps:$4 sm:$0xff]  }
  0xce   : > { %2718 = vmatmul.mubr.bf16.gmra.mrb[64].mxu1 %v5363_v0  ;;  %v5446_v0 = vld [vmem:[%s5835_s27 + $0x5fc] ss:$36 sps:$4 sm:$0xff]  }
  0xcf   : > { %3232 = vmatmul.mubr.bf16.gmra.mrb[32].mxu0 %v5364_v2  ;;  %2725 = vmatprep.mubr.bf16.mxu1 %v5366_v3 }
  0xd0   : > { %3239 = vmatprep.mubr.bf16.mxu0 %v5368_v4  ;;  %v5448_v4 = vld [vmem:[%s5835_s27 + $0x828] ss:$36 sps:$4 sm:$0xff]  }
  0xd6   : > { %2726 = vmatmul.mubr.bf16.gmra.mrb[68].mxu1 %v5370_v6 }
  0xd7   : > { %3240 = vmatmul.mubr.bf16.gmra.mrb[36].mxu0 %v5371_v7  ;;  %2733 = vmatprep.mubr.bf16.mxu1 %v5372_v8  ;;  %v5449_v7 = vld [vmem:[%s5835_s27 + $0x5f8] ss:$36 sps:$4 sm:$0xff]  }
  0xd8   : > { %3247 = vmatprep.mubr.bf16.mxu0 %v5374_v10  ;;  %v5450_v8 = vld [vmem:[%s5835_s27 + $0x874] ss:$36 sps:$4 sm:$0xff]   ;;  %v5452_v10 = vld [vmem:[%s5835_s27 + $0x644] ss:$36 sps:$4 sm:$0xff]  }
  0xde   : > { %2734 = vmatmul.mubr.bf16.gmra.mrb[72].mxu1 %v5376_v11 }
  0xdf   : > { %3248 = vmatmul.mubr.bf16.gmra.mrb[40].mxu0 %v5377_v12  ;;  %2741 = vmatprep.mubr.bf16.mxu1 %v5379_v13  ;;  %v5454_v13 = vld [vmem:[%s5835_s27 + $0x870] ss:$36 sps:$4 sm:$0xff]  }
  0xe0   : > { %3255 = vmatprep.mubr.bf16.mxu0 %v5381_v14 }
  0xe6   : > { %2742 = vmatmul.mubr.bf16.gmra.mrb[76].mxu1 %v5383_v16  ;;  %v5457_v16 = vld [vmem:[%s5835_s27 + $0x8bc] ss:$36 sps:$4 sm:$0xff]  }
  0xe7   : > { %3256 = vmatmul.mubr.bf16.gmra.mrb[44].mxu0 %v5384_v17  ;;  %2749 = vmatprep.mubr.bf16.mxu1 %v5385_v18  ;;  %v5459_v18 = vld [vmem:[%s5835_s27 + $0x68c] ss:$36 sps:$4 sm:$0xff]  }
  0xe8   : > { %3263 = vmatprep.mubr.bf16.mxu0 %v5387_v19 }
  0xee   : > { %2750 = vmatmul.mubr.bf16.gmra.mrb[80].mxu1 %v5389_v20 }
  0xef   : > { %3264 = vmatmul.mubr.bf16.gmra.mrb[48].mxu0 %v5390_v21  ;;  %2757 = vmatprep.mubr.bf16.mxu1 %v5392_v22  ;;  %v5461_v21 = vld [vmem:[%s5835_s27 + $0x8b8] ss:$36 sps:$4 sm:$0xff]  }
  0xf0   : > { %3271 = vmatprep.mubr.bf16.mxu0 %v5394_v23  ;;  %v5462_v23 = vld [vmem:[%s5835_s27 + $0x688] ss:$36 sps:$4 sm:$0xff]  }
  0xf6   : > { %2758 = vmatmul.mubr.bf16.gmra.mrb[84].mxu1 %v5396_v25 }
  0xf7   : > { %3272 = vmatmul.mubr.bf16.gmra.mrb[52].mxu0 %v5397_v26  ;;  %2765 = vmatprep.mubr.bf16.mxu1 %v5398_v27  ;;  %v5466_v26 = vld [vmem:[%s5835_s27 + $0x6d4] ss:$36 sps:$4 sm:$0xff]  }
  0xf8   : > { %3279 = vmatprep.mubr.bf16.mxu0 %v5400_v28 }
  0xfe   : > { %2766 = vmatmul.mubr.bf16.gmra.mrb[88].mxu1 %v5402_v29  ;;  %v5463_v29 = vld [vmem:[%s5835_s27 + $0x248] ss:$36 sps:$4 sm:$0xff]  }
  0xff   : > { %3280 = vmatmul.mubr.bf16.gmra.mrb[56].mxu0 %v5403_v30  ;;  %2773 = vmatprep.mubr.bf16.mxu1 %v5405_v31  ;;  %v5468_v31 = vld [vmem:[%s5835_s27 + $0x6d0] ss:$36 sps:$4 sm:$0xff]  }
 0x100   : > { %3287 = vmatprep.mubr.bf16.mxu0 %v5407_v32 }
 0x106   : > { %2774 = vmatmul.mubr.bf16.gmra.mrb[92].mxu1 %v5409_v33  ;;  %v5473_v33 = vld [vmem:[%s5835_s27 + $0x71c] ss:$36 sps:$4 sm:$0xff]  }
 0x107   : > { %3288 = vmatmul.mubr.bf16.gmra.mrb[60].mxu0 %v5410_v34  ;;  %2781 = vmatprep.mubr.bf16.mxu1 %v5411_v35  ;;  %v5490_v34 = vld [vmem:[%s6832_s1 + $0x208] sm:$0xff]   ;;  %v5510_v35 = vld [vmem:[%s6832_s1 + $0x210] sm:$0xff]  }
 0x108   : > { %3295 = vmatprep.mubr.bf16.mxu0 %v5413_v36 }
 0x10e   : > { %2782 = vmatmul.mubr.bf16.gmra.mrb[96].mxu1 %v5415_v37 }
 0x10f   : > { %3296 = vmatmul.mubr.bf16.gmra.mrb[64].mxu0 %v5416_v38  ;;  %2789 = vmatprep.mubr.bf16.mxu1 %v5418_v39  ;;  %v5475_v38 = vld [vmem:[%s5835_s27 + $0x290] ss:$36 sps:$4 sm:$0xff]  }
 0x110   : > { %3303 = vmatprep.mubr.bf16.mxu0 %v5420_v40  ;;  %v5476_v40 = vld [vmem:[%s5835_s27 + $0x718] ss:$36 sps:$4 sm:$0xff]  }
 0x116   : > { %2790 = vmatmul.mubr.bf16.gmra.mrb[100].mxu1 %v5422_v41  ;;  %v5477_v41 = vld [vmem:[%s5835_s27 + $0x2dc] ss:$36 sps:$4 sm:$0xff]  }
 0x117   : > { %3304 = vmatmul.mubr.bf16.gmra.mrb[68].mxu0 %v5423_v42  ;;  %2797 = vmatprep.mubr.bf16.mxu1 %v5424_v43  ;;  %v5530_v43 = vld [vmem:[%s6832_s1 + $0x218] sm:$0xff]  }
 0x118   : > { %3311 = vmatprep.mubr.bf16.mxu0 %v5426_v44 }
 0x11e   : > { %2798 = vmatmul.mubr.bf16.gmra.mrb[104].mxu1 %v5428_v45  ;;  %v5549_v45 = vld [vmem:[%s6832_s1 + $0x220] sm:$0xff]  }
 0x11f   : > { %3312 = vmatmul.mubr.bf16.gmra.mrb[72].mxu0 %v5429_v46  ;;  %2805 = vmatprep.mubr.bf16.mxu1 %v5431_v47  ;;  %v5481_v47 = vld [vmem:[%s5835_s27 + $0x2d8] ss:$36 sps:$4 sm:$0xff]  }
 0x120   : > { %3319 = vmatprep.mubr.bf16.mxu0 %v5433_v48 }
 0x121   : > { %v6199_v49 = vpop.f32.mrb[0].mxu1 }
 0x122   : > { %v2593_v50 = vpop.f32.mrb[1].mxu1 }
 0x123   : > { %v6202_v52 = vpop.f32.mrb[2].mxu1  ;;  %v5482_v50 = vld [vmem:[%s5835_s27 + $0x760] ss:$36 sps:$4 sm:$0xff]  }
 0x124   : > { %v2596_v55 = vpop.f32.mrb[3].mxu1 }
 0x125   : > { %v5568_v55 = vld [vmem:[%s6832_s1 + $0x228] sm:$0xff]  }
 0x126   : > { %2806 = vmatmul.mubr.bf16.gmra.mrb[108].mxu1 %v5435_v51  ;;  %v5484_v51 = vld [vmem:[%s5835_s27 + $0x324] ss:$36 sps:$4 sm:$0xff]  }
 0x127   : > { %3320 = vmatmul.mubr.bf16.gmra.mrb[76].mxu0 %v5436_v53  ;;  %2813 = vmatprep.mubr.bf16.mxu1 %v5437_v54  ;;  %v5486_v54 = vld [vmem:[%s5835_s27 + $0x7ac] ss:$36 sps:$4 sm:$0xff]  }
 0x128   : > { %3327 = vmatprep.mubr.bf16.mxu0 %v5439_v56  ;;  %v5587_v56 = vld [vmem:[%s6832_s1 + $0x230] sm:$0xff]  }
 0x129   : > { %v6207_v57 = vpop.f32.mrb[4].mxu1 }
 0x12a   : > { %v2601_v58 = vpop.f32.mrb[5].mxu1 }
 0x12b   : > { %v6210_v60 = vpop.f32.mrb[6].mxu1  ;;  %v5488_v58 = vld [vmem:[%s5835_s27 + $0x320] ss:$36 sps:$4 sm:$0xff]  }
 0x12c   : > { %v2604_v63 = vpop.f32.mrb[7].mxu1 }
 0x12d   : > { %v5495_v63 = vld [vmem:[%s5835_s27 + $0x368] ss:$36 sps:$4 sm:$0xff]  }
 0x12e   : > { %2814 = vmatmul.mubr.bf16.gmra.mrb[112].mxu1 %v5441_v59  ;;  %v5489_v59 = vld [vmem:[%s5835_s27 + $0x7a8] ss:$36 sps:$4 sm:$0xff]  }
 0x12f   : > { %3328 = vmatmul.mubr.bf16.gmra.mrb[80].mxu0 %v5442_v61  ;;  %2821 = vmatprep.mubr.bf16.mxu1 %v5444_v62  ;;  %v5491_v61 = vld [vmem:[%s5835_s27 + $0x36c] ss:$36 sps:$4 sm:$0xff]   ;;  %v5493_v62 = vld [vmem:[%s5835_s27 + $0x7f4] ss:$36 sps:$4 sm:$0xff]  }
 0x130   : > { %3335 = vmatprep.mubr.bf16.mxu0 %v5446_v0  ;;  %v5496_v0 = vld [vmem:[%s5835_s27 + $0x7f0] ss:$36 sps:$4 sm:$0xff]  }
 0x131   : > { %v6215_v2 = vpop.f32.mrb[8].mxu1 }
 0x132   : > { %v2609_v3 = vpop.f32.mrb[9].mxu1 }
 0x133   : > { %v6218_v6 = vpop.f32.mrb[10].mxu1  ;;  %v5498_v3 = vld [vmem:[%s5835_s27 + $0x3b4] ss:$36 sps:$4 sm:$0xff]  }
 0x134   : > { %v2612_v9 = vpop.f32.mrb[11].mxu1 }
 0x135   : > { %v5504_v9 = vld [vmem:[%s5835_s27 + $0x3fc] ss:$36 sps:$4 sm:$0xff]  }
 0x136   : > { %2822 = vmatmul.mubr.bf16.gmra.mrb[116].mxu1 %v5448_v4  ;;  %v5500_v4 = vld [vmem:[%s5835_s27 + $0x83c] ss:$36 sps:$4 sm:$0xff]  }
 0x137   : > { %3336 = vmatmul.mubr.bf16.gmra.mrb[84].mxu0 %v5449_v7  ;;  %2829 = vmatprep.mubr.bf16.mxu1 %v5450_v8  ;;  %v5502_v7 = vld [vmem:[%s5835_s27 + $0x3b0] ss:$36 sps:$4 sm:$0xff]   ;;  %v5503_v8 = vld [vmem:[%s5835_s27 + $0x838] ss:$36 sps:$4 sm:$0xff]  }
 0x138   : > { %3343 = vmatprep.mubr.bf16.mxu0 %v5452_v10  ;;  %v5506_v10 = vld [vmem:[%s5835_s27 + $0x884] ss:$36 sps:$4 sm:$0xff]  }
 0x139   : > { %v6223_v11 = vpop.f32.mrb[12].mxu1 }
 0x13a   : > { %v2617_v12 = vpop.f32.mrb[13].mxu1 }
 0x13b   : > { %v6226_v14 = vpop.f32.mrb[14].mxu1  ;;  %v5606_v12 = vld [vmem:[%s6832_s1 + $0x238] sm:$0xff]  }
 0x13c   : > { %v2620_v17 = vpop.f32.mrb[15].mxu1 }
 0x13d   : > { %v5514_v17 = vld [vmem:[%s5835_s27 + $0x8cc] ss:$36 sps:$4 sm:$0xff]  }
 0x13e   : > { %2830 = vmatmul.mubr.bf16.gmra.mrb[120].mxu1 %v5454_v13  ;;  %v5508_v13 = vld [vmem:[%s5835_s27 + $0x3f8] ss:$36 sps:$4 sm:$0xff]  }
 0x13f   : > { %3344 = vmatmul.mubr.bf16.gmra.mrb[88].mxu0 %v5455_v15  ;;  %2837 = vmatprep.mubr.bf16.mxu1 %v5457_v16  ;;  %v5509_v15 = vld [vmem:[%s5835_s27 + $0x880] ss:$36 sps:$4 sm:$0xff]  }
 0x140   : > { %3351 = vmatprep.mubr.bf16.mxu0 %v5459_v18  ;;  %v5512_v16 = vld [vmem:[%s5835_s27 + $0x444] ss:$36 sps:$4 sm:$0xff]  }
 0x141   : > { %v6231_v19 = vpop.f32.mrb[16].mxu1  ;;  %v5516_v18 = vld [vmem:[%s5835_s27 + $0x440] ss:$36 sps:$4 sm:$0xff]  }
 0x142   : > { %v2625_v20 = vpop.f32.mrb[17].mxu1 }
 0x143   : > { %v6234_v22 = vpop.f32.mrb[18].mxu1  ;;  %v5517_v20 = vld [vmem:[%s5835_s27 + $0x8c8] ss:$36 sps:$4 sm:$0xff]  }
 0x144   : > { %v2628_v25 = vpop.f32.mrb[19].mxu1 }
 0x145   : > { %v5520_v25 = vld [vmem:[%s5835_s27 + $0x18] ss:$36 sps:$4 sm:$0xff]  }
 0x146   : > { %2838 = vmatmul.mubr.bf16.gmra.mrb[124].mxu1 %v5461_v21  ;;  %v5518_v21 = vld [vmem:[%s5835_s27 + $0x48c] ss:$36 sps:$4 sm:$0xff]  }
 0x147   : > { %3352 = vmatmul.mubr.bf16.gmra.mrb[92].mxu0 %v5462_v23  ;;  %2942 = vmatprep.mubr.bf16.mxu1 %v5465_v24  ;;  %v5522_v23 = vld [vmem:[%s5835_s27 + $0x1c] ss:$36 sps:$4 sm:$0xff]   ;;  %v5523_v24 = vld [vmem:[%s5835_s27 + $0x488] ss:$36 sps:$4 sm:$0xff]  }
 0x148   : > { %3359 = vmatprep.mubr.bf16.mxu0 %v5466_v26  ;;  %v5524_v26 = vld [vmem:[%s5835_s27 + $0x4d4] ss:$36 sps:$4 sm:$0xff]  }
 0x149   : > { %v6239_v27 = vpop.f32.mrb[20].mxu1 }
 0x14a   : > { %v2633_v28 = vpop.f32.mrb[21].mxu1 }
 0x14b   : > { %v6242_v30 = vpop.f32.mrb[22].mxu1  ;;  %v5526_v28 = vld [vmem:[%s5835_s27 + $0x64] ss:$36 sps:$4 sm:$0xff]  }
 0x14c   : > { %v2636_v32 = vpop.f32.mrb[23].mxu1 }
 0x14d   : > { %v5531_v32 = vld [vmem:[%s5835_s27 + $0x51c] ss:$36 sps:$4 sm:$0xff]  }
 0x14e   : > { %2943 = vmatmul.mubr.bf16.vlgmr.msra.gmra.mrb[32].mxu1 %v5463_v29  ;;  %v5528_v29 = vld [vmem:[%s5835_s27 + $0x4d0] ss:$36 sps:$4 sm:$0xff]  }
 0x14f   : > { %3360 = vmatmul.mubr.bf16.gmra.mrb[96].mxu0 %v5468_v31  ;;  %4770 = vmatpush3.bf16.msra.mxu1 %v6141_v5  ;;  %v5479_v5 = vld [vmem:[%s5835_s27 + $0x764] ss:$36 sps:$4 sm:$0xff]  }
 0x150   : > { %2950 = vmatprep.mubr.bf16.mxu1 %v5471_v1  ;;  %3367 = vmatprep.mubr.bf16.mxu0 %v5473_v33  ;;  %v5529_v31 = vld [vmem:[%s5835_s27 + $0x60] ss:$36 sps:$4 sm:$0xff]   ;;  %v5533_v1 = vld [vmem:[%s5835_s27 + $0xac] ss:$36 sps:$4 sm:$0xff]   ;;  %v5535_v33 = vld [vmem:[%s5835_s27 + $0x518] ss:$36 sps:$4 sm:$0xff]  }
 0x151   : > { %v6254_v36 = vpop.f32.mrb[24].mxu1  ;;  %4771 = vmatprep.subr.bf16.mxu1 %v5490_v34 }
 0x152   : > { %v2641_v37 = vpop.f32.mrb[25].mxu1 }
 0x153   : > { %v6257_v39 = vpop.f32.mrb[26].mxu1  ;;  %4772 = vmatpush3.bf16.msra.mxu1 %v5490_v34  ;;  %v5536_v34 = vld [vmem:[%s5835_s27 + $0xa8] ss:$36 sps:$4 sm:$0xff]   ;;  %v5539_v37 = vld [vmem:[%s5835_s27 + $0xf4] ss:$36 sps:$4 sm:$0xff]  }
 0x154   : > { %v2644_v42 = vpop.f32.mrb[27].mxu1  ;;  %4773 = vmatprep.subr.bf16.mxu1 %v5510_v35 }
 0x155   : > { %v5545_v42 = vld [vmem:[%s5835_s27 + $0x13c] ss:$36 sps:$4 sm:$0xff]  }
 0x156   : > { %2951 = vmatmul.mubr.bf16.gmra.mrb[36].mxu1 %v5475_v38  ;;  %v5541_v38 = vld [vmem:[%s5835_s27 + $0x560] ss:$36 sps:$4 sm:$0xff]  }
 0x157   : > { %3368 = vmatmul.mubr.bf16.gmra.mrb[100].mxu0 %v5476_v40  ;;  %2958 = vmatprep.mubr.bf16.mxu1 %v5477_v41  ;;  %v5542_v40 = vld [vmem:[%s5835_s27 + $0xf0] ss:$36 sps:$4 sm:$0xff]  }
 0x158   : > { %3375 = vmatprep.mubr.bf16.mxu0 %v5479_v5  ;;  %4774 = vmatpush3.bf16.msra.mxu1 %v5510_v35  ;;  %v5537_v35 = vld [vmem:[%s5835_s27 + $0x564] ss:$36 sps:$4 sm:$0xff]   ;;  %v5543_v41 = vld [vmem:[%s5835_s27 + $0x5ac] ss:$36 sps:$4 sm:$0xff]  }
 0x159   : > { %v6265_v44 = vpop.f32.mrb[28].mxu1  ;;  %4775 = vmatprep.subr.bf16.mxu1 %v5530_v43  ;;  %v5547_v5 = vld [vmem:[%s5835_s27 + $0x5a8] ss:$36 sps:$4 sm:$0xff]  }
 0x15a   : > { %v2649_v46 = vpop.f32.mrb[29].mxu1 }
 0x15b   : > { %v6271_v48 = vpop.f32.mrb[30].mxu1  ;;  %v5552_v46 = vld [vmem:[%s5835_s27 + $0x184] ss:$36 sps:$4 sm:$0xff]  }
 0x15c   : > { %v2652_v53 = vpop.f32.mrb[31].mxu1  ;;  %4776 = vmatpush3.bf16.msra.mxu1 %v5530_v43  ;;  %v5548_v43 = vld [vmem:[%s5835_s27 + $0x138] ss:$36 sps:$4 sm:$0xff]  }
 0x15d   : > { %4777 = vmatprep.subr.bf16.mxu1 %v5549_v45  ;;  %v5558_v53 = vld [vmem:[%s5835_s27 + $0x1cc] ss:$36 sps:$4 sm:$0xff]  }
 0x15e   : > { %2959 = vmatmul.mubr.bf16.gmra.mrb[40].mxu1 %v5481_v47  ;;  %v5554_v47 = vld [vmem:[%s5835_s27 + $0x5f0] ss:$36 sps:$4 sm:$0xff]  }
 0x15f   : > { %3376 = vmatmul.mubr.bf16.gmra.mrb[104].mxu0 %v5482_v50  ;;  %2966 = vmatprep.mubr.bf16.mxu1 %v5484_v51  ;;  %v5555_v50 = vld [vmem:[%s5835_s27 + $0x180] ss:$36 sps:$4 sm:$0xff]  }
 0x160   : > { %3383 = vmatprep.mubr.bf16.mxu0 %v5486_v54  ;;  %4778 = vmatpush3.bf16.msra.mxu1 %v5549_v45  ;;  %v5550_v45 = vld [vmem:[%s5835_s27 + $0x5f4] ss:$36 sps:$4 sm:$0xff]   ;;  %v5556_v51 = vld [vmem:[%s5835_s27 + $0x63c] ss:$36 sps:$4 sm:$0xff]  }
 0x161   : > { %4779 = vmatprep.subr.bf16.mxu1 %v5568_v55  ;;  %v5560_v54 = vld [vmem:[%s5835_s27 + $0x638] ss:$36 sps:$4 sm:$0xff]  }
 0x164   : > { %4780 = vmatpush3.bf16.msra.mxu1 %v5568_v55  ;;  %v5561_v55 = vld [vmem:[%s5835_s27 + $0x1c8] ss:$36 sps:$4 sm:$0xff]  }
 0x165   : > { %4781 = vmatprep.subr.bf16.mxu1 %v5587_v56 }
 0x166   : > { %2967 = vmatmul.mubr.bf16.gmra.mrb[44].mxu1 %v5488_v58  ;;  %v5564_v58 = vld [vmem:[%s5835_s27 + $0x214] ss:$36 sps:$4 sm:$0xff]  }
 0x167   : > { %3384 = vmatmul.mubr.bf16.gmra.mrb[108].mxu0 %v5489_v59  ;;  %2974 = vmatprep.mubr.bf16.mxu1 %v5491_v61  ;;  %v5566_v59 = vld [vmem:[%s5835_s27 + $0x680] ss:$36 sps:$4 sm:$0xff]   ;;  %v5567_v61 = vld [vmem:[%s5835_s27 + $0x210] ss:$36 sps:$4 sm:$0xff]  }
 0x168   : > { %3391 = vmatprep.mubr.bf16.mxu0 %v5493_v62  ;;  %4782 = vmatpush3.bf16.msra.mxu1 %v5587_v56  ;;  %v5562_v56 = vld [vmem:[%s5835_s27 + $0x684] ss:$36 sps:$4 sm:$0xff]   ;;  %v5569_v62 = vld [vmem:[%s5835_s27 + $0x6cc] ss:$36 sps:$4 sm:$0xff]  }
 0x169   : > { %4783 = vmatprep.subr.bf16.mxu1 %v5606_v12 }
 0x16c   : > { %4784 = vmatpush3.bf16.msra.mxu1 %v5606_v12  ;;  %v5583_v12 = vld [vmem:[%s5835_s27 + $0x2ec] ss:$36 sps:$4 sm:$0xff]  }
 0x16e   : > { %2975 = vmatmul.mubr.bf16.gmra.mrb[48].mxu1 %v5495_v63  ;;  %v5571_v63 = vld [vmem:[%s5835_s27 + $0x25c] ss:$36 sps:$4 sm:$0xff]  }
 0x16f   : > { %3392 = vmatmul.mubr.bf16.gmra.mrb[112].mxu0 %v5496_v0  ;;  %2982 = vmatprep.mubr.bf16.mxu1 %v5498_v3  ;;  %v5573_v0 = vld [vmem:[%s5835_s27 + $0x6c8] ss:$36 sps:$4 sm:$0xff]   ;;  %v5574_v3 = vld [vmem:[%s5835_s27 + $0x258] ss:$36 sps:$4 sm:$0xff]  }
 0x170   : > { %3399 = vmatprep.mubr.bf16.mxu0 %v5500_v4  ;;  %v5575_v4 = vld [vmem:[%s5835_s27 + $0x714] ss:$36 sps:$4 sm:$0xff]  }
 0x176   : > { %2983 = vmatmul.mubr.bf16.gmra.mrb[52].mxu1 %v5502_v7  ;;  %v5577_v7 = vld [vmem:[%s5835_s27 + $0x2a4] ss:$36 sps:$4 sm:$0xff]  }
 0x177   : > { %3400 = vmatmul.mubr.bf16.gmra.mrb[116].mxu0 %v5503_v8  ;;  %2990 = vmatprep.mubr.bf16.mxu1 %v5504_v9  ;;  %v5579_v8 = vld [vmem:[%s5835_s27 + $0x710] ss:$36 sps:$4 sm:$0xff]   ;;  %v5580_v9 = vld [vmem:[%s5835_s27 + $0x2a0] ss:$36 sps:$4 sm:$0xff]  }
 0x178   : > { %3407 = vmatprep.mubr.bf16.mxu0 %v5506_v10  ;;  %v5581_v10 = vld [vmem:[%s5835_s27 + $0x75c] ss:$36 sps:$4 sm:$0xff]  }
 0x17e   : > { %2991 = vmatmul.mubr.bf16.gmra.mrb[56].mxu1 %v5508_v13  ;;  %v5585_v13 = vld [vmem:[%s5835_s27 + $0x758] ss:$36 sps:$4 sm:$0xff]  }
 0x17f   : > { %3408 = vmatmul.mubr.bf16.gmra.mrb[120].mxu0 %v5509_v15  ;;  %2998 = vmatprep.mubr.bf16.mxu1 %v5512_v16  ;;  %v5586_v15 = vld [vmem:[%s5835_s27 + $0x2e8] ss:$36 sps:$4 sm:$0xff]  }
 0x180   : > { %3415 = vmatprep.mubr.bf16.mxu0 %v5514_v17  ;;  %v5588_v16 = vld [vmem:[%s5835_s27 + $0x7a4] ss:$36 sps:$4 sm:$0xff]   ;;  %v5590_v17 = vld [vmem:[%s5835_s27 + $0x334] ss:$36 sps:$4 sm:$0xff]  }
 0x186   : > { %2999 = vmatmul.mubr.bf16.gmra.mrb[60].mxu1 %v5516_v18  ;;  %v5592_v18 = vld [vmem:[%s5835_s27 + $0x7a0] ss:$36 sps:$4 sm:$0xff]  }
 0x187   : > { %3416 = vmatmul.mubr.bf16.gmra.mrb[124].mxu0 %v5517_v20  ;;  %3006 = vmatprep.mubr.bf16.mxu1 %v5518_v21  ;;  %v5593_v20 = vld [vmem:[%s5835_s27 + $0x330] ss:$36 sps:$4 sm:$0xff]  }
 0x188   : > { %3456 = vmatprep.mubr.bf16.mxu0 %v5522_v23  ;;  %v5594_v21 = vld [vmem:[%s5835_s27 + $0x7ec] ss:$36 sps:$4 sm:$0xff]   ;;  %v5596_v23 = vld [vmem:[%s5835_s27 + $0x37c] ss:$36 sps:$4 sm:$0xff]  }
 0x18e   : > { %3007 = vmatmul.mubr.bf16.gmra.mrb[64].mxu1 %v5523_v24  ;;  %v5598_v24 = vld [vmem:[%s5835_s27 + $0x7e8] ss:$36 sps:$4 sm:$0xff]  }
 0x18f   : > { %3457 = vmatmul.mubr.bf16.vlgmr.msra.gmra.mrb[0].mxu0 %v5520_v25  ;;  %3014 = vmatprep.mubr.bf16.mxu1 %v5524_v26  ;;  %v5599_v25 = vld [vmem:[%s5835_s27 + $0x378] ss:$36 sps:$4 sm:$0xff]  }
 0x190   : > { %3464 = vmatprep.mubr.bf16.mxu0 %v5526_v28  ;;  %v5600_v26 = vld [vmem:[%s5835_s27 + $0x834] ss:$36 sps:$4 sm:$0xff]   ;;  %v5602_v28 = vld [vmem:[%s5835_s27 + $0x3c4] ss:$36 sps:$4 sm:$0xff]  }
 0x196   : > { %3015 = vmatmul.mubr.bf16.gmra.mrb[68].mxu1 %v5528_v29  ;;  %v5604_v29 = vld [vmem:[%s5835_s27 + $0x830] ss:$36 sps:$4 sm:$0xff]  }
 0x197   : > { %3465 = vmatmul.mubr.bf16.gmra.mrb[4].mxu0 %v5529_v31  ;;  %3022 = vmatprep.mubr.bf16.mxu1 %v5531_v32  ;;  %v5605_v31 = vld [vmem:[%s5835_s27 + $0x3c0] ss:$36 sps:$4 sm:$0xff]  }
 0x198   : > { %3472 = vmatprep.mubr.bf16.mxu0 %v5533_v1  ;;  %v5607_v32 = vld [vmem:[%s5835_s27 + $0x87c] ss:$36 sps:$4 sm:$0xff]   ;;  %v5609_v1 = vld [vmem:[%s5835_s27 + $0x40c] ss:$36 sps:$4 sm:$0xff]  }
 0x19e   : > { %3023 = vmatmul.mubr.bf16.gmra.mrb[72].mxu1 %v5535_v33  ;;  %v5611_v33 = vld [vmem:[%s5835_s27 + $0x878] ss:$36 sps:$4 sm:$0xff]  }
 0x19f   : > { %3473 = vmatmul.mubr.bf16.gmra.mrb[8].mxu0 %v5536_v34  ;;  %3030 = vmatprep.mubr.bf16.mxu1 %v5537_v35  ;;  %v5612_v34 = vld [vmem:[%s5835_s27 + $0x408] ss:$36 sps:$4 sm:$0xff]  }
 0x1a0   : > { %3480 = vmatprep.mubr.bf16.mxu0 %v5539_v37  ;;  %v5613_v35 = vld [vmem:[%s5835_s27 + $0x8c4] ss:$36 sps:$4 sm:$0xff]   ;;  %v5615_v37 = vld [vmem:[%s5835_s27 + $0x454] ss:$36 sps:$4 sm:$0xff]  }
 0x1a6   : > { %3031 = vmatmul.mubr.bf16.gmra.mrb[76].mxu1 %v5541_v38  ;;  %v5617_v38 = vld [vmem:[%s5835_s27 + $0x8c0] ss:$36 sps:$4 sm:$0xff]  }
 0x1a7   : > { %3481 = vmatmul.mubr.bf16.gmra.mrb[12].mxu0 %v5542_v40  ;;  %3038 = vmatprep.mubr.bf16.mxu1 %v5543_v41  ;;  %v5618_v40 = vld [vmem:[%s5835_s27 + $0x450] ss:$36 sps:$4 sm:$0xff]   ;;  %v5621_v41 = vld [vmem:[%s5835_s27 + $0x20] ss:$36 sps:$4 sm:$0xff]  }
 0x1a8   : > { %3488 = vmatprep.mubr.bf16.mxu0 %v5545_v42  ;;  %v5619_v42 = vld [vmem:[%s5835_s27 + $0x49c] ss:$36 sps:$4 sm:$0xff]  }
 0x1ae   : > { %3039 = vmatmul.mubr.bf16.gmra.mrb[80].mxu1 %v5547_v5  ;;  %v5623_v5 = vld [vmem:[%s5835_s27 + $0x68] ss:$36 sps:$4 sm:$0xff]  }
 0x1af   : > { %3489 = vmatmul.mubr.bf16.gmra.mrb[16].mxu0 %v5548_v43  ;;  %3046 = vmatprep.mubr.bf16.mxu1 %v5550_v45  ;;  %v5622_v43 = vld [vmem:[%s5835_s27 + $0x498] ss:$36 sps:$4 sm:$0xff]   ;;  %v5626_v45 = vld [vmem:[%s5835_s27 + $0xb0] ss:$36 sps:$4 sm:$0xff]  }
 0x1b0   : > { %3496 = vmatprep.mubr.bf16.mxu0 %v5552_v46  ;;  %v5624_v46 = vld [vmem:[%s5835_s27 + $0x4e4] ss:$36 sps:$4 sm:$0xff]  }
 0x1b6   : > { %3047 = vmatmul.mubr.bf16.gmra.mrb[84].mxu1 %v5554_v47  ;;  %v5628_v47 = vld [vmem:[%s5835_s27 + $0xf8] ss:$36 sps:$4 sm:$0xff]  }
 0x1b7   : > { %3497 = vmatmul.mubr.bf16.gmra.mrb[20].mxu0 %v5555_v50  ;;  %3054 = vmatprep.mubr.bf16.mxu1 %v5556_v51  ;;  %v5627_v50 = vld [vmem:[%s5835_s27 + $0x4e0] ss:$36 sps:$4 sm:$0xff]  }
 0x1b8   : > { %3504 = vmatprep.mubr.bf16.mxu0 %v5558_v53  ;;  %v5631_v51 = vld [vmem:[%s5835_s27 + $0x140] ss:$36 sps:$4 sm:$0xff]   ;;  %v5629_v53 = vld [vmem:[%s5835_s27 + $0x52c] ss:$36 sps:$4 sm:$0xff]  }
 0x1be   : > { %3055 = vmatmul.mubr.bf16.gmra.mrb[88].mxu1 %v5560_v54  ;;  %v5633_v54 = vld [vmem:[%s5835_s27 + $0x188] ss:$36 sps:$4 sm:$0xff]  }
 0x1bf   : > { %3505 = vmatmul.mubr.bf16.gmra.mrb[24].mxu0 %v5561_v55  ;;  %3062 = vmatprep.mubr.bf16.mxu1 %v5562_v56  ;;  %v5632_v55 = vld [vmem:[%s5835_s27 + $0x528] ss:$36 sps:$4 sm:$0xff]   ;;  %v5636_v56 = vld [vmem:[%s5835_s27 + $0x1d0] ss:$36 sps:$4 sm:$0xff]  }
 0x1c0   : > { %3512 = vmatprep.mubr.bf16.mxu0 %v5564_v58  ;;  %v5634_v58 = vld [vmem:[%s5835_s27 + $0x574] ss:$36 sps:$4 sm:$0xff]  }
 0x1c6   : > { %3063 = vmatmul.mubr.bf16.gmra.mrb[92].mxu1 %v5566_v59 }
 0x1c7   : > { %3513 = vmatmul.mubr.bf16.gmra.mrb[28].mxu0 %v5567_v61  ;;  %3070 = vmatprep.mubr.bf16.mxu1 %v5569_v62  ;;  %v5638_v62 = vld [vmem:[%s5835_s27 + $0x218] ss:$36 sps:$4 sm:$0xff]  }
 0x1c8   : > { %3520 = vmatprep.mubr.bf16.mxu0 %v5571_v63 }
 0x1ce   : > { %3071 = vmatmul.mubr.bf16.gmra.mrb[96].mxu1 %v5573_v0  ;;  %v5637_v0 = vld [vmem:[%s5835_s27 + $0x570] ss:$36 sps:$4 sm:$0xff]  }
 0x1cf   : > { %3521 = vmatmul.mubr.bf16.gmra.mrb[32].mxu0 %v5574_v3  ;;  %3078 = vmatprep.mubr.bf16.mxu1 %v5575_v4  ;;  %v5641_v3 = vld [vmem:[%s5835_s27 + $0x260] ss:$36 sps:$4 sm:$0xff]  }
 0x1d0   : > { %3528 = vmatprep.mubr.bf16.mxu0 %v5577_v7  ;;  %v5639_v7 = vld [vmem:[%s5835_s27 + $0x5bc] ss:$36 sps:$4 sm:$0xff]  }
 0x1d6   : > { %3079 = vmatmul.mubr.bf16.gmra.mrb[100].mxu1 %v5579_v8 }
 0x1d7   : > { %3529 = vmatmul.mubr.bf16.gmra.mrb[36].mxu0 %v5580_v9  ;;  %3086 = vmatprep.mubr.bf16.mxu1 %v5581_v10  ;;  %v5643_v10 = vld [vmem:[%s5835_s27 + $0x2a8] ss:$36 sps:$4 sm:$0xff]  }
 0x1d8   : > { %3536 = vmatprep.mubr.bf16.mxu0 %v5583_v12 }
 0x1de   : > { %3087 = vmatmul.mubr.bf16.gmra.mrb[104].mxu1 %v5585_v13  ;;  %v5642_v13 = vld [vmem:[%s5835_s27 + $0x5b8] ss:$36 sps:$4 sm:$0xff]  }
 0x1df   : > { %3537 = vmatmul.mubr.bf16.gmra.mrb[40].mxu0 %v5586_v15  ;;  %3094 = vmatprep.mubr.bf16.mxu1 %v5588_v16  ;;  %v5646_v15 = vld [vmem:[%s5835_s27 + $0x2f0] ss:$36 sps:$4 sm:$0xff]  }
 0x1e0   : > { %3544 = vmatprep.mubr.bf16.mxu0 %v5590_v17  ;;  %v5644_v17 = vld [vmem:[%s5835_s27 + $0x604] ss:$36 sps:$4 sm:$0xff]  }
 0x1e6   : > { %3095 = vmatmul.mubr.bf16.gmra.mrb[108].mxu1 %v5592_v18 }
 0x1e7   : > { %3545 = vmatmul.mubr.bf16.gmra.mrb[44].mxu0 %v5593_v20  ;;  %3102 = vmatprep.mubr.bf16.mxu1 %v5594_v21  ;;  %v5648_v21 = vld [vmem:[%s5835_s27 + $0x338] ss:$36 sps:$4 sm:$0xff]  }
 0x1e8   : > { %3552 = vmatprep.mubr.bf16.mxu0 %v5596_v23 }
 0x1ee   : > { %3103 = vmatmul.mubr.bf16.gmra.mrb[112].mxu1 %v5598_v24  ;;  %v5647_v24 = vld [vmem:[%s5835_s27 + $0x600] ss:$36 sps:$4 sm:$0xff]  }
 0x1ef   : > { %3553 = vmatmul.mubr.bf16.gmra.mrb[48].mxu0 %v5599_v25  ;;  %3110 = vmatprep.mubr.bf16.mxu1 %v5600_v26  ;;  %v5651_v25 = vld [vmem:[%s5835_s27 + $0x380] ss:$36 sps:$4 sm:$0xff]  }
 0x1f0   : > { %3560 = vmatprep.mubr.bf16.mxu0 %v5602_v28  ;;  %v5649_v28 = vld [vmem:[%s5835_s27 + $0x64c] ss:$36 sps:$4 sm:$0xff]  }
 0x1f6   : > { %3111 = vmatmul.mubr.bf16.gmra.mrb[116].mxu1 %v5604_v29 }
 0x1f7   : > { %3561 = vmatmul.mubr.bf16.gmra.mrb[52].mxu0 %v5605_v31  ;;  %3118 = vmatprep.mubr.bf16.mxu1 %v5607_v32  ;;  %v5653_v32 = vld [vmem:[%s5835_s27 + $0x3c8] ss:$36 sps:$4 sm:$0xff]  }
 0x1f8   : > { %3568 = vmatprep.mubr.bf16.mxu0 %v5609_v1 }
 0x1fe   : > { %3119 = vmatmul.mubr.bf16.gmra.mrb[120].mxu1 %v5611_v33  ;;  %v5652_v33 = vld [vmem:[%s5835_s27 + $0x648] ss:$36 sps:$4 sm:$0xff]  }
 0x1ff   : > { %3569 = vmatmul.mubr.bf16.gmra.mrb[56].mxu0 %v5612_v34  ;;  %3126 = vmatprep.mubr.bf16.mxu1 %v5613_v35  ;;  %v5656_v34 = vld [vmem:[%s5835_s27 + $0x410] ss:$36 sps:$4 sm:$0xff]  }
 0x200   : > { %3576 = vmatprep.mubr.bf16.mxu0 %v5615_v37  ;;  %v5654_v37 = vld [vmem:[%s5835_s27 + $0x694] ss:$36 sps:$4 sm:$0xff]  }
 0x206   : > { %3127 = vmatmul.mubr.bf16.gmra.mrb[124].mxu1 %v5617_v38 }
 0x207   : > { %3577 = vmatmul.mubr.bf16.gmra.mrb[60].mxu0 %v5618_v40  ;;  %4785 = vmatprep.mubr.bf16.mxu1 %v5621_v41  ;;  %v5658_v41 = vld [vmem:[%s5835_s27 + $0x458] ss:$36 sps:$4 sm:$0xff]  }
 0x208   : > { %3584 = vmatprep.mubr.bf16.mxu0 %v5619_v42 }
 0x20e   : > { %4786 = vmatmul.mubr.bf16.vlgmr.msra.gmra.mrb[128].mxu1 %v5623_v5  ;;  %v5657_v5 = vld [vmem:[%s5835_s27 + $0x690] ss:$36 sps:$4 sm:$0xff]  }
 0x20f   : > { %3585 = vmatmul.mubr.bf16.gmra.mrb[64].mxu0 %v5622_v43  ;;  %4789 = vmatprep.mubr.bf16.mxu1 %v5626_v45  ;;  %v5661_v43 = vld [vmem:[%s5835_s27 + $0x4a0] ss:$36 sps:$4 sm:$0xff]  }
 0x210   : > { %3592 = vmatprep.mubr.bf16.mxu0 %v5624_v46  ;;  %v5659_v46 = vld [vmem:[%s5835_s27 + $0x6dc] ss:$36 sps:$4 sm:$0xff]  }
 0x216   : > { %4790 = vmatmul.mubr.bf16.gmra.mrb[132].mxu1 %v5628_v47 }
 0x217   : > { %3593 = vmatmul.mubr.bf16.gmra.mrb[68].mxu0 %v5627_v50  ;;  %4793 = vmatprep.mubr.bf16.mxu1 %v5631_v51  ;;  %v5663_v51 = vld [vmem:[%s5835_s27 + $0x4e8] ss:$36 sps:$4 sm:$0xff]  }
 0x218   : > { %3600 = vmatprep.mubr.bf16.mxu0 %v5629_v53 }
 0x21e   : > { %4794 = vmatmul.mubr.bf16.gmra.mrb[136].mxu1 %v5633_v54  ;;  %v5662_v54 = vld [vmem:[%s5835_s27 + $0x6d8] ss:$36 sps:$4 sm:$0xff]  }
 0x21f   : > { %3601 = vmatmul.mubr.bf16.gmra.mrb[72].mxu0 %v5632_v55  ;;  %4797 = vmatprep.mubr.bf16.mxu1 %v5636_v56  ;;  %v5666_v55 = vld [vmem:[%s5835_s27 + $0x530] ss:$36 sps:$4 sm:$0xff]  }
 0x220   : > { %3608 = vmatprep.mubr.bf16.mxu0 %v5634_v58  ;;  %v5664_v58 = vld [vmem:[%s5835_s27 + $0x724] ss:$36 sps:$4 sm:$0xff]  }
 0x221   : > { %v6381_v59 = vpop.f32.mrb[32].mxu1 }
 0x222   : > { %v2946_v61 = vpop.f32.mrb[33].mxu1 }
 0x223   : > { %v6384_v63 = vpop.f32.mrb[34].mxu1 }
 0x224   : > { %v2949_v4 = vpop.f32.mrb[35].mxu1 }
 0x225   : > { %v5667_v4 = vld [vmem:[%s5835_s27 + $0x720] ss:$36 sps:$4 sm:$0xff]  }
 0x226   : > { %4798 = vmatmul.mubr.bf16.gmra.mrb[140].mxu1 %v5638_v62 }
 0x227   : > { %3609 = vmatmul.mubr.bf16.gmra.mrb[76].mxu0 %v5637_v0  ;;  %4801 = vmatprep.mubr.bf16.mxu1 %v5641_v3  ;;  %v5668_v0 = vld [vmem:[%s5835_s27 + $0x578] ss:$36 sps:$4 sm:$0xff]  }
 0x228   : > { %3616 = vmatprep.mubr.bf16.mxu0 %v5639_v7  ;;  %v5671_v7 = vld [vmem:[%s5835_s27 + $0x5c0] ss:$36 sps:$4 sm:$0xff]  }
 0x229   : > { %v6389_v8 = vpop.f32.mrb[36].mxu1 }
 0x22a   : > { %v2954_v9 = vpop.f32.mrb[37].mxu1 }
 0x22b   : > { %v6392_v12 = vpop.f32.mrb[38].mxu1 }
 0x22c   : > { %v2957_v16 = vpop.f32.mrb[39].mxu1 }
 0x22d   : > { %v5673_v16 = vld [vmem:[%s5835_s27 + $0x608] ss:$36 sps:$4 sm:$0xff]  }
 0x22e   : > { %4802 = vmatmul.mubr.bf16.gmra.mrb[144].mxu1 %v5643_v10  ;;  %v5669_v10 = vld [vmem:[%s5835_s27 + $0x76c] ss:$36 sps:$4 sm:$0xff]  }
 0x22f   : > { %3617 = vmatmul.mubr.bf16.gmra.mrb[80].mxu0 %v5642_v13  ;;  %4805 = vmatprep.mubr.bf16.mxu1 %v5646_v15 }
 0x230   : > { %3624 = vmatprep.mubr.bf16.mxu0 %v5644_v17 }
 0x231   : > { %v6397_v18 = vpop.f32.mrb[40].mxu1 }
 0x232   : > { %v2962_v20 = vpop.f32.mrb[41].mxu1 }
 0x233   : > { %v6400_v23 = vpop.f32.mrb[42].mxu1  ;;  %v5672_v20 = vld [vmem:[%s5835_s27 + $0x768] ss:$36 sps:$4 sm:$0xff]  }
 0x234   : > { %v2965_v26 = vpop.f32.mrb[43].mxu1 }
 0x236   : > { %4806 = vmatmul.mubr.bf16.gmra.mrb[148].mxu1 %v5648_v21  ;;  %v5676_v21 = vld [vmem:[%s5835_s27 + $0x650] ss:$36 sps:$4 sm:$0xff]  }
 0x237   : > { %3625 = vmatmul.mubr.bf16.gmra.mrb[84].mxu0 %v5647_v24  ;;  %4809 = vmatprep.mubr.bf16.mxu1 %v5651_v25  ;;  %v5674_v25 = vld [vmem:[%s5835_s27 + $0x7b4] ss:$36 sps:$4 sm:$0xff]  }
 0x238   : > { %3632 = vmatprep.mubr.bf16.mxu0 %v5649_v28 }
 0x239   : > { %v6405_v29 = vpop.f32.mrb[44].mxu1 }
 0x23a   : > { %v2970_v31 = vpop.f32.mrb[45].mxu1 }
 0x23b   : > { %v6408_v1 = vpop.f32.mrb[46].mxu1 }
 0x23c   : > { %v2973_v35 = vpop.f32.mrb[47].mxu1 }
 0x23e   : > { %4810 = vmatmul.mubr.bf16.gmra.mrb[152].mxu1 %v5653_v32  ;;  %v5678_v32 = vld [vmem:[%s5835_s27 + $0x698] ss:$36 sps:$4 sm:$0xff]  }
 0x23f   : > { %3633 = vmatmul.mubr.bf16.gmra.mrb[88].mxu0 %v5652_v33  ;;  %4813 = vmatprep.mubr.bf16.mxu1 %v5656_v34 }
 0x240   : > { %3640 = vmatprep.mubr.bf16.mxu0 %v5654_v37  ;;  %v5677_v37 = vld [vmem:[%s5835_s27 + $0x7b0] ss:$36 sps:$4 sm:$0xff]  }
 0x241   : > { %v6413_v38 = vpop.f32.mrb[48].mxu1 }
 0x242   : > { %v2978_v40 = vpop.f32.mrb[49].mxu1 }
 0x243   : > { %v6416_v42 = vpop.f32.mrb[50].mxu1  ;;  %v5681_v40 = vld [vmem:[%s5835_s27 + $0x6e0] ss:$36 sps:$4 sm:$0xff]  }
 0x244   : > { %v2981_v45 = vpop.f32.mrb[51].mxu1 }
 0x246   : > { %4814 = vmatmul.mubr.bf16.gmra.mrb[156].mxu1 %v5658_v41 }
 0x247   : > { %3641 = vmatmul.mubr.bf16.gmra.mrb[92].mxu0 %v5657_v5  ;;  %4817 = vmatprep.mubr.bf16.mxu1 %v5661_v43  ;;  %v5679_v43 = vld [vmem:[%s5835_s27 + $0x7fc] ss:$36 sps:$4 sm:$0xff]  }
 0x248   : > { %3648 = vmatprep.mubr.bf16.mxu0 %v5659_v46 }
 0x249   : > { %v6421_v47 = vpop.f32.mrb[52].mxu1 }
 0x24a   : > { %v2986_v50 = vpop.f32.mrb[53].mxu1 }
 0x24b   : > { %v6424_v53 = vpop.f32.mrb[54].mxu1 }
 0x24c   : > { %v2989_v56 = vpop.f32.mrb[55].mxu1 }
 0x24e   : > { %4818 = vmatmul.mubr.bf16.gmra.mrb[160].mxu1 %v5663_v51 }
 0x24f   : > { %3649 = vmatmul.mubr.bf16.gmra.mrb[96].mxu0 %v5662_v54  ;;  %4821 = vmatprep.mubr.bf16.mxu1 %v5666_v55  ;;  %v5683_v54 = vld [vmem:[%s5835_s27 + $0x728] ss:$36 sps:$4 sm:$0xff]  }
 0x250   : > { %3656 = vmatprep.mubr.bf16.mxu0 %v5664_v58 }
 0x251   : > { %v6429_v61 = vpop.f32.mrb[56].mxu1 }
 0x252   : > { %v2994_v62 = vpop.f32.mrb[57].mxu1 }
 0x253   : > { %v6432_v3 = vpop.f32.mrb[58].mxu1  ;;  %v5686_v62 = vld [vmem:[%s5835_s27 + $0x770] ss:$36 sps:$4 sm:$0xff]  }
 0x254   : > { %v2997_v9 = vpop.f32.mrb[59].mxu1 }
 0x256   : > { %4822 = vmatmul.mubr.bf16.gmra.mrb[164].mxu1 %v5668_v0 }
 0x257   : > { %3657 = vmatmul.mubr.bf16.gmra.mrb[100].mxu0 %v5667_v4  ;;  %4825 = vmatprep.mubr.bf16.mxu1 %v5671_v7  ;;  %v5684_v7 = vld [vmem:[%s5835_s27 + $0x844] ss:$36 sps:$4 sm:$0xff]  }
 0x258   : > { %3664 = vmatprep.mubr.bf16.mxu0 %v5669_v10 }
 0x259   : > { %v6437_v13 = vpop.f32.mrb[60].mxu1 }
 0x25a   : > { %v3002_v15 = vpop.f32.mrb[61].mxu1 }
 0x25b   : > { %v6440_v17 = vpop.f32.mrb[62].mxu1 }
 0x25c   : > { %v3005_v24 = vpop.f32.mrb[63].mxu1 }
 0x25e   : > { %4826 = vmatmul.mubr.bf16.gmra.mrb[168].mxu1 %v5673_v16 }
 0x25f   : > { %3665 = vmatmul.mubr.bf16.gmra.mrb[104].mxu0 %v5672_v20  ;;  %4829 = vmatprep.mubr.bf16.mxu1 %v5676_v21  ;;  %v5688_v20 = vld [vmem:[%s5835_s27 + $0x7b8] ss:$36 sps:$4 sm:$0xff]  }
 0x260   : > { %3672 = vmatprep.mubr.bf16.mxu0 %v5674_v25 }
 0x261   : > { %v6445_v26 = vpop.f32.mrb[64].mxu1 }
 0x262   : > { %v3458_v28 = vpop.f32.mrb[0].mxu0  ;;  %v3010_v31 = vpop.f32.mrb[65].mxu1 }
 0x263   : > { %v6449_v33 = vadd.f32 %v3458_v28, %v6199_v49  ;;  %v3460_v34 = vpop.f32.mrb[1].mxu0  ;;  %v6451_v35 = vpop.f32.mrb[66].mxu1  ;;  %v5691_v28 = vld [vmem:[%s5835_s27 + $0x800] ss:$36 sps:$4 sm:$0xff]  }
 0x264   : > { %v3461_v41 = vpop.f32.mrb[2].mxu0  ;;  %v3013_v5 = vpop.f32.mrb[67].mxu1  ;;  %v5689_v34 = vld [vmem:[%s5835_s27 + $0x88c] ss:$36 sps:$4 sm:$0xff]  }
 0x265   : > { %v6457_v45 = vadd.f32 %v3461_v41, %v6202_v52  ;;  %v3463_v46 = vpop.f32.mrb[3].mxu0  ;;  %v5682_v52 = vld [vmem:[%s5835_s27 + $0x7f8] ss:$36 sps:$4 sm:$0xff]  }
 0x266   : > { %4830 = vmatmul.mubr.bf16.gmra.mrb[172].mxu1 %v5678_v32 }
 0x267   : > { %3673 = vmatmul.mubr.bf16.gmra.mrb[108].mxu0 %v5677_v37  ;;  %4833 = vmatprep.mubr.bf16.mxu1 %v5681_v40 }
 0x268   : > { %3680 = vmatprep.mubr.bf16.mxu0 %v5679_v43  ;;  %v5693_v43 = vld [vmem:[%s5835_s27 + $0x848] ss:$36 sps:$4 sm:$0xff]  }
 0x269   : > { %v6459_v49 = vpop.f32.mrb[68].mxu1 }
 0x26a   : > { %v3466_v50 = vpop.f32.mrb[4].mxu0  ;;  %v3018_v51 = vpop.f32.mrb[69].mxu1 }
 0x26b   : > { %v6463_v55 = vadd.f32 %v3466_v50, %v6207_v57  ;;  %v3468_v56 = vpop.f32.mrb[5].mxu0  ;;  %v6465_v58 = vpop.f32.mrb[70].mxu1 }
 0x26c   : > { %v3469_v0 = vpop.f32.mrb[6].mxu0  ;;  %v3021_v4 = vpop.f32.mrb[71].mxu1 }
 0x26d   : > { %v6471_v9 = vadd.f32 %v3469_v0, %v6210_v60  ;;  %v3471_v10 = vpop.f32.mrb[7].mxu0  ;;  %v5687_v60 = vld [vmem:[%s5835_s27 + $0x840] ss:$36 sps:$4 sm:$0xff]  }
 0x26e   : > { %4834 = vmatmul.mubr.bf16.gmra.mrb[176].mxu1 %v5683_v54  ;;  %v5696_v54 = vld [vmem:[%s5835_s27 + $0x890] ss:$36 sps:$4 sm:$0xff]  }
 0x26f   : > { %3681 = vmatmul.mubr.bf16.gmra.mrb[112].mxu0 %v5682_v52  ;;  %4837 = vmatprep.mubr.bf16.mxu1 %v5686_v62  ;;  %v5694_v62 = vld [vmem:[%s5835_s27 + $0x8d4] ss:$36 sps:$4 sm:$0xff]  }
 0x270   : > { %3688 = vmatprep.mubr.bf16.mxu0 %v5684_v7 }
 0x271   : > { %v6473_v57 = vpop.f32.mrb[72].mxu1 }
 0x272   : > { %v3474_v15 = vpop.f32.mrb[8].mxu0  ;;  %v3026_v16 = vpop.f32.mrb[73].mxu1 }
 0x273   : > { %v6477_v21 = vadd.f32 %v3474_v15, %v6215_v2  ;;  %v3476_v24 = vpop.f32.mrb[9].mxu0  ;;  %v6479_v25 = vpop.f32.mrb[74].mxu1  ;;  %v5698_v15 = vld [vmem:[%s5835_s27 + $0x8d8] ss:$36 sps:$4 sm:$0xff]  }
 0x274   : > { %v3477_v31 = vpop.f32.mrb[10].mxu0  ;;  %v3029_v32 = vpop.f32.mrb[75].mxu1 }
 0x275   : > { %v6485_v37 = vadd.f32 %v3477_v31, %v6218_v6  ;;  %v3479_v40 = vpop.f32.mrb[11].mxu0  ;;  %v5692_v6 = vld [vmem:[%s5835_s27 + $0x888] ss:$36 sps:$4 sm:$0xff]  }
 0x276   : > { %4838 = vmatmul.mubr.bf16.gmra.mrb[180].mxu1 %v5688_v20 }
 0x277   : > { %3689 = vmatmul.mubr.bf16.gmra.mrb[116].mxu0 %v5687_v60  ;;  %4841 = vmatprep.mubr.bf16.mxu1 %v5691_v28  ;;  %v5697_v60 = vld [vmem:[%s5835_s27 + $0x8d0] ss:$36 sps:$4 sm:$0xff]   ;;  %s4365_s27 = sshll.u32 %s6866_s7, 3  ;;  %s4366_s7 = sshll.u32 %s6868_s13, 1 }
 0x278   : > { %3696 = vmatprep.mubr.bf16.mxu0 %v5689_v34  ;;  %s6627_s24 = scalar_lea.vmem %s6833_s2, %s4365_s27  ;;  %s187_s28 = scalar_lea.vmem %s6834_s3, %s4366_s7 }
 0x279   : > { %v6487_v2 = vpop.f32.mrb[76].mxu1 }
 0x27a   : > { %v3482_v41 = vpop.f32.mrb[12].mxu0  ;;  %v3034_v5 = vpop.f32.mrb[77].mxu1 }
 0x27b   : > { %v6491_v46 = vadd.f32 %v3482_v41, %v6223_v11  ;;  %v3484_v50 = vpop.f32.mrb[13].mxu0  ;;  %v6493_v51 = vpop.f32.mrb[78].mxu1 }
 0x27c   : > { %v3485_v56 = vpop.f32.mrb[14].mxu0  ;;  %v3037_v52 = vpop.f32.mrb[79].mxu1 }
 0x27d   : > { %v6499_v0 = vadd.f32 %v3485_v56, %v6226_v14  ;;  %v3487_v4 = vpop.f32.mrb[15].mxu0 }
 0x27e   : > { %4842 = vmatmul.mubr.bf16.gmra.mrb[184].mxu1 %v5693_v43 }
 0x27f   : > { %3697 = vmatmul.mubr.bf16.gmra.mrb[120].mxu0 %v5692_v6  ;;  %4845 = vmatprep.mubr.bf16.mxu1 %v5696_v54 }
 0x280   : > { %3704 = vmatprep.mubr.bf16.mxu0 %v5694_v62 }
 0x281   : > { %v6501_v11 = vpop.f32.mrb[80].mxu1 }
 0x282   : > { %v3490_v7 = vpop.f32.mrb[16].mxu0  ;;  %v3042_v10 = vpop.f32.mrb[81].mxu1 }
 0x283   : > { %v6505_v16 = vadd.f32 %v3490_v7, %v6231_v19  ;;  %v3492_v20 = vpop.f32.mrb[17].mxu0  ;;  %v6507_v24 = vpop.f32.mrb[82].mxu1 }
 0x284   : > { %v3493_v28 = vpop.f32.mrb[18].mxu0  ;;  %v3045_v14 = vpop.f32.mrb[83].mxu1 }
 0x285   : > { %v6511_v31 = vadd.f32 %v3493_v28, %v6234_v22  ;;  %v3495_v32 = vpop.f32.mrb[19].mxu0 }
 0x286   : > { %4846 = vmatmul.mubr.bf16.gmra.mrb[188].mxu1 %v5698_v15 }
 0x287   : > { %3705 = vmatmul.mubr.bf16.gmra.mrb[124].mxu0 %v5697_v60 }
 0x289   : > { %v6513_v34 = vpop.f32.mrb[84].mxu1 }
 0x28a   : > { %v3498_v40 = vpop.f32.mrb[20].mxu0  ;;  %v3050_v41 = vpop.f32.mrb[85].mxu1 }
 0x28b   : > { %v6516_v5 = vadd.f32 %v3498_v40, %v6239_v27  ;;  %v3500_v19 = vpop.f32.mrb[21].mxu0  ;;  %v6518_v43 = vpop.f32.mrb[86].mxu1 }
 0x28c   : > { %v3501_v50 = vpop.f32.mrb[22].mxu0  ;;  %v3053_v6 = vpop.f32.mrb[87].mxu1 }
 0x28d   : > { %v6521_v54 = vadd.f32 %v3501_v50, %v6242_v30  ;;  %v3503_v22 = vpop.f32.mrb[23].mxu0 }
 0x291   : > { %v6523_v56 = vpop.f32.mrb[88].mxu1 }
 0x292   : > { %v3506_v52 = vpop.f32.mrb[24].mxu0  ;;  %v3058_v62 = vpop.f32.mrb[89].mxu1 }
 0x293   : > { %v6526_v4 = vadd.f32 %v3506_v52, %v6254_v36  ;;  %v3508_v7 = vpop.f32.mrb[25].mxu0  ;;  %v6528_v10 = vpop.f32.mrb[90].mxu1 }
 0x294   : > { %v3509_v27 = vpop.f32.mrb[26].mxu0  ;;  %v3061_v15 = vpop.f32.mrb[91].mxu1 }
 0x295   : > { %v6531_v20 = vadd.f32 %v3509_v27, %v6257_v39  ;;  %v3511_v60 = vpop.f32.mrb[27].mxu0 }
 0x299   : > { %v6533_v28 = vpop.f32.mrb[92].mxu1 }
 0x29a   : > { %v3514_v30 = vpop.f32.mrb[28].mxu0  ;;  %v3066_v14 = vpop.f32.mrb[93].mxu1 }
 0x29b   : > { %v6536_v32 = vadd.f32 %v3514_v30, %v6265_v44  ;;  %v3516_v40 = vpop.f32.mrb[29].mxu0  ;;  %v6538_v41 = vpop.f32.mrb[94].mxu1 }
 0x29c   : > { %v3517_v36 = vpop.f32.mrb[30].mxu0  ;;  %v3069_v19 = vpop.f32.mrb[95].mxu1 }
 0x29d   : > { %v6541_v50 = vadd.f32 %v3517_v36, %v6271_v48  ;;  %v3519_v6 = vpop.f32.mrb[31].mxu0 }
 0x2a1   : > { %v6543_v22 = vpop.f32.mrb[96].mxu1 }
 0x2a2   : > { %v3522_v39 = vpop.f32.mrb[32].mxu0  ;;  %v3074_v52 = vpop.f32.mrb[97].mxu1 }
 0x2a3   : > { %v6546_v62 = vadd.f32 %v3522_v39, %v6381_v59  ;;  %v3524_v7 = vpop.f32.mrb[33].mxu0  ;;  %v6548_v27 = vpop.f32.mrb[98].mxu1 }
 0x2a4   : > { %6835 = vst [vmem:[#allocation2_spill] sm:$0xff] %v6548_v27  ;;  %v3525_v44 = vpop.f32.mrb[34].mxu0  ;;  %v3077_v15 = vpop.f32.mrb[99].mxu1 }
 0x2a5   : > { %v6551_v60 = vadd.f32 %v3525_v44, %v6384_v63  ;;  %v3527_v30 = vpop.f32.mrb[35].mxu0 }
 0x2a9   : > { %v6553_v14 = vpop.f32.mrb[100].mxu1 }
 0x2aa   : > { %6836 = vst [vmem:[#allocation3_spill] sm:$0xff] %v6553_v14  ;;  %v3530_v48 = vpop.f32.mrb[36].mxu0  ;;  %v3082_v40 = vpop.f32.mrb[101].mxu1 }
 0x2ab   : > { %v6556_v36 = vadd.f32 %v3530_v48, %v6389_v8  ;;  %v3532_v19 = vpop.f32.mrb[37].mxu0  ;;  %v6558_v6 = vpop.f32.mrb[102].mxu1 }
 0x2ac   : > { %6837 = vst [vmem:[#allocation4_spill] sm:$0xff] %v6558_v6  ;;  %v3533_v59 = vpop.f32.mrb[38].mxu0  ;;  %v3085_v39 = vpop.f32.mrb[103].mxu1 }
 0x2ad   : > { %v6561_v52 = vadd.f32 %v3533_v59, %v6392_v12  ;;  %v3535_v7 = vpop.f32.mrb[39].mxu0 }
 0x2b1   : > { %v6563_v15 = vpop.f32.mrb[104].mxu1 }
 0x2b2   : > { %6838 = vst [vmem:[#allocation5_spill] sm:$0xff] %v6563_v15  ;;  %v3538_v63 = vpop.f32.mrb[40].mxu0  ;;  %v3090_v44 = vpop.f32.mrb[105].mxu1 }
 0x2b3   : > { %v6566_v30 = vadd.f32 %v3538_v63, %v6397_v18  ;;  %v3540_v40 = vpop.f32.mrb[41].mxu0  ;;  %v6568_v14 = vpop.f32.mrb[106].mxu1 }
 0x2b4   : > { %6839 = vst [vmem:[#allocation6_spill] sm:$0xff] %v6568_v14  ;;  %v3541_v8 = vpop.f32.mrb[42].mxu0  ;;  %v3093_v48 = vpop.f32.mrb[107].mxu1 }
 0x2b5   : > { %v6571_v19 = vadd.f32 %v3541_v8, %v6400_v23  ;;  %v3543_v39 = vpop.f32.mrb[43].mxu0 }
 0x2b9   : > { %v6573_v6 = vpop.f32.mrb[108].mxu1 }
 0x2ba   : > { %6840 = vst [vmem:[#allocation7_spill] sm:$0xff] %v6573_v6  ;;  %v3546_v12 = vpop.f32.mrb[44].mxu0  ;;  %v3098_v59 = vpop.f32.mrb[109].mxu1 }
 0x2bb   : > { %v6576_v7 = vadd.f32 %v3546_v12, %v6405_v29  ;;  %v3548_v44 = vpop.f32.mrb[45].mxu0  ;;  %v6578_v15 = vpop.f32.mrb[110].mxu1 }
 0x2bc   : > { %6841 = vst [vmem:[#allocation8_spill] sm:$0xff] %v6578_v15  ;;  %v3549_v18 = vpop.f32.mrb[46].mxu0  ;;  %v3101_v63 = vpop.f32.mrb[111].mxu1 }
 0x2bd   : > { %v6581_v40 = vadd.f32 %v3549_v18, %v6408_v1  ;;  %v3551_v48 = vpop.f32.mrb[47].mxu0 }
 0x2c1   : > { %v6583_v14 = vpop.f32.mrb[112].mxu1 }
 0x2c2   : > { %6842 = vst [vmem:[#allocation9_spill] sm:$0xff] %v6583_v14  ;;  %v3554_v23 = vpop.f32.mrb[48].mxu0  ;;  %v3106_v8 = vpop.f32.mrb[113].mxu1 }
 0x2c3   : > { %v6586_v39 = vadd.f32 %v3554_v23, %v6413_v38  ;;  %v3556_v59 = vpop.f32.mrb[49].mxu0  ;;  %v6588_v6 = vpop.f32.mrb[114].mxu1 }
 0x2c4   : > { %6843 = vst [vmem:[#allocation10_spill] sm:$0xff] %v6588_v6  ;;  %v3557_v29 = vpop.f32.mrb[50].mxu0  ;;  %v3109_v12 = vpop.f32.mrb[115].mxu1 }
 0x2c5   : > { %v6591_v44 = vadd.f32 %v3557_v29, %v6416_v42  ;;  %v3559_v63 = vpop.f32.mrb[51].mxu0 }
 0x2c9   : > { %v6593_v15 = vpop.f32.mrb[116].mxu1 }
 0x2ca   : > { %6844 = vst [vmem:[#allocation11_spill] sm:$0xff] %v6593_v15  ;;  %v3562_v1 = vpop.f32.mrb[52].mxu0  ;;  %v3114_v18 = vpop.f32.mrb[117].mxu1 }
 0x2cb   : > { %v6596_v48 = vadd.f32 %v3562_v1, %v6421_v47  ;;  %v3564_v8 = vpop.f32.mrb[53].mxu0  ;;  %v6598_v14 = vpop.f32.mrb[118].mxu1 }
 0x2cc   : > { %6845 = vst [vmem:[#allocation12_spill] sm:$0xff] %v6598_v14  ;;  %v3565_v38 = vpop.f32.mrb[54].mxu0  ;;  %v3117_v23 = vpop.f32.mrb[119].mxu1 }
 0x2cd   : > { %v6601_v59 = vadd.f32 %v3565_v38, %v6424_v53  ;;  %v3567_v12 = vpop.f32.mrb[55].mxu0 }
 0x2d1   : > { %v6603_v6 = vpop.f32.mrb[120].mxu1 }
 0x2d2   : > { %6846 = vst [vmem:[#allocation13_spill] sm:$0xff] %v6603_v6  ;;  %v3570_v42 = vpop.f32.mrb[56].mxu0  ;;  %v3122_v29 = vpop.f32.mrb[121].mxu1 }
 0x2d3   : > { %v6606_v63 = vadd.f32 %v3570_v42, %v6429_v61  ;;  %v3572_v18 = vpop.f32.mrb[57].mxu0  ;;  %v6608_v47 = vpop.f32.mrb[122].mxu1 }
 0x2d4   : > { %6847 = vst [vmem:[#allocation14_spill] sm:$0xff] %v6608_v47  ;;  %v3573_v1 = vpop.f32.mrb[58].mxu0  ;;  %v3125_v8 = vpop.f32.mrb[123].mxu1 }
 0x2d5   : > { %v6611_v14 = vadd.f32 %v3573_v1, %v6432_v3  ;;  %v3575_v23 = vpop.f32.mrb[59].mxu0 }
 0x2d9   : > { %v6613_v53 = vpop.f32.mrb[124].mxu1 }
 0x2da   : > { %6848 = vst [vmem:[#allocation15_spill] sm:$0xff] %v6613_v53  ;;  %v3578_v38 = vpop.f32.mrb[60].mxu0  ;;  %v3130_v12 = vpop.f32.mrb[125].mxu1 }
 0x2db   : > { %v6616_v6 = vadd.f32 %v3578_v38, %v6437_v13  ;;  %v3580_v29 = vpop.f32.mrb[61].mxu0  ;;  %v6618_v61 = vpop.f32.mrb[126].mxu1 }
 0x2dc   : > { %6849 = vst [vmem:[#allocation16_spill] sm:$0xff] %v6618_v61  ;;  %v3581_v42 = vpop.f32.mrb[62].mxu0  ;;  %v3133_v18 = vpop.f32.mrb[127].mxu1 }
 0x2dd   : > { %v6621_v47 = vadd.f32 %v3581_v42, %v6440_v17  ;;  %v3583_v8 = vpop.f32.mrb[63].mxu0 }
 0x2e1   : > { %v4787_v3 = vpop.f32.mrb[128].mxu1 }
 0x2e2   : > { %v3586_v13 = vpop.f32.mrb[64].mxu0  ;;  %v3756_v1 = vadd.f32 %v6463_v55, %v4787_v3  ;;  %v3747_v23 = vpop.f32.mrb[129].mxu1 }
 0x2e3   : > { %v6631_v38 = vadd.f32 %v3586_v13, %v6445_v26  ;;  %v3588_v17 = vpop.f32.mrb[65].mxu0  ;;  %v3748_v12 = vadd.f32 %v6449_v33, %v3747_v23  ;;  %v4788_v29 = vpop.f32.mrb[130].mxu1 }
 0x2e4   : > { %4004 = vst [vmem:[%s6627_s24 + $0x10] sm:$0xff] %v3756_v1  ;;  %v3589_v42 = vpop.f32.mrb[66].mxu0  ;;  %v3759_v18 = vadd.f32 %v6471_v9, %v4788_v29  ;;  %v3750_v8 = vpop.f32.mrb[131].mxu1  ;;  %v4138_v33 = vmul.f32 %v3756_v1, %v3756_v1 }
 0x2e5   : > { %4002 = vst [vmem:[%s6627_s24] sm:$0xff] %v3748_v12  ;;  %v6638_v61 = vadd.f32 %v3589_v42, %v6451_v35  ;;  %v3591_v53 = vpop.f32.mrb[67].mxu0  ;;  %v3751_v55 = vadd.f32 %v6457_v45, %v3750_v8  ;;  %v4136_v3 = vmul.f32 %v3748_v12, %v3748_v12 }
 0x2e6   : > { %4005 = vst [vmem:[%s6627_s24 + $0x18] sm:$0xff] %v3759_v18  ;;  %v4139_v9 = vmul.f32 %v3759_v18, %v3759_v18 }
 0x2e7   : > { %4003 = vst [vmem:[%s6627_s24 + $0x8] sm:$0xff] %v3751_v55  ;;  %v4066_v26 = vadd.f32 %v3751_v55, %v3748_v12  ;;  %v4137_v13 = vmul.f32 %v3751_v55, %v3751_v55 }
 0x2e9   : > { %v4067_v23 = vadd.f32 %v4066_v26, %v3756_v1  ;;  %v4200_v17 = vadd.f32 %v4137_v13, %v4136_v3  ;;  %v4791_v15 = vpop.f32.mrb[132].mxu1 }
 0x2ea   : > { %v3594_v29 = vpop.f32.mrb[68].mxu0  ;;  %v3772_v27 = vadd.f32 %v6491_v46, %v4791_v15  ;;  %v3763_v35 = vpop.f32.mrb[133].mxu1 }
 0x2eb   : > { %v4201_v42 = vadd.f32 %v4200_v17, %v4138_v33  ;;  %v6645_v45 = vadd.f32 %v3594_v29, %v6459_v49  ;;  %v3596_v53 = vpop.f32.mrb[69].mxu0  ;;  %v3764_v12 = vadd.f32 %v6477_v21, %v3763_v35  ;;  %v4068_v8 = vadd.f32 %v4067_v23, %v3759_v18  ;;  %v4792_v55 = vpop.f32.mrb[134].mxu1 }
 0x2ec   : > { %4008 = vst [vmem:[%s6627_s24 + $0x30] sm:$0xff] %v3772_v27  ;;  %v3597_v1 = vpop.f32.mrb[70].mxu0  ;;  %v3775_v3 = vadd.f32 %v6499_v0, %v4792_v55  ;;  %v3766_v26 = vpop.f32.mrb[135].mxu1  ;;  %v4142_v35 = vmul.f32 %v3772_v27, %v3772_v27 }
 0x2ed   : > { %4006 = vst [vmem:[%s6627_s24 + $0x20] sm:$0xff] %v3764_v12  ;;  %v4069_v13 = vadd.f32 %v4068_v8, %v3764_v12  ;;  %v4140_v46 = vmul.f32 %v3764_v12, %v3764_v12  ;;  %v4202_v15 = vadd.f32 %v4201_v42, %v4139_v9  ;;  %v6652_v33 = vadd.f32 %v3597_v1, %v6465_v58  ;;  %v3599_v49 = vpop.f32.mrb[71].mxu0 }
 0x2ee   : > { %4009 = vst [vmem:[%s6627_s24 + $0x38] sm:$0xff] %v3775_v3  ;;  %v3767_v17 = vadd.f32 %v6485_v37, %v3766_v26  ;;  %v4143_v1 = vmul.f32 %v3775_v3, %v3775_v3 }
 0x2ef   : > { %v4203_v21 = vadd.f32 %v4202_v15, %v4140_v46 }
 0x2f0   : > { %4007 = vst [vmem:[%s6627_s24 + $0x28] sm:$0xff] %v3767_v17  ;;  %v4070_v18 = vadd.f32 %v4069_v13, %v3767_v17  ;;  %v4141_v23 = vmul.f32 %v3767_v17, %v3767_v17 }
 0x2f1   : > { %v4795_v29 = vpop.f32.mrb[136].mxu1 }
 0x2f2   : > { %v4071_v0 = vadd.f32 %v4070_v18, %v3772_v27  ;;  %v4204_v53 = vadd.f32 %v4203_v21, %v4141_v23  ;;  %v3602_v8 = vpop.f32.mrb[72].mxu0  ;;  %v3788_v9 = vadd.f32 %v6516_v5, %v4795_v29  ;;  %v3779_v42 = vpop.f32.mrb[137].mxu1 }
 0x2f3   : > { %v6659_v58 = vadd.f32 %v3602_v8, %v6473_v57  ;;  %v3604_v12 = vpop.f32.mrb[73].mxu0  ;;  %v3780_v37 = vadd.f32 %v6505_v16, %v3779_v42  ;;  %v4796_v55 = vpop.f32.mrb[138].mxu1 }
 0x2f4   : > { %v4205_v26 = vadd.f32 %v4204_v53, %v4142_v35  ;;  %4012 = vst [vmem:[%s6627_s24 + $0x50] sm:$0xff] %v3788_v9  ;;  %v4072_v13 = vadd.f32 %v4071_v0, %v3775_v3  ;;  %v3605_v27 = vpop.f32.mrb[74].mxu0  ;;  %v3791_v46 = vadd.f32 %v6521_v54, %v4796_v55  ;;  %v3782_v15 = vpop.f32.mrb[139].mxu1  ;;  %v4146_v35 = vmul.f32 %v3788_v9, %v3788_v9 }
 0x2f5   : > { %4010 = vst [vmem:[%s6627_s24 + $0x40] sm:$0xff] %v3780_v37  ;;  %v4144_v5 = vmul.f32 %v3780_v37, %v3780_v37  ;;  %v6666_v49 = vadd.f32 %v3605_v27, %v6479_v25  ;;  %v3607_v57 = vpop.f32.mrb[75].mxu0  ;;  %v3783_v17 = vadd.f32 %v6511_v31, %v3782_v15 }
 0x2f6   : > { %v4073_v16 = vadd.f32 %v4072_v13, %v3780_v37  ;;  %v4206_v21 = vadd.f32 %v4205_v26, %v4143_v1  ;;  %4013 = vst [vmem:[%s6627_s24 + $0x58] sm:$0xff] %v3791_v46  ;;  %v4147_v55 = vmul.f32 %v3791_v46, %v3791_v46 }
 0x2f7   : > { %4011 = vst [vmem:[%s6627_s24 + $0x48] sm:$0xff] %v3783_v17  ;;  %v4145_v18 = vmul.f32 %v3783_v17, %v3783_v17 }
 0x2f8   : > { %v4207_v23 = vadd.f32 %v4206_v21, %v4144_v5  ;;  %v4074_v3 = vadd.f32 %v4073_v16, %v3783_v17 }
 0x2f9   : > { %v4799_v29 = vpop.f32.mrb[140].mxu1 }
 0x2fa   : > { %v4075_v54 = vadd.f32 %v4074_v3, %v3788_v9  ;;  %v4208_v0 = vadd.f32 %v4207_v23, %v4145_v18  ;;  %v3610_v53 = vpop.f32.mrb[76].mxu0  ;;  %v3804_v25 = vadd.f32 %v6536_v32, %v4799_v29  ;;  %v3795_v8 = vpop.f32.mrb[141].mxu1 }
 0x2fb   : > { %v6673_v42 = vadd.f32 %v3610_v53, %v6487_v2  ;;  %v3612_v31 = vpop.f32.mrb[77].mxu0  ;;  %v3796_v12 = vadd.f32 %v6526_v4, %v3795_v8  ;;  %v4800_v37 = vpop.f32.mrb[142].mxu1 }
 0x2fc   : > { %v4209_v1 = vadd.f32 %v4208_v0, %v4146_v35  ;;  %4016 = vst [vmem:[%s6627_s24 + $0x70] sm:$0xff] %v3804_v25  ;;  %v4076_v26 = vadd.f32 %v4075_v54, %v3791_v46  ;;  %v3613_v9 = vpop.f32.mrb[78].mxu0  ;;  %v3807_v13 = vadd.f32 %v6541_v50, %v4800_v37  ;;  %v3798_v27 = vpop.f32.mrb[143].mxu1  ;;  %v4150_v18 = vmul.f32 %v3804_v25, %v3804_v25 }
 0x2fd   : > { %4014 = vst [vmem:[%s6627_s24 + $0x60] sm:$0xff] %v3796_v12  ;;  %v4148_v32 = vmul.f32 %v3796_v12, %v3796_v12  ;;  %v6680_v15 = vadd.f32 %v3613_v9, %v6493_v51  ;;  %v3615_v2 = vpop.f32.mrb[79].mxu0  ;;  %v3799_v5 = vadd.f32 %v6531_v20, %v3798_v27 }
 0x2fe   : > { %v4077_v4 = vadd.f32 %v4076_v26, %v3796_v12  ;;  %v4210_v57 = vadd.f32 %v4209_v1, %v4147_v55  ;;  %4017 = vst [vmem:[%s6627_s24 + $0x78] sm:$0xff] %v3807_v13  ;;  %v4151_v53 = vmul.f32 %v3807_v13, %v3807_v13 }
 0x2ff   : > { %4015 = vst [vmem:[%s6627_s24 + $0x68] sm:$0xff] %v3799_v5  ;;  %v4149_v17 = vmul.f32 %v3799_v5, %v3799_v5 }
 0x300   : > { %v4211_v16 = vadd.f32 %v4210_v57, %v4148_v32  ;;  %v4078_v46 = vadd.f32 %v4077_v4, %v3799_v5 }
 0x301   : > { %v4803_v21 = vpop.f32.mrb[144].mxu1 }
 0x302   : > { %v4079_v50 = vadd.f32 %v4078_v46, %v3804_v25  ;;  %v4212_v23 = vadd.f32 %v4211_v16, %v4149_v17  ;;  %v3618_v3 = vpop.f32.mrb[80].mxu0  ;;  %v3820_v51 = vadd.f32 %v6556_v36, %v4803_v21  ;;  %v3811_v29 = vpop.f32.mrb[145].mxu1 }
 0x303   : > { %v6687_v35 = vadd.f32 %v3618_v3, %v6501_v11  ;;  %v3620_v20 = vpop.f32.mrb[81].mxu0  ;;  %v3812_v54 = vadd.f32 %v6546_v62, %v3811_v29  ;;  %v4804_v0 = vpop.f32.mrb[146].mxu1 }
 0x304   : > { %v4213_v8 = vadd.f32 %v4212_v23, %v4150_v18  ;;  %4020 = vst [vmem:[%s6627_s24 + $0x90] sm:$0xff] %v3820_v51  ;;  %v4080_v31 = vadd.f32 %v4079_v50, %v3807_v13  ;;  %v3621_v25 = vpop.f32.mrb[82].mxu0  ;;  %v3823_v12 = vadd.f32 %v6561_v52, %v4804_v0  ;;  %v3814_v37 = vpop.f32.mrb[147].mxu1  ;;  %v4154_v2 = vmul.f32 %v3820_v51, %v3820_v51 }
 0x305   : > { %4018 = vst [vmem:[%s6627_s24 + $0x80] sm:$0xff] %v3812_v54  ;;  %v4152_v36 = vmul.f32 %v3812_v54, %v3812_v54  ;;  %v6694_v55 = vadd.f32 %v3621_v25, %v6507_v24  ;;  %v3623_v11 = vpop.f32.mrb[83].mxu0  ;;  %v3815_v1 = vadd.f32 %v6551_v60, %v3814_v37 }
 0x306   : > { %v4081_v62 = vadd.f32 %v4080_v31, %v3812_v54  ;;  %v4214_v26 = vadd.f32 %v4213_v8, %v4151_v53  ;;  %4021 = vst [vmem:[%s6627_s24 + $0x98] sm:$0xff] %v3823_v12  ;;  %v4155_v21 = vmul.f32 %v3823_v12, %v3823_v12 }
 0x307   : > { %4019 = vst [vmem:[%s6627_s24 + $0x88] sm:$0xff] %v3815_v1  ;;  %v4153_v9 = vmul.f32 %v3815_v1, %v3815_v1 }
 0x308   : > { %v4215_v27 = vadd.f32 %v4214_v26, %v4152_v36  ;;  %v4082_v13 = vadd.f32 %v4081_v62, %v3815_v1 }
 0x309   : > { %v4807_v32 = vpop.f32.mrb[148].mxu1 }
 0x30a   : > { %v4083_v52 = vadd.f32 %v4082_v13, %v3820_v51  ;;  %v4216_v5 = vadd.f32 %v4215_v27, %v4153_v9  ;;  %v3626_v4 = vpop.f32.mrb[84].mxu0  ;;  %v3836_v24 = vadd.f32 %v6576_v7, %v4807_v32  ;;  %v3827_v57 = vpop.f32.mrb[149].mxu1 }
 0x30b   : > { %v6701_v17 = vadd.f32 %v3626_v4, %v6513_v34  ;;  %v3628_v60 = vpop.f32.mrb[85].mxu0  ;;  %v3828_v16 = vadd.f32 %v6566_v30, %v3827_v57  ;;  %v4808_v46 = vpop.f32.mrb[150].mxu1 }
 0x30c   : > { %v4217_v18 = vadd.f32 %v4216_v5, %v4154_v2  ;;  %4024 = vst [vmem:[%s6627_s24 + $0xb0] sm:$0xff] %v3836_v24  ;;  %v4084_v50 = vadd.f32 %v4083_v52, %v3823_v12  ;;  %v3629_v23 = vpop.f32.mrb[86].mxu0  ;;  %v3839_v3 = vadd.f32 %v6581_v40, %v4808_v46  ;;  %v3830_v51 = vpop.f32.mrb[151].mxu1  ;;  %v4158_v25 = vmul.f32 %v3836_v24, %v3836_v24 }
 0x30d   : > { %4022 = vst [vmem:[%s6627_s24 + $0xa0] sm:$0xff] %v3828_v16  ;;  %v4156_v7 = vmul.f32 %v3828_v16, %v3828_v16  ;;  %v6708_v29 = vadd.f32 %v3629_v23, %v6518_v43  ;;  %v3631_v34 = vpop.f32.mrb[87].mxu0  ;;  %v3831_v20 = vadd.f32 %v6571_v19, %v3830_v51 }
 0x30e   : > { %v4085_v30 = vadd.f32 %v4084_v50, %v3828_v16  ;;  %v4218_v54 = vadd.f32 %v4217_v18, %v4155_v21  ;;  %4025 = vst [vmem:[%s6627_s24 + $0xb8] sm:$0xff] %v3839_v3  ;;  %v4159_v26 = vmul.f32 %v3839_v3, %v3839_v3 }
 0x30f   : > { %4023 = vst [vmem:[%s6627_s24 + $0xa8] sm:$0xff] %v3831_v20  ;;  %v4157_v0 = vmul.f32 %v3831_v20, %v3831_v20 }
 0x310   : > { %v4219_v53 = vadd.f32 %v4218_v54, %v4156_v7  ;;  %v4086_v8 = vadd.f32 %v4085_v30, %v3831_v20 }
 0x311   : > { %v4811_v31 = vpop.f32.mrb[152].mxu1 }
 0x312   : > { %v4087_v40 = vadd.f32 %v4086_v8, %v3836_v24  ;;  %v4220_v12 = vadd.f32 %v4219_v53, %v4157_v0  ;;  %v3634_v37 = vpop.f32.mrb[88].mxu0  ;;  %v3852_v43 = vadd.f32 %v6596_v48, %v4811_v31  ;;  %v3843_v36 = vpop.f32.mrb[153].mxu1 }
 0x313   : > { %v6715_v11 = vadd.f32 %v3634_v37, %v6523_v56  ;;  %v3636_v19 = vpop.f32.mrb[89].mxu0  ;;  %v3844_v1 = vadd.f32 %v6586_v39, %v3843_v36  ;;  %v4812_v62 = vpop.f32.mrb[154].mxu1 }
 0x314   : > { %v4221_v9 = vadd.f32 %v4220_v12, %v4158_v25  ;;  %4028 = vst [vmem:[%s6627_s24 + $0xd0] sm:$0xff] %v3852_v43  ;;  %v4088_v27 = vadd.f32 %v4087_v40, %v3839_v3  ;;  %v3637_v13 = vpop.f32.mrb[90].mxu0  ;;  %v3855_v32 = vadd.f32 %v6601_v59, %v4812_v62  ;;  %v3846_v2 = vpop.f32.mrb[155].mxu1  ;;  %v4162_v46 = vmul.f32 %v3852_v43, %v3852_v43 }
 0x315   : > { %4026 = vst [vmem:[%s6627_s24 + $0xc0] sm:$0xff] %v3844_v1  ;;  %v4160_v48 = vmul.f32 %v3844_v1, %v3844_v1  ;;  %v6722_v52 = vadd.f32 %v3637_v13, %v6528_v10  ;;  %v3639_v56 = vpop.f32.mrb[91].mxu0  ;;  %v3847_v5 = vadd.f32 %v6591_v44, %v3846_v2 }
 0x316   : > { %v4089_v39 = vadd.f32 %v4088_v27, %v3844_v1  ;;  %v4222_v4 = vadd.f32 %v4221_v9, %v4159_v26  ;;  %4029 = vst [vmem:[%s6627_s24 + $0xd8] sm:$0xff] %v3855_v32  ;;  %v4163_v7 = vmul.f32 %v3855_v32, %v3855_v32 }
 0x317   : > { %4027 = vst [vmem:[%s6627_s24 + $0xc8] sm:$0xff] %v3847_v5  ;;  %v4161_v24 = vmul.f32 %v3847_v5, %v3847_v5 }
 0x318   : > { %v4223_v57 = vadd.f32 %v4222_v4, %v4160_v48  ;;  %v4090_v60 = vadd.f32 %v4089_v39, %v3847_v5  ;;  %v6850_v5 = vld [vmem:[#allocation2_spill] sm:$0xff] }
 0x319   : > { %v4815_v16 = vpop.f32.mrb[156].mxu1 }
 0x31a   : > { %v4091_v59 = vadd.f32 %v4090_v60, %v3852_v43  ;;  %v4224_v21 = vadd.f32 %v4223_v57, %v4161_v24  ;;  %v3642_v18 = vpop.f32.mrb[92].mxu0  ;;  %v3868_v10 = vadd.f32 %v6616_v6, %v4815_v16  ;;  %v3859_v50 = vpop.f32.mrb[157].mxu1 }
 0x31b   : > { %v6729_v23 = vadd.f32 %v3642_v18, %v6533_v28  ;;  %v3644_v44 = vpop.f32.mrb[93].mxu0  ;;  %v3860_v3 = vadd.f32 %v6606_v63, %v3859_v50  ;;  %v4816_v51 = vpop.f32.mrb[158].mxu1 }
 0x31c   : > { %v4225_v34 = vadd.f32 %v4224_v21, %v4162_v46  ;;  %4032 = vst [vmem:[%s6627_s24 + $0xf0] sm:$0xff] %v3868_v10  ;;  %v4092_v20 = vadd.f32 %v4091_v59, %v3855_v32  ;;  %v3645_v30 = vpop.f32.mrb[94].mxu0  ;;  %v3871_v54 = vadd.f32 %v6621_v47, %v4816_v51  ;;  %v3862_v0 = vpop.f32.mrb[159].mxu1  ;;  %v4166_v43 = vmul.f32 %v3868_v10, %v3868_v10  ;;  %v6851_v44 = vld [vmem:[#allocation3_spill] sm:$0xff] }
 0x31d   : > { %4030 = vst [vmem:[%s6627_s24 + $0xe0] sm:$0xff] %v3860_v3  ;;  %v4164_v6 = vmul.f32 %v3860_v3, %v3860_v3  ;;  %v6736_v53 = vadd.f32 %v3645_v30, %v6538_v41  ;;  %v3647_v28 = vpop.f32.mrb[95].mxu0  ;;  %v3863_v8 = vadd.f32 %v6611_v14, %v3862_v0 }
 0x31e   : > { %v4093_v63 = vadd.f32 %v4092_v20, %v3860_v3  ;;  %v4226_v31 = vadd.f32 %v4225_v34, %v4163_v7  ;;  %4033 = vst [vmem:[%s6627_s24 + $0xf8] sm:$0xff] %v3871_v54  ;;  %v4167_v27 = vmul.f32 %v3871_v54, %v3871_v54  ;;  %v6852_v28 = vld [vmem:[#allocation4_spill] sm:$0xff] }
 0x31f   : > { %4031 = vst [vmem:[%s6627_s24 + $0xe8] sm:$0xff] %v3863_v8  ;;  %v4165_v25 = vmul.f32 %v3863_v8, %v3863_v8 }
 0x320   : > { %v4227_v40 = vadd.f32 %v4226_v31, %v4164_v6  ;;  %v4094_v12 = vadd.f32 %v4093_v63, %v3863_v8 }
 0x321   : > { %v4819_v37 = vpop.f32.mrb[160].mxu1 }
 0x322   : > { %v4095_v47 = vadd.f32 %v4094_v12, %v3868_v10  ;;  %v4228_v36 = vadd.f32 %v4227_v40, %v4165_v25  ;;  %v3650_v19 = vpop.f32.mrb[96].mxu0  ;;  %v3884_v41 = vadd.f32 %v6645_v45, %v4819_v37  ;;  %v3875_v1 = vpop.f32.mrb[161].mxu1 }
 0x323   : > { %v6743_v62 = vadd.f32 %v3650_v19, %v6543_v22  ;;  %v3652_v14 = vpop.f32.mrb[97].mxu0  ;;  %v3876_v26 = vadd.f32 %v6631_v38, %v3875_v1  ;;  %v4820_v9 = vpop.f32.mrb[162].mxu1 }
 0x324   : > { %v4229_v13 = vadd.f32 %v4228_v36, %v4166_v43  ;;  %4036 = vst [vmem:[%s6627_s24 + $0x110] sm:$0xff] %v3884_v41  ;;  %v4096_v32 = vadd.f32 %v4095_v47, %v3871_v54  ;;  %v3653_v2 = vpop.f32.mrb[98].mxu0  ;;  %v3887_v48 = vadd.f32 %v6652_v33, %v4820_v9  ;;  %v3878_v56 = vpop.f32.mrb[163].mxu1  ;;  %v4170_v59 = vmul.f32 %v3884_v41, %v3884_v41  ;;  %v6853_v14 = vld [vmem:[#allocation5_spill] sm:$0xff] }
 0x325   : > { %4034 = vst [vmem:[%s6627_s24 + $0x100] sm:$0xff] %v3876_v26  ;;  %v4168_v45 = vmul.f32 %v3876_v26, %v3876_v26  ;;  %v6750_v39 = vadd.f32 %v3653_v2, %v6850_v5  ;;  %v3655_v22 = vpop.f32.mrb[99].mxu0  ;;  %v3879_v4 = vadd.f32 %v6638_v61, %v3878_v56  ;;  %v6854_v5 = vld [vmem:[#allocation6_spill] sm:$0xff] }
 0x326   : > { %v4097_v38 = vadd.f32 %v4096_v32, %v3876_v26  ;;  %v4230_v24 = vadd.f32 %v4229_v13, %v4167_v27  ;;  %4037 = vst [vmem:[%s6627_s24 + $0x118] sm:$0xff] %v3887_v48  ;;  %v4171_v34 = vmul.f32 %v3887_v48, %v3887_v48 }
 0x327   : > { %4035 = vst [vmem:[%s6627_s24 + $0x108] sm:$0xff] %v3879_v4  ;;  %v4169_v57 = vmul.f32 %v3879_v4, %v3879_v4 }
 0x328   : > { %v4231_v60 = vadd.f32 %v4230_v24, %v4168_v45  ;;  %v4098_v16 = vadd.f32 %v4097_v38, %v3879_v4 }
 0x329   : > { %v4823_v46 = vpop.f32.mrb[164].mxu1 }
 0x32a   : > { %v4099_v33 = vadd.f32 %v4098_v16, %v3884_v41  ;;  %v4232_v21 = vadd.f32 %v4231_v60, %v4169_v57  ;;  %v3658_v18 = vpop.f32.mrb[100].mxu0  ;;  %v3900_v10 = vadd.f32 %v6673_v42, %v4823_v46  ;;  %v3891_v50 = vpop.f32.mrb[165].mxu1 }
 0x32b   : > { %v6757_v3 = vadd.f32 %v3658_v18, %v6851_v44  ;;  %v3660_v61 = vpop.f32.mrb[101].mxu0  ;;  %v3892_v51 = vadd.f32 %v6659_v58, %v3891_v50  ;;  %v4824_v7 = vpop.f32.mrb[166].mxu1  ;;  %v6855_v50 = vld [vmem:[#allocation7_spill] sm:$0xff] }
 0x32c   : > { %v4233_v20 = vadd.f32 %v4232_v21, %v4170_v59  ;;  %4040 = vst [vmem:[%s6627_s24 + $0x130] sm:$0xff] %v3900_v10  ;;  %v4100_v30 = vadd.f32 %v4099_v33, %v3887_v48  ;;  %v3661_v54 = vpop.f32.mrb[102].mxu0  ;;  %v3903_v0 = vadd.f32 %v6680_v15, %v4824_v7  ;;  %v3894_v6 = vpop.f32.mrb[167].mxu1  ;;  %v4174_v47 = vmul.f32 %v3900_v10, %v3900_v10 }
 0x32d   : > { %4038 = vst [vmem:[%s6627_s24 + $0x120] sm:$0xff] %v3892_v51  ;;  %v4172_v42 = vmul.f32 %v3892_v51, %v3892_v51  ;;  %v6764_v8 = vadd.f32 %v3661_v54, %v6852_v28  ;;  %v3663_v63 = vpop.f32.mrb[103].mxu0  ;;  %v3895_v31 = vadd.f32 %v6666_v49, %v3894_v6 }
 0x32e   : > { %v4101_v58 = vadd.f32 %v4100_v30, %v3892_v51  ;;  %v4234_v25 = vadd.f32 %v4233_v20, %v4171_v34  ;;  %4041 = vst [vmem:[%s6627_s24 + $0x138] sm:$0xff] %v3903_v0  ;;  %v4175_v13 = vmul.f32 %v3903_v0, %v3903_v0 }
 0x32f   : > { %4039 = vst [vmem:[%s6627_s24 + $0x128] sm:$0xff] %v3895_v31  ;;  %v4173_v40 = vmul.f32 %v3895_v31, %v3895_v31 }
 0x330   : > { %v4235_v12 = vadd.f32 %v4234_v25, %v4172_v42  ;;  %v4102_v37 = vadd.f32 %v4101_v58, %v3895_v31 }
 0x331   : > { %v4827_v43 = vpop.f32.mrb[168].mxu1 }
 0x332   : > { %v4103_v15 = vadd.f32 %v4102_v37, %v3900_v10  ;;  %v4236_v36 = vadd.f32 %v4235_v12, %v4173_v40  ;;  %v3666_v19 = vpop.f32.mrb[104].mxu0  ;;  %v3916_v41 = vadd.f32 %v6701_v17, %v4827_v43  ;;  %v3907_v1 = vpop.f32.mrb[169].mxu1 }
 0x333   : > { %v6771_v26 = vadd.f32 %v3666_v19, %v6853_v14  ;;  %v3668_v49 = vpop.f32.mrb[105].mxu0  ;;  %v3908_v9 = vadd.f32 %v6687_v35, %v3907_v1  ;;  %v4828_v27 = vpop.f32.mrb[170].mxu1  ;;  %v6857_v19 = vld [vmem:[#allocation9_spill] sm:$0xff] }
 0x334   : > { %v4237_v32 = vadd.f32 %v4236_v36, %v4174_v47  ;;  %4044 = vst [vmem:[%s6627_s24 + $0x150] sm:$0xff] %v3916_v41  ;;  %v4104_v2 = vadd.f32 %v4103_v15, %v3903_v0  ;;  %v3669_v48 = vpop.f32.mrb[106].mxu0  ;;  %v3919_v56 = vadd.f32 %v6708_v29, %v4828_v27  ;;  %v3910_v45 = vpop.f32.mrb[171].mxu1  ;;  %v4178_v59 = vmul.f32 %v3916_v41, %v3916_v41 }
 0x335   : > { %4042 = vst [vmem:[%s6627_s24 + $0x140] sm:$0xff] %v3908_v9  ;;  %v4176_v17 = vmul.f32 %v3908_v9, %v3908_v9  ;;  %v6778_v22 = vadd.f32 %v3669_v48, %v6854_v5  ;;  %v3671_v4 = vpop.f32.mrb[107].mxu0  ;;  %v3911_v38 = vadd.f32 %v6694_v55, %v3910_v45 }
 0x336   : > { %v4105_v35 = vadd.f32 %v4104_v2, %v3908_v9  ;;  %v4238_v24 = vadd.f32 %v4237_v32, %v4175_v13  ;;  %4045 = vst [vmem:[%s6627_s24 + $0x158] sm:$0xff] %v3919_v56  ;;  %v4179_v7 = vmul.f32 %v3919_v56, %v3919_v56 }
 0x337   : > { %4043 = vst [vmem:[%s6627_s24 + $0x148] sm:$0xff] %v3911_v38  ;;  %v4177_v57 = vmul.f32 %v3911_v38, %v3911_v38 }
 0x338   : > { %v4239_v60 = vadd.f32 %v4238_v24, %v4176_v17  ;;  %v4106_v16 = vadd.f32 %v4105_v35, %v3911_v38 }
 0x339   : > { %v4831_v46 = vpop.f32.mrb[172].mxu1 }
 0x33a   : > { %v4107_v29 = vadd.f32 %v4106_v16, %v3916_v41  ;;  %v4240_v33 = vadd.f32 %v4239_v60, %v4177_v57  ;;  %v3674_v21 = vpop.f32.mrb[108].mxu0  ;;  %v3932_v18 = vadd.f32 %v6729_v23, %v4831_v46  ;;  %v3923_v10 = vpop.f32.mrb[173].mxu1  ;;  %v6856_v23 = vld [vmem:[#allocation8_spill] sm:$0xff] }
 0x33b   : > { %v4935_v44 = vadd.f32 %v3674_v21, %v6855_v50  ;;  %v3676_v55 = vpop.f32.mrb[109].mxu0  ;;  %v3924_v61 = vadd.f32 %v6715_v11, %v3923_v10  ;;  %v4832_v51 = vpop.f32.mrb[174].mxu1 }
 0x33c   : > { %v4241_v34 = vadd.f32 %v4240_v33, %v4178_v59  ;;  %4048 = vst [vmem:[%s6627_s24 + $0x170] sm:$0xff] %v3932_v18  ;;  %v4108_v20 = vadd.f32 %v4107_v29, %v3919_v56  ;;  %v3677_v30 = vpop.f32.mrb[110].mxu0  ;;  %v3935_v54 = vadd.f32 %v6736_v53, %v4832_v51  ;;  %v3926_v0 = vpop.f32.mrb[175].mxu1  ;;  %v4182_v37 = vmul.f32 %v3932_v18, %v3932_v18  ;;  %v6859_v29 = vld [vmem:[#allocation11_spill] sm:$0xff] }
 0x33d   : > { %4046 = vst [vmem:[%s6627_s24 + $0x160] sm:$0xff] %v3924_v61  ;;  %v4180_v6 = vmul.f32 %v3924_v61, %v3924_v61  ;;  %v4936_v42 = vadd.f32 %v3677_v30, %v6856_v23  ;;  %v3679_v28 = vpop.f32.mrb[111].mxu0  ;;  %v3927_v63 = vadd.f32 %v6722_v52, %v3926_v0 }
 0x33e   : > { %v4109_v31 = vadd.f32 %v4108_v20, %v3924_v61  ;;  %v4242_v11 = vadd.f32 %v4241_v34, %v4179_v7  ;;  %4049 = vst [vmem:[%s6627_s24 + $0x178] sm:$0xff] %v3935_v54  ;;  %v4183_v49 = vmul.f32 %v3935_v54, %v3935_v54  ;;  %v6860_v20 = vld [vmem:[#allocation12_spill] sm:$0xff] }
 0x33f   : > { %4047 = vst [vmem:[%s6627_s24 + $0x168] sm:$0xff] %v3927_v63  ;;  %v4181_v58 = vmul.f32 %v3927_v63, %v3927_v63 }
 0x340   : > { %v4243_v25 = vadd.f32 %v4242_v11, %v4180_v6  ;;  %v4110_v40 = vadd.f32 %v4109_v31, %v3927_v63 }
 0x341   : > { %v4835_v12 = vpop.f32.mrb[176].mxu1 }
 0x342   : > { %v4111_v43 = vadd.f32 %v4110_v40, %v3932_v18  ;;  %v4244_v53 = vadd.f32 %v4243_v25, %v4181_v58  ;;  %v3682_v47 = vpop.f32.mrb[112].mxu0  ;;  %v3948_v15 = vadd.f32 %v6757_v3, %v4835_v12  ;;  %v3939_v36 = vpop.f32.mrb[177].mxu1  ;;  %v6858_v3 = vld [vmem:[#allocation10_spill] sm:$0xff]  ;;  %v6861_v12 = vld [vmem:[#allocation13_spill] sm:$0xff] }
 0x343   : > { %v4937_v41 = vadd.f32 %v3682_v47, %v6857_v19  ;;  %v3684_v52 = vpop.f32.mrb[113].mxu0  ;;  %v3940_v1 = vadd.f32 %v6743_v62, %v3939_v36  ;;  %v4836_v14 = vpop.f32.mrb[178].mxu1 }
 0x344   : > { %v4245_v9 = vadd.f32 %v4244_v53, %v4182_v37  ;;  %4052 = vst [vmem:[%s6627_s24 + $0x190] sm:$0xff] %v3948_v15  ;;  %v4112_v27 = vadd.f32 %v4111_v43, %v3935_v54  ;;  %v3685_v13 = vpop.f32.mrb[114].mxu0  ;;  %v3951_v32 = vadd.f32 %v6764_v8, %v4836_v14  ;;  %v3942_v2 = vpop.f32.mrb[179].mxu1  ;;  %v4186_v57 = vmul.f32 %v3948_v15, %v3948_v15 }
 0x345   : > { %4050 = vst [vmem:[%s6627_s24 + $0x180] sm:$0xff] %v3940_v1  ;;  %v4184_v48 = vmul.f32 %v3940_v1, %v3940_v1  ;;  %v4938_v56 = vadd.f32 %v3685_v13, %v6858_v3  ;;  %v3687_v45 = vpop.f32.mrb[115].mxu0  ;;  %v3943_v17 = vadd.f32 %v6750_v39, %v3942_v2 }
 0x346   : > { %v4113_v5 = vadd.f32 %v4112_v27, %v3940_v1  ;;  %v4246_v62 = vadd.f32 %v4245_v9, %v4183_v49  ;;  %4053 = vst [vmem:[%s6627_s24 + $0x198] sm:$0xff] %v3951_v32  ;;  %v4187_v10 = vmul.f32 %v3951_v32, %v3951_v32  ;;  %v6862_v49 = vld [vmem:[#allocation14_spill] sm:$0xff] }
 0x347   : > { %4051 = vst [vmem:[%s6627_s24 + $0x188] sm:$0xff] %v3943_v17  ;;  %v4185_v4 = vmul.f32 %v3943_v17, %v3943_v17 }
 0x348   : > { %v4247_v38 = vadd.f32 %v4246_v62, %v4184_v48  ;;  %v4114_v35 = vadd.f32 %v4113_v5, %v3943_v17 }
 0x349   : > { %v4839_v24 = vpop.f32.mrb[180].mxu1 }
 0x34a   : > { %v4115_v60 = vadd.f32 %v4114_v35, %v3948_v15  ;;  %v4248_v8 = vadd.f32 %v4247_v38, %v4185_v4  ;;  %v3690_v16 = vpop.f32.mrb[116].mxu0  ;;  %v3964_v46 = vadd.f32 %v4935_v44, %v4839_v24  ;;  %v3955_v59 = vpop.f32.mrb[181].mxu1  ;;  %v6863_v35 = vld [vmem:[#allocation15_spill] sm:$0xff] }
 0x34b   : > { %v4939_v33 = vadd.f32 %v3690_v16, %v6859_v29  ;;  %v3692_v21 = vpop.f32.mrb[117].mxu0  ;;  %v3956_v39 = vadd.f32 %v6771_v26, %v3955_v59  ;;  %v4840_v18 = vpop.f32.mrb[182].mxu1 }
 0x34c   : > { %v4249_v50 = vadd.f32 %v4248_v8, %v4186_v57  ;;  %4056 = vst [vmem:[%s6627_s24 + $0x1b0] sm:$0xff] %v3964_v46  ;;  %v4116_v55 = vadd.f32 %v4115_v60, %v3951_v32  ;;  %v3693_v61 = vpop.f32.mrb[118].mxu0  ;;  %v3967_v51 = vadd.f32 %v4936_v42, %v4840_v18  ;;  %v3958_v7 = vpop.f32.mrb[183].mxu1  ;;  %v4190_v31 = vmul.f32 %v3964_v46, %v3964_v46 }
 0x34d   : > { %4054 = vst [vmem:[%s6627_s24 + $0x1a0] sm:$0xff] %v3956_v39  ;;  %v4188_v34 = vmul.f32 %v3956_v39, %v3956_v39  ;;  %v4940_v44 = vadd.f32 %v3693_v61, %v6860_v20  ;;  %v3695_v30 = vpop.f32.mrb[119].mxu0  ;;  %v3959_v54 = vadd.f32 %v6778_v22, %v3958_v7 }
 0x34e   : > { %v4117_v0 = vadd.f32 %v4116_v55, %v3956_v39  ;;  %v4250_v6 = vadd.f32 %v4249_v50, %v4187_v10  ;;  %4057 = vst [vmem:[%s6627_s24 + $0x1b8] sm:$0xff] %v3967_v51  ;;  %v4191_v47 = vmul.f32 %v3967_v51, %v3967_v51  ;;  %v6864_v39 = vld [vmem:[#allocation16_spill] sm:$0xff] }
 0x34f   : > { %4055 = vst [vmem:[%s6627_s24 + $0x1a8] sm:$0xff] %v3959_v54  ;;  %v4189_v26 = vmul.f32 %v3959_v54, %v3959_v54 }
 0x350   : > { %v4251_v23 = vadd.f32 %v4250_v6, %v4188_v34  ;;  %v4118_v28 = vadd.f32 %v4117_v0, %v3959_v54 }
 0x351   : > { %v4843_v63 = vpop.f32.mrb[184].mxu1 }
 0x352   : > { %v4119_v11 = vadd.f32 %v4118_v28, %v3964_v46  ;;  %v4252_v42 = vadd.f32 %v4251_v23, %v4189_v26  ;;  %v3698_v58 = vpop.f32.mrb[120].mxu0  ;;  %v3980_v25 = vadd.f32 %v4939_v33, %v4843_v63  ;;  %v3971_v40 = vpop.f32.mrb[185].mxu1 }
 0x353   : > { %v4941_v37 = vadd.f32 %v3698_v58, %v6861_v12  ;;  %v3700_v43 = vpop.f32.mrb[121].mxu0  ;;  %v3972_v22 = vadd.f32 %v4937_v41, %v3971_v40  ;;  %v4844_v53 = vpop.f32.mrb[186].mxu1 }
 0x354   : > { %v4253_v15 = vadd.f32 %v4252_v42, %v4190_v31  ;;  %4060 = vst [vmem:[%s6627_s24 + $0x1d0] sm:$0xff] %v3980_v25  ;;  %v4120_v36 = vadd.f32 %v4119_v11, %v3967_v51  ;;  %v3701_v19 = vpop.f32.mrb[122].mxu0  ;;  %v3983_v52 = vadd.f32 %v4940_v44, %v4844_v53  ;;  %v3974_v1 = vpop.f32.mrb[187].mxu1  ;;  %v4194_v17 = vmul.f32 %v3980_v25, %v3980_v25 }
 0x355   : > { %4058 = vst [vmem:[%s6627_s24 + $0x1c0] sm:$0xff] %v3972_v22  ;;  %v4192_v14 = vmul.f32 %v3972_v22, %v3972_v22  ;;  %v4942_v9 = vadd.f32 %v3701_v19, %v6862_v49  ;;  %v3703_v27 = vpop.f32.mrb[123].mxu0  ;;  %v3975_v13 = vadd.f32 %v4938_v56, %v3974_v1 }
 0x356   : > { %v4121_v32 = vadd.f32 %v4120_v36, %v3972_v22  ;;  %v4254_v2 = vadd.f32 %v4253_v15, %v4191_v47  ;;  %4061 = vst [vmem:[%s6627_s24 + $0x1d8] sm:$0xff] %v3983_v52  ;;  %v4195_v8 = vmul.f32 %v3983_v52, %v3983_v52 }
 0x357   : > { %4059 = vst [vmem:[%s6627_s24 + $0x1c8] sm:$0xff] %v3975_v13  ;;  %v4193_v41 = vmul.f32 %v3975_v13, %v3975_v13 }
 0x358   : > { %v4255_v48 = vadd.f32 %v4254_v2, %v4192_v14  ;;  %v4122_v3 = vadd.f32 %v4121_v32, %v3975_v13 }
 0x359   : > { %v4847_v45 = vpop.f32.mrb[188].mxu1 }
 0x35a   : > { %v4123_v5 = vadd.f32 %v4122_v3, %v3980_v25  ;;  %v4256_v62 = vadd.f32 %v4255_v48, %v4193_v41  ;;  %v3706_v4 = vpop.f32.mrb[124].mxu0  ;;  %v3987_v38 = vpop.f32.mrb[189].mxu1 }
 0x35b   : > { %v4943_v24 = vadd.f32 %v3706_v4, %v6863_v35  ;;  %v3708_v57 = vpop.f32.mrb[125].mxu0  ;;  %v3988_v60 = vadd.f32 %v4941_v37, %v3987_v38  ;;  %v4848_v56 = vpop.f32.mrb[190].mxu1 }
 0x35c   : > { %v4257_v16 = vadd.f32 %v4256_v62, %v4194_v17  ;;  %v4124_v46 = vadd.f32 %v4123_v5, %v3983_v52  ;;  %v3709_v59 = vpop.f32.mrb[126].mxu0  ;;  %v3990_v29 = vpop.f32.mrb[191].mxu1 }
 0x35d   : > { %v3996_v33 = vadd.f32 %v4943_v24, %v4847_v45  ;;  %4062 = vst [vmem:[%s6627_s24 + $0x1e0] sm:$0xff] %v3988_v60  ;;  %v4196_v21 = vmul.f32 %v3988_v60, %v3988_v60  ;;  %v4944_v18 = vadd.f32 %v3709_v59, %v6864_v39  ;;  %v3711_v10 = vpop.f32.mrb[127].mxu0  ;;  %v3991_v50 = vadd.f32 %v4942_v9, %v3990_v29 }
 0x35e   : > { %v4125_v55 = vadd.f32 %v4124_v46, %v3988_v60  ;;  %v4258_v61 = vadd.f32 %v4257_v16, %v4195_v8 }
 0x35f   : > { %4064 = vst [vmem:[%s6627_s24 + $0x1f0] sm:$0xff] %v3996_v33  ;;  %v3999_v51 = vadd.f32 %v4944_v18, %v4848_v56  ;;  %4063 = vst [vmem:[%s6627_s24 + $0x1e8] sm:$0xff] %v3991_v50  ;;  %v4197_v7 = vmul.f32 %v3991_v50, %v3991_v50  ;;  %v4198_v44 = vmul.f32 %v3996_v33, %v3996_v33 }
 0x360   : > { %v4259_v34 = vadd.f32 %v4258_v61, %v4196_v21  ;;  %v4126_v20 = vadd.f32 %v4125_v55, %v3991_v50 }
 0x361   : > { %4065 = vst [vmem:[%s6627_s24 + $0x1f8] sm:$0xff] %v3999_v51  ;;  %v4199_v0 = vmul.f32 %v3999_v51, %v3999_v51 }
 0x362   : > { %v4127_v30 = vadd.f32 %v4126_v20, %v3996_v33  ;;  %v4260_v54 = vadd.f32 %v4259_v34, %v4197_v7 }
 0x364   : > { %v4128_v6 = vadd.f32 %v4127_v30, %v3999_v51  ;;  %v4261_v26 = vadd.f32 %v4260_v54, %v4198_v44 }
 0x366   : > { %v4129_v23 = vrot.slane %v4128_v6, 4  ;;  %v4262_v28 = vadd.f32 %v4261_v26, %v4199_v0 }
 0x368   : > { %v4130_v63 = vadd.f32 %v4129_v23, %v4128_v6  ;;  %v4263_v31 = vrot.slane %v4262_v28, 4 }
 0x36a   : > { %v4131_v11 = vrot.slane %v4130_v63, 2  ;;  %v4264_v42 = vadd.f32 %v4263_v31, %v4262_v28 }
 0x36c   : > { %v4132_v58 = vadd.f32 %v4131_v11, %v4130_v63  ;;  %v4265_v25 = vrot.slane %v4264_v42, 2 }
 0x36e   : > { %v4133_v40 = vrot.slane %v4132_v58, 1  ;;  %v4266_v12 = vadd.f32 %v4265_v25, %v4264_v42 }
 0x370   : > { %v4134_v37 = vadd.f32 %v4133_v40, %v4132_v58  ;;  %v4267_v43 = vrot.slane %v4266_v12, 1 }
 0x372   : > { %4135 = vst [vmem:[%s187_s28] sm:$0x1] %v4134_v37  ;;  %v4268_v22 = vadd.f32 %v4267_v43, %v4266_v12 }
 0x374   : > { %4269 = vst [vmem:[%s187_s28 + $0x1] sm:$0x1] %v4268_v22 }
 0x375 PF: > { %s14_s12 = sadd.s32 1, %s5705_s12  }
 0x376   : > { %p11_p5 = scmp.ge.s32.totalorder %s14_s12, 6  }
 0x378   :  { %13 = sbr.rel (!%p11_p5) target bundleno = 1 (0x1), region = 70 }

// kernel: encoder_forward.29
= control target key start
LH: loop header
LB: loop body
LE: loop exit
PB: predicated region body
PF: predicated region fallthrough
CT: control target
= control target key end

     0   :  { %s896_s0 = inlined_call_operand.vmem [shape: f32[512,128], index: 0, kind: input, shape index: {}, may-alias: {0,3}]   ;;  %s897_s1 = inlined_call_operand.vmem [shape: f32[1,128], index: 1, kind: input, shape index: {}]   ;;  %s898_s2 = inlined_call_operand.vmem [shape: f32[1,128], index: 2, kind: input, shape index: {}]   ;;  %s899_s3 = inlined_call_operand.vmem [shape: f32[512,128], index: 3, kind: output, shape index: {}, may-alias: {0,3}]  }
   0x1   :  { %v14_v0 = vld [vmem:[%s896_s0] sm:$0xff]  ;;  %v15_v4 = vld [vmem:[%s896_s0 + $0x8] sm:$0xff]  ;;  %v16_v5 = vld [vmem:[%s896_s0 + $0x10] sm:$0xff] }
   0x2   :  { %v380_v1 = vld [vmem:[%s897_s1] ss:$0 sm:$0xff]  ;;  %v17_v6 = vld [vmem:[%s896_s0 + $0x18] sm:$0xff]  ;;  %v19_v11 = vld [vmem:[%s896_s0 + $0x28] sm:$0xff] }
   0x3   :  { %v385_v2 = vld [vmem:[%s898_s2] ss:$0 sm:$0xff]  ;;  %v85_v3 = vmul.f32 %v380_v1, %v14_v0  ;;  %v86_v7 = vmul.f32 %v380_v1, %v15_v4  ;;  %v87_v8 = vmul.f32 %v380_v1, %v16_v5  ;;  %v88_v9 = vmul.f32 %v380_v1, %v17_v6  ;;  %v20_v12 = vld [vmem:[%s896_s0 + $0x30] sm:$0xff]  ;;  %v21_v17 = vld [vmem:[%s896_s0 + $0x38] sm:$0xff] }
   0x4   :  { %v18_v10 = vld [vmem:[%s896_s0 + $0x20] sm:$0xff]  ;;  %v90_v15 = vmul.f32 %v380_v1, %v19_v11  ;;  %v91_v16 = vmul.f32 %v380_v1, %v20_v12  ;;  %v92_v21 = vmul.f32 %v380_v1, %v21_v17  ;;  %v23_v27 = vld [vmem:[%s896_s0 + $0x48] sm:$0xff]  ;;  %v24_v28 = vld [vmem:[%s896_s0 + $0x50] sm:$0xff] }
   0x5   :  { %v156_v13 = vadd.f32 %v385_v2, %v85_v3  ;;  %v89_v14 = vmul.f32 %v380_v1, %v18_v10  ;;  %v157_v18 = vadd.f32 %v385_v2, %v86_v7  ;;  %v158_v19 = vadd.f32 %v385_v2, %v87_v8  ;;  %v22_v22 = vld [vmem:[%s896_s0 + $0x40] sm:$0xff]  ;;  %v25_v29 = vld [vmem:[%s896_s0 + $0x58] sm:$0xff]  ;;  %v27_v35 = vld [vmem:[%s896_s0 + $0x68] sm:$0xff] }
   0x6   :  { %v159_v20 = vadd.f32 %v385_v2, %v88_v9  ;;  %v161_v25 = vadd.f32 %v385_v2, %v90_v15  ;;  %v162_v26 = vadd.f32 %v385_v2, %v91_v16  ;;  %v163_v33 = vadd.f32 %v385_v2, %v92_v21  ;;  %v26_v34 = vld [vmem:[%s896_s0 + $0x60] sm:$0xff]  ;;  %v28_v36 = vld [vmem:[%s896_s0 + $0x70] sm:$0xff] }
   0x7   :  { %v220_v23 = vmax.f32 %v156_v13, 0.0  ;;  %v160_v24 = vadd.f32 %v385_v2, %v89_v14  ;;  %v221_v30 = vmax.f32 %v157_v18, 0.0  ;;  %v222_v31 = vmax.f32 %v158_v19, 0.0 }
   0x8   :  { %v223_v32 = vmax.f32 %v159_v20, 0.0  ;;  %v225_v38 = vmax.f32 %v161_v25, 0.0  ;;  %v226_v39 = vmax.f32 %v162_v26, 0.0  ;;  %v93_v40 = vmul.f32 %v380_v1, %v22_v22 }
   0x9   :  { %284 = vst [vmem:[%s899_s3] sm:$0xff] %v220_v23  ;;  %v224_v37 = vmax.f32 %v160_v24, 0.0  ;;  %v227_v42 = vmax.f32 %v163_v33, 0.0  ;;  %v94_v43 = vmul.f32 %v380_v1, %v23_v27  ;;  %v95_v44 = vmul.f32 %v380_v1, %v24_v28 }
   0xa   :  { %v96_v45 = vmul.f32 %v380_v1, %v25_v29  ;;  %v164_v46 = vadd.f32 %v385_v2, %v93_v40  ;;  %v97_v47 = vmul.f32 %v380_v1, %v26_v34  ;;  %v98_v48 = vmul.f32 %v380_v1, %v27_v35 }
   0xb   :  { %v99_v49 = vmul.f32 %v380_v1, %v28_v36  ;;  %v165_v50 = vadd.f32 %v385_v2, %v94_v43  ;;  %v166_v51 = vadd.f32 %v385_v2, %v95_v44 }
   0xc   :  { %v167_v52 = vadd.f32 %v385_v2, %v96_v45  ;;  %v228_v55 = vmax.f32 %v164_v46, 0.0  ;;  %v168_v56 = vadd.f32 %v385_v2, %v97_v47  ;;  %v169_v57 = vadd.f32 %v385_v2, %v98_v48 }
   0xd   :  { %v170_v58 = vadd.f32 %v385_v2, %v99_v49  ;;  %v229_v62 = vmax.f32 %v165_v50, 0.0  ;;  %v230_v63 = vmax.f32 %v166_v51, 0.0 }
   0xe   :  { %v231_v0 = vmax.f32 %v167_v52, 0.0  ;;  %v232_v7 = vmax.f32 %v168_v56, 0.0  ;;  %v233_v8 = vmax.f32 %v169_v57, 0.0 }
   0xf   :  { %v234_v9 = vmax.f32 %v170_v58, 0.0 }
  0x10   :  { %v29_v41 = vld [vmem:[%s896_s0 + $0x78] sm:$0xff] }
  0x11   :  { %285 = vst [vmem:[%s899_s3 + $0x8] sm:$0xff] %v221_v30  ;;  %286 = vst [vmem:[%s899_s3 + $0x10] sm:$0xff] %v222_v31  ;;  %v100_v53 = vmul.f32 %v380_v1, %v29_v41 }
  0x12   :  { %287 = vst [vmem:[%s899_s3 + $0x18] sm:$0xff] %v223_v32  ;;  %288 = vst [vmem:[%s899_s3 + $0x20] sm:$0xff] %v224_v37 }
  0x13   :  { %289 = vst [vmem:[%s899_s3 + $0x28] sm:$0xff] %v225_v38  ;;  %290 = vst [vmem:[%s899_s3 + $0x30] sm:$0xff] %v226_v39  ;;  %v171_v3 = vadd.f32 %v385_v2, %v100_v53 }
  0x14   :  { %291 = vst [vmem:[%s899_s3 + $0x38] sm:$0xff] %v227_v42 }
  0x15   :  { %v235_v12 = vmax.f32 %v171_v3, 0.0 }
  0x1b   :  { %v30_v54 = vld [vmem:[%s896_s0 + $0x80] sm:$0xff]  ;;  %v31_v59 = vld [vmem:[%s896_s0 + $0x88] sm:$0xff]  ;;  %v32_v60 = vld [vmem:[%s896_s0 + $0x90] sm:$0xff] }
  0x1c   :  { %v33_v61 = vld [vmem:[%s896_s0 + $0x98] sm:$0xff]  ;;  %v34_v4 = vld [vmem:[%s896_s0 + $0xa0] sm:$0xff]  ;;  %v35_v5 = vld [vmem:[%s896_s0 + $0xa8] sm:$0xff]  ;;  %v101_v10 = vmul.f32 %v380_v1, %v30_v54  ;;  %v102_v13 = vmul.f32 %v380_v1, %v31_v59  ;;  %v103_v14 = vmul.f32 %v380_v1, %v32_v60 }
  0x1d   :  { %v36_v6 = vld [vmem:[%s896_s0 + $0xb0] sm:$0xff]  ;;  %v104_v15 = vmul.f32 %v380_v1, %v33_v61  ;;  %v105_v17 = vmul.f32 %v380_v1, %v34_v4  ;;  %v106_v18 = vmul.f32 %v380_v1, %v35_v5 }
  0x1e   :  { %292 = vst [vmem:[%s899_s3 + $0x40] sm:$0xff] %v228_v55  ;;  %v172_v16 = vadd.f32 %v385_v2, %v101_v10  ;;  %v107_v19 = vmul.f32 %v380_v1, %v36_v6  ;;  %v173_v20 = vadd.f32 %v385_v2, %v102_v13  ;;  %v174_v21 = vadd.f32 %v385_v2, %v103_v14 }
  0x1f   :  { %v175_v22 = vadd.f32 %v385_v2, %v104_v15  ;;  %v176_v26 = vadd.f32 %v385_v2, %v105_v17  ;;  %v177_v27 = vadd.f32 %v385_v2, %v106_v18 }
  0x20   :  { %v236_v25 = vmax.f32 %v172_v16, 0.0  ;;  %v178_v28 = vadd.f32 %v385_v2, %v107_v19  ;;  %v237_v32 = vmax.f32 %v173_v20, 0.0  ;;  %v238_v33 = vmax.f32 %v174_v21, 0.0 }
  0x21   :  { %v239_v34 = vmax.f32 %v175_v22, 0.0  ;;  %v240_v39 = vmax.f32 %v176_v26, 0.0  ;;  %v241_v40 = vmax.f32 %v177_v27, 0.0 }
  0x22   :  { %v242_v41 = vmax.f32 %v178_v28, 0.0 }
  0x25   :  { %v37_v11 = vld [vmem:[%s896_s0 + $0xb8] sm:$0xff] }
  0x26   :  { %293 = vst [vmem:[%s899_s3 + $0x48] sm:$0xff] %v229_v62  ;;  %294 = vst [vmem:[%s899_s3 + $0x50] sm:$0xff] %v230_v63  ;;  %v108_v23 = vmul.f32 %v380_v1, %v37_v11 }
  0x27   :  { %295 = vst [vmem:[%s899_s3 + $0x58] sm:$0xff] %v231_v0  ;;  %296 = vst [vmem:[%s899_s3 + $0x60] sm:$0xff] %v232_v7 }
  0x28   :  { %297 = vst [vmem:[%s899_s3 + $0x68] sm:$0xff] %v233_v8  ;;  %298 = vst [vmem:[%s899_s3 + $0x70] sm:$0xff] %v234_v9  ;;  %v179_v35 = vadd.f32 %v385_v2, %v108_v23 }
  0x29   :  { %299 = vst [vmem:[%s899_s3 + $0x78] sm:$0xff] %v235_v12 }
  0x2a   :  { %v243_v44 = vmax.f32 %v179_v35, 0.0 }
  0x30   :  { %v38_v24 = vld [vmem:[%s896_s0 + $0xc0] sm:$0xff]  ;;  %v39_v29 = vld [vmem:[%s896_s0 + $0xc8] sm:$0xff]  ;;  %v40_v30 = vld [vmem:[%s896_s0 + $0xd0] sm:$0xff] }
  0x31   :  { %v41_v31 = vld [vmem:[%s896_s0 + $0xd8] sm:$0xff]  ;;  %v42_v36 = vld [vmem:[%s896_s0 + $0xe0] sm:$0xff]  ;;  %v43_v37 = vld [vmem:[%s896_s0 + $0xe8] sm:$0xff]  ;;  %v109_v42 = vmul.f32 %v380_v1, %v38_v24  ;;  %v110_v45 = vmul.f32 %v380_v1, %v39_v29  ;;  %v111_v46 = vmul.f32 %v380_v1, %v40_v30 }
  0x32   :  { %v44_v38 = vld [vmem:[%s896_s0 + $0xf0] sm:$0xff]  ;;  %v112_v47 = vmul.f32 %v380_v1, %v41_v31  ;;  %v113_v49 = vmul.f32 %v380_v1, %v42_v36  ;;  %v114_v50 = vmul.f32 %v380_v1, %v43_v37 }
  0x33   :  { %300 = vst [vmem:[%s899_s3 + $0x80] sm:$0xff] %v236_v25  ;;  %v180_v48 = vadd.f32 %v385_v2, %v109_v42  ;;  %v115_v51 = vmul.f32 %v380_v1, %v44_v38  ;;  %v181_v52 = vadd.f32 %v385_v2, %v110_v45  ;;  %v182_v53 = vadd.f32 %v385_v2, %v111_v46 }
  0x34   :  { %v183_v54 = vadd.f32 %v385_v2, %v112_v47  ;;  %v184_v58 = vadd.f32 %v385_v2, %v113_v49  ;;  %v185_v59 = vadd.f32 %v385_v2, %v114_v50 }
  0x35   :  { %v244_v57 = vmax.f32 %v180_v48, 0.0  ;;  %v186_v60 = vadd.f32 %v385_v2, %v115_v51  ;;  %v245_v0 = vmax.f32 %v181_v52, 0.0  ;;  %v246_v3 = vmax.f32 %v182_v53, 0.0 }
  0x36   :  { %v247_v4 = vmax.f32 %v183_v54, 0.0  ;;  %v248_v9 = vmax.f32 %v184_v58, 0.0  ;;  %v249_v10 = vmax.f32 %v185_v59, 0.0 }
  0x37   :  { %v250_v11 = vmax.f32 %v186_v60, 0.0 }
  0x3a   :  { %v45_v43 = vld [vmem:[%s896_s0 + $0xf8] sm:$0xff] }
  0x3b   :  { %301 = vst [vmem:[%s899_s3 + $0x88] sm:$0xff] %v237_v32  ;;  %302 = vst [vmem:[%s899_s3 + $0x90] sm:$0xff] %v238_v33  ;;  %v116_v55 = vmul.f32 %v380_v1, %v45_v43 }
  0x3c   :  { %303 = vst [vmem:[%s899_s3 + $0x98] sm:$0xff] %v239_v34  ;;  %304 = vst [vmem:[%s899_s3 + $0xa0] sm:$0xff] %v240_v39 }
  0x3d   :  { %305 = vst [vmem:[%s899_s3 + $0xa8] sm:$0xff] %v241_v40  ;;  %306 = vst [vmem:[%s899_s3 + $0xb0] sm:$0xff] %v242_v41  ;;  %v187_v5 = vadd.f32 %v385_v2, %v116_v55 }
  0x3e   :  { %307 = vst [vmem:[%s899_s3 + $0xb8] sm:$0xff] %v243_v44 }
  0x3f   :  { %v251_v14 = vmax.f32 %v187_v5, 0.0 }
  0x45   :  { %v46_v56 = vld [vmem:[%s896_s0 + $0x100] sm:$0xff]  ;;  %v47_v61 = vld [vmem:[%s896_s0 + $0x108] sm:$0xff]  ;;  %v48_v62 = vld [vmem:[%s896_s0 + $0x110] sm:$0xff] }
  0x46   :  { %v49_v63 = vld [vmem:[%s896_s0 + $0x118] sm:$0xff]  ;;  %v50_v6 = vld [vmem:[%s896_s0 + $0x120] sm:$0xff]  ;;  %v51_v7 = vld [vmem:[%s896_s0 + $0x128] sm:$0xff]  ;;  %v117_v12 = vmul.f32 %v380_v1, %v46_v56  ;;  %v118_v15 = vmul.f32 %v380_v1, %v47_v61  ;;  %v119_v16 = vmul.f32 %v380_v1, %v48_v62 }
  0x47   :  { %v52_v8 = vld [vmem:[%s896_s0 + $0x130] sm:$0xff]  ;;  %v120_v17 = vmul.f32 %v380_v1, %v49_v63  ;;  %v121_v19 = vmul.f32 %v380_v1, %v50_v6  ;;  %v122_v20 = vmul.f32 %v380_v1, %v51_v7 }
  0x48   :  { %308 = vst [vmem:[%s899_s3 + $0xc0] sm:$0xff] %v244_v57  ;;  %v188_v18 = vadd.f32 %v385_v2, %v117_v12  ;;  %v123_v21 = vmul.f32 %v380_v1, %v52_v8  ;;  %v189_v22 = vadd.f32 %v385_v2, %v118_v15  ;;  %v190_v23 = vadd.f32 %v385_v2, %v119_v16 }
  0x49   :  { %v191_v24 = vadd.f32 %v385_v2, %v120_v17  ;;  %v192_v28 = vadd.f32 %v385_v2, %v121_v19  ;;  %v193_v29 = vadd.f32 %v385_v2, %v122_v20 }
  0x4a   :  { %v252_v27 = vmax.f32 %v188_v18, 0.0  ;;  %v194_v30 = vadd.f32 %v385_v2, %v123_v21  ;;  %v253_v34 = vmax.f32 %v189_v22, 0.0  ;;  %v254_v35 = vmax.f32 %v190_v23, 0.0 }
  0x4b   :  { %v255_v36 = vmax.f32 %v191_v24, 0.0  ;;  %v256_v41 = vmax.f32 %v192_v28, 0.0  ;;  %v257_v42 = vmax.f32 %v193_v29, 0.0 }
  0x4c   :  { %v258_v43 = vmax.f32 %v194_v30, 0.0 }
  0x4f   :  { %v53_v13 = vld [vmem:[%s896_s0 + $0x138] sm:$0xff] }
  0x50   :  { %309 = vst [vmem:[%s899_s3 + $0xc8] sm:$0xff] %v245_v0  ;;  %310 = vst [vmem:[%s899_s3 + $0xd0] sm:$0xff] %v246_v3  ;;  %v124_v25 = vmul.f32 %v380_v1, %v53_v13 }
  0x51   :  { %311 = vst [vmem:[%s899_s3 + $0xd8] sm:$0xff] %v247_v4  ;;  %312 = vst [vmem:[%s899_s3 + $0xe0] sm:$0xff] %v248_v9 }
  0x52   :  { %313 = vst [vmem:[%s899_s3 + $0xe8] sm:$0xff] %v249_v10  ;;  %314 = vst [vmem:[%s899_s3 + $0xf0] sm:$0xff] %v250_v11  ;;  %v195_v37 = vadd.f32 %v385_v2, %v124_v25 }
  0x53   :  { %315 = vst [vmem:[%s899_s3 + $0xf8] sm:$0xff] %v251_v14 }
  0x54   :  { %v259_v46 = vmax.f32 %v195_v37, 0.0 }
  0x5a   :  { %v54_v26 = vld [vmem:[%s896_s0 + $0x140] sm:$0xff]  ;;  %v55_v31 = vld [vmem:[%s896_s0 + $0x148] sm:$0xff]  ;;  %v56_v32 = vld [vmem:[%s896_s0 + $0x150] sm:$0xff] }
  0x5b   :  { %v57_v33 = vld [vmem:[%s896_s0 + $0x158] sm:$0xff]  ;;  %v58_v38 = vld [vmem:[%s896_s0 + $0x160] sm:$0xff]  ;;  %v59_v39 = vld [vmem:[%s896_s0 + $0x168] sm:$0xff]  ;;  %v125_v44 = vmul.f32 %v380_v1, %v54_v26  ;;  %v126_v47 = vmul.f32 %v380_v1, %v55_v31  ;;  %v127_v48 = vmul.f32 %v380_v1, %v56_v32 }
  0x5c   :  { %v60_v40 = vld [vmem:[%s896_s0 + $0x170] sm:$0xff]  ;;  %v128_v49 = vmul.f32 %v380_v1, %v57_v33  ;;  %v129_v51 = vmul.f32 %v380_v1, %v58_v38  ;;  %v130_v52 = vmul.f32 %v380_v1, %v59_v39 }
  0x5d   :  { %316 = vst [vmem:[%s899_s3 + $0x100] sm:$0xff] %v252_v27  ;;  %v196_v50 = vadd.f32 %v385_v2, %v125_v44  ;;  %v131_v53 = vmul.f32 %v380_v1, %v60_v40  ;;  %v197_v54 = vadd.f32 %v385_v2, %v126_v47  ;;  %v198_v55 = vadd.f32 %v385_v2, %v127_v48 }
  0x5e   :  { %v199_v56 = vadd.f32 %v385_v2, %v128_v49  ;;  %v200_v60 = vadd.f32 %v385_v2, %v129_v51  ;;  %v201_v61 = vadd.f32 %v385_v2, %v130_v52 }
  0x5f   :  { %v260_v59 = vmax.f32 %v196_v50, 0.0  ;;  %v202_v62 = vadd.f32 %v385_v2, %v131_v53  ;;  %v261_v4 = vmax.f32 %v197_v54, 0.0  ;;  %v262_v5 = vmax.f32 %v198_v55, 0.0 }
  0x60   :  { %v263_v6 = vmax.f32 %v199_v56, 0.0  ;;  %v264_v11 = vmax.f32 %v200_v60, 0.0  ;;  %v265_v12 = vmax.f32 %v201_v61, 0.0 }
  0x61   :  { %v266_v13 = vmax.f32 %v202_v62, 0.0 }
  0x64   :  { %v61_v45 = vld [vmem:[%s896_s0 + $0x178] sm:$0xff] }
  0x65   :  { %317 = vst [vmem:[%s899_s3 + $0x108] sm:$0xff] %v253_v34  ;;  %318 = vst [vmem:[%s899_s3 + $0x110] sm:$0xff] %v254_v35  ;;  %v132_v57 = vmul.f32 %v380_v1, %v61_v45 }
  0x66   :  { %319 = vst [vmem:[%s899_s3 + $0x118] sm:$0xff] %v255_v36  ;;  %320 = vst [vmem:[%s899_s3 + $0x120] sm:$0xff] %v256_v41 }
  0x67   :  { %321 = vst [vmem:[%s899_s3 + $0x128] sm:$0xff] %v257_v42  ;;  %322 = vst [vmem:[%s899_s3 + $0x130] sm:$0xff] %v258_v43  ;;  %v203_v7 = vadd.f32 %v385_v2, %v132_v57 }
  0x68   :  { %323 = vst [vmem:[%s899_s3 + $0x138] sm:$0xff] %v259_v46 }
  0x69   :  { %v267_v16 = vmax.f32 %v203_v7, 0.0 }
  0x6f   :  { %v62_v58 = vld [vmem:[%s896_s0 + $0x180] sm:$0xff]  ;;  %v63_v63 = vld [vmem:[%s896_s0 + $0x188] sm:$0xff]  ;;  %v64_v0 = vld [vmem:[%s896_s0 + $0x190] sm:$0xff] }
  0x70   :  { %v65_v3 = vld [vmem:[%s896_s0 + $0x198] sm:$0xff]  ;;  %v66_v8 = vld [vmem:[%s896_s0 + $0x1a0] sm:$0xff]  ;;  %v67_v9 = vld [vmem:[%s896_s0 + $0x1a8] sm:$0xff]  ;;  %v133_v14 = vmul.f32 %v380_v1, %v62_v58  ;;  %v134_v17 = vmul.f32 %v380_v1, %v63_v63  ;;  %v135_v18 = vmul.f32 %v380_v1, %v64_v0 }
  0x71   :  { %v68_v10 = vld [vmem:[%s896_s0 + $0x1b0] sm:$0xff]  ;;  %v136_v19 = vmul.f32 %v380_v1, %v65_v3  ;;  %v137_v21 = vmul.f32 %v380_v1, %v66_v8  ;;  %v138_v22 = vmul.f32 %v380_v1, %v67_v9 }
  0x72   :  { %324 = vst [vmem:[%s899_s3 + $0x140] sm:$0xff] %v260_v59  ;;  %v204_v20 = vadd.f32 %v385_v2, %v133_v14  ;;  %v139_v23 = vmul.f32 %v380_v1, %v68_v10  ;;  %v205_v24 = vadd.f32 %v385_v2, %v134_v17  ;;  %v206_v25 = vadd.f32 %v385_v2, %v135_v18 }
  0x73   :  { %v207_v26 = vadd.f32 %v385_v2, %v136_v19  ;;  %v208_v30 = vadd.f32 %v385_v2, %v137_v21  ;;  %v209_v31 = vadd.f32 %v385_v2, %v138_v22 }
  0x74   :  { %v268_v29 = vmax.f32 %v204_v20, 0.0  ;;  %v210_v32 = vadd.f32 %v385_v2, %v139_v23  ;;  %v269_v36 = vmax.f32 %v205_v24, 0.0  ;;  %v270_v37 = vmax.f32 %v206_v25, 0.0 }
  0x75   :  { %v271_v38 = vmax.f32 %v207_v26, 0.0  ;;  %v272_v43 = vmax.f32 %v208_v30, 0.0  ;;  %v273_v44 = vmax.f32 %v209_v31, 0.0 }
  0x76   :  { %v274_v45 = vmax.f32 %v210_v32, 0.0 }
  0x79   :  { %v69_v15 = vld [vmem:[%s896_s0 + $0x1b8] sm:$0xff] }
  0x7a   :  { %325 = vst [vmem:[%s899_s3 + $0x148] sm:$0xff] %v261_v4  ;;  %326 = vst [vmem:[%s899_s3 + $0x150] sm:$0xff] %v262_v5  ;;  %v140_v27 = vmul.f32 %v380_v1, %v69_v15 }
  0x7b   :  { %327 = vst [vmem:[%s899_s3 + $0x158] sm:$0xff] %v263_v6  ;;  %328 = vst [vmem:[%s899_s3 + $0x160] sm:$0xff] %v264_v11 }
  0x7c   :  { %329 = vst [vmem:[%s899_s3 + $0x168] sm:$0xff] %v265_v12  ;;  %330 = vst [vmem:[%s899_s3 + $0x170] sm:$0xff] %v266_v13  ;;  %v211_v39 = vadd.f32 %v385_v2, %v140_v27 }
  0x7d   :  { %331 = vst [vmem:[%s899_s3 + $0x178] sm:$0xff] %v267_v16 }
  0x7e   :  { %v275_v48 = vmax.f32 %v211_v39, 0.0 }
  0x84   :  { %v70_v28 = vld [vmem:[%s896_s0 + $0x1c0] sm:$0xff]  ;;  %v71_v33 = vld [vmem:[%s896_s0 + $0x1c8] sm:$0xff]  ;;  %v72_v34 = vld [vmem:[%s896_s0 + $0x1d0] sm:$0xff] }
  0x85   :  { %v73_v35 = vld [vmem:[%s896_s0 + $0x1d8] sm:$0xff]  ;;  %v74_v40 = vld [vmem:[%s896_s0 + $0x1e0] sm:$0xff]  ;;  %v75_v41 = vld [vmem:[%s896_s0 + $0x1e8] sm:$0xff]  ;;  %v141_v46 = vmul.f32 %v380_v1, %v70_v28  ;;  %v142_v49 = vmul.f32 %v380_v1, %v71_v33  ;;  %v143_v50 = vmul.f32 %v380_v1, %v72_v34 }
  0x86   :  { %v76_v42 = vld [vmem:[%s896_s0 + $0x1f0] sm:$0xff]  ;;  %v144_v51 = vmul.f32 %v380_v1, %v73_v35  ;;  %v145_v53 = vmul.f32 %v380_v1, %v74_v40  ;;  %v146_v54 = vmul.f32 %v380_v1, %v75_v41 }
  0x87   :  { %332 = vst [vmem:[%s899_s3 + $0x180] sm:$0xff] %v268_v29  ;;  %v212_v52 = vadd.f32 %v385_v2, %v141_v46  ;;  %v147_v55 = vmul.f32 %v380_v1, %v76_v42  ;;  %v213_v56 = vadd.f32 %v385_v2, %v142_v49  ;;  %v214_v57 = vadd.f32 %v385_v2, %v143_v50 }
  0x88   :  { %v215_v58 = vadd.f32 %v385_v2, %v144_v51  ;;  %v216_v61 = vadd.f32 %v385_v2, %v145_v53  ;;  %v217_v62 = vadd.f32 %v385_v2, %v146_v54 }
  0x89   :  { %v276_v60 = vmax.f32 %v212_v52, 0.0  ;;  %v218_v63 = vadd.f32 %v385_v2, %v147_v55  ;;  %v277_v0 = vmax.f32 %v213_v56, 0.0  ;;  %v278_v3 = vmax.f32 %v214_v57, 0.0 }
  0x8a   :  { %v279_v4 = vmax.f32 %v215_v58, 0.0  ;;  %v280_v6 = vmax.f32 %v216_v61, 0.0  ;;  %v281_v7 = vmax.f32 %v217_v62, 0.0 }
  0x8b   :  { %v282_v8 = vmax.f32 %v218_v63, 0.0 }
  0x8e   :  { %v77_v47 = vld [vmem:[%s896_s0 + $0x1f8] sm:$0xff] }
  0x8f   :  { %333 = vst [vmem:[%s899_s3 + $0x188] sm:$0xff] %v269_v36  ;;  %334 = vst [vmem:[%s899_s3 + $0x190] sm:$0xff] %v270_v37  ;;  %v148_v59 = vmul.f32 %v380_v1, %v77_v47 }
  0x90   :  { %335 = vst [vmem:[%s899_s3 + $0x198] sm:$0xff] %v271_v38  ;;  %336 = vst [vmem:[%s899_s3 + $0x1a0] sm:$0xff] %v272_v43 }
  0x91   :  { %337 = vst [vmem:[%s899_s3 + $0x1a8] sm:$0xff] %v273_v44  ;;  %338 = vst [vmem:[%s899_s3 + $0x1b0] sm:$0xff] %v274_v45  ;;  %v219_v5 = vadd.f32 %v385_v2, %v148_v59 }
  0x92   :  { %339 = vst [vmem:[%s899_s3 + $0x1b8] sm:$0xff] %v275_v48  ;;  %340 = vst [vmem:[%s899_s3 + $0x1c0] sm:$0xff] %v276_v60 }
  0x93   :  { %341 = vst [vmem:[%s899_s3 + $0x1c8] sm:$0xff] %v277_v0  ;;  %342 = vst [vmem:[%s899_s3 + $0x1d0] sm:$0xff] %v278_v3  ;;  %v283_v1 = vmax.f32 %v219_v5, 0.0 }
  0x94   :  { %343 = vst [vmem:[%s899_s3 + $0x1d8] sm:$0xff] %v279_v4  ;;  %344 = vst [vmem:[%s899_s3 + $0x1e0] sm:$0xff] %v280_v6 }
  0x95   :  { %345 = vst [vmem:[%s899_s3 + $0x1e8] sm:$0xff] %v281_v7  ;;  %346 = vst [vmem:[%s899_s3 + $0x1f0] sm:$0xff] %v282_v8 }
  0x96   :  { %347 = vst [vmem:[%s899_s3 + $0x1f8] sm:$0xff] %v283_v1 }

// kernel: encoder_forward.28
= control target key start
LH: loop header
LB: loop body
LE: loop exit
PB: predicated region body
PF: predicated region fallthrough
CT: control target
= control target key end

     0   :  { %v5424_v0 = vmov 0   ;;  %s7225_s1 = inlined_call_operand.vmem [shape: bf16[1152,128], index: 1, kind: input, shape index: {}]   ;;  %s7226_s0 = inlined_call_operand.vmem [shape: bf16[512,1152], index: 0, kind: input, shape index: {}]   ;;  %s7227_s2 = inlined_call_operand.vmem [shape: f32[512,128], index: 2, kind: output, shape index: {0}]   ;;  %s7228_s3 = inlined_call_operand.vmem [shape: f32[1,2,128], index: 3, kind: output, shape index: {1}]  }
   0x1   :  { %2382 = vmatprep.subr.bf16.mxu1 %v5424_v0  ;;  %2671 = vmatprep.subr.bf16.mxu0 %v5424_v0  ;;  %v4936_v1 = vld [vmem:[%s7225_s1] sm:$0xff]   ;;  %v4938_v3 = vld [vmem:[%s7225_s1 + $0x8] sm:$0xff]   ;;  %v4940_v5 = vld [vmem:[%s7225_s1 + $0x10] sm:$0xff]  }
   0x2   :  { %v5453_v2 = vld [vmem:[%s7225_s1 + $0x80] sm:$0xff]   ;;  %2383 = vmatpush1.bf16.msra.mxu1 %v4936_v1  ;;  %v5463_v4 = vld [vmem:[%s7225_s1 + $0x88] sm:$0xff]   ;;  %v5474_v6 = vld [vmem:[%s7225_s1 + $0x90] sm:$0xff]  }
   0x3   :  { %2672 = vmatpush1.bf16.msra.mxu0 %v5453_v2  ;;  %2384 = vmatprep.subr.bf16.mxu1 %v5424_v0  ;;  %v4942_v7 = vld [vmem:[%s7225_s1 + $0x18] sm:$0xff]   ;;  %v4944_v9 = vld [vmem:[%s7225_s1 + $0x20] sm:$0xff]   ;;  %v4946_v11 = vld [vmem:[%s7225_s1 + $0x28] sm:$0xff]  }
   0x4   :  { %2673 = vmatprep.subr.bf16.mxu0 %v5424_v0  ;;  %v5485_v8 = vld [vmem:[%s7225_s1 + $0x98] sm:$0xff]   ;;  %v5496_v10 = vld [vmem:[%s7225_s1 + $0xa0] sm:$0xff]   ;;  %v5507_v12 = vld [vmem:[%s7225_s1 + $0xa8] sm:$0xff]  }
   0x5   :  { %v4948_v13 = vld [vmem:[%s7225_s1 + $0x30] sm:$0xff]   ;;  %v4950_v15 = vld [vmem:[%s7225_s1 + $0x38] sm:$0xff]   ;;  %v4952_v17 = vld [vmem:[%s7225_s1 + $0x40] sm:$0xff]  }
   0x6   :  { %2385 = vmatpush1.bf16.msra.mxu1 %v4938_v3  ;;  %v5518_v14 = vld [vmem:[%s7225_s1 + $0xb0] sm:$0xff]   ;;  %v5529_v16 = vld [vmem:[%s7225_s1 + $0xb8] sm:$0xff]   ;;  %v5540_v18 = vld [vmem:[%s7225_s1 + $0xc0] sm:$0xff]  }
   0x7   :  { %2674 = vmatpush1.bf16.msra.mxu0 %v5463_v4  ;;  %2386 = vmatprep.subr.bf16.mxu1 %v5424_v0  ;;  %v4970_v19 = vld [vmem:[%s7226_s0 + $0x4] ss:$36 sps:$4 sm:$0xff]   ;;  %v4973_v21 = vld [vmem:[%s7226_s0 + $0xc] ss:$36 sps:$4 sm:$0xff]   ;;  %v4958_v25 = vld [vmem:[%s7225_s1 + $0x58] sm:$0xff]  }
   0x8   :  { %2675 = vmatprep.subr.bf16.mxu0 %v5424_v0  ;;  %v4954_v20 = vld [vmem:[%s7225_s1 + $0x48] sm:$0xff]   ;;  %2414 = vmatprep.mubr.bf16.mxu1 %v4970_v19  ;;  %v4956_v23 = vld [vmem:[%s7225_s1 + $0x50] sm:$0xff]   ;;  %v5579_v26 = vld [vmem:[%s7225_s1 + $0xd8] sm:$0xff]  }
   0x9   :  { %v5557_v22 = vld [vmem:[%s7225_s1 + $0xc8] sm:$0xff]   ;;  %2703 = vmatprep.mubr.bf16.mxu0 %v4973_v21  ;;  %v5568_v24 = vld [vmem:[%s7225_s1 + $0xd0] sm:$0xff]   ;;  %v4960_v27 = vld [vmem:[%s7225_s1 + $0x60] sm:$0xff]  }
   0xa   :  { %2387 = vmatpush1.bf16.msra.mxu1 %v4940_v5  ;;  %v5590_v28 = vld [vmem:[%s7225_s1 + $0xe0] sm:$0xff]   ;;  %v4962_v29 = vld [vmem:[%s7225_s1 + $0x68] sm:$0xff]   ;;  %v4964_v31 = vld [vmem:[%s7225_s1 + $0x70] sm:$0xff]  }
   0xb   :  { %2676 = vmatpush1.bf16.msra.mxu0 %v5474_v6  ;;  %2388 = vmatprep.subr.bf16.mxu1 %v5424_v0  ;;  %v5601_v30 = vld [vmem:[%s7225_s1 + $0xe8] sm:$0xff]   ;;  %v5612_v32 = vld [vmem:[%s7225_s1 + $0xf0] sm:$0xff]   ;;  %v4966_v33 = vld [vmem:[%s7225_s1 + $0x78] sm:$0xff]  }
   0xc   :  { %2677 = vmatprep.subr.bf16.mxu0 %v5424_v0  ;;  %v5623_v34 = vld [vmem:[%s7225_s1 + $0xf8] sm:$0xff]   ;;  %v4968_v35 = vld [vmem:[%s7226_s0] ss:$36 sps:$4 sm:$0xff]   ;;  %v4971_v36 = vld [vmem:[%s7226_s0 + $0x8] ss:$36 sps:$4 sm:$0xff]  }
   0xd   :  { %v4974_v37 = vld [vmem:[%s7225_s1 + $0x100] sm:$0xff]   ;;  %v4976_v38 = vld [vmem:[%s7226_s0 + $0x4c] ss:$36 sps:$4 sm:$0xff]   ;;  %v4978_v39 = vld [vmem:[%s7226_s0 + $0x54] ss:$36 sps:$4 sm:$0xff]  }
   0xe   :  { %2389 = vmatpush1.bf16.msra.mxu1 %v4942_v7  ;;  %v4975_v40 = vld [vmem:[%s7225_s1 + $0x108] sm:$0xff]   ;;  %v4981_v42 = vld [vmem:[%s7226_s0 + $0x50] ss:$36 sps:$4 sm:$0xff]   ;;  %v4986_v45 = vld [vmem:[%s7226_s0 + $0x9c] ss:$36 sps:$4 sm:$0xff]  }
   0xf   :  { %2678 = vmatpush1.bf16.msra.mxu0 %v5485_v8  ;;  %2390 = vmatprep.subr.bf16.mxu1 %v5424_v0  ;;  %v4980_v41 = vld [vmem:[%s7226_s0 + $0x48] ss:$36 sps:$4 sm:$0xff]   ;;  %v4984_v43 = vld [vmem:[%s7226_s0 + $0x94] ss:$36 sps:$4 sm:$0xff]   ;;  %v4990_v49 = vld [vmem:[%s7225_s1 + $0x120] sm:$0xff]  }
  0x10   :  { %2679 = vmatprep.subr.bf16.mxu0 %v5424_v0  ;;  %v4982_v44 = vld [vmem:[%s7225_s1 + $0x110] sm:$0xff]   ;;  %v4983_v46 = vld [vmem:[%s7225_s1 + $0x118] sm:$0xff]   ;;  %v4994_v51 = vld [vmem:[%s7226_s0 + $0xe4] ss:$36 sps:$4 sm:$0xff]  }
  0x11   :  { %v4988_v47 = vld [vmem:[%s7226_s0 + $0x90] ss:$36 sps:$4 sm:$0xff]   ;;  %v4989_v48 = vld [vmem:[%s7226_s0 + $0x98] ss:$36 sps:$4 sm:$0xff]   ;;  %v4991_v52 = vld [vmem:[%s7225_s1 + $0x128] sm:$0xff]  }
  0x12   :  { %2391 = vmatpush1.bf16.msra.mxu1 %v4944_v9  ;;  %v4992_v50 = vld [vmem:[%s7226_s0 + $0xdc] ss:$36 sps:$4 sm:$0xff]   ;;  %v5000_v55 = vld [vmem:[%s7226_s0 + $0x124] ss:$36 sps:$4 sm:$0xff]   ;;  %v4998_v56 = vld [vmem:[%s7225_s1 + $0x130] sm:$0xff]  }
  0x13   :  { %2680 = vmatpush1.bf16.msra.mxu0 %v5496_v10  ;;  %2392 = vmatprep.subr.bf16.mxu1 %v5424_v0  ;;  %v4996_v53 = vld [vmem:[%s7226_s0 + $0xd8] ss:$36 sps:$4 sm:$0xff]   ;;  %v4997_v54 = vld [vmem:[%s7226_s0 + $0xe0] ss:$36 sps:$4 sm:$0xff]   ;;  %v5002_v57 = vld [vmem:[%s7226_s0 + $0x12c] ss:$36 sps:$4 sm:$0xff]  }
  0x14   :  { %2681 = vmatprep.subr.bf16.mxu0 %v5424_v0  ;;  %v4999_v58 = vld [vmem:[%s7225_s1 + $0x138] sm:$0xff]   ;;  %v5004_v59 = vld [vmem:[%s7226_s0 + $0x120] ss:$36 sps:$4 sm:$0xff]   ;;  %v5005_v60 = vld [vmem:[%s7226_s0 + $0x128] ss:$36 sps:$4 sm:$0xff]  }
  0x15   :  { %v5006_v61 = vld [vmem:[%s7225_s1 + $0x140] sm:$0xff]   ;;  %v5008_v62 = vld [vmem:[%s7226_s0 + $0x16c] ss:$36 sps:$4 sm:$0xff]   ;;  %v5010_v63 = vld [vmem:[%s7226_s0 + $0x174] ss:$36 sps:$4 sm:$0xff]  }
  0x16   :  { %2393 = vmatpush1.bf16.msra.mxu1 %v4946_v11  ;;  %v5007_v1 = vld [vmem:[%s7225_s1 + $0x148] sm:$0xff]   ;;  %v5013_v3 = vld [vmem:[%s7226_s0 + $0x170] ss:$36 sps:$4 sm:$0xff]   ;;  %v5015_v7 = vld [vmem:[%s7225_s1 + $0x158] sm:$0xff]  }
  0x17   :  { %2682 = vmatpush1.bf16.msra.mxu0 %v5507_v12  ;;  %2394 = vmatprep.subr.bf16.mxu1 %v5424_v0  ;;  %v5014_v5 = vld [vmem:[%s7225_s1 + $0x150] sm:$0xff]   ;;  %v5021_v9 = vld [vmem:[%s7226_s0 + $0x1b8] ss:$36 sps:$4 sm:$0xff]  }
  0x18   :  { %2683 = vmatprep.subr.bf16.mxu0 %v5424_v0  ;;  %v5024_v11 = vld [vmem:[%s7226_s0 + $0x1fc] ss:$36 sps:$4 sm:$0xff]   ;;  %v5034_v21 = vld [vmem:[%s7226_s0 + $0x10] ss:$36 sps:$4 sm:$0xff]  }
  0x19   :  { %v5031_v19 = vld [vmem:[%s7225_s1 + $0x178] sm:$0xff]  }
  0x1a   :  { %2395 = vmatpush1.bf16.msra.mxu1 %v4948_v13  ;;  %v5023_v13 = vld [vmem:[%s7225_s1 + $0x168] sm:$0xff]  }
  0x1b   :  { %2684 = vmatpush1.bf16.msra.mxu0 %v5518_v14  ;;  %2396 = vmatprep.subr.bf16.mxu1 %v5424_v0 }
  0x1c   :  { %2685 = vmatprep.subr.bf16.mxu0 %v5424_v0 }
  0x1e   :  { %2397 = vmatpush1.bf16.msra.mxu1 %v4950_v15  ;;  %v5029_v15 = vld [vmem:[%s7226_s0 + $0x200] ss:$36 sps:$4 sm:$0xff]  }
  0x1f   :  { %2686 = vmatpush1.bf16.msra.mxu0 %v5529_v16  ;;  %2398 = vmatprep.subr.bf16.mxu1 %v5424_v0 }
  0x20   :  { %2687 = vmatprep.subr.bf16.mxu0 %v5424_v0 }
  0x22   :  { %2399 = vmatpush1.bf16.msra.mxu1 %v4952_v17  ;;  %v5030_v17 = vld [vmem:[%s7225_s1 + $0x170] sm:$0xff]  }
  0x23   :  { %2688 = vmatpush1.bf16.msra.mxu0 %v5540_v18  ;;  %2400 = vmatprep.subr.bf16.mxu1 %v5424_v0 }
  0x24   :  { %2689 = vmatprep.subr.bf16.mxu0 %v5424_v0 }
  0x26   :  { %2401 = vmatpush1.bf16.msra.mxu1 %v4954_v20  ;;  %v5037_v20 = vld [vmem:[%s7226_s0 + $0x240] ss:$36 sps:$4 sm:$0xff]  }
  0x27   :  { %2690 = vmatpush1.bf16.msra.mxu0 %v5557_v22  ;;  %2402 = vmatprep.subr.bf16.mxu1 %v5424_v0 }
  0x28   :  { %2691 = vmatprep.subr.bf16.mxu0 %v5424_v0 }
  0x2a   :  { %2403 = vmatpush1.bf16.msra.mxu1 %v4956_v23  ;;  %v5038_v23 = vld [vmem:[%s7225_s1 + $0x180] sm:$0xff]  }
  0x2b   :  { %2692 = vmatpush1.bf16.msra.mxu0 %v5568_v24  ;;  %2404 = vmatprep.subr.bf16.mxu1 %v5424_v0 }
  0x2c   :  { %2693 = vmatprep.subr.bf16.mxu0 %v5424_v0 }
  0x2e   :  { %2405 = vmatpush1.bf16.msra.mxu1 %v4958_v25  ;;  %v5043_v25 = vld [vmem:[%s7226_s0 + $0x288] ss:$36 sps:$4 sm:$0xff]  }
  0x2f   :  { %2694 = vmatpush1.bf16.msra.mxu0 %v5579_v26  ;;  %2406 = vmatprep.subr.bf16.mxu1 %v5424_v0 }
  0x30   :  { %2695 = vmatprep.subr.bf16.mxu0 %v5424_v0 }
  0x32   :  { %2407 = vmatpush1.bf16.msra.mxu1 %v4960_v27  ;;  %v5044_v27 = vld [vmem:[%s7226_s0 + $0x58] ss:$36 sps:$4 sm:$0xff]  }
  0x33   :  { %2696 = vmatpush1.bf16.msra.mxu0 %v5590_v28  ;;  %2408 = vmatprep.subr.bf16.mxu1 %v5424_v0 }
  0x34   :  { %2697 = vmatprep.subr.bf16.mxu0 %v5424_v0 }
  0x36   :  { %2409 = vmatpush1.bf16.msra.mxu1 %v4962_v29  ;;  %v5047_v29 = vld [vmem:[%s7226_s0 + $0xa4] ss:$36 sps:$4 sm:$0xff]  }
  0x37   :  { %2698 = vmatpush1.bf16.msra.mxu0 %v5601_v30  ;;  %2410 = vmatprep.subr.bf16.mxu1 %v5424_v0 }
  0x38   :  { %2699 = vmatprep.subr.bf16.mxu0 %v5424_v0 }
  0x3a   :  { %2411 = vmatpush1.bf16.msra.mxu1 %v4964_v31  ;;  %v5049_v31 = vld [vmem:[%s7226_s0 + $0x2d0] ss:$36 sps:$4 sm:$0xff]  }
  0x3b   :  { %2700 = vmatpush1.bf16.msra.mxu0 %v5612_v32  ;;  %2412 = vmatprep.subr.bf16.mxu1 %v5424_v0 }
  0x3c   :  { %2701 = vmatprep.subr.bf16.mxu0 %v5424_v0 }
  0x3e   :  { %2413 = vmatpush1.bf16.msra.mxu1 %v4966_v33  ;;  %v5050_v33 = vld [vmem:[%s7226_s0 + $0xa0] ss:$36 sps:$4 sm:$0xff]  }
  0x3f   :  { %2702 = vmatpush1.bf16.msra.mxu0 %v5623_v34  ;;  %4583 = vmatprep.subr.bf16.mxu1 %v5424_v0 }
  0x40   :  { %2960 = vmatprep.subr.bf16.mxu0 %v5424_v0 }
  0x41   :  { %2415 = vmatmul.mubr.bf16.vlgmr.msra.gmra.mrb[0].mxu1 %v4968_v35  ;;  %v5054_v35 = vld [vmem:[%s7226_s0 + $0xec] ss:$36 sps:$4 sm:$0xff]  }
  0x42   :  { %2704 = vmatmul.mubr.bf16.vlgmr.msra.gmra.mrb[0].mxu0 %v4971_v36  ;;  %4599 = vmatpush1.bf16.msra.mxu1 %v5453_v2  ;;  %v5012_v2 = vld [vmem:[%s7226_s0 + $0x168] ss:$36 sps:$4 sm:$0xff]   ;;  %v5090_v36 = vld [vmem:[%s7225_s1 + $0x1a0] sm:$0xff]  }
  0x43   :  { %2961 = vmatpush1.bf16.msra.mxu0 %v4974_v37  ;;  %2422 = vmatprep.mubr.bf16.mxu1 %v4976_v38  ;;  %v5103_v37 = vld [vmem:[%s7225_s1 + $0x1a8] sm:$0xff]   ;;  %v5056_v38 = vld [vmem:[%s7226_s0 + $0x318] ss:$36 sps:$4 sm:$0xff]  }
  0x44   :  { %2962 = vmatprep.subr.bf16.mxu0 %v5424_v0  ;;  %2711 = vmatprep.mubr.bf16.mxu0 %v4978_v39  ;;  %v5057_v39 = vld [vmem:[%s7226_s0 + $0xe8] ss:$36 sps:$4 sm:$0xff]  }
  0x45   :  { %4584 = vmatprep.subr.bf16.mxu1 %v5424_v0 }
  0x46   :  { %4600 = vmatpush1.bf16.msra.mxu1 %v5463_v4  ;;  %v5016_v4 = vld [vmem:[%s7226_s0 + $0x1b4] ss:$36 sps:$4 sm:$0xff]  }
  0x47   :  { %2963 = vmatpush1.bf16.msra.mxu0 %v4975_v40  ;;  %4585 = vmatprep.subr.bf16.mxu1 %v5424_v0  ;;  %v5058_v40 = vld [vmem:[%s7226_s0 + $0x364] ss:$36 sps:$4 sm:$0xff]  }
  0x48   :  { %2964 = vmatprep.subr.bf16.mxu0 %v5424_v0 }
  0x49   :  { %2423 = vmatmul.mubr.bf16.gmra.mrb[4].mxu1 %v4980_v41  ;;  %v5060_v41 = vld [vmem:[%s7226_s0 + $0x134] ss:$36 sps:$4 sm:$0xff]  }
  0x4a   :  { %2712 = vmatmul.mubr.bf16.gmra.mrb[4].mxu0 %v4981_v42  ;;  %2430 = vmatprep.mubr.bf16.mxu1 %v4984_v43  ;;  %v5116_v42 = vld [vmem:[%s7225_s1 + $0x1b0] sm:$0xff]   ;;  %v5129_v43 = vld [vmem:[%s7225_s1 + $0x1b8] sm:$0xff]  }
  0x4b   :  { %2965 = vmatpush1.bf16.msra.mxu0 %v4982_v44  ;;  %2719 = vmatprep.mubr.bf16.mxu0 %v4986_v45  ;;  %v5062_v44 = vld [vmem:[%s7226_s0 + $0x360] ss:$36 sps:$4 sm:$0xff]   ;;  %v5063_v45 = vld [vmem:[%s7226_s0 + $0x130] ss:$36 sps:$4 sm:$0xff]  }
  0x4c   :  { %2966 = vmatprep.subr.bf16.mxu0 %v5424_v0  ;;  %4601 = vmatpush1.bf16.msra.mxu1 %v5474_v6  ;;  %v5018_v6 = vld [vmem:[%s7226_s0 + $0x1bc] ss:$36 sps:$4 sm:$0xff]  }
  0x4d   :  { %4586 = vmatprep.subr.bf16.mxu1 %v5424_v0 }
  0x4f   :  { %2967 = vmatpush1.bf16.msra.mxu0 %v4983_v46  ;;  %v5065_v46 = vld [vmem:[%s7226_s0 + $0x3ac] ss:$36 sps:$4 sm:$0xff]  }
  0x50   :  { %2968 = vmatprep.subr.bf16.mxu0 %v5424_v0  ;;  %4602 = vmatpush1.bf16.msra.mxu1 %v5485_v8  ;;  %v5020_v8 = vld [vmem:[%s7226_s0 + $0x1b0] ss:$36 sps:$4 sm:$0xff]  }
  0x51   :  { %2431 = vmatmul.mubr.bf16.gmra.mrb[8].mxu1 %v4988_v47  ;;  %4587 = vmatprep.subr.bf16.mxu1 %v5424_v0  ;;  %v5067_v47 = vld [vmem:[%s7226_s0 + $0x17c] ss:$36 sps:$4 sm:$0xff]  }
  0x52   :  { %2720 = vmatmul.mubr.bf16.gmra.mrb[8].mxu0 %v4989_v48  ;;  %2438 = vmatprep.mubr.bf16.mxu1 %v4992_v50  ;;  %v5142_v48 = vld [vmem:[%s7225_s1 + $0x1c0] sm:$0xff]   ;;  %v5069_v50 = vld [vmem:[%s7226_s0 + $0x3a8] ss:$36 sps:$4 sm:$0xff]  }
  0x53   :  { %2969 = vmatpush1.bf16.msra.mxu0 %v4990_v49  ;;  %2727 = vmatprep.mubr.bf16.mxu0 %v4994_v51  ;;  %v5155_v49 = vld [vmem:[%s7225_s1 + $0x1c8] sm:$0xff]   ;;  %v5070_v51 = vld [vmem:[%s7226_s0 + $0x178] ss:$36 sps:$4 sm:$0xff]  }
  0x54   :  { %2970 = vmatprep.subr.bf16.mxu0 %v5424_v0  ;;  %4603 = vmatpush1.bf16.msra.mxu1 %v5496_v10  ;;  %v5022_v10 = vld [vmem:[%s7225_s1 + $0x160] sm:$0xff]  }
  0x55   :  { %4588 = vmatprep.subr.bf16.mxu1 %v5424_v0 }
  0x57   :  { %2971 = vmatpush1.bf16.msra.mxu0 %v4991_v52  ;;  %v5071_v52 = vld [vmem:[%s7226_s0 + $0x3f4] ss:$36 sps:$4 sm:$0xff]  }
  0x58   :  { %2972 = vmatprep.subr.bf16.mxu0 %v5424_v0  ;;  %4604 = vmatpush1.bf16.msra.mxu1 %v5507_v12  ;;  %v5026_v12 = vld [vmem:[%s7226_s0 + $0x204] ss:$36 sps:$4 sm:$0xff]  }
  0x59   :  { %2439 = vmatmul.mubr.bf16.gmra.mrb[12].mxu1 %v4996_v53  ;;  %4589 = vmatprep.subr.bf16.mxu1 %v5424_v0  ;;  %v5073_v53 = vld [vmem:[%s7226_s0 + $0x1c4] ss:$36 sps:$4 sm:$0xff]  }
  0x5a   :  { %2728 = vmatmul.mubr.bf16.gmra.mrb[12].mxu0 %v4997_v54  ;;  %2446 = vmatprep.mubr.bf16.mxu1 %v5000_v55  ;;  %v5168_v54 = vld [vmem:[%s7225_s1 + $0x1d0] sm:$0xff]  }
  0x5b   :  { %2973 = vmatpush1.bf16.msra.mxu0 %v4998_v56  ;;  %2735 = vmatprep.mubr.bf16.mxu0 %v5002_v57  ;;  %v5075_v55 = vld [vmem:[%s7226_s0 + $0x3f0] ss:$36 sps:$4 sm:$0xff]   ;;  %v5076_v56 = vld [vmem:[%s7226_s0 + $0x1c0] ss:$36 sps:$4 sm:$0xff]  }
  0x5c   :  { %2974 = vmatprep.subr.bf16.mxu0 %v5424_v0  ;;  %4605 = vmatpush1.bf16.msra.mxu1 %v5518_v14  ;;  %v5028_v14 = vld [vmem:[%s7226_s0 + $0x1f8] ss:$36 sps:$4 sm:$0xff]  }
  0x5d   :  { %4590 = vmatprep.subr.bf16.mxu1 %v5424_v0  ;;  %v5078_v57 = vld [vmem:[%s7226_s0 + $0x43c] ss:$36 sps:$4 sm:$0xff]  }
  0x5f   :  { %2975 = vmatpush1.bf16.msra.mxu0 %v4999_v58  ;;  %v5080_v58 = vld [vmem:[%s7226_s0 + $0x20c] ss:$36 sps:$4 sm:$0xff]  }
  0x60   :  { %2976 = vmatprep.subr.bf16.mxu0 %v5424_v0  ;;  %4606 = vmatpush1.bf16.msra.mxu1 %v5529_v16  ;;  %v5032_v16 = vld [vmem:[%s7226_s0 + $0x244] ss:$36 sps:$4 sm:$0xff]  }
  0x61   :  { %2447 = vmatmul.mubr.bf16.gmra.mrb[16].mxu1 %v5004_v59  ;;  %4591 = vmatprep.subr.bf16.mxu1 %v5424_v0  ;;  %v5082_v59 = vld [vmem:[%s7226_s0 + $0x438] ss:$36 sps:$4 sm:$0xff]  }
  0x62   :  { %2736 = vmatmul.mubr.bf16.gmra.mrb[16].mxu0 %v5005_v60  ;;  %2454 = vmatprep.mubr.bf16.mxu1 %v5008_v62  ;;  %v5083_v60 = vld [vmem:[%s7226_s0 + $0x208] ss:$36 sps:$4 sm:$0xff]   ;;  %v5181_v62 = vld [vmem:[%s7225_s1 + $0x1d8] sm:$0xff]  }
  0x63   :  { %2977 = vmatpush1.bf16.msra.mxu0 %v5006_v61  ;;  %2743 = vmatprep.mubr.bf16.mxu0 %v5010_v63  ;;  %v5084_v61 = vld [vmem:[%s7226_s0 + $0x484] ss:$36 sps:$4 sm:$0xff]   ;;  %v5086_v63 = vld [vmem:[%s7226_s0 + $0x254] ss:$36 sps:$4 sm:$0xff]  }
  0x64   :  { %2978 = vmatprep.subr.bf16.mxu0 %v5424_v0  ;;  %4607 = vmatpush1.bf16.msra.mxu1 %v5540_v18  ;;  %v5036_v18 = vld [vmem:[%s7226_s0 + $0x14] ss:$36 sps:$4 sm:$0xff]  }
  0x65   :  { %4592 = vmatprep.subr.bf16.mxu1 %v5424_v0 }
  0x67   :  { %2979 = vmatpush1.bf16.msra.mxu0 %v5007_v1  ;;  %v5088_v1 = vld [vmem:[%s7226_s0 + $0x480] ss:$36 sps:$4 sm:$0xff]  }
  0x68   :  { %2980 = vmatprep.subr.bf16.mxu0 %v5424_v0  ;;  %4608 = vmatpush1.bf16.msra.mxu1 %v5557_v22  ;;  %v5039_v22 = vld [vmem:[%s7226_s0 + $0x28c] ss:$36 sps:$4 sm:$0xff]  }
  0x69   :  { %2455 = vmatmul.mubr.bf16.gmra.mrb[20].mxu1 %v5012_v2  ;;  %4593 = vmatprep.subr.bf16.mxu1 %v5424_v0  ;;  %v5089_v2 = vld [vmem:[%s7226_s0 + $0x250] ss:$36 sps:$4 sm:$0xff]  }
  0x6a   :  { %2744 = vmatmul.mubr.bf16.gmra.mrb[20].mxu0 %v5013_v3  ;;  %2462 = vmatprep.mubr.bf16.mxu1 %v5016_v4  ;;  %v5091_v3 = vld [vmem:[%s7226_s0 + $0x4cc] ss:$36 sps:$4 sm:$0xff]   ;;  %v5093_v4 = vld [vmem:[%s7226_s0 + $0x29c] ss:$36 sps:$4 sm:$0xff]  }
  0x6b   :  { %2981 = vmatpush1.bf16.msra.mxu0 %v5014_v5  ;;  %2751 = vmatprep.mubr.bf16.mxu0 %v5018_v6  ;;  %v5979_v5 = vld [vmem:[%s7225_s1 + $0x200] sm:$0xff]   ;;  %v5095_v6 = vld [vmem:[%s7226_s0 + $0x4c8] ss:$36 sps:$4 sm:$0xff]  }
  0x6c   :  { %2982 = vmatprep.subr.bf16.mxu0 %v5424_v0  ;;  %4609 = vmatpush1.bf16.msra.mxu1 %v5568_v24  ;;  %v5041_v24 = vld [vmem:[%s7226_s0 + $0x5c] ss:$36 sps:$4 sm:$0xff]  }
  0x6d   :  { %4594 = vmatprep.subr.bf16.mxu1 %v5424_v0 }
  0x6f   :  { %2983 = vmatpush1.bf16.msra.mxu0 %v5015_v7  ;;  %v5096_v7 = vld [vmem:[%s7226_s0 + $0x298] ss:$36 sps:$4 sm:$0xff]  }
  0x70   :  { %2984 = vmatprep.subr.bf16.mxu0 %v5424_v0  ;;  %4610 = vmatpush1.bf16.msra.mxu1 %v5579_v26  ;;  %v5051_v26 = vld [vmem:[%s7225_s1 + $0x188] sm:$0xff]  }
  0x71   :  { %2463 = vmatmul.mubr.bf16.gmra.mrb[24].mxu1 %v5020_v8  ;;  %4595 = vmatprep.subr.bf16.mxu1 %v5424_v0  ;;  %v5097_v8 = vld [vmem:[%s7226_s0 + $0x514] ss:$36 sps:$4 sm:$0xff]  }
  0x72   :  { %2752 = vmatmul.mubr.bf16.gmra.mrb[24].mxu0 %v5021_v9  ;;  %2470 = vmatprep.mubr.bf16.mxu1 %v5024_v11  ;;  %v5195_v9 = vld [vmem:[%s7225_s1 + $0x1e0] sm:$0xff]   ;;  %v5101_v11 = vld [vmem:[%s7226_s0 + $0x510] ss:$36 sps:$4 sm:$0xff]  }
  0x73   :  { %2985 = vmatpush1.bf16.msra.mxu0 %v5022_v10  ;;  %2759 = vmatprep.mubr.bf16.mxu0 %v5026_v12  ;;  %v5099_v10 = vld [vmem:[%s7226_s0 + $0x2e4] ss:$36 sps:$4 sm:$0xff]  }
  0x74   :  { %2986 = vmatprep.subr.bf16.mxu0 %v5424_v0  ;;  %4611 = vmatpush1.bf16.msra.mxu1 %v5590_v28  ;;  %v5045_v28 = vld [vmem:[%s7226_s0 + $0x2d4] ss:$36 sps:$4 sm:$0xff]   ;;  %v5102_v12 = vld [vmem:[%s7226_s0 + $0x2e0] ss:$36 sps:$4 sm:$0xff]  }
  0x75   :  { %4596 = vmatprep.subr.bf16.mxu1 %v5424_v0 }
  0x77   :  { %2987 = vmatpush1.bf16.msra.mxu0 %v5023_v13  ;;  %v5104_v13 = vld [vmem:[%s7226_s0 + $0x55c] ss:$36 sps:$4 sm:$0xff]  }
  0x78   :  { %2988 = vmatprep.subr.bf16.mxu0 %v5424_v0  ;;  %4612 = vmatpush1.bf16.msra.mxu1 %v5601_v30  ;;  %v5064_v30 = vld [vmem:[%s7225_s1 + $0x190] sm:$0xff]  }
  0x79   :  { %2471 = vmatmul.mubr.bf16.gmra.mrb[28].mxu1 %v5028_v14  ;;  %4597 = vmatprep.subr.bf16.mxu1 %v5424_v0  ;;  %v5106_v14 = vld [vmem:[%s7226_s0 + $0x32c] ss:$36 sps:$4 sm:$0xff]  }
  0x7a   :  { %2760 = vmatmul.mubr.bf16.gmra.mrb[28].mxu0 %v5029_v15  ;;  %2478 = vmatprep.mubr.bf16.mxu1 %v5032_v16  ;;  %v5208_v15 = vld [vmem:[%s7225_s1 + $0x1e8] sm:$0xff]   ;;  %v5108_v16 = vld [vmem:[%s7226_s0 + $0x558] ss:$36 sps:$4 sm:$0xff]  }
  0x7b   :  { %2989 = vmatpush1.bf16.msra.mxu0 %v5030_v17  ;;  %2992 = vmatprep.mubr.bf16.mxu0 %v5036_v18  ;;  %v5109_v17 = vld [vmem:[%s7226_s0 + $0x328] ss:$36 sps:$4 sm:$0xff]  }
  0x7c   :  { %2990 = vmatprep.subr.bf16.mxu0 %v5424_v0  ;;  %4613 = vmatpush1.bf16.msra.mxu1 %v5612_v32  ;;  %v5077_v32 = vld [vmem:[%s7225_s1 + $0x198] sm:$0xff]   ;;  %v5110_v18 = vld [vmem:[%s7226_s0 + $0x5a4] ss:$36 sps:$4 sm:$0xff]  }
  0x7d   :  { %4598 = vmatprep.subr.bf16.mxu1 %v5424_v0 }
  0x7f   :  { %2991 = vmatpush1.bf16.msra.mxu0 %v5031_v19  ;;  %v5112_v19 = vld [vmem:[%s7226_s0 + $0x374] ss:$36 sps:$4 sm:$0xff]  }
  0x80   :  { %3249 = vmatprep.subr.bf16.mxu0 %v5424_v0  ;;  %4614 = vmatpush1.bf16.msra.mxu1 %v5623_v34  ;;  %v5052_v34 = vld [vmem:[%s7226_s0 + $0x31c] ss:$36 sps:$4 sm:$0xff]  }
  0x81   :  { %2479 = vmatmul.mubr.bf16.gmra.mrb[32].mxu1 %v5037_v20  ;;  %4503 = vmatprep.subr.bf16.mxu1 %v5979_v5  ;;  %v5114_v20 = vld [vmem:[%s7226_s0 + $0x5a0] ss:$36 sps:$4 sm:$0xff]  }
  0x82   :  { %2993 = vmatmul.mubr.bf16.vlgmr.msra.gmra.mrb[0].mxu0 %v5034_v21  ;;  %2486 = vmatprep.mubr.bf16.mxu1 %v5039_v22  ;;  %v5115_v21 = vld [vmem:[%s7226_s0 + $0x370] ss:$36 sps:$4 sm:$0xff]  }
  0x83   :  { %3250 = vmatpush1.bf16.msra.mxu0 %v5038_v23  ;;  %3000 = vmatprep.mubr.bf16.mxu0 %v5041_v24  ;;  %v5117_v22 = vld [vmem:[%s7226_s0 + $0x5ec] ss:$36 sps:$4 sm:$0xff]   ;;  %v5119_v23 = vld [vmem:[%s7226_s0 + $0x3bc] ss:$36 sps:$4 sm:$0xff]  }
  0x84   :  { %3251 = vmatprep.subr.bf16.mxu0 %v5424_v0  ;;  %v5222_v24 = vld [vmem:[%s7225_s1 + $0x1f0] sm:$0xff]  }
  0x87   :  { %3252 = vmatpush1.bf16.msra.mxu0 %v5051_v26  ;;  %v5122_v26 = vld [vmem:[%s7226_s0 + $0x3b8] ss:$36 sps:$4 sm:$0xff]  }
  0x88   :  { %3253 = vmatprep.subr.bf16.mxu0 %v5424_v0 }
  0x89   :  { %2487 = vmatmul.mubr.bf16.gmra.mrb[36].mxu1 %v5043_v25  ;;  %v5121_v25 = vld [vmem:[%s7226_s0 + $0x5e8] ss:$36 sps:$4 sm:$0xff]  }
  0x8a   :  { %3001 = vmatmul.mubr.bf16.gmra.mrb[4].mxu0 %v5044_v27  ;;  %2494 = vmatprep.mubr.bf16.mxu1 %v5045_v28  ;;  %v5123_v27 = vld [vmem:[%s7226_s0 + $0x634] ss:$36 sps:$4 sm:$0xff]   ;;  %v5125_v28 = vld [vmem:[%s7226_s0 + $0x404] ss:$36 sps:$4 sm:$0xff]  }
  0x8b   :  { %3008 = vmatprep.mubr.bf16.mxu0 %v5047_v29  ;;  %3254 = vmatpush1.bf16.msra.mxu0 %v5064_v30  ;;  %v5128_v29 = vld [vmem:[%s7226_s0 + $0x400] ss:$36 sps:$4 sm:$0xff]  }
  0x8c   :  { %3255 = vmatprep.subr.bf16.mxu0 %v5424_v0  ;;  %v5130_v30 = vld [vmem:[%s7226_s0 + $0x67c] ss:$36 sps:$4 sm:$0xff]  }
  0x8f   :  { %3256 = vmatpush1.bf16.msra.mxu0 %v5077_v32  ;;  %v5236_v32 = vld [vmem:[%s7225_s1 + $0x1f8] sm:$0xff]  }
  0x90   :  { %3257 = vmatprep.subr.bf16.mxu0 %v5424_v0 }
  0x91   :  { %2495 = vmatmul.mubr.bf16.gmra.mrb[40].mxu1 %v5049_v31  ;;  %v5132_v31 = vld [vmem:[%s7226_s0 + $0x44c] ss:$36 sps:$4 sm:$0xff]  }
  0x92   :  { %3009 = vmatmul.mubr.bf16.gmra.mrb[8].mxu0 %v5050_v33  ;;  %2502 = vmatprep.mubr.bf16.mxu1 %v5052_v34  ;;  %v5134_v33 = vld [vmem:[%s7226_s0 + $0x678] ss:$36 sps:$4 sm:$0xff]   ;;  %v5135_v34 = vld [vmem:[%s7226_s0 + $0x448] ss:$36 sps:$4 sm:$0xff]  }
  0x93   :  { %3016 = vmatprep.mubr.bf16.mxu0 %v5054_v35  ;;  %3258 = vmatpush1.bf16.msra.mxu0 %v5090_v36  ;;  %v5136_v35 = vld [vmem:[%s7226_s0 + $0x6c4] ss:$36 sps:$4 sm:$0xff]   ;;  %v5138_v36 = vld [vmem:[%s7226_s0 + $0x494] ss:$36 sps:$4 sm:$0xff]  }
  0x94   :  { %3259 = vmatprep.subr.bf16.mxu0 %v5424_v0 }
  0x97   :  { %3260 = vmatpush1.bf16.msra.mxu0 %v5103_v37  ;;  %v5140_v37 = vld [vmem:[%s7226_s0 + $0x6c0] ss:$36 sps:$4 sm:$0xff]  }
  0x98   :  { %3261 = vmatprep.subr.bf16.mxu0 %v5424_v0 }
  0x99   :  { %2503 = vmatmul.mubr.bf16.gmra.mrb[44].mxu1 %v5056_v38  ;;  %v5141_v38 = vld [vmem:[%s7226_s0 + $0x490] ss:$36 sps:$4 sm:$0xff]  }
  0x9a   :  { %3017 = vmatmul.mubr.bf16.gmra.mrb[12].mxu0 %v5057_v39  ;;  %2510 = vmatprep.mubr.bf16.mxu1 %v5058_v40  ;;  %v5143_v39 = vld [vmem:[%s7226_s0 + $0x70c] ss:$36 sps:$4 sm:$0xff]   ;;  %v5145_v40 = vld [vmem:[%s7226_s0 + $0x4dc] ss:$36 sps:$4 sm:$0xff]  }
  0x9b   :  { %3024 = vmatprep.mubr.bf16.mxu0 %v5060_v41  ;;  %3262 = vmatpush1.bf16.msra.mxu0 %v5116_v42  ;;  %v5147_v41 = vld [vmem:[%s7226_s0 + $0x708] ss:$36 sps:$4 sm:$0xff]   ;;  %v5148_v42 = vld [vmem:[%s7226_s0 + $0x4d8] ss:$36 sps:$4 sm:$0xff]  }
  0x9c   :  { %3263 = vmatprep.subr.bf16.mxu0 %v5424_v0 }
  0x9f   :  { %3264 = vmatpush1.bf16.msra.mxu0 %v5129_v43  ;;  %v5149_v43 = vld [vmem:[%s7226_s0 + $0x754] ss:$36 sps:$4 sm:$0xff]  }
  0xa0   :  { %3265 = vmatprep.subr.bf16.mxu0 %v5424_v0 }
  0xa1   :  { %2511 = vmatmul.mubr.bf16.gmra.mrb[48].mxu1 %v5062_v44  ;;  %v5151_v44 = vld [vmem:[%s7226_s0 + $0x524] ss:$36 sps:$4 sm:$0xff]  }
  0xa2   :  { %3025 = vmatmul.mubr.bf16.gmra.mrb[16].mxu0 %v5063_v45  ;;  %2518 = vmatprep.mubr.bf16.mxu1 %v5065_v46  ;;  %v5153_v45 = vld [vmem:[%s7226_s0 + $0x750] ss:$36 sps:$4 sm:$0xff]   ;;  %v5154_v46 = vld [vmem:[%s7226_s0 + $0x520] ss:$36 sps:$4 sm:$0xff]  }
  0xa3   :  { %3032 = vmatprep.mubr.bf16.mxu0 %v5067_v47  ;;  %3266 = vmatpush1.bf16.msra.mxu0 %v5142_v48  ;;  %v5156_v47 = vld [vmem:[%s7226_s0 + $0x79c] ss:$36 sps:$4 sm:$0xff]   ;;  %v5158_v48 = vld [vmem:[%s7226_s0 + $0x56c] ss:$36 sps:$4 sm:$0xff]  }
  0xa4   :  { %3267 = vmatprep.subr.bf16.mxu0 %v5424_v0 }
  0xa7   :  { %3268 = vmatpush1.bf16.msra.mxu0 %v5155_v49 }
  0xa8   :  { %3269 = vmatprep.subr.bf16.mxu0 %v5424_v0 }
  0xa9   :  { %2519 = vmatmul.mubr.bf16.gmra.mrb[52].mxu1 %v5069_v50 }
  0xaa   :  { %3033 = vmatmul.mubr.bf16.gmra.mrb[20].mxu0 %v5070_v51  ;;  %2526 = vmatprep.mubr.bf16.mxu1 %v5071_v52  ;;  %v5160_v51 = vld [vmem:[%s7226_s0 + $0x798] ss:$36 sps:$4 sm:$0xff]  }
  0xab   :  { %3040 = vmatprep.mubr.bf16.mxu0 %v5073_v53  ;;  %3270 = vmatpush1.bf16.msra.mxu0 %v5168_v54  ;;  %v5161_v53 = vld [vmem:[%s7226_s0 + $0x568] ss:$36 sps:$4 sm:$0xff]  }
  0xac   :  { %3271 = vmatprep.subr.bf16.mxu0 %v5424_v0  ;;  %v5162_v54 = vld [vmem:[%s7226_s0 + $0x7e4] ss:$36 sps:$4 sm:$0xff]  }
  0xaf   :  { %3272 = vmatpush1.bf16.msra.mxu0 %v5181_v62  ;;  %v5169_v62 = vld [vmem:[%s7226_s0 + $0x82c] ss:$36 sps:$4 sm:$0xff]  }
  0xb0   :  { %3273 = vmatprep.subr.bf16.mxu0 %v5424_v0 }
  0xb1   :  { %2527 = vmatmul.mubr.bf16.gmra.mrb[56].mxu1 %v5075_v55 }
  0xb2   :  { %3041 = vmatmul.mubr.bf16.gmra.mrb[24].mxu0 %v5076_v56  ;;  %2534 = vmatprep.mubr.bf16.mxu1 %v5078_v57  ;;  %v5164_v56 = vld [vmem:[%s7226_s0 + $0x5b4] ss:$36 sps:$4 sm:$0xff]  }
  0xb3   :  { %3048 = vmatprep.mubr.bf16.mxu0 %v5080_v58  ;;  %3274 = vmatpush1.bf16.msra.mxu0 %v5195_v9 }
  0xb4   :  { %3275 = vmatprep.subr.bf16.mxu0 %v5424_v0 }
  0xb7   :  { %3276 = vmatpush1.bf16.msra.mxu0 %v5208_v15  ;;  %v5180_v15 = vld [vmem:[%s7226_s0 + $0x640] ss:$36 sps:$4 sm:$0xff]  }
  0xb8   :  { %3277 = vmatprep.subr.bf16.mxu0 %v5424_v0 }
  0xb9   :  { %2535 = vmatmul.mubr.bf16.gmra.mrb[60].mxu1 %v5082_v59  ;;  %v5166_v59 = vld [vmem:[%s7226_s0 + $0x7e0] ss:$36 sps:$4 sm:$0xff]  }
  0xba   :  { %3049 = vmatmul.mubr.bf16.gmra.mrb[28].mxu0 %v5083_v60  ;;  %2542 = vmatprep.mubr.bf16.mxu1 %v5084_v61  ;;  %v5167_v61 = vld [vmem:[%s7226_s0 + $0x5b0] ss:$36 sps:$4 sm:$0xff]  }
  0xbb   :  { %3056 = vmatprep.mubr.bf16.mxu0 %v5086_v63  ;;  %3278 = vmatpush1.bf16.msra.mxu0 %v5222_v24  ;;  %v5190_v24 = vld [vmem:[%s7226_s0 + $0x24c] ss:$36 sps:$4 sm:$0xff]  }
  0xbc   :  { %3279 = vmatprep.subr.bf16.mxu0 %v5424_v0  ;;  %v5127_v0 = vld [vmem:[%s7226_s0 + $0x630] ss:$36 sps:$4 sm:$0xff]  }
  0xbf   :  { %3280 = vmatpush1.bf16.msra.mxu0 %v5236_v32  ;;  %v5196_v32 = vld [vmem:[%s7226_s0 + $0x294] ss:$36 sps:$4 sm:$0xff]  }
  0xc1   :  { %2543 = vmatmul.mubr.bf16.gmra.mrb[64].mxu1 %v5088_v1  ;;  %v5171_v1 = vld [vmem:[%s7226_s0 + $0x5fc] ss:$36 sps:$4 sm:$0xff]  }
  0xc2   :  { %3057 = vmatmul.mubr.bf16.gmra.mrb[32].mxu0 %v5089_v2  ;;  %2550 = vmatprep.mubr.bf16.mxu1 %v5091_v3 }
  0xc3   :  { %3064 = vmatprep.mubr.bf16.mxu0 %v5093_v4  ;;  %v5173_v4 = vld [vmem:[%s7226_s0 + $0x828] ss:$36 sps:$4 sm:$0xff]  }
  0xc9   :  { %2551 = vmatmul.mubr.bf16.gmra.mrb[68].mxu1 %v5095_v6 }
  0xca   :  { %3065 = vmatmul.mubr.bf16.gmra.mrb[36].mxu0 %v5096_v7  ;;  %2558 = vmatprep.mubr.bf16.mxu1 %v5097_v8  ;;  %v5174_v7 = vld [vmem:[%s7226_s0 + $0x5f8] ss:$36 sps:$4 sm:$0xff]  }
  0xcb   :  { %3072 = vmatprep.mubr.bf16.mxu0 %v5099_v10  ;;  %v5175_v8 = vld [vmem:[%s7226_s0 + $0x874] ss:$36 sps:$4 sm:$0xff]   ;;  %v5177_v10 = vld [vmem:[%s7226_s0 + $0x644] ss:$36 sps:$4 sm:$0xff]  }
  0xd1   :  { %2559 = vmatmul.mubr.bf16.gmra.mrb[72].mxu1 %v5101_v11 }
  0xd2   :  { %3073 = vmatmul.mubr.bf16.gmra.mrb[40].mxu0 %v5102_v12  ;;  %2566 = vmatprep.mubr.bf16.mxu1 %v5104_v13  ;;  %v5179_v13 = vld [vmem:[%s7226_s0 + $0x870] ss:$36 sps:$4 sm:$0xff]  }
  0xd3   :  { %3080 = vmatprep.mubr.bf16.mxu0 %v5106_v14 }
  0xd9   :  { %2567 = vmatmul.mubr.bf16.gmra.mrb[76].mxu1 %v5108_v16  ;;  %v5182_v16 = vld [vmem:[%s7226_s0 + $0x8bc] ss:$36 sps:$4 sm:$0xff]  }
  0xda   :  { %3081 = vmatmul.mubr.bf16.gmra.mrb[44].mxu0 %v5109_v17  ;;  %2574 = vmatprep.mubr.bf16.mxu1 %v5110_v18  ;;  %v5184_v18 = vld [vmem:[%s7226_s0 + $0x68c] ss:$36 sps:$4 sm:$0xff]  }
  0xdb   :  { %3088 = vmatprep.mubr.bf16.mxu0 %v5112_v19 }
  0xe1   :  { %2575 = vmatmul.mubr.bf16.gmra.mrb[80].mxu1 %v5114_v20 }
  0xe2   :  { %3089 = vmatmul.mubr.bf16.gmra.mrb[48].mxu0 %v5115_v21  ;;  %2582 = vmatprep.mubr.bf16.mxu1 %v5117_v22  ;;  %v5186_v21 = vld [vmem:[%s7226_s0 + $0x8b8] ss:$36 sps:$4 sm:$0xff]  }
  0xe3   :  { %3096 = vmatprep.mubr.bf16.mxu0 %v5119_v23  ;;  %v5187_v23 = vld [vmem:[%s7226_s0 + $0x688] ss:$36 sps:$4 sm:$0xff]  }
  0xe9   :  { %2583 = vmatmul.mubr.bf16.gmra.mrb[84].mxu1 %v5121_v25 }
  0xea   :  { %3097 = vmatmul.mubr.bf16.gmra.mrb[52].mxu0 %v5122_v26  ;;  %2590 = vmatprep.mubr.bf16.mxu1 %v5123_v27  ;;  %v5191_v26 = vld [vmem:[%s7226_s0 + $0x6d4] ss:$36 sps:$4 sm:$0xff]  }
  0xeb   :  { %3104 = vmatprep.mubr.bf16.mxu0 %v5125_v28 }
  0xf1   :  { %2591 = vmatmul.mubr.bf16.gmra.mrb[88].mxu1 %v5127_v0  ;;  %v5188_v0 = vld [vmem:[%s7226_s0 + $0x248] ss:$36 sps:$4 sm:$0xff]  }
  0xf2   :  { %3105 = vmatmul.mubr.bf16.gmra.mrb[56].mxu0 %v5128_v29  ;;  %2598 = vmatprep.mubr.bf16.mxu1 %v5130_v30  ;;  %v5193_v30 = vld [vmem:[%s7226_s0 + $0x6d0] ss:$36 sps:$4 sm:$0xff]  }
  0xf3   :  { %3112 = vmatprep.mubr.bf16.mxu0 %v5132_v31 }
  0xf9   :  { %2599 = vmatmul.mubr.bf16.gmra.mrb[92].mxu1 %v5134_v33  ;;  %v5198_v33 = vld [vmem:[%s7226_s0 + $0x71c] ss:$36 sps:$4 sm:$0xff]  }
  0xfa   :  { %3113 = vmatmul.mubr.bf16.gmra.mrb[60].mxu0 %v5135_v34  ;;  %2606 = vmatprep.mubr.bf16.mxu1 %v5136_v35  ;;  %v5215_v34 = vld [vmem:[%s7225_s1 + $0x208] sm:$0xff]   ;;  %v5235_v35 = vld [vmem:[%s7225_s1 + $0x210] sm:$0xff]  }
  0xfb   :  { %3120 = vmatprep.mubr.bf16.mxu0 %v5138_v36 }
 0x101   :  { %2607 = vmatmul.mubr.bf16.gmra.mrb[96].mxu1 %v5140_v37 }
 0x102   :  { %3121 = vmatmul.mubr.bf16.gmra.mrb[64].mxu0 %v5141_v38  ;;  %2614 = vmatprep.mubr.bf16.mxu1 %v5143_v39  ;;  %v5200_v38 = vld [vmem:[%s7226_s0 + $0x290] ss:$36 sps:$4 sm:$0xff]  }
 0x103   :  { %3128 = vmatprep.mubr.bf16.mxu0 %v5145_v40  ;;  %v5202_v40 = vld [vmem:[%s7226_s0 + $0x2dc] ss:$36 sps:$4 sm:$0xff]  }
 0x109   :  { %2615 = vmatmul.mubr.bf16.gmra.mrb[100].mxu1 %v5147_v41 }
 0x10a   :  { %3129 = vmatmul.mubr.bf16.gmra.mrb[68].mxu0 %v5148_v42  ;;  %2622 = vmatprep.mubr.bf16.mxu1 %v5149_v43  ;;  %v5204_v42 = vld [vmem:[%s7226_s0 + $0x764] ss:$36 sps:$4 sm:$0xff]   ;;  %v5255_v43 = vld [vmem:[%s7225_s1 + $0x218] sm:$0xff]  }
 0x10b   :  { %3136 = vmatprep.mubr.bf16.mxu0 %v5151_v44 }
 0x111   :  { %2623 = vmatmul.mubr.bf16.gmra.mrb[104].mxu1 %v5153_v45  ;;  %v5274_v45 = vld [vmem:[%s7225_s1 + $0x220] sm:$0xff]  }
 0x112   :  { %3137 = vmatmul.mubr.bf16.gmra.mrb[72].mxu0 %v5154_v46  ;;  %2630 = vmatprep.mubr.bf16.mxu1 %v5156_v47  ;;  %v5206_v47 = vld [vmem:[%s7226_s0 + $0x2d8] ss:$36 sps:$4 sm:$0xff]  }
 0x113   :  { %3144 = vmatprep.mubr.bf16.mxu0 %v5158_v48 }
 0x114   :  { %v6117_v49 = vpop.f32.mrb[0].mxu1 }
 0x115   :  { %v2418_v50 = vpop.f32.mrb[1].mxu1 }
 0x116   :  { %v6122_v52 = vpop.f32.mrb[2].mxu1  ;;  %v5207_v50 = vld [vmem:[%s7226_s0 + $0x760] ss:$36 sps:$4 sm:$0xff]  }
 0x117   :  { %v2421_v55 = vpop.f32.mrb[3].mxu1 }
 0x118   :  { %v5293_v55 = vld [vmem:[%s7225_s1 + $0x228] sm:$0xff]  }
 0x119   :  { %2631 = vmatmul.mubr.bf16.gmra.mrb[108].mxu1 %v5160_v51  ;;  %v5209_v51 = vld [vmem:[%s7226_s0 + $0x324] ss:$36 sps:$4 sm:$0xff]  }
 0x11a   :  { %3145 = vmatmul.mubr.bf16.gmra.mrb[76].mxu0 %v5161_v53  ;;  %2638 = vmatprep.mubr.bf16.mxu1 %v5162_v54  ;;  %v5211_v54 = vld [vmem:[%s7226_s0 + $0x7ac] ss:$36 sps:$4 sm:$0xff]  }
 0x11b   :  { %3152 = vmatprep.mubr.bf16.mxu0 %v5164_v56  ;;  %v5312_v56 = vld [vmem:[%s7225_s1 + $0x230] sm:$0xff]  }
 0x11c   :  { %v6133_v57 = vpop.f32.mrb[4].mxu1 }
 0x11d   :  { %v2426_v58 = vpop.f32.mrb[5].mxu1 }
 0x11e   :  { %v6138_v60 = vpop.f32.mrb[6].mxu1  ;;  %v5213_v58 = vld [vmem:[%s7226_s0 + $0x320] ss:$36 sps:$4 sm:$0xff]  }
 0x11f   :  { %v2429_v63 = vpop.f32.mrb[7].mxu1 }
 0x120   :  { %v5220_v63 = vld [vmem:[%s7226_s0 + $0x368] ss:$36 sps:$4 sm:$0xff]  }
 0x121   :  { %2639 = vmatmul.mubr.bf16.gmra.mrb[112].mxu1 %v5166_v59  ;;  %v5214_v59 = vld [vmem:[%s7226_s0 + $0x7a8] ss:$36 sps:$4 sm:$0xff]  }
 0x122   :  { %3153 = vmatmul.mubr.bf16.gmra.mrb[80].mxu0 %v5167_v61  ;;  %2646 = vmatprep.mubr.bf16.mxu1 %v5169_v62  ;;  %v5216_v61 = vld [vmem:[%s7226_s0 + $0x36c] ss:$36 sps:$4 sm:$0xff]   ;;  %v5218_v62 = vld [vmem:[%s7226_s0 + $0x7f4] ss:$36 sps:$4 sm:$0xff]  }
 0x123   :  { %3160 = vmatprep.mubr.bf16.mxu0 %v5171_v1  ;;  %v5221_v1 = vld [vmem:[%s7226_s0 + $0x7f0] ss:$36 sps:$4 sm:$0xff]  }
 0x124   :  { %v6149_v2 = vpop.f32.mrb[8].mxu1 }
 0x125   :  { %v2434_v3 = vpop.f32.mrb[9].mxu1 }
 0x126   :  { %v6154_v6 = vpop.f32.mrb[10].mxu1  ;;  %v5223_v3 = vld [vmem:[%s7226_s0 + $0x3b4] ss:$36 sps:$4 sm:$0xff]  }
 0x127   :  { %v2437_v9 = vpop.f32.mrb[11].mxu1 }
 0x128   :  { %v5229_v9 = vld [vmem:[%s7226_s0 + $0x3fc] ss:$36 sps:$4 sm:$0xff]  }
 0x129   :  { %2647 = vmatmul.mubr.bf16.gmra.mrb[116].mxu1 %v5173_v4  ;;  %v5225_v4 = vld [vmem:[%s7226_s0 + $0x83c] ss:$36 sps:$4 sm:$0xff]  }
 0x12a   :  { %3161 = vmatmul.mubr.bf16.gmra.mrb[84].mxu0 %v5174_v7  ;;  %2654 = vmatprep.mubr.bf16.mxu1 %v5175_v8  ;;  %v5227_v7 = vld [vmem:[%s7226_s0 + $0x3b0] ss:$36 sps:$4 sm:$0xff]   ;;  %v5228_v8 = vld [vmem:[%s7226_s0 + $0x838] ss:$36 sps:$4 sm:$0xff]  }
 0x12b   :  { %3168 = vmatprep.mubr.bf16.mxu0 %v5177_v10  ;;  %v5231_v10 = vld [vmem:[%s7226_s0 + $0x884] ss:$36 sps:$4 sm:$0xff]  }
 0x12c   :  { %v6165_v11 = vpop.f32.mrb[12].mxu1 }
 0x12d   :  { %v2442_v12 = vpop.f32.mrb[13].mxu1 }
 0x12e   :  { %v6170_v14 = vpop.f32.mrb[14].mxu1  ;;  %v5331_v12 = vld [vmem:[%s7225_s1 + $0x238] sm:$0xff]  }
 0x12f   :  { %v2445_v17 = vpop.f32.mrb[15].mxu1 }
 0x130   :  { %v5239_v17 = vld [vmem:[%s7226_s0 + $0x8cc] ss:$36 sps:$4 sm:$0xff]  }
 0x131   :  { %2655 = vmatmul.mubr.bf16.gmra.mrb[120].mxu1 %v5179_v13  ;;  %v5233_v13 = vld [vmem:[%s7226_s0 + $0x3f8] ss:$36 sps:$4 sm:$0xff]  }
 0x132   :  { %3169 = vmatmul.mubr.bf16.gmra.mrb[88].mxu0 %v5180_v15  ;;  %2662 = vmatprep.mubr.bf16.mxu1 %v5182_v16  ;;  %v5234_v15 = vld [vmem:[%s7226_s0 + $0x880] ss:$36 sps:$4 sm:$0xff]  }
 0x133   :  { %3176 = vmatprep.mubr.bf16.mxu0 %v5184_v18  ;;  %v5237_v16 = vld [vmem:[%s7226_s0 + $0x444] ss:$36 sps:$4 sm:$0xff]  }
 0x134   :  { %v6181_v19 = vpop.f32.mrb[16].mxu1  ;;  %v5241_v18 = vld [vmem:[%s7226_s0 + $0x440] ss:$36 sps:$4 sm:$0xff]  }
 0x135   :  { %v2450_v20 = vpop.f32.mrb[17].mxu1 }
 0x136   :  { %v6186_v22 = vpop.f32.mrb[18].mxu1  ;;  %v5242_v20 = vld [vmem:[%s7226_s0 + $0x8c8] ss:$36 sps:$4 sm:$0xff]  }
 0x137   :  { %v2453_v25 = vpop.f32.mrb[19].mxu1 }
 0x138   :  { %v5245_v25 = vld [vmem:[%s7226_s0 + $0x18] ss:$36 sps:$4 sm:$0xff]  }
 0x139   :  { %2663 = vmatmul.mubr.bf16.gmra.mrb[124].mxu1 %v5186_v21  ;;  %v5243_v21 = vld [vmem:[%s7226_s0 + $0x48c] ss:$36 sps:$4 sm:$0xff]  }
 0x13a   :  { %3177 = vmatmul.mubr.bf16.gmra.mrb[92].mxu0 %v5187_v23  ;;  %2767 = vmatprep.mubr.bf16.mxu1 %v5190_v24  ;;  %v5247_v23 = vld [vmem:[%s7226_s0 + $0x1c] ss:$36 sps:$4 sm:$0xff]   ;;  %v5248_v24 = vld [vmem:[%s7226_s0 + $0x488] ss:$36 sps:$4 sm:$0xff]  }
 0x13b   :  { %3184 = vmatprep.mubr.bf16.mxu0 %v5191_v26  ;;  %v5249_v26 = vld [vmem:[%s7226_s0 + $0x4d4] ss:$36 sps:$4 sm:$0xff]  }
 0x13c   :  { %v6197_v27 = vpop.f32.mrb[20].mxu1 }
 0x13d   :  { %v2458_v28 = vpop.f32.mrb[21].mxu1 }
 0x13e   :  { %v6202_v29 = vpop.f32.mrb[22].mxu1  ;;  %v5251_v28 = vld [vmem:[%s7226_s0 + $0x64] ss:$36 sps:$4 sm:$0xff]  }
 0x13f   :  { %v2461_v31 = vpop.f32.mrb[23].mxu1 }
 0x140   :  { %v5256_v31 = vld [vmem:[%s7226_s0 + $0x51c] ss:$36 sps:$4 sm:$0xff]  }
 0x141   :  { %2768 = vmatmul.mubr.bf16.vlgmr.msra.gmra.mrb[32].mxu1 %v5188_v0  ;;  %v5253_v0 = vld [vmem:[%s7226_s0 + $0x4d0] ss:$36 sps:$4 sm:$0xff]  }
 0x142   :  { %3185 = vmatmul.mubr.bf16.gmra.mrb[96].mxu0 %v5193_v30  ;;  %4504 = vmatpush3.bf16.msra.mxu1 %v5979_v5  ;;  %v5201_v5 = vld [vmem:[%s7226_s0 + $0x718] ss:$36 sps:$4 sm:$0xff]   ;;  %v5254_v30 = vld [vmem:[%s7226_s0 + $0x60] ss:$36 sps:$4 sm:$0xff]  }
 0x143   :  { %2775 = vmatprep.mubr.bf16.mxu1 %v5196_v32  ;;  %3192 = vmatprep.mubr.bf16.mxu0 %v5198_v33  ;;  %v5258_v32 = vld [vmem:[%s7226_s0 + $0xac] ss:$36 sps:$4 sm:$0xff]   ;;  %v5260_v33 = vld [vmem:[%s7226_s0 + $0x518] ss:$36 sps:$4 sm:$0xff]  }
 0x144   :  { %v6220_v36 = vpop.f32.mrb[24].mxu1  ;;  %4505 = vmatprep.subr.bf16.mxu1 %v5215_v34 }
 0x145   :  { %v2466_v37 = vpop.f32.mrb[25].mxu1 }
 0x146   :  { %v6225_v39 = vpop.f32.mrb[26].mxu1  ;;  %4506 = vmatpush3.bf16.msra.mxu1 %v5215_v34  ;;  %v5261_v34 = vld [vmem:[%s7226_s0 + $0xa8] ss:$36 sps:$4 sm:$0xff]   ;;  %v5264_v37 = vld [vmem:[%s7226_s0 + $0xf4] ss:$36 sps:$4 sm:$0xff]  }
 0x147   :  { %v2469_v41 = vpop.f32.mrb[27].mxu1  ;;  %4507 = vmatprep.subr.bf16.mxu1 %v5235_v35 }
 0x148   :  { %v5270_v41 = vld [vmem:[%s7226_s0 + $0x13c] ss:$36 sps:$4 sm:$0xff]  }
 0x149   :  { %2776 = vmatmul.mubr.bf16.gmra.mrb[36].mxu1 %v5200_v38  ;;  %v5266_v38 = vld [vmem:[%s7226_s0 + $0x560] ss:$36 sps:$4 sm:$0xff]  }
 0x14a   :  { %3193 = vmatmul.mubr.bf16.gmra.mrb[100].mxu0 %v5201_v5  ;;  %2783 = vmatprep.mubr.bf16.mxu1 %v5202_v40  ;;  %v5267_v5 = vld [vmem:[%s7226_s0 + $0xf0] ss:$36 sps:$4 sm:$0xff]  }
 0x14b   :  { %3200 = vmatprep.mubr.bf16.mxu0 %v5204_v42  ;;  %4508 = vmatpush3.bf16.msra.mxu1 %v5235_v35  ;;  %v5262_v35 = vld [vmem:[%s7226_s0 + $0x564] ss:$36 sps:$4 sm:$0xff]   ;;  %v5268_v40 = vld [vmem:[%s7226_s0 + $0x5ac] ss:$36 sps:$4 sm:$0xff]  }
 0x14c   :  { %v6239_v44 = vpop.f32.mrb[28].mxu1  ;;  %4509 = vmatprep.subr.bf16.mxu1 %v5255_v43  ;;  %v5272_v42 = vld [vmem:[%s7226_s0 + $0x5a8] ss:$36 sps:$4 sm:$0xff]  }
 0x14d   :  { %v2474_v46 = vpop.f32.mrb[29].mxu1 }
 0x14e   :  { %v6247_v48 = vpop.f32.mrb[30].mxu1  ;;  %v5277_v46 = vld [vmem:[%s7226_s0 + $0x184] ss:$36 sps:$4 sm:$0xff]  }
 0x14f   :  { %v2477_v53 = vpop.f32.mrb[31].mxu1  ;;  %4510 = vmatpush3.bf16.msra.mxu1 %v5255_v43  ;;  %v5273_v43 = vld [vmem:[%s7226_s0 + $0x138] ss:$36 sps:$4 sm:$0xff]  }
 0x150   :  { %4511 = vmatprep.subr.bf16.mxu1 %v5274_v45  ;;  %v5283_v53 = vld [vmem:[%s7226_s0 + $0x1cc] ss:$36 sps:$4 sm:$0xff]  }
 0x151   :  { %2784 = vmatmul.mubr.bf16.gmra.mrb[40].mxu1 %v5206_v47  ;;  %v5279_v47 = vld [vmem:[%s7226_s0 + $0x5f0] ss:$36 sps:$4 sm:$0xff]  }
 0x152   :  { %3201 = vmatmul.mubr.bf16.gmra.mrb[104].mxu0 %v5207_v50  ;;  %2791 = vmatprep.mubr.bf16.mxu1 %v5209_v51  ;;  %v5280_v50 = vld [vmem:[%s7226_s0 + $0x180] ss:$36 sps:$4 sm:$0xff]  }
 0x153   :  { %3208 = vmatprep.mubr.bf16.mxu0 %v5211_v54  ;;  %4512 = vmatpush3.bf16.msra.mxu1 %v5274_v45  ;;  %v5275_v45 = vld [vmem:[%s7226_s0 + $0x5f4] ss:$36 sps:$4 sm:$0xff]   ;;  %v5281_v51 = vld [vmem:[%s7226_s0 + $0x63c] ss:$36 sps:$4 sm:$0xff]  }
 0x154   :  { %4513 = vmatprep.subr.bf16.mxu1 %v5293_v55  ;;  %v5285_v54 = vld [vmem:[%s7226_s0 + $0x638] ss:$36 sps:$4 sm:$0xff]  }
 0x157   :  { %4514 = vmatpush3.bf16.msra.mxu1 %v5293_v55  ;;  %v5286_v55 = vld [vmem:[%s7226_s0 + $0x1c8] ss:$36 sps:$4 sm:$0xff]  }
 0x158   :  { %4515 = vmatprep.subr.bf16.mxu1 %v5312_v56 }
 0x159   :  { %2792 = vmatmul.mubr.bf16.gmra.mrb[44].mxu1 %v5213_v58  ;;  %v5289_v58 = vld [vmem:[%s7226_s0 + $0x214] ss:$36 sps:$4 sm:$0xff]  }
 0x15a   :  { %3209 = vmatmul.mubr.bf16.gmra.mrb[108].mxu0 %v5214_v59  ;;  %2799 = vmatprep.mubr.bf16.mxu1 %v5216_v61  ;;  %v5291_v59 = vld [vmem:[%s7226_s0 + $0x680] ss:$36 sps:$4 sm:$0xff]   ;;  %v5292_v61 = vld [vmem:[%s7226_s0 + $0x210] ss:$36 sps:$4 sm:$0xff]  }
 0x15b   :  { %3216 = vmatprep.mubr.bf16.mxu0 %v5218_v62  ;;  %4516 = vmatpush3.bf16.msra.mxu1 %v5312_v56  ;;  %v5287_v56 = vld [vmem:[%s7226_s0 + $0x684] ss:$36 sps:$4 sm:$0xff]   ;;  %v5294_v62 = vld [vmem:[%s7226_s0 + $0x6cc] ss:$36 sps:$4 sm:$0xff]  }
 0x15c   :  { %4517 = vmatprep.subr.bf16.mxu1 %v5331_v12 }
 0x15f   :  { %4518 = vmatpush3.bf16.msra.mxu1 %v5331_v12  ;;  %v5308_v12 = vld [vmem:[%s7226_s0 + $0x2ec] ss:$36 sps:$4 sm:$0xff]  }
 0x161   :  { %2800 = vmatmul.mubr.bf16.gmra.mrb[48].mxu1 %v5220_v63  ;;  %v5296_v63 = vld [vmem:[%s7226_s0 + $0x25c] ss:$36 sps:$4 sm:$0xff]  }
 0x162   :  { %3217 = vmatmul.mubr.bf16.gmra.mrb[112].mxu0 %v5221_v1  ;;  %2807 = vmatprep.mubr.bf16.mxu1 %v5223_v3  ;;  %v5298_v1 = vld [vmem:[%s7226_s0 + $0x6c8] ss:$36 sps:$4 sm:$0xff]   ;;  %v5299_v3 = vld [vmem:[%s7226_s0 + $0x258] ss:$36 sps:$4 sm:$0xff]  }
 0x163   :  { %3224 = vmatprep.mubr.bf16.mxu0 %v5225_v4  ;;  %v5300_v4 = vld [vmem:[%s7226_s0 + $0x714] ss:$36 sps:$4 sm:$0xff]  }
 0x169   :  { %2808 = vmatmul.mubr.bf16.gmra.mrb[52].mxu1 %v5227_v7  ;;  %v5302_v7 = vld [vmem:[%s7226_s0 + $0x2a4] ss:$36 sps:$4 sm:$0xff]  }
 0x16a   :  { %3225 = vmatmul.mubr.bf16.gmra.mrb[116].mxu0 %v5228_v8  ;;  %2815 = vmatprep.mubr.bf16.mxu1 %v5229_v9  ;;  %v5304_v8 = vld [vmem:[%s7226_s0 + $0x710] ss:$36 sps:$4 sm:$0xff]   ;;  %v5305_v9 = vld [vmem:[%s7226_s0 + $0x2a0] ss:$36 sps:$4 sm:$0xff]  }
 0x16b   :  { %3232 = vmatprep.mubr.bf16.mxu0 %v5231_v10  ;;  %v5306_v10 = vld [vmem:[%s7226_s0 + $0x75c] ss:$36 sps:$4 sm:$0xff]  }
 0x171   :  { %2816 = vmatmul.mubr.bf16.gmra.mrb[56].mxu1 %v5233_v13  ;;  %v5310_v13 = vld [vmem:[%s7226_s0 + $0x758] ss:$36 sps:$4 sm:$0xff]  }
 0x172   :  { %3233 = vmatmul.mubr.bf16.gmra.mrb[120].mxu0 %v5234_v15  ;;  %2823 = vmatprep.mubr.bf16.mxu1 %v5237_v16  ;;  %v5311_v15 = vld [vmem:[%s7226_s0 + $0x2e8] ss:$36 sps:$4 sm:$0xff]  }
 0x173   :  { %3240 = vmatprep.mubr.bf16.mxu0 %v5239_v17  ;;  %v5313_v16 = vld [vmem:[%s7226_s0 + $0x7a4] ss:$36 sps:$4 sm:$0xff]   ;;  %v5315_v17 = vld [vmem:[%s7226_s0 + $0x334] ss:$36 sps:$4 sm:$0xff]  }
 0x179   :  { %2824 = vmatmul.mubr.bf16.gmra.mrb[60].mxu1 %v5241_v18  ;;  %v5317_v18 = vld [vmem:[%s7226_s0 + $0x7a0] ss:$36 sps:$4 sm:$0xff]  }
 0x17a   :  { %3241 = vmatmul.mubr.bf16.gmra.mrb[124].mxu0 %v5242_v20  ;;  %2831 = vmatprep.mubr.bf16.mxu1 %v5243_v21  ;;  %v5318_v20 = vld [vmem:[%s7226_s0 + $0x330] ss:$36 sps:$4 sm:$0xff]  }
 0x17b   :  { %3281 = vmatprep.mubr.bf16.mxu0 %v5247_v23  ;;  %v5319_v21 = vld [vmem:[%s7226_s0 + $0x7ec] ss:$36 sps:$4 sm:$0xff]   ;;  %v5321_v23 = vld [vmem:[%s7226_s0 + $0x37c] ss:$36 sps:$4 sm:$0xff]  }
 0x181   :  { %2832 = vmatmul.mubr.bf16.gmra.mrb[64].mxu1 %v5248_v24  ;;  %v5323_v24 = vld [vmem:[%s7226_s0 + $0x7e8] ss:$36 sps:$4 sm:$0xff]  }
 0x182   :  { %3282 = vmatmul.mubr.bf16.vlgmr.msra.gmra.mrb[0].mxu0 %v5245_v25  ;;  %2839 = vmatprep.mubr.bf16.mxu1 %v5249_v26  ;;  %v5324_v25 = vld [vmem:[%s7226_s0 + $0x378] ss:$36 sps:$4 sm:$0xff]  }
 0x183   :  { %3289 = vmatprep.mubr.bf16.mxu0 %v5251_v28  ;;  %v5325_v26 = vld [vmem:[%s7226_s0 + $0x834] ss:$36 sps:$4 sm:$0xff]   ;;  %v5327_v28 = vld [vmem:[%s7226_s0 + $0x3c4] ss:$36 sps:$4 sm:$0xff]  }
 0x189   :  { %2840 = vmatmul.mubr.bf16.gmra.mrb[68].mxu1 %v5253_v0  ;;  %v5329_v0 = vld [vmem:[%s7226_s0 + $0x830] ss:$36 sps:$4 sm:$0xff]  }
 0x18a   :  { %3290 = vmatmul.mubr.bf16.gmra.mrb[4].mxu0 %v5254_v30  ;;  %2847 = vmatprep.mubr.bf16.mxu1 %v5256_v31  ;;  %v5330_v30 = vld [vmem:[%s7226_s0 + $0x3c0] ss:$36 sps:$4 sm:$0xff]  }
 0x18b   :  { %3297 = vmatprep.mubr.bf16.mxu0 %v5258_v32  ;;  %v5332_v31 = vld [vmem:[%s7226_s0 + $0x87c] ss:$36 sps:$4 sm:$0xff]   ;;  %v5334_v32 = vld [vmem:[%s7226_s0 + $0x40c] ss:$36 sps:$4 sm:$0xff]  }
 0x191   :  { %2848 = vmatmul.mubr.bf16.gmra.mrb[72].mxu1 %v5260_v33  ;;  %v5336_v33 = vld [vmem:[%s7226_s0 + $0x878] ss:$36 sps:$4 sm:$0xff]  }
 0x192   :  { %3298 = vmatmul.mubr.bf16.gmra.mrb[8].mxu0 %v5261_v34  ;;  %2855 = vmatprep.mubr.bf16.mxu1 %v5262_v35  ;;  %v5337_v34 = vld [vmem:[%s7226_s0 + $0x408] ss:$36 sps:$4 sm:$0xff]  }
 0x193   :  { %3305 = vmatprep.mubr.bf16.mxu0 %v5264_v37  ;;  %v5338_v35 = vld [vmem:[%s7226_s0 + $0x8c4] ss:$36 sps:$4 sm:$0xff]   ;;  %v5340_v37 = vld [vmem:[%s7226_s0 + $0x454] ss:$36 sps:$4 sm:$0xff]  }
 0x199   :  { %2856 = vmatmul.mubr.bf16.gmra.mrb[76].mxu1 %v5266_v38  ;;  %v5342_v38 = vld [vmem:[%s7226_s0 + $0x8c0] ss:$36 sps:$4 sm:$0xff]  }
 0x19a   :  { %3306 = vmatmul.mubr.bf16.gmra.mrb[12].mxu0 %v5267_v5  ;;  %2863 = vmatprep.mubr.bf16.mxu1 %v5268_v40  ;;  %v5343_v5 = vld [vmem:[%s7226_s0 + $0x450] ss:$36 sps:$4 sm:$0xff]   ;;  %v5346_v40 = vld [vmem:[%s7226_s0 + $0x20] ss:$36 sps:$4 sm:$0xff]  }
 0x19b   :  { %3313 = vmatprep.mubr.bf16.mxu0 %v5270_v41  ;;  %v5344_v41 = vld [vmem:[%s7226_s0 + $0x49c] ss:$36 sps:$4 sm:$0xff]  }
 0x1a1   :  { %2864 = vmatmul.mubr.bf16.gmra.mrb[80].mxu1 %v5272_v42  ;;  %v5348_v42 = vld [vmem:[%s7226_s0 + $0x68] ss:$36 sps:$4 sm:$0xff]  }
 0x1a2   :  { %3314 = vmatmul.mubr.bf16.gmra.mrb[16].mxu0 %v5273_v43  ;;  %2871 = vmatprep.mubr.bf16.mxu1 %v5275_v45  ;;  %v5347_v43 = vld [vmem:[%s7226_s0 + $0x498] ss:$36 sps:$4 sm:$0xff]   ;;  %v5351_v45 = vld [vmem:[%s7226_s0 + $0xb0] ss:$36 sps:$4 sm:$0xff]  }
 0x1a3   :  { %3321 = vmatprep.mubr.bf16.mxu0 %v5277_v46  ;;  %v5349_v46 = vld [vmem:[%s7226_s0 + $0x4e4] ss:$36 sps:$4 sm:$0xff]  }
 0x1a9   :  { %2872 = vmatmul.mubr.bf16.gmra.mrb[84].mxu1 %v5279_v47  ;;  %v5353_v47 = vld [vmem:[%s7226_s0 + $0xf8] ss:$36 sps:$4 sm:$0xff]  }
 0x1aa   :  { %3322 = vmatmul.mubr.bf16.gmra.mrb[20].mxu0 %v5280_v50  ;;  %2879 = vmatprep.mubr.bf16.mxu1 %v5281_v51  ;;  %v5352_v50 = vld [vmem:[%s7226_s0 + $0x4e0] ss:$36 sps:$4 sm:$0xff]  }
 0x1ab   :  { %3329 = vmatprep.mubr.bf16.mxu0 %v5283_v53  ;;  %v5356_v51 = vld [vmem:[%s7226_s0 + $0x140] ss:$36 sps:$4 sm:$0xff]   ;;  %v5354_v53 = vld [vmem:[%s7226_s0 + $0x52c] ss:$36 sps:$4 sm:$0xff]  }
 0x1b1   :  { %2880 = vmatmul.mubr.bf16.gmra.mrb[88].mxu1 %v5285_v54  ;;  %v5358_v54 = vld [vmem:[%s7226_s0 + $0x188] ss:$36 sps:$4 sm:$0xff]  }
 0x1b2   :  { %3330 = vmatmul.mubr.bf16.gmra.mrb[24].mxu0 %v5286_v55  ;;  %2887 = vmatprep.mubr.bf16.mxu1 %v5287_v56  ;;  %v5357_v55 = vld [vmem:[%s7226_s0 + $0x528] ss:$36 sps:$4 sm:$0xff]   ;;  %v5361_v56 = vld [vmem:[%s7226_s0 + $0x1d0] ss:$36 sps:$4 sm:$0xff]  }
 0x1b3   :  { %3337 = vmatprep.mubr.bf16.mxu0 %v5289_v58  ;;  %v5359_v58 = vld [vmem:[%s7226_s0 + $0x574] ss:$36 sps:$4 sm:$0xff]  }
 0x1b9   :  { %2888 = vmatmul.mubr.bf16.gmra.mrb[92].mxu1 %v5291_v59 }
 0x1ba   :  { %3338 = vmatmul.mubr.bf16.gmra.mrb[28].mxu0 %v5292_v61  ;;  %2895 = vmatprep.mubr.bf16.mxu1 %v5294_v62  ;;  %v5363_v62 = vld [vmem:[%s7226_s0 + $0x218] ss:$36 sps:$4 sm:$0xff]  }
 0x1bb   :  { %3345 = vmatprep.mubr.bf16.mxu0 %v5296_v63 }
 0x1c1   :  { %2896 = vmatmul.mubr.bf16.gmra.mrb[96].mxu1 %v5298_v1  ;;  %v5362_v1 = vld [vmem:[%s7226_s0 + $0x570] ss:$36 sps:$4 sm:$0xff]  }
 0x1c2   :  { %3346 = vmatmul.mubr.bf16.gmra.mrb[32].mxu0 %v5299_v3  ;;  %2903 = vmatprep.mubr.bf16.mxu1 %v5300_v4  ;;  %v5366_v3 = vld [vmem:[%s7226_s0 + $0x260] ss:$36 sps:$4 sm:$0xff]  }
 0x1c3   :  { %3353 = vmatprep.mubr.bf16.mxu0 %v5302_v7  ;;  %v5364_v7 = vld [vmem:[%s7226_s0 + $0x5bc] ss:$36 sps:$4 sm:$0xff]  }
 0x1c9   :  { %2904 = vmatmul.mubr.bf16.gmra.mrb[100].mxu1 %v5304_v8 }
 0x1ca   :  { %3354 = vmatmul.mubr.bf16.gmra.mrb[36].mxu0 %v5305_v9  ;;  %2911 = vmatprep.mubr.bf16.mxu1 %v5306_v10  ;;  %v5368_v10 = vld [vmem:[%s7226_s0 + $0x2a8] ss:$36 sps:$4 sm:$0xff]  }
 0x1cb   :  { %3361 = vmatprep.mubr.bf16.mxu0 %v5308_v12 }
 0x1d1   :  { %2912 = vmatmul.mubr.bf16.gmra.mrb[104].mxu1 %v5310_v13  ;;  %v5367_v13 = vld [vmem:[%s7226_s0 + $0x5b8] ss:$36 sps:$4 sm:$0xff]  }
 0x1d2   :  { %3362 = vmatmul.mubr.bf16.gmra.mrb[40].mxu0 %v5311_v15  ;;  %2919 = vmatprep.mubr.bf16.mxu1 %v5313_v16  ;;  %v5371_v15 = vld [vmem:[%s7226_s0 + $0x2f0] ss:$36 sps:$4 sm:$0xff]  }
 0x1d3   :  { %3369 = vmatprep.mubr.bf16.mxu0 %v5315_v17  ;;  %v5369_v17 = vld [vmem:[%s7226_s0 + $0x604] ss:$36 sps:$4 sm:$0xff]  }
 0x1d9   :  { %2920 = vmatmul.mubr.bf16.gmra.mrb[108].mxu1 %v5317_v18 }
 0x1da   :  { %3370 = vmatmul.mubr.bf16.gmra.mrb[44].mxu0 %v5318_v20  ;;  %2927 = vmatprep.mubr.bf16.mxu1 %v5319_v21  ;;  %v5373_v21 = vld [vmem:[%s7226_s0 + $0x338] ss:$36 sps:$4 sm:$0xff]  }
 0x1db   :  { %3377 = vmatprep.mubr.bf16.mxu0 %v5321_v23 }
 0x1e1   :  { %2928 = vmatmul.mubr.bf16.gmra.mrb[112].mxu1 %v5323_v24  ;;  %v5372_v24 = vld [vmem:[%s7226_s0 + $0x600] ss:$36 sps:$4 sm:$0xff]  }
 0x1e2   :  { %3378 = vmatmul.mubr.bf16.gmra.mrb[48].mxu0 %v5324_v25  ;;  %2935 = vmatprep.mubr.bf16.mxu1 %v5325_v26  ;;  %v5376_v25 = vld [vmem:[%s7226_s0 + $0x380] ss:$36 sps:$4 sm:$0xff]  }
 0x1e3   :  { %3385 = vmatprep.mubr.bf16.mxu0 %v5327_v28  ;;  %v5374_v28 = vld [vmem:[%s7226_s0 + $0x64c] ss:$36 sps:$4 sm:$0xff]  }
 0x1e9   :  { %2936 = vmatmul.mubr.bf16.gmra.mrb[116].mxu1 %v5329_v0 }
 0x1ea   :  { %3386 = vmatmul.mubr.bf16.gmra.mrb[52].mxu0 %v5330_v30  ;;  %2943 = vmatprep.mubr.bf16.mxu1 %v5332_v31  ;;  %v5378_v31 = vld [vmem:[%s7226_s0 + $0x3c8] ss:$36 sps:$4 sm:$0xff]  }
 0x1eb   :  { %3393 = vmatprep.mubr.bf16.mxu0 %v5334_v32 }
 0x1f1   :  { %2944 = vmatmul.mubr.bf16.gmra.mrb[120].mxu1 %v5336_v33  ;;  %v5377_v33 = vld [vmem:[%s7226_s0 + $0x648] ss:$36 sps:$4 sm:$0xff]  }
 0x1f2   :  { %3394 = vmatmul.mubr.bf16.gmra.mrb[56].mxu0 %v5337_v34  ;;  %2951 = vmatprep.mubr.bf16.mxu1 %v5338_v35  ;;  %v5381_v34 = vld [vmem:[%s7226_s0 + $0x410] ss:$36 sps:$4 sm:$0xff]  }
 0x1f3   :  { %3401 = vmatprep.mubr.bf16.mxu0 %v5340_v37  ;;  %v5379_v37 = vld [vmem:[%s7226_s0 + $0x694] ss:$36 sps:$4 sm:$0xff]  }
 0x1f9   :  { %2952 = vmatmul.mubr.bf16.gmra.mrb[124].mxu1 %v5342_v38 }
 0x1fa   :  { %3402 = vmatmul.mubr.bf16.gmra.mrb[60].mxu0 %v5343_v5  ;;  %4519 = vmatprep.mubr.bf16.mxu1 %v5346_v40  ;;  %v5383_v40 = vld [vmem:[%s7226_s0 + $0x458] ss:$36 sps:$4 sm:$0xff]  }
 0x1fb   :  { %3409 = vmatprep.mubr.bf16.mxu0 %v5344_v41 }
 0x201   :  { %4520 = vmatmul.mubr.bf16.vlgmr.msra.gmra.mrb[128].mxu1 %v5348_v42  ;;  %v5382_v42 = vld [vmem:[%s7226_s0 + $0x690] ss:$36 sps:$4 sm:$0xff]  }
 0x202   :  { %3410 = vmatmul.mubr.bf16.gmra.mrb[64].mxu0 %v5347_v43  ;;  %4523 = vmatprep.mubr.bf16.mxu1 %v5351_v45  ;;  %v5386_v43 = vld [vmem:[%s7226_s0 + $0x4a0] ss:$36 sps:$4 sm:$0xff]  }
 0x203   :  { %3417 = vmatprep.mubr.bf16.mxu0 %v5349_v46  ;;  %v5384_v46 = vld [vmem:[%s7226_s0 + $0x6dc] ss:$36 sps:$4 sm:$0xff]  }
 0x209   :  { %4524 = vmatmul.mubr.bf16.gmra.mrb[132].mxu1 %v5353_v47 }
 0x20a   :  { %3418 = vmatmul.mubr.bf16.gmra.mrb[68].mxu0 %v5352_v50  ;;  %4527 = vmatprep.mubr.bf16.mxu1 %v5356_v51  ;;  %v5388_v51 = vld [vmem:[%s7226_s0 + $0x4e8] ss:$36 sps:$4 sm:$0xff]  }
 0x20b   :  { %3425 = vmatprep.mubr.bf16.mxu0 %v5354_v53 }
 0x211   :  { %4528 = vmatmul.mubr.bf16.gmra.mrb[136].mxu1 %v5358_v54  ;;  %v5387_v54 = vld [vmem:[%s7226_s0 + $0x6d8] ss:$36 sps:$4 sm:$0xff]  }
 0x212   :  { %3426 = vmatmul.mubr.bf16.gmra.mrb[72].mxu0 %v5357_v55  ;;  %4531 = vmatprep.mubr.bf16.mxu1 %v5361_v56  ;;  %v5391_v55 = vld [vmem:[%s7226_s0 + $0x530] ss:$36 sps:$4 sm:$0xff]  }
 0x213   :  { %3433 = vmatprep.mubr.bf16.mxu0 %v5359_v58  ;;  %v5389_v58 = vld [vmem:[%s7226_s0 + $0x724] ss:$36 sps:$4 sm:$0xff]  }
 0x214   :  { %v6555_v59 = vpop.f32.mrb[32].mxu1 }
 0x215   :  { %v2771_v61 = vpop.f32.mrb[33].mxu1 }
 0x216   :  { %v6560_v63 = vpop.f32.mrb[34].mxu1 }
 0x217   :  { %v2774_v4 = vpop.f32.mrb[35].mxu1 }
 0x218   :  { %v5392_v4 = vld [vmem:[%s7226_s0 + $0x720] ss:$36 sps:$4 sm:$0xff]  }
 0x219   :  { %4532 = vmatmul.mubr.bf16.gmra.mrb[140].mxu1 %v5363_v62 }
 0x21a   :  { %3434 = vmatmul.mubr.bf16.gmra.mrb[76].mxu0 %v5362_v1  ;;  %4535 = vmatprep.mubr.bf16.mxu1 %v5366_v3  ;;  %v5393_v1 = vld [vmem:[%s7226_s0 + $0x578] ss:$36 sps:$4 sm:$0xff]  }
 0x21b   :  { %3441 = vmatprep.mubr.bf16.mxu0 %v5364_v7  ;;  %v5396_v7 = vld [vmem:[%s7226_s0 + $0x5c0] ss:$36 sps:$4 sm:$0xff]  }
 0x21c   :  { %v6571_v8 = vpop.f32.mrb[36].mxu1 }
 0x21d   :  { %v2779_v9 = vpop.f32.mrb[37].mxu1 }
 0x21e   :  { %v6576_v12 = vpop.f32.mrb[38].mxu1 }
 0x21f   :  { %v2782_v16 = vpop.f32.mrb[39].mxu1 }
 0x220   :  { %v5398_v16 = vld [vmem:[%s7226_s0 + $0x608] ss:$36 sps:$4 sm:$0xff]  }
 0x221   :  { %4536 = vmatmul.mubr.bf16.gmra.mrb[144].mxu1 %v5368_v10  ;;  %v5394_v10 = vld [vmem:[%s7226_s0 + $0x76c] ss:$36 sps:$4 sm:$0xff]  }
 0x222   :  { %3442 = vmatmul.mubr.bf16.gmra.mrb[80].mxu0 %v5367_v13  ;;  %4539 = vmatprep.mubr.bf16.mxu1 %v5371_v15 }
 0x223   :  { %3449 = vmatprep.mubr.bf16.mxu0 %v5369_v17 }
 0x224   :  { %v6587_v18 = vpop.f32.mrb[40].mxu1 }
 0x225   :  { %v2787_v20 = vpop.f32.mrb[41].mxu1 }
 0x226   :  { %v6592_v23 = vpop.f32.mrb[42].mxu1  ;;  %v5397_v20 = vld [vmem:[%s7226_s0 + $0x768] ss:$36 sps:$4 sm:$0xff]  }
 0x227   :  { %v2790_v26 = vpop.f32.mrb[43].mxu1 }
 0x229   :  { %4540 = vmatmul.mubr.bf16.gmra.mrb[148].mxu1 %v5373_v21  ;;  %v5401_v21 = vld [vmem:[%s7226_s0 + $0x650] ss:$36 sps:$4 sm:$0xff]  }
 0x22a   :  { %3450 = vmatmul.mubr.bf16.gmra.mrb[84].mxu0 %v5372_v24  ;;  %4543 = vmatprep.mubr.bf16.mxu1 %v5376_v25  ;;  %v5399_v25 = vld [vmem:[%s7226_s0 + $0x7b4] ss:$36 sps:$4 sm:$0xff]  }
 0x22b   :  { %3457 = vmatprep.mubr.bf16.mxu0 %v5374_v28 }
 0x22c   :  { %v6603_v0 = vpop.f32.mrb[44].mxu1 }
 0x22d   :  { %v2795_v30 = vpop.f32.mrb[45].mxu1 }
 0x22e   :  { %v6608_v32 = vpop.f32.mrb[46].mxu1 }
 0x22f   :  { %v2798_v35 = vpop.f32.mrb[47].mxu1 }
 0x231   :  { %4544 = vmatmul.mubr.bf16.gmra.mrb[152].mxu1 %v5378_v31  ;;  %v5403_v31 = vld [vmem:[%s7226_s0 + $0x698] ss:$36 sps:$4 sm:$0xff]  }
 0x232   :  { %3458 = vmatmul.mubr.bf16.gmra.mrb[88].mxu0 %v5377_v33  ;;  %4547 = vmatprep.mubr.bf16.mxu1 %v5381_v34 }
 0x233   :  { %3465 = vmatprep.mubr.bf16.mxu0 %v5379_v37  ;;  %v5402_v37 = vld [vmem:[%s7226_s0 + $0x7b0] ss:$36 sps:$4 sm:$0xff]  }
 0x234   :  { %v6619_v38 = vpop.f32.mrb[48].mxu1 }
 0x235   :  { %v2803_v5 = vpop.f32.mrb[49].mxu1 }
 0x236   :  { %v6624_v41 = vpop.f32.mrb[50].mxu1  ;;  %v5406_v5 = vld [vmem:[%s7226_s0 + $0x6e0] ss:$36 sps:$4 sm:$0xff]  }
 0x237   :  { %v2806_v45 = vpop.f32.mrb[51].mxu1 }
 0x239   :  { %4548 = vmatmul.mubr.bf16.gmra.mrb[156].mxu1 %v5383_v40 }
 0x23a   :  { %3466 = vmatmul.mubr.bf16.gmra.mrb[92].mxu0 %v5382_v42  ;;  %4551 = vmatprep.mubr.bf16.mxu1 %v5386_v43  ;;  %v5404_v43 = vld [vmem:[%s7226_s0 + $0x7fc] ss:$36 sps:$4 sm:$0xff]  }
 0x23b   :  { %3473 = vmatprep.mubr.bf16.mxu0 %v5384_v46 }
 0x23c   :  { %v6635_v47 = vpop.f32.mrb[52].mxu1 }
 0x23d   :  { %v2811_v50 = vpop.f32.mrb[53].mxu1 }
 0x23e   :  { %v6640_v53 = vpop.f32.mrb[54].mxu1 }
 0x23f   :  { %v2814_v56 = vpop.f32.mrb[55].mxu1 }
 0x241   :  { %4552 = vmatmul.mubr.bf16.gmra.mrb[160].mxu1 %v5388_v51 }
 0x242   :  { %3474 = vmatmul.mubr.bf16.gmra.mrb[96].mxu0 %v5387_v54  ;;  %4555 = vmatprep.mubr.bf16.mxu1 %v5391_v55  ;;  %v5408_v54 = vld [vmem:[%s7226_s0 + $0x728] ss:$36 sps:$4 sm:$0xff]  }
 0x243   :  { %3481 = vmatprep.mubr.bf16.mxu0 %v5389_v58 }
 0x244   :  { %v6651_v61 = vpop.f32.mrb[56].mxu1 }
 0x245   :  { %v2819_v62 = vpop.f32.mrb[57].mxu1 }
 0x246   :  { %v6656_v3 = vpop.f32.mrb[58].mxu1  ;;  %v5411_v62 = vld [vmem:[%s7226_s0 + $0x770] ss:$36 sps:$4 sm:$0xff]  }
 0x247   :  { %v2822_v9 = vpop.f32.mrb[59].mxu1 }
 0x249   :  { %4556 = vmatmul.mubr.bf16.gmra.mrb[164].mxu1 %v5393_v1 }
 0x24a   :  { %3482 = vmatmul.mubr.bf16.gmra.mrb[100].mxu0 %v5392_v4  ;;  %4559 = vmatprep.mubr.bf16.mxu1 %v5396_v7  ;;  %v5409_v7 = vld [vmem:[%s7226_s0 + $0x844] ss:$36 sps:$4 sm:$0xff]  }
 0x24b   :  { %3489 = vmatprep.mubr.bf16.mxu0 %v5394_v10 }
 0x24c   :  { %v6667_v13 = vpop.f32.mrb[60].mxu1 }
 0x24d   :  { %v2827_v15 = vpop.f32.mrb[61].mxu1 }
 0x24e   :  { %v6672_v17 = vpop.f32.mrb[62].mxu1 }
 0x24f   :  { %v2830_v24 = vpop.f32.mrb[63].mxu1 }
 0x251   :  { %4560 = vmatmul.mubr.bf16.gmra.mrb[168].mxu1 %v5398_v16 }
 0x252   :  { %3490 = vmatmul.mubr.bf16.gmra.mrb[104].mxu0 %v5397_v20  ;;  %4563 = vmatprep.mubr.bf16.mxu1 %v5401_v21  ;;  %v5413_v20 = vld [vmem:[%s7226_s0 + $0x7b8] ss:$36 sps:$4 sm:$0xff]  }
 0x253   :  { %3497 = vmatprep.mubr.bf16.mxu0 %v5399_v25 }
 0x254   :  { %v6683_v26 = vpop.f32.mrb[64].mxu1 }
 0x255   :  { %v3283_v28 = vpop.f32.mrb[0].mxu0  ;;  %v2835_v30 = vpop.f32.mrb[65].mxu1 }
 0x256   :  { %v6689_v33 = vadd.f32 %v3283_v28, %v6117_v49  ;;  %v3285_v34 = vpop.f32.mrb[1].mxu0  ;;  %v6691_v35 = vpop.f32.mrb[66].mxu1  ;;  %v5416_v28 = vld [vmem:[%s7226_s0 + $0x800] ss:$36 sps:$4 sm:$0xff]  }
 0x257   :  { %v3286_v40 = vpop.f32.mrb[2].mxu0  ;;  %v2838_v42 = vpop.f32.mrb[67].mxu1  ;;  %v5414_v34 = vld [vmem:[%s7226_s0 + $0x88c] ss:$36 sps:$4 sm:$0xff]  }
 0x258   :  { %v6703_v49 = vadd.f32 %v3286_v40, %v6122_v52  ;;  %v3288_v45 = vpop.f32.mrb[3].mxu0  ;;  %v5407_v52 = vld [vmem:[%s7226_s0 + $0x7f8] ss:$36 sps:$4 sm:$0xff]  }
 0x259   :  { %4564 = vmatmul.mubr.bf16.gmra.mrb[172].mxu1 %v5403_v31 }
 0x25a   :  { %3498 = vmatmul.mubr.bf16.gmra.mrb[108].mxu0 %v5402_v37  ;;  %4567 = vmatprep.mubr.bf16.mxu1 %v5406_v5 }
 0x25b   :  { %3505 = vmatprep.mubr.bf16.mxu0 %v5404_v43  ;;  %v5418_v43 = vld [vmem:[%s7226_s0 + $0x848] ss:$36 sps:$4 sm:$0xff]  }
 0x25c   :  { %v6705_v46 = vpop.f32.mrb[68].mxu1 }
 0x25d   :  { %v3291_v50 = vpop.f32.mrb[4].mxu0  ;;  %v2843_v51 = vpop.f32.mrb[69].mxu1 }
 0x25e   :  { %v6711_v55 = vadd.f32 %v3291_v50, %v6133_v57  ;;  %v3293_v56 = vpop.f32.mrb[5].mxu0  ;;  %v6713_v58 = vpop.f32.mrb[70].mxu1 }
 0x25f   :  { %v3294_v1 = vpop.f32.mrb[6].mxu0  ;;  %v2846_v4 = vpop.f32.mrb[71].mxu1 }
 0x260   :  { %v6725_v57 = vadd.f32 %v3294_v1, %v6138_v60  ;;  %v3296_v9 = vpop.f32.mrb[7].mxu0  ;;  %v5412_v60 = vld [vmem:[%s7226_s0 + $0x840] ss:$36 sps:$4 sm:$0xff]  }
 0x261   :  { %4568 = vmatmul.mubr.bf16.gmra.mrb[176].mxu1 %v5408_v54  ;;  %v5421_v54 = vld [vmem:[%s7226_s0 + $0x890] ss:$36 sps:$4 sm:$0xff]  }
 0x262   :  { %3506 = vmatmul.mubr.bf16.gmra.mrb[112].mxu0 %v5407_v52  ;;  %4571 = vmatprep.mubr.bf16.mxu1 %v5411_v62  ;;  %v5419_v62 = vld [vmem:[%s7226_s0 + $0x8d4] ss:$36 sps:$4 sm:$0xff]  }
 0x263   :  { %3513 = vmatprep.mubr.bf16.mxu0 %v5409_v7 }
 0x264   :  { %v6727_v10 = vpop.f32.mrb[72].mxu1 }
 0x265   :  { %v3299_v15 = vpop.f32.mrb[8].mxu0  ;;  %v2851_v16 = vpop.f32.mrb[73].mxu1 }
 0x266   :  { %v6733_v21 = vadd.f32 %v3299_v15, %v6149_v2  ;;  %v3301_v24 = vpop.f32.mrb[9].mxu0  ;;  %v6735_v25 = vpop.f32.mrb[74].mxu1  ;;  %v5423_v15 = vld [vmem:[%s7226_s0 + $0x8d8] ss:$36 sps:$4 sm:$0xff]  }
 0x267   :  { %v3302_v30 = vpop.f32.mrb[10].mxu0  ;;  %v2854_v31 = vpop.f32.mrb[75].mxu1 }
 0x268   :  { %v6747_v2 = vadd.f32 %v3302_v30, %v6154_v6  ;;  %v3304_v37 = vpop.f32.mrb[11].mxu0  ;;  %v5417_v6 = vld [vmem:[%s7226_s0 + $0x888] ss:$36 sps:$4 sm:$0xff]  }
 0x269   :  { %4572 = vmatmul.mubr.bf16.gmra.mrb[180].mxu1 %v5413_v20 }
 0x26a   :  { %3514 = vmatmul.mubr.bf16.gmra.mrb[116].mxu0 %v5412_v60  ;;  %4575 = vmatprep.mubr.bf16.mxu1 %v5416_v28 }
 0x26b   :  { %3521 = vmatprep.mubr.bf16.mxu0 %v5414_v34 }
 0x26c   :  { %v6749_v5 = vpop.f32.mrb[76].mxu1 }
 0x26d   :  { %v3307_v40 = vpop.f32.mrb[12].mxu0  ;;  %v2859_v42 = vpop.f32.mrb[77].mxu1 }
 0x26e   :  { %v6755_v45 = vadd.f32 %v3307_v40, %v6165_v11  ;;  %v3309_v50 = vpop.f32.mrb[13].mxu0  ;;  %v6757_v51 = vpop.f32.mrb[78].mxu1 }
 0x26f   :  { %v3310_v56 = vpop.f32.mrb[14].mxu0  ;;  %v2862_v52 = vpop.f32.mrb[79].mxu1 }
 0x270   :  { %v6769_v11 = vadd.f32 %v3310_v56, %v6170_v14  ;;  %v3312_v1 = vpop.f32.mrb[15].mxu0  ;;  %v5422_v14 = vld [vmem:[%s7226_s0 + $0x8d0] ss:$36 sps:$4 sm:$0xff]  }
 0x271   :  { %4576 = vmatmul.mubr.bf16.gmra.mrb[184].mxu1 %v5418_v43 }
 0x272   :  { %3522 = vmatmul.mubr.bf16.gmra.mrb[120].mxu0 %v5417_v6  ;;  %4579 = vmatprep.mubr.bf16.mxu1 %v5421_v54 }
 0x273   :  { %3529 = vmatprep.mubr.bf16.mxu0 %v5419_v62 }
 0x274   :  { %v6771_v4 = vpop.f32.mrb[80].mxu1 }
 0x275   :  { %v3315_v7 = vpop.f32.mrb[16].mxu0  ;;  %v2867_v9 = vpop.f32.mrb[81].mxu1 }
 0x276   :  { %v6777_v16 = vadd.f32 %v3315_v7, %v6181_v19  ;;  %v3317_v20 = vpop.f32.mrb[17].mxu0  ;;  %v6779_v24 = vpop.f32.mrb[82].mxu1 }
 0x277   :  { %v3318_v60 = vpop.f32.mrb[18].mxu0  ;;  %v2870_v28 = vpop.f32.mrb[83].mxu1 }
 0x278   :  { %v6785_v30 = vadd.f32 %v3318_v60, %v6186_v22  ;;  %v3320_v31 = vpop.f32.mrb[19].mxu0 }
 0x279   :  { %4580 = vmatmul.mubr.bf16.gmra.mrb[188].mxu1 %v5423_v15 }
 0x27a   :  { %3530 = vmatmul.mubr.bf16.gmra.mrb[124].mxu0 %v5422_v14 }
 0x27c   :  { %v6787_v34 = vpop.f32.mrb[84].mxu1 }
 0x27d   :  { %v3323_v37 = vpop.f32.mrb[20].mxu0  ;;  %v2875_v19 = vpop.f32.mrb[85].mxu1 }
 0x27e   :  { %v6790_v40 = vadd.f32 %v3323_v37, %v6197_v27  ;;  %v3325_v42 = vpop.f32.mrb[21].mxu0  ;;  %v6792_v43 = vpop.f32.mrb[86].mxu1 }
 0x27f   :  { %v3326_v50 = vpop.f32.mrb[22].mxu0  ;;  %v2878_v6 = vpop.f32.mrb[87].mxu1 }
 0x280   :  { %v6795_v54 = vadd.f32 %v3326_v50, %v6202_v29  ;;  %v3328_v22 = vpop.f32.mrb[23].mxu0 }
 0x284   :  { %v6797_v56 = vpop.f32.mrb[88].mxu1 }
 0x285   :  { %v3331_v52 = vpop.f32.mrb[24].mxu0  ;;  %v2883_v62 = vpop.f32.mrb[89].mxu1 }
 0x286   :  { %v6800_v1 = vadd.f32 %v3331_v52, %v6220_v36  ;;  %v3333_v7 = vpop.f32.mrb[25].mxu0  ;;  %v6802_v9 = vpop.f32.mrb[90].mxu1 }
 0x287   :  { %v3334_v27 = vpop.f32.mrb[26].mxu0  ;;  %v2886_v15 = vpop.f32.mrb[91].mxu1 }
 0x288   :  { %v6805_v20 = vadd.f32 %v3334_v27, %v6225_v39  ;;  %v3336_v14 = vpop.f32.mrb[27].mxu0 }
 0x28c   :  { %v6807_v60 = vpop.f32.mrb[92].mxu1 }
 0x28d   :  { %v3339_v29 = vpop.f32.mrb[28].mxu0  ;;  %v2891_v28 = vpop.f32.mrb[93].mxu1 }
 0x28e   :  { %v6810_v31 = vadd.f32 %v3339_v29, %v6239_v44  ;;  %v3341_v37 = vpop.f32.mrb[29].mxu0  ;;  %v6812_v19 = vpop.f32.mrb[94].mxu1 }
 0x28f   :  { %v3342_v36 = vpop.f32.mrb[30].mxu0  ;;  %v2894_v42 = vpop.f32.mrb[95].mxu1 }
 0x290   :  { %v6815_v50 = vadd.f32 %v3342_v36, %v6247_v48  ;;  %v3344_v6 = vpop.f32.mrb[31].mxu0 }
 0x294   :  { %v6817_v22 = vpop.f32.mrb[96].mxu1 }
 0x295   :  { %v3347_v39 = vpop.f32.mrb[32].mxu0  ;;  %v2899_v52 = vpop.f32.mrb[97].mxu1 }
 0x296   :  { %v6820_v62 = vadd.f32 %v3347_v39, %v6555_v59  ;;  %v3349_v7 = vpop.f32.mrb[33].mxu0  ;;  %v6822_v27 = vpop.f32.mrb[98].mxu1 }
 0x297   :  { %7229 = vst [vmem:[#allocation2_spill] sm:$0xff] %v6822_v27  ;;  %v3350_v44 = vpop.f32.mrb[34].mxu0  ;;  %v2902_v15 = vpop.f32.mrb[99].mxu1 }
 0x298   :  { %v6825_v14 = vadd.f32 %v3350_v44, %v6560_v63  ;;  %v3352_v29 = vpop.f32.mrb[35].mxu0 }
 0x29c   :  { %v6827_v28 = vpop.f32.mrb[100].mxu1 }
 0x29d   :  { %7230 = vst [vmem:[#allocation3_spill] sm:$0xff] %v6827_v28  ;;  %v3355_v48 = vpop.f32.mrb[36].mxu0  ;;  %v2907_v37 = vpop.f32.mrb[101].mxu1 }
 0x29e   :  { %v6830_v36 = vadd.f32 %v3355_v48, %v6571_v8  ;;  %v3357_v42 = vpop.f32.mrb[37].mxu0  ;;  %v6832_v6 = vpop.f32.mrb[102].mxu1 }
 0x29f   :  { %7231 = vst [vmem:[#allocation4_spill] sm:$0xff] %v6832_v6  ;;  %v3358_v59 = vpop.f32.mrb[38].mxu0  ;;  %v2910_v39 = vpop.f32.mrb[103].mxu1 }
 0x2a0   :  { %v6835_v52 = vadd.f32 %v3358_v59, %v6576_v12  ;;  %v3360_v7 = vpop.f32.mrb[39].mxu0 }
 0x2a4   :  { %v6837_v15 = vpop.f32.mrb[104].mxu1 }
 0x2a5   :  { %7232 = vst [vmem:[#allocation5_spill] sm:$0xff] %v6837_v15  ;;  %v3363_v63 = vpop.f32.mrb[40].mxu0  ;;  %v2915_v44 = vpop.f32.mrb[105].mxu1 }
 0x2a6   :  { %v6840_v29 = vadd.f32 %v3363_v63, %v6587_v18  ;;  %v3365_v37 = vpop.f32.mrb[41].mxu0  ;;  %v6842_v28 = vpop.f32.mrb[106].mxu1 }
 0x2a7   :  { %7233 = vst [vmem:[#allocation6_spill] sm:$0xff] %v6842_v28  ;;  %v3366_v8 = vpop.f32.mrb[42].mxu0  ;;  %v2918_v48 = vpop.f32.mrb[107].mxu1 }
 0x2a8   :  { %v6845_v42 = vadd.f32 %v3366_v8, %v6592_v23  ;;  %v3368_v39 = vpop.f32.mrb[43].mxu0 }
 0x2ac   :  { %v6847_v6 = vpop.f32.mrb[108].mxu1 }
 0x2ad   :  { %7234 = vst [vmem:[#allocation7_spill] sm:$0xff] %v6847_v6  ;;  %v3371_v12 = vpop.f32.mrb[44].mxu0  ;;  %v2923_v59 = vpop.f32.mrb[109].mxu1 }
 0x2ae   :  { %v6850_v7 = vadd.f32 %v3371_v12, %v6603_v0  ;;  %v3373_v44 = vpop.f32.mrb[45].mxu0  ;;  %v6852_v15 = vpop.f32.mrb[110].mxu1 }
 0x2af   :  { %7235 = vst [vmem:[#allocation8_spill] sm:$0xff] %v6852_v15  ;;  %v3374_v18 = vpop.f32.mrb[46].mxu0  ;;  %v2926_v63 = vpop.f32.mrb[111].mxu1 }
 0x2b0   :  { %v6855_v37 = vadd.f32 %v3374_v18, %v6608_v32  ;;  %v3376_v48 = vpop.f32.mrb[47].mxu0 }
 0x2b4   :  { %v6857_v28 = vpop.f32.mrb[112].mxu1 }
 0x2b5   :  { %7236 = vst [vmem:[#allocation9_spill] sm:$0xff] %v6857_v28  ;;  %v3379_v23 = vpop.f32.mrb[48].mxu0  ;;  %v2931_v8 = vpop.f32.mrb[113].mxu1 }
 0x2b6   :  { %v6860_v39 = vadd.f32 %v3379_v23, %v6619_v38  ;;  %v3381_v59 = vpop.f32.mrb[49].mxu0  ;;  %v6862_v6 = vpop.f32.mrb[114].mxu1 }
 0x2b7   :  { %7237 = vst [vmem:[#allocation10_spill] sm:$0xff] %v6862_v6  ;;  %v3382_v0 = vpop.f32.mrb[50].mxu0  ;;  %v2934_v12 = vpop.f32.mrb[115].mxu1 }
 0x2b8   :  { %v6865_v44 = vadd.f32 %v3382_v0, %v6624_v41  ;;  %v3384_v63 = vpop.f32.mrb[51].mxu0 }
 0x2bc   :  { %v6867_v15 = vpop.f32.mrb[116].mxu1 }
 0x2bd   :  { %7238 = vst [vmem:[#allocation11_spill] sm:$0xff] %v6867_v15  ;;  %v3387_v32 = vpop.f32.mrb[52].mxu0  ;;  %v2939_v18 = vpop.f32.mrb[117].mxu1 }
 0x2be   :  { %v6870_v48 = vadd.f32 %v3387_v32, %v6635_v47  ;;  %v3389_v8 = vpop.f32.mrb[53].mxu0  ;;  %v6872_v28 = vpop.f32.mrb[118].mxu1 }
 0x2bf   :  { %7239 = vst [vmem:[#allocation12_spill] sm:$0xff] %v6872_v28  ;;  %v3390_v38 = vpop.f32.mrb[54].mxu0  ;;  %v2942_v23 = vpop.f32.mrb[119].mxu1 }
 0x2c0   :  { %v6875_v59 = vadd.f32 %v3390_v38, %v6640_v53  ;;  %v3392_v12 = vpop.f32.mrb[55].mxu0 }
 0x2c4   :  { %v6877_v6 = vpop.f32.mrb[120].mxu1 }
 0x2c5   :  { %7240 = vst [vmem:[#allocation13_spill] sm:$0xff] %v6877_v6  ;;  %v3395_v41 = vpop.f32.mrb[56].mxu0  ;;  %v2947_v0 = vpop.f32.mrb[121].mxu1 }
 0x2c6   :  { %v6880_v63 = vadd.f32 %v3395_v41, %v6651_v61  ;;  %v3397_v18 = vpop.f32.mrb[57].mxu0  ;;  %v6882_v15 = vpop.f32.mrb[122].mxu1 }
 0x2c7   :  { %7241 = vst [vmem:[#allocation14_spill] sm:$0xff] %v6882_v15  ;;  %v3398_v47 = vpop.f32.mrb[58].mxu0  ;;  %v2950_v32 = vpop.f32.mrb[123].mxu1 }
 0x2c8   :  { %v6885_v8 = vadd.f32 %v3398_v47, %v6656_v3  ;;  %v3400_v23 = vpop.f32.mrb[59].mxu0 }
 0x2cc   :  { %v6887_v28 = vpop.f32.mrb[124].mxu1 }
 0x2cd   :  { %7242 = vst [vmem:[#allocation15_spill] sm:$0xff] %v6887_v28  ;;  %v3403_v53 = vpop.f32.mrb[60].mxu0  ;;  %v2955_v38 = vpop.f32.mrb[125].mxu1 }
 0x2ce   :  { %v6890_v12 = vadd.f32 %v3403_v53, %v6667_v13  ;;  %v3405_v0 = vpop.f32.mrb[61].mxu0  ;;  %v6892_v6 = vpop.f32.mrb[126].mxu1 }
 0x2cf   :  { %7243 = vst [vmem:[#allocation16_spill] sm:$0xff] %v6892_v6  ;;  %v3406_v61 = vpop.f32.mrb[62].mxu0  ;;  %v2958_v41 = vpop.f32.mrb[127].mxu1 }
 0x2d0   :  { %v6895_v18 = vadd.f32 %v3406_v61, %v6672_v17  ;;  %v3408_v32 = vpop.f32.mrb[63].mxu0 }
 0x2d4   :  { %v4521_v15 = vpop.f32.mrb[128].mxu1 }
 0x2d5   :  { %v3411_v3 = vpop.f32.mrb[64].mxu0  ;;  %v3581_v47 = vadd.f32 %v6711_v55, %v4521_v15  ;;  %v3572_v23 = vpop.f32.mrb[129].mxu1 }
 0x2d6   :  { %v6899_v28 = vadd.f32 %v3411_v3, %v6683_v26  ;;  %v3413_v38 = vpop.f32.mrb[65].mxu0  ;;  %v3573_v13 = vadd.f32 %v6689_v33, %v3572_v23  ;;  %v4522_v53 = vpop.f32.mrb[130].mxu1 }
 0x2d7   :  { %3829 = vst [vmem:[%s7227_s2 + $0x10] sm:$0xff] %v3581_v47  ;;  %v3414_v0 = vpop.f32.mrb[66].mxu0  ;;  %v3584_v17 = vadd.f32 %v6725_v57, %v4522_v53  ;;  %v3575_v61 = vpop.f32.mrb[131].mxu1  ;;  %v3963_v32 = vmul.f32 %v3581_v47, %v3581_v47 }
 0x2d8   :  { %7244 = vst [vmem:[#allocation17_spill] sm:$0xff] %v6899_v28  ;;  %3827 = vst [vmem:[%s7227_s2] sm:$0xff] %v3573_v13  ;;  %v6910_v55 = vadd.f32 %v3414_v0, %v6691_v35  ;;  %v3416_v26 = vpop.f32.mrb[67].mxu0  ;;  %v3576_v15 = vadd.f32 %v6703_v49, %v3575_v61  ;;  %v3961_v33 = vmul.f32 %v3573_v13, %v3573_v13 }
 0x2d9   :  { %3830 = vst [vmem:[%s7227_s2 + $0x18] sm:$0xff] %v3584_v17  ;;  %v3964_v35 = vmul.f32 %v3584_v17, %v3584_v17 }
 0x2da   :  { %7245 = vst [vmem:[#allocation18_spill] sm:$0xff] %v6910_v55  ;;  %3828 = vst [vmem:[%s7227_s2 + $0x8] sm:$0xff] %v3576_v15  ;;  %v3891_v57 = vadd.f32 %v3576_v15, %v3573_v13  ;;  %v3962_v41 = vmul.f32 %v3576_v15, %v3576_v15 }
 0x2dc   :  { %v3892_v3 = vadd.f32 %v3891_v57, %v3581_v47  ;;  %v4025_v23 = vadd.f32 %v3962_v41, %v3961_v33  ;;  %v4525_v38 = vpop.f32.mrb[132].mxu1 }
 0x2dd   :  { %v3419_v53 = vpop.f32.mrb[68].mxu0  ;;  %v3597_v0 = vadd.f32 %v6755_v45, %v4525_v38  ;;  %v3588_v49 = vpop.f32.mrb[133].mxu1 }
 0x2de   :  { %v4026_v61 = vadd.f32 %v4025_v23, %v3963_v32  ;;  %v6921_v26 = vadd.f32 %v3419_v53, %v6705_v46  ;;  %v3421_v6 = vpop.f32.mrb[69].mxu0  ;;  %v3589_v55 = vadd.f32 %v6733_v21, %v3588_v49  ;;  %v3893_v27 = vadd.f32 %v3892_v3, %v3584_v17  ;;  %v4526_v28 = vpop.f32.mrb[134].mxu1 }
 0x2df   :  { %3833 = vst [vmem:[%s7227_s2 + $0x30] sm:$0xff] %v3597_v0  ;;  %v3422_v47 = vpop.f32.mrb[70].mxu0  ;;  %v3600_v13 = vadd.f32 %v6769_v11, %v4526_v28  ;;  %v3591_v15 = vpop.f32.mrb[135].mxu1 }
 0x2e0   :  { %3831 = vst [vmem:[%s7227_s2 + $0x20] sm:$0xff] %v3589_v55  ;;  %v3894_v45 = vadd.f32 %v3893_v27, %v3589_v55  ;;  %v3965_v46 = vmul.f32 %v3589_v55, %v3589_v55  ;;  %v4027_v33 = vadd.f32 %v4026_v61, %v3964_v35  ;;  %v6932_v6 = vadd.f32 %v3422_v47, %v6713_v58  ;;  %v3424_v21 = vpop.f32.mrb[71].mxu0 }
 0x2e1   :  { %3834 = vst [vmem:[%s7227_s2 + $0x38] sm:$0xff] %v3600_v13  ;;  %v3592_v17 = vadd.f32 %v6747_v2, %v3591_v15  ;;  %v3967_v55 = vmul.f32 %v3597_v0, %v3597_v0  ;;  %v3968_v49 = vmul.f32 %v3600_v13, %v3600_v13 }
 0x2e2   :  { %v4028_v57 = vadd.f32 %v4027_v33, %v3965_v46 }
 0x2e3   :  { %3832 = vst [vmem:[%s7227_s2 + $0x28] sm:$0xff] %v3592_v17  ;;  %v3895_v11 = vadd.f32 %v3894_v45, %v3592_v17  ;;  %v3966_v28 = vmul.f32 %v3592_v17, %v3592_v17 }
 0x2e4   :  { %v4529_v27 = vpop.f32.mrb[136].mxu1 }
 0x2e5   :  { %v3896_v41 = vadd.f32 %v3895_v11, %v3597_v0  ;;  %v4029_v32 = vadd.f32 %v4028_v57, %v3966_v28  ;;  %v3427_v58 = vpop.f32.mrb[72].mxu0  ;;  %v3613_v3 = vadd.f32 %v6790_v40, %v4529_v27  ;;  %v3604_v23 = vpop.f32.mrb[137].mxu1 }
 0x2e6   :  { %v6943_v38 = vadd.f32 %v3427_v58, %v6727_v10  ;;  %v3429_v35 = vpop.f32.mrb[73].mxu0  ;;  %v3605_v2 = vadd.f32 %v6777_v16, %v3604_v23  ;;  %v4530_v53 = vpop.f32.mrb[138].mxu1 }
 0x2e7   :  { %v4030_v61 = vadd.f32 %v4029_v32, %v3967_v55  ;;  %3837 = vst [vmem:[%s7227_s2 + $0x50] sm:$0xff] %v3613_v3  ;;  %v3897_v47 = vadd.f32 %v3896_v41, %v3600_v13  ;;  %v3430_v0 = vpop.f32.mrb[74].mxu0  ;;  %v3616_v15 = vadd.f32 %v6795_v54, %v4530_v53  ;;  %v3607_v45 = vpop.f32.mrb[139].mxu1  ;;  %v3971_v11 = vmul.f32 %v3613_v3, %v3613_v3 }
 0x2e8   :  { %3835 = vst [vmem:[%s7227_s2 + $0x40] sm:$0xff] %v3605_v2  ;;  %v3969_v10 = vmul.f32 %v3605_v2, %v3605_v2  ;;  %v6954_v40 = vadd.f32 %v3430_v0, %v6735_v25  ;;  %v3432_v16 = vpop.f32.mrb[75].mxu0  ;;  %v3608_v46 = vadd.f32 %v6785_v30, %v3607_v45 }
 0x2e9   :  { %v3898_v33 = vadd.f32 %v3897_v47, %v3605_v2  ;;  %v4031_v21 = vadd.f32 %v4030_v61, %v3968_v49  ;;  %3838 = vst [vmem:[%s7227_s2 + $0x58] sm:$0xff] %v3616_v15  ;;  %v3972_v35 = vmul.f32 %v3616_v15, %v3616_v15 }
 0x2ea   :  { %3836 = vst [vmem:[%s7227_s2 + $0x48] sm:$0xff] %v3608_v46  ;;  %v3970_v54 = vmul.f32 %v3608_v46, %v3608_v46 }
 0x2eb   :  { %v4032_v13 = vadd.f32 %v4031_v21, %v3969_v10  ;;  %v3899_v17 = vadd.f32 %v3898_v33, %v3608_v46 }
 0x2ec   :  { %v4533_v57 = vpop.f32.mrb[140].mxu1 }
 0x2ed   :  { %v3900_v25 = vadd.f32 %v3899_v17, %v3613_v3  ;;  %v4033_v28 = vadd.f32 %v4032_v13, %v3970_v54  ;;  %v3435_v27 = vpop.f32.mrb[76].mxu0  ;;  %v3629_v30 = vadd.f32 %v6810_v31, %v4533_v57  ;;  %v3620_v55 = vpop.f32.mrb[141].mxu1 }
 0x2ee   :  { %v6965_v41 = vadd.f32 %v3435_v27, %v6749_v5  ;;  %v3437_v32 = vpop.f32.mrb[77].mxu0  ;;  %v3621_v58 = vadd.f32 %v6800_v1, %v3620_v55  ;;  %v4534_v23 = vpop.f32.mrb[142].mxu1 }
 0x2ef   :  { %v4034_v2 = vadd.f32 %v4033_v28, %v3971_v11  ;;  %3841 = vst [vmem:[%s7227_s2 + $0x70] sm:$0xff] %v3629_v30  ;;  %v3901_v53 = vadd.f32 %v3900_v25, %v3616_v15  ;;  %v3438_v3 = vpop.f32.mrb[78].mxu0  ;;  %v3632_v49 = vadd.f32 %v6815_v50, %v4534_v23  ;;  %v3623_v61 = vpop.f32.mrb[143].mxu1  ;;  %v3975_v46 = vmul.f32 %v3629_v30, %v3629_v30 }
 0x2f0   :  { %3839 = vst [vmem:[%s7227_s2 + $0x60] sm:$0xff] %v3621_v58  ;;  %v3973_v5 = vmul.f32 %v3621_v58, %v3621_v58  ;;  %v6976_v31 = vadd.f32 %v3438_v3, %v6757_v51  ;;  %v3440_v1 = vpop.f32.mrb[79].mxu0  ;;  %v3624_v47 = vadd.f32 %v6805_v20, %v3623_v61 }
 0x2f1   :  { %v3902_v0 = vadd.f32 %v3901_v53, %v3621_v58  ;;  %v4035_v45 = vadd.f32 %v4034_v2, %v3972_v35  ;;  %3842 = vst [vmem:[%s7227_s2 + $0x78] sm:$0xff] %v3632_v49  ;;  %v3976_v25 = vmul.f32 %v3632_v49, %v3632_v49 }
 0x2f2   :  { %3840 = vst [vmem:[%s7227_s2 + $0x68] sm:$0xff] %v3624_v47  ;;  %v3974_v50 = vmul.f32 %v3624_v47, %v3624_v47 }
 0x2f3   :  { %v4036_v15 = vadd.f32 %v4035_v45, %v3973_v5  ;;  %v3903_v10 = vadd.f32 %v3902_v0, %v3624_v47 }
 0x2f4   :  { %v4537_v16 = vpop.f32.mrb[144].mxu1 }
 0x2f5   :  { %v3904_v51 = vadd.f32 %v3903_v10, %v3629_v30  ;;  %v4037_v33 = vadd.f32 %v4036_v15, %v3974_v50  ;;  %v3443_v21 = vpop.f32.mrb[80].mxu0  ;;  %v3645_v20 = vadd.f32 %v6830_v36, %v4537_v16  ;;  %v3636_v54 = vpop.f32.mrb[145].mxu1 }
 0x2f6   :  { %v6987_v13 = vadd.f32 %v3443_v21, %v6771_v4  ;;  %v3445_v17 = vpop.f32.mrb[81].mxu0  ;;  %v3637_v57 = vadd.f32 %v6820_v62, %v3636_v54  ;;  %v4538_v11 = vpop.f32.mrb[146].mxu1 }
 0x2f7   :  { %v4038_v28 = vadd.f32 %v4037_v33, %v3975_v46  ;;  %3845 = vst [vmem:[%s7227_s2 + $0x90] sm:$0xff] %v3645_v20  ;;  %v3905_v27 = vadd.f32 %v3904_v51, %v3632_v49  ;;  %v3446_v30 = vpop.f32.mrb[82].mxu0  ;;  %v3648_v55 = vadd.f32 %v6835_v52, %v4538_v11  ;;  %v3639_v32 = vpop.f32.mrb[147].mxu1  ;;  %v3979_v49 = vmul.f32 %v3645_v20, %v3645_v20 }
 0x2f8   :  { %3843 = vst [vmem:[%s7227_s2 + $0x80] sm:$0xff] %v3637_v57  ;;  %v3977_v4 = vmul.f32 %v3637_v57, %v3637_v57  ;;  %v6998_v36 = vadd.f32 %v3446_v30, %v6779_v24  ;;  %v3448_v62 = vpop.f32.mrb[83].mxu0  ;;  %v3640_v58 = vadd.f32 %v6825_v14, %v3639_v32 }
 0x2f9   :  { %v3906_v23 = vadd.f32 %v3905_v27, %v3637_v57  ;;  %v4039_v35 = vadd.f32 %v4038_v28, %v3976_v25  ;;  %3846 = vst [vmem:[%s7227_s2 + $0x98] sm:$0xff] %v3648_v55  ;;  %v3980_v15 = vmul.f32 %v3648_v55, %v3648_v55 }
 0x2fa   :  { %3844 = vst [vmem:[%s7227_s2 + $0x88] sm:$0xff] %v3640_v58  ;;  %v3978_v52 = vmul.f32 %v3640_v58, %v3640_v58 }
 0x2fb   :  { %v4040_v2 = vadd.f32 %v4039_v35, %v3977_v4  ;;  %v3907_v53 = vadd.f32 %v3906_v23, %v3640_v58 }
 0x2fc   :  { %v4541_v3 = vpop.f32.mrb[148].mxu1 }
 0x2fd   :  { %v3908_v24 = vadd.f32 %v3907_v53, %v3645_v20  ;;  %v4041_v61 = vadd.f32 %v4040_v2, %v3978_v52  ;;  %v3451_v5 = vpop.f32.mrb[84].mxu0  ;;  %v3661_v14 = vadd.f32 %v6850_v7, %v4541_v3  ;;  %v3652_v1 = vpop.f32.mrb[149].mxu1 }
 0x2fe   :  { %v7009_v47 = vadd.f32 %v3451_v5, %v6787_v34  ;;  %v3453_v0 = vpop.f32.mrb[85].mxu0  ;;  %v3653_v45 = vadd.f32 %v6840_v29, %v3652_v1  ;;  %v4542_v50 = vpop.f32.mrb[150].mxu1 }
 0x2ff   :  { %v4042_v10 = vadd.f32 %v4041_v61, %v3979_v49  ;;  %3849 = vst [vmem:[%s7227_s2 + $0xb0] sm:$0xff] %v3661_v14  ;;  %v3909_v16 = vadd.f32 %v3908_v24, %v3648_v55  ;;  %v3454_v46 = vpop.f32.mrb[86].mxu0  ;;  %v3664_v51 = vadd.f32 %v6855_v37, %v4542_v50  ;;  %v3655_v33 = vpop.f32.mrb[151].mxu1  ;;  %v3983_v25 = vmul.f32 %v3661_v14, %v3661_v14 }
 0x300   :  { %3847 = vst [vmem:[%s7227_s2 + $0xa0] sm:$0xff] %v3653_v45  ;;  %v3981_v34 = vmul.f32 %v3653_v45, %v3653_v45  ;;  %v7020_v7 = vadd.f32 %v3454_v46, %v6792_v43  ;;  %v3456_v29 = vpop.f32.mrb[87].mxu0  ;;  %v3656_v21 = vadd.f32 %v6845_v42, %v3655_v33 }
 0x301   :  { %v3910_v20 = vadd.f32 %v3909_v16, %v3653_v45  ;;  %v4043_v54 = vadd.f32 %v4042_v10, %v3980_v15  ;;  %3850 = vst [vmem:[%s7227_s2 + $0xb8] sm:$0xff] %v3664_v51  ;;  %v3984_v58 = vmul.f32 %v3664_v51, %v3664_v51 }
 0x302   :  { %3848 = vst [vmem:[%s7227_s2 + $0xa8] sm:$0xff] %v3656_v21  ;;  %v3982_v37 = vmul.f32 %v3656_v21, %v3656_v21 }
 0x303   :  { %v4044_v17 = vadd.f32 %v4043_v54, %v3981_v34  ;;  %v3911_v57 = vadd.f32 %v3910_v20, %v3656_v21 }
 0x304   :  { %v4545_v11 = vpop.f32.mrb[152].mxu1 }
 0x305   :  { %v3912_v43 = vadd.f32 %v3911_v57, %v3661_v14  ;;  %v4045_v28 = vadd.f32 %v4044_v17, %v3982_v37  ;;  %v3459_v27 = vpop.f32.mrb[88].mxu0  ;;  %v3677_v42 = vadd.f32 %v6870_v48, %v4545_v11  ;;  %v3668_v30 = vpop.f32.mrb[153].mxu1 }
 0x306   :  { %v7031_v55 = vadd.f32 %v3459_v27, %v6797_v56  ;;  %v3461_v32 = vpop.f32.mrb[89].mxu0  ;;  %v3669_v4 = vadd.f32 %v6860_v39, %v3668_v30  ;;  %v4546_v62 = vpop.f32.mrb[154].mxu1 }
 0x307   :  { %v4046_v23 = vadd.f32 %v4045_v28, %v3983_v25  ;;  %3853 = vst [vmem:[%s7227_s2 + $0xd0] sm:$0xff] %v3677_v42  ;;  %v3913_v35 = vadd.f32 %v3912_v43, %v3664_v51  ;;  %v3462_v52 = vpop.f32.mrb[90].mxu0  ;;  %v3680_v2 = vadd.f32 %v6875_v59, %v4546_v62  ;;  %v3671_v53 = vpop.f32.mrb[155].mxu1  ;;  %v3987_v1 = vmul.f32 %v3677_v42, %v3677_v42 }
 0x308   :  { %3851 = vst [vmem:[%s7227_s2 + $0xc0] sm:$0xff] %v3669_v4  ;;  %v3985_v56 = vmul.f32 %v3669_v4, %v3669_v4  ;;  %v7042_v48 = vadd.f32 %v3462_v52, %v6802_v9  ;;  %v3464_v39 = vpop.f32.mrb[91].mxu0  ;;  %v3672_v3 = vadd.f32 %v6865_v44, %v3671_v53 }
 0x309   :  { %v3914_v49 = vadd.f32 %v3913_v35, %v3669_v4  ;;  %v4047_v24 = vadd.f32 %v4046_v23, %v3984_v58  ;;  %3854 = vst [vmem:[%s7227_s2 + $0xd8] sm:$0xff] %v3680_v2  ;;  %v3988_v51 = vmul.f32 %v3680_v2, %v3680_v2  ;;  %v7246_v4 = vld [vmem:[#allocation17_spill] sm:$0xff] }
 0x30a   :  { %3852 = vst [vmem:[%s7227_s2 + $0xc8] sm:$0xff] %v3672_v3  ;;  %v3986_v59 = vmul.f32 %v3672_v3, %v3672_v3 }
 0x30b   :  { %v4048_v61 = vadd.f32 %v4047_v24, %v3985_v56  ;;  %v3915_v5 = vadd.f32 %v3914_v49, %v3672_v3  ;;  %v7248_v49 = vld [vmem:[#allocation18_spill] sm:$0xff] }
 0x30c   :  { %v4549_v14 = vpop.f32.mrb[156].mxu1 }
 0x30d   :  { %v3916_v9 = vadd.f32 %v3915_v5, %v3677_v42  ;;  %v4049_v0 = vadd.f32 %v4048_v61, %v3986_v59  ;;  %v3467_v45 = vpop.f32.mrb[92].mxu0  ;;  %v3693_v44 = vadd.f32 %v6890_v12, %v4549_v14  ;;  %v3684_v50 = vpop.f32.mrb[157].mxu1 }
 0x30e   :  { %v7053_v15 = vadd.f32 %v3467_v45, %v6807_v60  ;;  %v3469_v10 = vpop.f32.mrb[93].mxu0  ;;  %v3685_v16 = vadd.f32 %v6880_v63, %v3684_v50  ;;  %v4550_v46 = vpop.f32.mrb[158].mxu1 }
 0x30f   :  { %v4050_v33 = vadd.f32 %v4049_v0, %v3987_v1  ;;  %3857 = vst [vmem:[%s7227_s2 + $0xf0] sm:$0xff] %v3693_v44  ;;  %v3917_v34 = vadd.f32 %v3916_v9, %v3680_v2  ;;  %v3470_v29 = vpop.f32.mrb[94].mxu0  ;;  %v3696_v21 = vadd.f32 %v6895_v18, %v4550_v46  ;;  %v3687_v20 = vpop.f32.mrb[159].mxu1  ;;  %v3991_v43 = vmul.f32 %v3693_v44, %v3693_v44 }
 0x310   :  { %3855 = vst [vmem:[%s7227_s2 + $0xe0] sm:$0xff] %v3685_v16  ;;  %v3989_v60 = vmul.f32 %v3685_v16, %v3685_v16  ;;  %v7064_v12 = vadd.f32 %v3470_v29, %v6812_v19  ;;  %v3472_v63 = vpop.f32.mrb[95].mxu0  ;;  %v3688_v54 = vadd.f32 %v6885_v8, %v3687_v20 }
 0x311   :  { %v3918_v37 = vadd.f32 %v3917_v34, %v3685_v16  ;;  %v4051_v17 = vadd.f32 %v4050_v33, %v3988_v51  ;;  %3858 = vst [vmem:[%s7227_s2 + $0xf8] sm:$0xff] %v3696_v21  ;;  %v3992_v23 = vmul.f32 %v3696_v21, %v3696_v21  ;;  %v7249_v16 = vld [vmem:[#allocation3_spill] sm:$0xff] }
 0x312   :  { %3856 = vst [vmem:[%s7227_s2 + $0xe8] sm:$0xff] %v3688_v54  ;;  %v3990_v18 = vmul.f32 %v3688_v54, %v3688_v54 }
 0x313   :  { %v4052_v57 = vadd.f32 %v4051_v17, %v3989_v60  ;;  %v3919_v11 = vadd.f32 %v3918_v37, %v3688_v54  ;;  %v7250_v37 = vld [vmem:[#allocation4_spill] sm:$0xff] }
 0x314   :  { %v4553_v25 = vpop.f32.mrb[160].mxu1 }
 0x315   :  { %v3920_v19 = vadd.f32 %v3919_v11, %v3693_v44  ;;  %v4053_v28 = vadd.f32 %v4052_v57, %v3990_v18  ;;  %v3475_v27 = vpop.f32.mrb[96].mxu0  ;;  %v3709_v8 = vadd.f32 %v6921_v26, %v4553_v25  ;;  %v3700_v42 = vpop.f32.mrb[161].mxu1  ;;  %v7247_v26 = vld [vmem:[#allocation2_spill] sm:$0xff] }
 0x316   :  { %v7075_v30 = vadd.f32 %v3475_v27, %v6817_v22  ;;  %v3477_v32 = vpop.f32.mrb[97].mxu0  ;;  %v3701_v62 = vadd.f32 %v7246_v4, %v3700_v42  ;;  %v4554_v58 = vpop.f32.mrb[162].mxu1  ;;  %v7251_v4 = vld [vmem:[#allocation5_spill] sm:$0xff] }
 0x317   :  { %v4054_v35 = vadd.f32 %v4053_v28, %v3991_v43  ;;  %3861 = vst [vmem:[%s7227_s2 + $0x110] sm:$0xff] %v3709_v8  ;;  %v3921_v52 = vadd.f32 %v3920_v19, %v3696_v21  ;;  %v3478_v2 = vpop.f32.mrb[98].mxu0  ;;  %v3712_v53 = vadd.f32 %v6932_v6, %v4554_v58  ;;  %v3703_v56 = vpop.f32.mrb[163].mxu1  ;;  %v3995_v9 = vmul.f32 %v3709_v8, %v3709_v8 }
 0x318   :  { %3859 = vst [vmem:[%s7227_s2 + $0x100] sm:$0xff] %v3701_v62  ;;  %v3993_v22 = vmul.f32 %v3701_v62, %v3701_v62  ;;  %v7086_v39 = vadd.f32 %v3478_v2, %v7247_v26  ;;  %v3480_v3 = vpop.f32.mrb[99].mxu0  ;;  %v3704_v24 = vadd.f32 %v7248_v49, %v3703_v56 }
 0x319   :  { %v3922_v59 = vadd.f32 %v3921_v52, %v3701_v62  ;;  %v4055_v61 = vadd.f32 %v4054_v35, %v3992_v23  ;;  %3862 = vst [vmem:[%s7227_s2 + $0x118] sm:$0xff] %v3712_v53  ;;  %v3996_v29 = vmul.f32 %v3712_v53, %v3712_v53  ;;  %v7252_v3 = vld [vmem:[#allocation6_spill] sm:$0xff] }
 0x31a   :  { %3860 = vst [vmem:[%s7227_s2 + $0x108] sm:$0xff] %v3704_v24  ;;  %v3994_v6 = vmul.f32 %v3704_v24, %v3704_v24 }
 0x31b   :  { %v4056_v5 = vadd.f32 %v4055_v61, %v3993_v22  ;;  %v3923_v14 = vadd.f32 %v3922_v59, %v3704_v24 }
 0x31c   :  { %v4557_v1 = vpop.f32.mrb[164].mxu1 }
 0x31d   :  { %v3924_v0 = vadd.f32 %v3923_v14, %v3709_v8  ;;  %v4057_v45 = vadd.f32 %v4056_v5, %v3994_v6  ;;  %v3483_v44 = vpop.f32.mrb[100].mxu0  ;;  %v3725_v50 = vadd.f32 %v6965_v41, %v4557_v1  ;;  %v3716_v10 = vpop.f32.mrb[165].mxu1 }
 0x31e   :  { %v7097_v46 = vadd.f32 %v3483_v44, %v7249_v16  ;;  %v3485_v51 = vpop.f32.mrb[101].mxu0  ;;  %v3717_v33 = vadd.f32 %v6943_v38, %v3716_v10  ;;  %v4558_v34 = vpop.f32.mrb[166].mxu1 }
 0x31f   :  { %v4058_v21 = vadd.f32 %v4057_v45, %v3995_v9  ;;  %3865 = vst [vmem:[%s7227_s2 + $0x130] sm:$0xff] %v3725_v50  ;;  %v3925_v20 = vadd.f32 %v3924_v0, %v3712_v53  ;;  %v3486_v60 = vpop.f32.mrb[102].mxu0  ;;  %v3728_v63 = vadd.f32 %v6976_v31, %v4558_v34  ;;  %v3719_v54 = vpop.f32.mrb[167].mxu1  ;;  %v3999_v28 = vmul.f32 %v3725_v50, %v3725_v50 }
 0x320   :  { %3863 = vst [vmem:[%s7227_s2 + $0x120] sm:$0xff] %v3717_v33  ;;  %v3997_v41 = vmul.f32 %v3717_v33, %v3717_v33  ;;  %v7108_v17 = vadd.f32 %v3486_v60, %v7250_v37  ;;  %v3488_v38 = vpop.f32.mrb[103].mxu0  ;;  %v3720_v18 = vadd.f32 %v6954_v40, %v3719_v54  ;;  %v7254_v54 = vld [vmem:[#allocation8_spill] sm:$0xff] }
 0x321   :  { %v3926_v57 = vadd.f32 %v3925_v20, %v3717_v33  ;;  %v4059_v11 = vadd.f32 %v4058_v21, %v3996_v29  ;;  %3866 = vst [vmem:[%s7227_s2 + $0x138] sm:$0xff] %v3728_v63  ;;  %v4000_v52 = vmul.f32 %v3728_v63, %v3728_v63 }
 0x322   :  { %3864 = vst [vmem:[%s7227_s2 + $0x128] sm:$0xff] %v3720_v18  ;;  %v3998_v31 = vmul.f32 %v3720_v18, %v3720_v18 }
 0x323   :  { %v4060_v25 = vadd.f32 %v4059_v11, %v3997_v41  ;;  %v3927_v43 = vadd.f32 %v3926_v57, %v3720_v18 }
 0x324   :  { %v4561_v19 = vpop.f32.mrb[168].mxu1 }
 0x325   :  { %v3928_v27 = vadd.f32 %v3927_v43, %v3725_v50  ;;  %v4061_v8 = vadd.f32 %v4060_v25, %v3998_v31  ;;  %v3491_v42 = vpop.f32.mrb[104].mxu0  ;;  %v3741_v40 = vadd.f32 %v7009_v47, %v4561_v19  ;;  %v3732_v32 = vpop.f32.mrb[169].mxu1  ;;  %v7253_v50 = vld [vmem:[#allocation7_spill] sm:$0xff] }
 0x326   :  { %v7119_v62 = vadd.f32 %v3491_v42, %v7251_v4  ;;  %v3493_v58 = vpop.f32.mrb[105].mxu0  ;;  %v3733_v23 = vadd.f32 %v6987_v13, %v3732_v32  ;;  %v4562_v35 = vpop.f32.mrb[170].mxu1 }
 0x327   :  { %v4062_v2 = vadd.f32 %v4061_v8, %v3999_v28  ;;  %3869 = vst [vmem:[%s7227_s2 + $0x150] sm:$0xff] %v3741_v40  ;;  %v3929_v53 = vadd.f32 %v3928_v27, %v3728_v63  ;;  %v3494_v56 = vpop.f32.mrb[106].mxu0  ;;  %v3744_v22 = vadd.f32 %v7020_v7, %v4562_v35  ;;  %v3735_v26 = vpop.f32.mrb[171].mxu1  ;;  %v4003_v1 = vmul.f32 %v3741_v40, %v3741_v40  ;;  %v7255_v8 = vld [vmem:[#allocation9_spill] sm:$0xff] }
 0x328   :  { %3867 = vst [vmem:[%s7227_s2 + $0x140] sm:$0xff] %v3733_v23  ;;  %v4001_v47 = vmul.f32 %v3733_v23, %v3733_v23  ;;  %v7130_v49 = vadd.f32 %v3494_v56, %v7252_v3  ;;  %v3496_v13 = vpop.f32.mrb[107].mxu0  ;;  %v3736_v24 = vadd.f32 %v6998_v36, %v3735_v26  ;;  %v7256_v56 = vld [vmem:[#allocation10_spill] sm:$0xff] }
 0x329   :  { %v3930_v59 = vadd.f32 %v3929_v53, %v3733_v23  ;;  %v4063_v61 = vadd.f32 %v4062_v2, %v4000_v52  ;;  %3870 = vst [vmem:[%s7227_s2 + $0x158] sm:$0xff] %v3744_v22  ;;  %v4004_v34 = vmul.f32 %v3744_v22, %v3744_v22 }
 0x32a   :  { %3868 = vst [vmem:[%s7227_s2 + $0x148] sm:$0xff] %v3736_v24  ;;  %v4002_v7 = vmul.f32 %v3736_v24, %v3736_v24 }
 0x32b   :  { %v4064_v6 = vadd.f32 %v4063_v61, %v4001_v47  ;;  %v3931_v5 = vadd.f32 %v3930_v59, %v3736_v24 }
 0x32c   :  { %v4565_v14 = vpop.f32.mrb[172].mxu1 }
 0x32d   :  { %v3932_v9 = vadd.f32 %v3931_v5, %v3741_v40  ;;  %v4065_v0 = vadd.f32 %v4064_v6, %v4002_v7  ;;  %v3499_v45 = vpop.f32.mrb[108].mxu0  ;;  %v3757_v36 = vadd.f32 %v7053_v15, %v4565_v14  ;;  %v3748_v44 = vpop.f32.mrb[173].mxu1 }
 0x32e   :  { %v4669_v10 = vadd.f32 %v3499_v45, %v7253_v50  ;;  %v3501_v16 = vpop.f32.mrb[109].mxu0  ;;  %v3749_v51 = vadd.f32 %v7031_v55, %v3748_v44  ;;  %v4566_v33 = vpop.f32.mrb[174].mxu1 }
 0x32f   :  { %v4066_v29 = vadd.f32 %v4065_v0, %v4003_v1  ;;  %3873 = vst [vmem:[%s7227_s2 + $0x170] sm:$0xff] %v3757_v36  ;;  %v3933_v21 = vadd.f32 %v3932_v9, %v3744_v22  ;;  %v3502_v20 = vpop.f32.mrb[110].mxu0  ;;  %v3760_v60 = vadd.f32 %v7064_v12, %v4566_v33  ;;  %v3751_v63 = vpop.f32.mrb[175].mxu1  ;;  %v4007_v25 = vmul.f32 %v3757_v36, %v3757_v36  ;;  %v7257_v1 = vld [vmem:[#allocation11_spill] sm:$0xff] }
 0x330   :  { %3871 = vst [vmem:[%s7227_s2 + $0x160] sm:$0xff] %v3749_v51  ;;  %v4005_v15 = vmul.f32 %v3749_v51, %v3749_v51  ;;  %v4670_v41 = vadd.f32 %v3502_v20, %v7254_v54  ;;  %v3504_v55 = vpop.f32.mrb[111].mxu0  ;;  %v3752_v37 = vadd.f32 %v7042_v48, %v3751_v63 }
 0x331   :  { %v3934_v38 = vadd.f32 %v3933_v21, %v3749_v51  ;;  %v4067_v18 = vadd.f32 %v4066_v29, %v4004_v34  ;;  %3874 = vst [vmem:[%s7227_s2 + $0x178] sm:$0xff] %v3760_v60  ;;  %v4008_v58 = vmul.f32 %v3760_v60, %v3760_v60  ;;  %v7258_v29 = vld [vmem:[#allocation12_spill] sm:$0xff] }
 0x332   :  { %3872 = vst [vmem:[%s7227_s2 + $0x168] sm:$0xff] %v3752_v37  ;;  %v4006_v12 = vmul.f32 %v3752_v37, %v3752_v37 }
 0x333   :  { %v4068_v57 = vadd.f32 %v4067_v18, %v4005_v15  ;;  %v3935_v11 = vadd.f32 %v3934_v38, %v3752_v37 }
 0x334   :  { %v4569_v31 = vpop.f32.mrb[176].mxu1 }
 0x335   :  { %v3936_v43 = vadd.f32 %v3935_v11, %v3757_v36  ;;  %v4069_v19 = vadd.f32 %v4068_v57, %v4006_v12  ;;  %v3507_v28 = vpop.f32.mrb[112].mxu0  ;;  %v3773_v48 = vadd.f32 %v7097_v46, %v4569_v31  ;;  %v3764_v27 = vpop.f32.mrb[177].mxu1  ;;  %v7259_v11 = vld [vmem:[#allocation13_spill] sm:$0xff] }
 0x336   :  { %v4671_v42 = vadd.f32 %v3507_v28, %v7255_v8  ;;  %v3509_v40 = vpop.f32.mrb[113].mxu0  ;;  %v3765_v32 = vadd.f32 %v7075_v30, %v3764_v27  ;;  %v4570_v4 = vpop.f32.mrb[178].mxu1 }
 0x337   :  { %v4070_v23 = vadd.f32 %v4069_v19, %v4007_v25  ;;  %3877 = vst [vmem:[%s7227_s2 + $0x190] sm:$0xff] %v3773_v48  ;;  %v3937_v35 = vadd.f32 %v3936_v43, %v3760_v60  ;;  %v3510_v52 = vpop.f32.mrb[114].mxu0  ;;  %v3776_v2 = vadd.f32 %v7108_v17, %v4570_v4  ;;  %v3767_v53 = vpop.f32.mrb[179].mxu1  ;;  %v4011_v61 = vmul.f32 %v3773_v48, %v3773_v48 }
 0x338   :  { %3875 = vst [vmem:[%s7227_s2 + $0x180] sm:$0xff] %v3765_v32  ;;  %v4009_v46 = vmul.f32 %v3765_v32, %v3765_v32  ;;  %v4672_v22 = vadd.f32 %v3510_v52, %v7256_v56  ;;  %v3512_v30 = vpop.f32.mrb[115].mxu0  ;;  %v3768_v26 = vadd.f32 %v7086_v39, %v3767_v53 }
 0x339   :  { %v3938_v47 = vadd.f32 %v3937_v35, %v3765_v32  ;;  %v4071_v3 = vadd.f32 %v4070_v23, %v4008_v58  ;;  %3878 = vst [vmem:[%s7227_s2 + $0x198] sm:$0xff] %v3776_v2  ;;  %v4012_v44 = vmul.f32 %v3776_v2, %v3776_v2  ;;  %v7260_v58 = vld [vmem:[#allocation14_spill] sm:$0xff] }
 0x33a   :  { %3876 = vst [vmem:[%s7227_s2 + $0x188] sm:$0xff] %v3768_v26  ;;  %v4010_v17 = vmul.f32 %v3768_v26, %v3768_v26 }
 0x33b   :  { %v4072_v13 = vadd.f32 %v4071_v3, %v4009_v46  ;;  %v3939_v24 = vadd.f32 %v3938_v47, %v3768_v26 }
 0x33c   :  { %v4573_v59 = vpop.f32.mrb[180].mxu1 }
 0x33d   :  { %v3940_v7 = vadd.f32 %v3939_v24, %v3773_v48  ;;  %v4073_v6 = vadd.f32 %v4072_v13, %v4010_v17  ;;  %v3515_v5 = vpop.f32.mrb[116].mxu0  ;;  %v3789_v14 = vadd.f32 %v4669_v10, %v4573_v59  ;;  %v3780_v39 = vpop.f32.mrb[181].mxu1 }
 0x33e   :  { %v4673_v9 = vadd.f32 %v3515_v5, %v7257_v1  ;;  %v3517_v0 = vpop.f32.mrb[117].mxu0  ;;  %v3781_v45 = vadd.f32 %v7119_v62, %v3780_v39  ;;  %v4574_v36 = vpop.f32.mrb[182].mxu1 }
 0x33f   :  { %v4074_v50 = vadd.f32 %v4073_v6, %v4011_v61  ;;  %3881 = vst [vmem:[%s7227_s2 + $0x1b0] sm:$0xff] %v3789_v14  ;;  %v3941_v16 = vadd.f32 %v3940_v7, %v3776_v2  ;;  %v3518_v51 = vpop.f32.mrb[118].mxu0  ;;  %v3792_v33 = vadd.f32 %v4670_v41, %v4574_v36  ;;  %v3783_v34 = vpop.f32.mrb[183].mxu1  ;;  %v4015_v37 = vmul.f32 %v3789_v14, %v3789_v14 }
 0x340   :  { %3879 = vst [vmem:[%s7227_s2 + $0x1a0] sm:$0xff] %v3781_v45  ;;  %v4013_v10 = vmul.f32 %v3781_v45, %v3781_v45  ;;  %v4674_v21 = vadd.f32 %v3518_v51, %v7258_v29  ;;  %v3520_v20 = vpop.f32.mrb[119].mxu0  ;;  %v3784_v62 = vadd.f32 %v7130_v49, %v3783_v34 }
 0x341   :  { %v3942_v60 = vadd.f32 %v3941_v16, %v3781_v45  ;;  %v4075_v63 = vadd.f32 %v4074_v50, %v4012_v44  ;;  %3882 = vst [vmem:[%s7227_s2 + $0x1b8] sm:$0xff] %v3792_v33  ;;  %v4016_v28 = vmul.f32 %v3792_v33, %v3792_v33  ;;  %v7262_v45 = vld [vmem:[#allocation16_spill] sm:$0xff] }
 0x342   :  { %3880 = vst [vmem:[%s7227_s2 + $0x1a8] sm:$0xff] %v3784_v62  ;;  %v4014_v15 = vmul.f32 %v3784_v62, %v3784_v62 }
 0x343   :  { %v4076_v54 = vadd.f32 %v4075_v63, %v4013_v10  ;;  %v3943_v41 = vadd.f32 %v3942_v60, %v3784_v62 }
 0x344   :  { %v4577_v55 = vpop.f32.mrb[184].mxu1 }
 0x345   :  { %v3944_v38 = vadd.f32 %v3943_v41, %v3789_v14  ;;  %v4077_v18 = vadd.f32 %v4076_v54, %v4014_v15  ;;  %v3523_v12 = vpop.f32.mrb[120].mxu0  ;;  %v3805_v57 = vadd.f32 %v4673_v9, %v4577_v55  ;;  %v3796_v49 = vpop.f32.mrb[185].mxu1 }
 0x346   :  { %v4675_v31 = vadd.f32 %v3523_v12, %v7259_v11  ;;  %v3525_v25 = vpop.f32.mrb[121].mxu0  ;;  %v3797_v43 = vadd.f32 %v4671_v42, %v3796_v49  ;;  %v4578_v19 = vpop.f32.mrb[186].mxu1 }
 0x347   :  { %v4078_v48 = vadd.f32 %v4077_v18, %v4015_v37  ;;  %3885 = vst [vmem:[%s7227_s2 + $0x1d0] sm:$0xff] %v3805_v57  ;;  %v3945_v27 = vadd.f32 %v3944_v38, %v3792_v33  ;;  %v3526_v8 = vpop.f32.mrb[122].mxu0  ;;  %v3808_v40 = vadd.f32 %v4674_v21, %v4578_v19  ;;  %v3799_v32 = vpop.f32.mrb[187].mxu1  ;;  %v4019_v26 = vmul.f32 %v3805_v57, %v3805_v57 }
 0x348   :  { %3883 = vst [vmem:[%s7227_s2 + $0x1c0] sm:$0xff] %v3797_v43  ;;  %v4017_v4 = vmul.f32 %v3797_v43, %v3797_v43  ;;  %v4676_v23 = vadd.f32 %v3526_v8, %v7260_v58  ;;  %v3528_v35 = vpop.f32.mrb[123].mxu0  ;;  %v3800_v42 = vadd.f32 %v4672_v22, %v3799_v32  ;;  %v7261_v22 = vld [vmem:[#allocation15_spill] sm:$0xff] }
 0x349   :  { %v3946_v52 = vadd.f32 %v3945_v27, %v3797_v43  ;;  %v4079_v2 = vadd.f32 %v4078_v48, %v4016_v28  ;;  %3886 = vst [vmem:[%s7227_s2 + $0x1d8] sm:$0xff] %v3808_v40  ;;  %v4020_v6 = vmul.f32 %v3808_v40, %v3808_v40 }
 0x34a   :  { %3884 = vst [vmem:[%s7227_s2 + $0x1c8] sm:$0xff] %v3800_v42  ;;  %v4018_v53 = vmul.f32 %v3800_v42, %v3800_v42 }
 0x34b   :  { %v4080_v46 = vadd.f32 %v4079_v2, %v4017_v4  ;;  %v3947_v56 = vadd.f32 %v3946_v52, %v3800_v42 }
 0x34c   :  { %v4581_v30 = vpop.f32.mrb[188].mxu1 }
 0x34d   :  { %v3948_v47 = vadd.f32 %v3947_v56, %v3805_v57  ;;  %v4081_v3 = vadd.f32 %v4080_v46, %v4018_v53  ;;  %v3531_v17 = vpop.f32.mrb[124].mxu0  ;;  %v3812_v13 = vpop.f32.mrb[189].mxu1 }
 0x34e   :  { %v4677_v24 = vadd.f32 %v3531_v17, %v7261_v22  ;;  %v3533_v59 = vpop.f32.mrb[125].mxu0  ;;  %v3813_v61 = vadd.f32 %v4675_v31, %v3812_v13  ;;  %v4582_v7 = vpop.f32.mrb[190].mxu1 }
 0x34f   :  { %v4082_v5 = vadd.f32 %v4081_v3, %v4019_v26  ;;  %v3949_v14 = vadd.f32 %v3948_v47, %v3808_v40  ;;  %v3534_v39 = vpop.f32.mrb[126].mxu0  ;;  %v3815_v1 = vpop.f32.mrb[191].mxu1 }
 0x350   :  { %v3821_v9 = vadd.f32 %v4677_v24, %v4581_v30  ;;  %3887 = vst [vmem:[%s7227_s2 + $0x1e0] sm:$0xff] %v3813_v61  ;;  %v4021_v0 = vmul.f32 %v3813_v61, %v3813_v61  ;;  %v4678_v36 = vadd.f32 %v3534_v39, %v7262_v45  ;;  %v3536_v44 = vpop.f32.mrb[127].mxu0  ;;  %v3816_v50 = vadd.f32 %v4676_v23, %v3815_v1 }
 0x351   :  { %v3950_v16 = vadd.f32 %v3949_v14, %v3813_v61  ;;  %v4083_v51 = vadd.f32 %v4082_v5, %v4020_v6 }
 0x352   :  { %3889 = vst [vmem:[%s7227_s2 + $0x1f0] sm:$0xff] %v3821_v9  ;;  %v3824_v33 = vadd.f32 %v4678_v36, %v4582_v7  ;;  %3888 = vst [vmem:[%s7227_s2 + $0x1e8] sm:$0xff] %v3816_v50  ;;  %v4022_v34 = vmul.f32 %v3816_v50, %v3816_v50  ;;  %v4023_v21 = vmul.f32 %v3821_v9, %v3821_v9 }
 0x353   :  { %v4084_v10 = vadd.f32 %v4083_v51, %v4021_v0  ;;  %v3951_v29 = vadd.f32 %v3950_v16, %v3816_v50 }
 0x354   :  { %3890 = vst [vmem:[%s7227_s2 + $0x1f8] sm:$0xff] %v3824_v33  ;;  %v4024_v60 = vmul.f32 %v3824_v33, %v3824_v33 }
 0x355   :  { %v3952_v20 = vadd.f32 %v3951_v29, %v3821_v9  ;;  %v4085_v62 = vadd.f32 %v4084_v10, %v4022_v34 }
 0x357   :  { %v3953_v63 = vadd.f32 %v3952_v20, %v3824_v33  ;;  %v4086_v15 = vadd.f32 %v4085_v62, %v4023_v21 }
 0x359   :  { %v3954_v54 = vrot.slane %v3953_v63, 4  ;;  %v4087_v41 = vadd.f32 %v4086_v15, %v4024_v60 }
 0x35b   :  { %v3955_v55 = vadd.f32 %v3954_v54, %v3953_v63  ;;  %v4088_v37 = vrot.slane %v4087_v41, 4 }
 0x35d   :  { %v3956_v38 = vrot.slane %v3955_v55, 2  ;;  %v4089_v18 = vadd.f32 %v4088_v37, %v4087_v41 }
 0x35f   :  { %v3957_v12 = vadd.f32 %v3956_v38, %v3955_v55  ;;  %v4090_v57 = vrot.slane %v4089_v18, 2 }
 0x361   :  { %v3958_v49 = vrot.slane %v3957_v12, 1  ;;  %v4091_v11 = vadd.f32 %v4090_v57, %v4089_v18 }
 0x363   :  { %v3959_v31 = vadd.f32 %v3958_v49, %v3957_v12  ;;  %v4092_v25 = vrot.slane %v4091_v11, 1 }
 0x365   :  { %3960 = vst [vmem:[%s7228_s3] sm:$0x1] %v3959_v31  ;;  %v4093_v43 = vadd.f32 %v4092_v25, %v4091_v11 }
 0x367   :  { %4094 = vst [vmem:[%s7228_s3 + $0x1] sm:$0x1] %v4093_v43 }

// kernel: encoder_forward.33
= control target key start
LH: loop header
LB: loop body
LE: loop exit
PB: predicated region body
PF: predicated region fallthrough
CT: control target
= control target key end

     0   :  { %s254_s0 = inlined_call_operand.vmem [shape: f32[128,128], index: 0, kind: input, shape index: {}, may-alias: {0,3}]   ;;  %s255_s1 = inlined_call_operand.vmem [shape: f32[1,128], index: 1, kind: input, shape index: {}]   ;;  %s256_s2 = inlined_call_operand.vmem [shape: f32[1,128], index: 2, kind: input, shape index: {}]   ;;  %s257_s3 = inlined_call_operand.vmem [shape: f32[128,128], index: 3, kind: output, shape index: {}, may-alias: {0,3}]  }
   0x1   :  { %v14_v0 = vld [vmem:[%s254_s0] sm:$0xff]  ;;  %v15_v4 = vld [vmem:[%s254_s0 + $0x8] sm:$0xff]  ;;  %v16_v5 = vld [vmem:[%s254_s0 + $0x10] sm:$0xff] }
   0x2   :  { %v112_v1 = vld [vmem:[%s255_s1] ss:$0 sm:$0xff]  ;;  %v17_v6 = vld [vmem:[%s254_s0 + $0x18] sm:$0xff]  ;;  %v19_v11 = vld [vmem:[%s254_s0 + $0x28] sm:$0xff] }
   0x3   :  { %v143_v2 = vld [vmem:[%s256_s2] ss:$0 sm:$0xff]  ;;  %v37_v3 = vmul.f32 %v112_v1, %v14_v0  ;;  %v38_v7 = vmul.f32 %v112_v1, %v15_v4  ;;  %v39_v8 = vmul.f32 %v112_v1, %v16_v5  ;;  %v40_v9 = vmul.f32 %v112_v1, %v17_v6  ;;  %v20_v12 = vld [vmem:[%s254_s0 + $0x30] sm:$0xff]  ;;  %v21_v17 = vld [vmem:[%s254_s0 + $0x38] sm:$0xff] }
   0x4   :  { %v18_v10 = vld [vmem:[%s254_s0 + $0x20] sm:$0xff]  ;;  %v42_v15 = vmul.f32 %v112_v1, %v19_v11  ;;  %v43_v16 = vmul.f32 %v112_v1, %v20_v12  ;;  %v44_v21 = vmul.f32 %v112_v1, %v21_v17  ;;  %v23_v27 = vld [vmem:[%s254_s0 + $0x48] sm:$0xff]  ;;  %v24_v28 = vld [vmem:[%s254_s0 + $0x50] sm:$0xff] }
   0x5   :  { %v60_v13 = vadd.f32 %v143_v2, %v37_v3  ;;  %v41_v14 = vmul.f32 %v112_v1, %v18_v10  ;;  %v61_v18 = vadd.f32 %v143_v2, %v38_v7  ;;  %v62_v19 = vadd.f32 %v143_v2, %v39_v8  ;;  %v22_v22 = vld [vmem:[%s254_s0 + $0x40] sm:$0xff]  ;;  %v25_v29 = vld [vmem:[%s254_s0 + $0x58] sm:$0xff]  ;;  %v27_v35 = vld [vmem:[%s254_s0 + $0x68] sm:$0xff] }
   0x6   :  { %v63_v20 = vadd.f32 %v143_v2, %v40_v9  ;;  %v65_v25 = vadd.f32 %v143_v2, %v42_v15  ;;  %v66_v26 = vadd.f32 %v143_v2, %v43_v16  ;;  %v67_v33 = vadd.f32 %v143_v2, %v44_v21  ;;  %v26_v34 = vld [vmem:[%s254_s0 + $0x60] sm:$0xff]  ;;  %v28_v36 = vld [vmem:[%s254_s0 + $0x70] sm:$0xff] }
   0x7   :  { %v76_v23 = vmax.f32 %v60_v13, 0.0  ;;  %v64_v24 = vadd.f32 %v143_v2, %v41_v14  ;;  %v77_v30 = vmax.f32 %v61_v18, 0.0  ;;  %v78_v31 = vmax.f32 %v62_v19, 0.0 }
   0x8   :  { %v79_v32 = vmax.f32 %v63_v20, 0.0  ;;  %v81_v38 = vmax.f32 %v65_v25, 0.0  ;;  %v82_v39 = vmax.f32 %v66_v26, 0.0  ;;  %v45_v40 = vmul.f32 %v112_v1, %v22_v22 }
   0x9   :  { %92 = vst [vmem:[%s257_s3] sm:$0xff] %v76_v23  ;;  %v80_v37 = vmax.f32 %v64_v24, 0.0  ;;  %v83_v42 = vmax.f32 %v67_v33, 0.0  ;;  %v46_v43 = vmul.f32 %v112_v1, %v23_v27  ;;  %v47_v44 = vmul.f32 %v112_v1, %v24_v28 }
   0xa   :  { %v48_v45 = vmul.f32 %v112_v1, %v25_v29  ;;  %v68_v46 = vadd.f32 %v143_v2, %v45_v40  ;;  %v49_v47 = vmul.f32 %v112_v1, %v26_v34  ;;  %v50_v48 = vmul.f32 %v112_v1, %v27_v35 }
   0xb   :  { %v51_v49 = vmul.f32 %v112_v1, %v28_v36  ;;  %v69_v50 = vadd.f32 %v143_v2, %v46_v43  ;;  %v70_v51 = vadd.f32 %v143_v2, %v47_v44 }
   0xc   :  { %v71_v52 = vadd.f32 %v143_v2, %v48_v45  ;;  %v84_v54 = vmax.f32 %v68_v46, 0.0  ;;  %v72_v55 = vadd.f32 %v143_v2, %v49_v47  ;;  %v73_v56 = vadd.f32 %v143_v2, %v50_v48 }
   0xd   :  { %v74_v57 = vadd.f32 %v143_v2, %v51_v49  ;;  %v85_v58 = vmax.f32 %v69_v50, 0.0  ;;  %v86_v59 = vmax.f32 %v70_v51, 0.0 }
   0xe   :  { %v87_v60 = vmax.f32 %v71_v52, 0.0  ;;  %v88_v62 = vmax.f32 %v72_v55, 0.0  ;;  %v89_v63 = vmax.f32 %v73_v56, 0.0 }
   0xf   :  { %v90_v0 = vmax.f32 %v74_v57, 0.0 }
  0x10   :  { %v29_v41 = vld [vmem:[%s254_s0 + $0x78] sm:$0xff] }
  0x11   :  { %93 = vst [vmem:[%s257_s3 + $0x8] sm:$0xff] %v77_v30  ;;  %94 = vst [vmem:[%s257_s3 + $0x10] sm:$0xff] %v78_v31  ;;  %v52_v53 = vmul.f32 %v112_v1, %v29_v41 }
  0x12   :  { %95 = vst [vmem:[%s257_s3 + $0x18] sm:$0xff] %v79_v32  ;;  %96 = vst [vmem:[%s257_s3 + $0x20] sm:$0xff] %v80_v37 }
  0x13   :  { %97 = vst [vmem:[%s257_s3 + $0x28] sm:$0xff] %v81_v38  ;;  %98 = vst [vmem:[%s257_s3 + $0x30] sm:$0xff] %v82_v39  ;;  %v75_v61 = vadd.f32 %v143_v2, %v52_v53 }
  0x14   :  { %99 = vst [vmem:[%s257_s3 + $0x38] sm:$0xff] %v83_v42  ;;  %100 = vst [vmem:[%s257_s3 + $0x40] sm:$0xff] %v84_v54 }
  0x15   :  { %101 = vst [vmem:[%s257_s3 + $0x48] sm:$0xff] %v85_v58  ;;  %102 = vst [vmem:[%s257_s3 + $0x50] sm:$0xff] %v86_v59  ;;  %v91_v1 = vmax.f32 %v75_v61, 0.0 }
  0x16   :  { %103 = vst [vmem:[%s257_s3 + $0x58] sm:$0xff] %v87_v60  ;;  %104 = vst [vmem:[%s257_s3 + $0x60] sm:$0xff] %v88_v62 }
  0x17   :  { %105 = vst [vmem:[%s257_s3 + $0x68] sm:$0xff] %v89_v63  ;;  %106 = vst [vmem:[%s257_s3 + $0x70] sm:$0xff] %v90_v0 }
  0x18   :  { %107 = vst [vmem:[%s257_s3 + $0x78] sm:$0xff] %v91_v1 }

// kernel: encoder_forward.32
= control target key start
LH: loop header
LB: loop body
LE: loop exit
PB: predicated region body
PF: predicated region fallthrough
CT: control target
= control target key end

     0   :  { %s2843_s1 = inlined_call_operand.vmem [shape: bf16[1152,128], index: 1, kind: input, shape index: {}]   ;;  %s2844_s0 = inlined_call_operand.vmem [shape: bf16[128,1152], index: 0, kind: input, shape index: {}]   ;;  %s2845_s2 = inlined_call_operand.vmem [shape: f32[128,128], index: 2, kind: output, shape index: {0}]   ;;  %s2846_s3 = inlined_call_operand.vmem [shape: f32[1,2,128], index: 3, kind: output, shape index: {1}]  }
   0x1   :  { %v2071_v0 = vld [vmem:[%s2843_s1 + $0x40] sm:$0xff]   ;;  %v2075_v4 = vld [vmem:[%s2843_s1 + $0x48] sm:$0xff]   ;;  %v2079_v8 = vld [vmem:[%s2843_s1 + $0x50] sm:$0xff]  }
   0x2   :  { %v2072_v1 = vld [vmem:[%s2843_s1 + $0xc0] sm:$0xff]   ;;  %1751 = vmatprep.subr.bf16.mxu0 %v2071_v0  ;;  %v2076_v5 = vld [vmem:[%s2843_s1 + $0xc8] sm:$0xff]   ;;  %v2080_v9 = vld [vmem:[%s2843_s1 + $0xd0] sm:$0xff]  }
   0x3   :  { %v2073_v2 = vld [vmem:[%s2843_s1] sm:$0xff]   ;;  %1815 = vmatprep.subr.bf16.mxu1 %v2072_v1  ;;  %v2077_v6 = vld [vmem:[%s2843_s1 + $0x8] sm:$0xff]   ;;  %v2081_v10 = vld [vmem:[%s2843_s1 + $0x10] sm:$0xff]  }
   0x4   :  { %v2074_v3 = vld [vmem:[%s2843_s1 + $0x80] sm:$0xff]   ;;  %1752 = vmatpush3.bf16.msra.mxu0 %v2073_v2  ;;  %v2078_v7 = vld [vmem:[%s2843_s1 + $0x88] sm:$0xff]   ;;  %v2082_v11 = vld [vmem:[%s2843_s1 + $0x90] sm:$0xff]  }
   0x5   :  { %1816 = vmatpush3.bf16.msra.mxu1 %v2074_v3  ;;  %1753 = vmatprep.subr.bf16.mxu0 %v2075_v4  ;;  %v2083_v12 = vld [vmem:[%s2843_s1 + $0x58] sm:$0xff]   ;;  %v2087_v16 = vld [vmem:[%s2843_s1 + $0x60] sm:$0xff]   ;;  %v2091_v20 = vld [vmem:[%s2843_s1 + $0x68] sm:$0xff]  }
   0x6   :  { %1817 = vmatprep.subr.bf16.mxu1 %v2076_v5  ;;  %v2084_v13 = vld [vmem:[%s2843_s1 + $0xd8] sm:$0xff]   ;;  %v2088_v17 = vld [vmem:[%s2843_s1 + $0xe0] sm:$0xff]   ;;  %v2092_v21 = vld [vmem:[%s2843_s1 + $0xe8] sm:$0xff]  }
   0x7   :  { %v2085_v14 = vld [vmem:[%s2843_s1 + $0x18] sm:$0xff]   ;;  %v2089_v18 = vld [vmem:[%s2843_s1 + $0x20] sm:$0xff]   ;;  %v2093_v22 = vld [vmem:[%s2843_s1 + $0x28] sm:$0xff]  }
   0x8   :  { %1754 = vmatpush3.bf16.msra.mxu0 %v2077_v6  ;;  %v2086_v15 = vld [vmem:[%s2843_s1 + $0x98] sm:$0xff]   ;;  %v2090_v19 = vld [vmem:[%s2843_s1 + $0xa0] sm:$0xff]   ;;  %v2094_v23 = vld [vmem:[%s2843_s1 + $0xa8] sm:$0xff]  }
   0x9   :  { %1818 = vmatpush3.bf16.msra.mxu1 %v2078_v7  ;;  %1755 = vmatprep.subr.bf16.mxu0 %v2079_v8  ;;  %v2095_v24 = vld [vmem:[%s2843_s1 + $0x70] sm:$0xff]   ;;  %v2099_v28 = vld [vmem:[%s2843_s1 + $0x78] sm:$0xff]   ;;  %v2103_v32 = vld [vmem:[%s2844_s0] ss:$36 sps:$4 sm:$0xff]  }
   0xa   :  { %1819 = vmatprep.subr.bf16.mxu1 %v2080_v9  ;;  %v2096_v25 = vld [vmem:[%s2843_s1 + $0xf0] sm:$0xff]   ;;  %v2100_v29 = vld [vmem:[%s2843_s1 + $0xf8] sm:$0xff]   ;;  %v2105_v33 = vld [vmem:[%s2844_s0 + $0x4] ss:$36 sps:$4 sm:$0xff]  }
   0xb   :  { %v2097_v26 = vld [vmem:[%s2843_s1 + $0x30] sm:$0xff]   ;;  %v2101_v30 = vld [vmem:[%s2843_s1 + $0x38] sm:$0xff]   ;;  %v2106_v34 = vld [vmem:[%s2844_s0 + $0x8] ss:$36 sps:$4 sm:$0xff]   ;;  %1070 = vmatprep.mubr.bf16.mxu0 %v2105_v33 }
   0xc   :  { %1756 = vmatpush3.bf16.msra.mxu0 %v2081_v10  ;;  %v2098_v27 = vld [vmem:[%s2843_s1 + $0xb0] sm:$0xff]   ;;  %v2102_v31 = vld [vmem:[%s2843_s1 + $0xb8] sm:$0xff]   ;;  %v2109_v36 = vld [vmem:[%s2843_s1 + $0x140] sm:$0xff]  }
   0xd   :  { %1820 = vmatpush3.bf16.msra.mxu1 %v2082_v11  ;;  %1757 = vmatprep.subr.bf16.mxu0 %v2083_v12  ;;  %v2108_v35 = vld [vmem:[%s2844_s0 + $0xc] ss:$36 sps:$4 sm:$0xff]   ;;  %v2110_v37 = vld [vmem:[%s2843_s1 + $0x100] sm:$0xff]   ;;  %v2113_v39 = vld [vmem:[%s2844_s0 + $0x54] ss:$36 sps:$4 sm:$0xff]  }
   0xe   :  { %1821 = vmatprep.subr.bf16.mxu1 %v2084_v13  ;;  %1167 = vmatprep.mubr.bf16.mxu1 %v2108_v35  ;;  %v2111_v38 = vld [vmem:[%s2844_s0 + $0x4c] ss:$36 sps:$4 sm:$0xff]   ;;  %v2119_v44 = vld [vmem:[%s2844_s0 + $0x94] ss:$36 sps:$4 sm:$0xff]   ;;  %v2121_v45 = vld [vmem:[%s2844_s0 + $0x9c] ss:$36 sps:$4 sm:$0xff]  }
   0xf   :  { %v2115_v40 = vld [vmem:[%s2844_s0 + $0x48] ss:$36 sps:$4 sm:$0xff]   ;;  %v2116_v41 = vld [vmem:[%s2844_s0 + $0x50] ss:$36 sps:$4 sm:$0xff]   ;;  %v2126_v47 = vld [vmem:[%s2843_s1 + $0x1c0] sm:$0xff]  }
  0x10   :  { %1758 = vmatpush3.bf16.msra.mxu0 %v2085_v14  ;;  %v2117_v42 = vld [vmem:[%s2843_s1 + $0x148] sm:$0xff]   ;;  %v2125_v46 = vld [vmem:[%s2843_s1 + $0x150] sm:$0xff]   ;;  %v2128_v50 = vld [vmem:[%s2843_s1 + $0x180] sm:$0xff]  }
  0x11   :  { %1822 = vmatpush3.bf16.msra.mxu1 %v2086_v15  ;;  %1759 = vmatprep.subr.bf16.mxu0 %v2087_v16  ;;  %v2118_v43 = vld [vmem:[%s2843_s1 + $0x108] sm:$0xff]   ;;  %v2123_v48 = vld [vmem:[%s2844_s0 + $0x90] ss:$36 sps:$4 sm:$0xff]   ;;  %v2124_v51 = vld [vmem:[%s2844_s0 + $0x98] ss:$36 sps:$4 sm:$0xff]  }
  0x12   :  { %1823 = vmatprep.subr.bf16.mxu1 %v2088_v17  ;;  %v2127_v49 = vld [vmem:[%s2843_s1 + $0x110] sm:$0xff]   ;;  %v2129_v52 = vld [vmem:[%s2844_s0 + $0xdc] ss:$36 sps:$4 sm:$0xff]   ;;  %v2131_v53 = vld [vmem:[%s2844_s0 + $0xe4] ss:$36 sps:$4 sm:$0xff]  }
  0x13   :  { %v2135_v54 = vld [vmem:[%s2843_s1 + $0x158] sm:$0xff]   ;;  %v2136_v55 = vld [vmem:[%s2843_s1 + $0x1c8] sm:$0xff]   ;;  %v2134_v59 = vld [vmem:[%s2844_s0 + $0xe0] ss:$36 sps:$4 sm:$0xff]  }
  0x14   :  { %1760 = vmatpush3.bf16.msra.mxu0 %v2089_v18  ;;  %v2137_v56 = vld [vmem:[%s2843_s1 + $0x118] sm:$0xff]   ;;  %v2138_v57 = vld [vmem:[%s2843_s1 + $0x188] sm:$0xff]   ;;  %v2145_v62 = vld [vmem:[%s2843_s1 + $0x160] sm:$0xff]  }
  0x15   :  { %1824 = vmatpush3.bf16.msra.mxu1 %v2090_v19  ;;  %1761 = vmatprep.subr.bf16.mxu0 %v2091_v20  ;;  %v2133_v58 = vld [vmem:[%s2844_s0 + $0xd8] ss:$36 sps:$4 sm:$0xff]   ;;  %v2139_v60 = vld [vmem:[%s2844_s0 + $0x124] ss:$36 sps:$4 sm:$0xff]   ;;  %v2141_v61 = vld [vmem:[%s2844_s0 + $0x12c] ss:$36 sps:$4 sm:$0xff]  }
  0x16   :  { %1825 = vmatprep.subr.bf16.mxu1 %v2092_v21  ;;  %v2146_v63 = vld [vmem:[%s2843_s1 + $0x1d0] sm:$0xff]   ;;  %v2147_v0 = vld [vmem:[%s2843_s1 + $0x120] sm:$0xff]   ;;  %v2144_v3 = vld [vmem:[%s2844_s0 + $0x128] ss:$36 sps:$4 sm:$0xff]  }
  0x17   :  { %v2148_v1 = vld [vmem:[%s2843_s1 + $0x190] sm:$0xff]   ;;  %v2143_v2 = vld [vmem:[%s2844_s0 + $0x120] ss:$36 sps:$4 sm:$0xff]   ;;  %v2155_v6 = vld [vmem:[%s2843_s1 + $0x168] sm:$0xff]  }
  0x18   :  { %1762 = vmatpush3.bf16.msra.mxu0 %v2093_v22  ;;  %v2149_v4 = vld [vmem:[%s2844_s0 + $0x16c] ss:$36 sps:$4 sm:$0xff]   ;;  %v2151_v5 = vld [vmem:[%s2844_s0 + $0x174] ss:$36 sps:$4 sm:$0xff]   ;;  %v2161_v14 = vld [vmem:[%s2844_s0 + $0x1bc] ss:$36 sps:$4 sm:$0xff]  }
  0x19   :  { %1826 = vmatpush3.bf16.msra.mxu1 %v2094_v23  ;;  %1763 = vmatprep.subr.bf16.mxu0 %v2095_v24  ;;  %v2156_v7 = vld [vmem:[%s2843_s1 + $0x1d8] sm:$0xff]   ;;  %v2157_v8 = vld [vmem:[%s2843_s1 + $0x128] sm:$0xff]   ;;  %v2154_v11 = vld [vmem:[%s2844_s0 + $0x170] ss:$36 sps:$4 sm:$0xff]  }
  0x1a   :  { %1827 = vmatprep.subr.bf16.mxu1 %v2096_v25  ;;  %v2158_v9 = vld [vmem:[%s2843_s1 + $0x198] sm:$0xff]   ;;  %v2153_v10 = vld [vmem:[%s2844_s0 + $0x168] ss:$36 sps:$4 sm:$0xff]   ;;  %v2165_v13 = vld [vmem:[%s2843_s1 + $0x170] sm:$0xff]  }
  0x1b   :  { %v2159_v12 = vld [vmem:[%s2844_s0 + $0x1b4] ss:$36 sps:$4 sm:$0xff]   ;;  %v2166_v15 = vld [vmem:[%s2843_s1 + $0x1e0] sm:$0xff]   ;;  %v2169_v18 = vld [vmem:[%s2843_s1 + $0x1e8] sm:$0xff]  }
  0x1c   :  { %1764 = vmatpush3.bf16.msra.mxu0 %v2097_v26  ;;  %v2167_v16 = vld [vmem:[%s2843_s1 + $0x130] sm:$0xff]   ;;  %v2168_v17 = vld [vmem:[%s2843_s1 + $0x1a0] sm:$0xff]   ;;  %v2170_v19 = vld [vmem:[%s2843_s1 + $0x1a8] sm:$0xff]  }
  0x1d   :  { %1828 = vmatpush3.bf16.msra.mxu1 %v2098_v27  ;;  %1765 = vmatprep.subr.bf16.mxu0 %v2099_v28  ;;  %v2163_v20 = vld [vmem:[%s2844_s0 + $0x1b0] ss:$36 sps:$4 sm:$0xff]   ;;  %v2164_v21 = vld [vmem:[%s2844_s0 + $0x1b8] ss:$36 sps:$4 sm:$0xff]   ;;  %v2173_v23 = vld [vmem:[%s2844_s0 + $0x204] ss:$36 sps:$4 sm:$0xff]  }
  0x1e   :  { %1829 = vmatprep.subr.bf16.mxu1 %v2100_v29  ;;  %v2171_v22 = vld [vmem:[%s2844_s0 + $0x1fc] ss:$36 sps:$4 sm:$0xff]   ;;  %v2178_v25 = vld [vmem:[%s2843_s1 + $0x1f0] sm:$0xff]  }
  0x1f   :  { %v2177_v24 = vld [vmem:[%s2843_s1 + $0x178] sm:$0xff]   ;;  %v2180_v27 = vld [vmem:[%s2843_s1 + $0x1b0] sm:$0xff]  }
  0x20   :  { %1766 = vmatpush3.bf16.msra.mxu0 %v2101_v30  ;;  %v2179_v26 = vld [vmem:[%s2843_s1 + $0x138] sm:$0xff]   ;;  %v2176_v30 = vld [vmem:[%s2844_s0 + $0x200] ss:$36 sps:$4 sm:$0xff]   ;;  %v2183_v35 = vld [vmem:[%s2844_s0 + $0x10] ss:$36 sps:$4 sm:$0xff]  }
  0x21   :  { %1830 = vmatpush3.bf16.msra.mxu1 %v2102_v31  ;;  %1879 = vmatprep.subr.bf16.mxu0 %v2109_v36  ;;  %v2181_v28 = vld [vmem:[%s2843_s1 + $0x1f8] sm:$0xff]  }
  0x22   :  { %1943 = vmatprep.subr.bf16.mxu1 %v2126_v47  ;;  %v2175_v29 = vld [vmem:[%s2844_s0 + $0x1f8] ss:$36 sps:$4 sm:$0xff]   ;;  %v2201_v47 = vld [vmem:[%s2844_s0 + $0xa0] ss:$36 sps:$4 sm:$0xff]  }
  0x23   :  { %1071 = vmatmul.mubr.bf16.vlgmr.msra.gmra.mrb[0].mxu0 %v2103_v32  ;;  %v2182_v31 = vld [vmem:[%s2843_s1 + $0x1b8] sm:$0xff]   ;;  %v2189_v32 = vld [vmem:[%s2843_s1 + $0x200] sm:$0xff]  }
  0x24   :  { %1168 = vmatmul.mubr.bf16.vlgmr.msra.gmra.mrb[0].mxu1 %v2106_v34  ;;  %1880 = vmatpush3.bf16.msra.mxu0 %v2110_v37  ;;  %v2185_v33 = vld [vmem:[%s2844_s0 + $0x14] ss:$36 sps:$4 sm:$0xff]   ;;  %v2188_v34 = vld [vmem:[%s2844_s0 + $0x1c] ss:$36 sps:$4 sm:$0xff]  }
  0x25   :  { %1078 = vmatprep.mubr.bf16.mxu0 %v2111_v38  ;;  %1175 = vmatprep.mubr.bf16.mxu1 %v2113_v39  ;;  %v2186_v36 = vld [vmem:[%s2844_s0 + $0x18] ss:$36 sps:$4 sm:$0xff]   ;;  %v2192_v38 = vld [vmem:[%s2844_s0 + $0x64] ss:$36 sps:$4 sm:$0xff]  }
  0x26   :  { %1881 = vmatprep.subr.bf16.mxu0 %v2117_v42  ;;  %1944 = vmatpush3.bf16.msra.mxu1 %v2128_v50  ;;  %v2190_v37 = vld [vmem:[%s2844_s0 + $0x5c] ss:$36 sps:$4 sm:$0xff]   ;;  %v2196_v39 = vld [vmem:[%s2843_s1 + $0x208] sm:$0xff]   ;;  %v2206_v50 = vld [vmem:[%s2844_s0 + $0xf4] ss:$36 sps:$4 sm:$0xff]  }
  0x27   :  { %1945 = vmatprep.subr.bf16.mxu1 %v2136_v55  ;;  %v2195_v42 = vld [vmem:[%s2844_s0 + $0x60] ss:$36 sps:$4 sm:$0xff]   ;;  %v2211_v55 = vld [vmem:[%s2844_s0 + $0x134] ss:$36 sps:$4 sm:$0xff]  }
  0x28   :  { %1882 = vmatpush3.bf16.msra.mxu0 %v2118_v43  ;;  %v2197_v43 = vld [vmem:[%s2844_s0 + $0xa4] ss:$36 sps:$4 sm:$0xff]  }
  0x29   :  { %1883 = vmatprep.subr.bf16.mxu0 %v2125_v46  ;;  %v2217_v46 = vld [vmem:[%s2843_s1 + $0x220] sm:$0xff]  }
  0x2a   :  { %1946 = vmatpush3.bf16.msra.mxu1 %v2138_v57  ;;  %v2238_v57 = vld [vmem:[%s2843_s1 + $0x238] sm:$0xff]  }
  0x2b   :  { %1079 = vmatmul.mubr.bf16.gmra.mrb[4].mxu0 %v2115_v40  ;;  %1947 = vmatprep.subr.bf16.mxu1 %v2146_v63  ;;  %v2203_v40 = vld [vmem:[%s2843_s1 + $0x210] sm:$0xff]   ;;  %v2223_v63 = vld [vmem:[%s2844_s0 + $0x180] ss:$36 sps:$4 sm:$0xff]  }
  0x2c   :  { %1176 = vmatmul.mubr.bf16.gmra.mrb[4].mxu1 %v2116_v41  ;;  %1086 = vmatprep.mubr.bf16.mxu0 %v2119_v44  ;;  %v2194_v41 = vld [vmem:[%s2844_s0 + $0x58] ss:$36 sps:$4 sm:$0xff]   ;;  %v2199_v44 = vld [vmem:[%s2844_s0 + $0xac] ss:$36 sps:$4 sm:$0xff]  }
  0x2d   :  { %1183 = vmatprep.mubr.bf16.mxu1 %v2121_v45  ;;  %1884 = vmatpush3.bf16.msra.mxu0 %v2127_v49  ;;  %v2210_v45 = vld [vmem:[%s2843_s1 + $0x218] sm:$0xff]   ;;  %v2204_v49 = vld [vmem:[%s2844_s0 + $0xec] ss:$36 sps:$4 sm:$0xff]  }
  0x2e   :  { %1885 = vmatprep.subr.bf16.mxu0 %v2135_v54  ;;  %1948 = vmatpush3.bf16.msra.mxu1 %v2148_v1  ;;  %v2209_v54 = vld [vmem:[%s2844_s0 + $0xf0] ss:$36 sps:$4 sm:$0xff]  }
  0x2f   :  { %1949 = vmatprep.subr.bf16.mxu1 %v2156_v7  ;;  %v2227_v1 = vld [vmem:[%s2844_s0 + $0x1cc] ss:$36 sps:$4 sm:$0xff]  }
  0x30   :  { %v2237_v7 = vld [vmem:[%s2844_s0 + $0x210] ss:$36 sps:$4 sm:$0xff]  }
  0x31   :  { %1886 = vmatpush3.bf16.msra.mxu0 %v2137_v56  ;;  %v2213_v56 = vld [vmem:[%s2844_s0 + $0x13c] ss:$36 sps:$4 sm:$0xff]  }
  0x32   :  { %1887 = vmatprep.subr.bf16.mxu0 %v2145_v62  ;;  %1950 = vmatpush3.bf16.msra.mxu1 %v2158_v9  ;;  %v2222_v62 = vld [vmem:[%s2844_s0 + $0x178] ss:$36 sps:$4 sm:$0xff]   ;;  %v2240_v9 = vld [vmem:[%s2844_s0 + $0x140] ss:$36 sps:$4 sm:$0xff]  }
  0x33   :  { %1087 = vmatmul.mubr.bf16.gmra.mrb[8].mxu0 %v2123_v48  ;;  %1951 = vmatprep.subr.bf16.mxu1 %v2166_v15  ;;  %v2202_v48 = vld [vmem:[%s2844_s0 + $0xa8] ss:$36 sps:$4 sm:$0xff]   ;;  %v2246_v15 = vld [vmem:[%s2844_s0 + $0x218] ss:$36 sps:$4 sm:$0xff]  }
  0x34   :  { %1184 = vmatmul.mubr.bf16.gmra.mrb[8].mxu1 %v2124_v51  ;;  %1094 = vmatprep.mubr.bf16.mxu0 %v2129_v52  ;;  %v2224_v51 = vld [vmem:[%s2843_s1 + $0x228] sm:$0xff]  }
  0x35   :  { %1191 = vmatprep.mubr.bf16.mxu1 %v2131_v53  ;;  %1888 = vmatpush3.bf16.msra.mxu0 %v2147_v0  ;;  %v2208_v52 = vld [vmem:[%s2844_s0 + $0xe8] ss:$36 sps:$4 sm:$0xff]   ;;  %v2231_v53 = vld [vmem:[%s2843_s1 + $0x230] sm:$0xff]  }
  0x36   :  { %1889 = vmatprep.subr.bf16.mxu0 %v2155_v6  ;;  %1952 = vmatpush3.bf16.msra.mxu1 %v2168_v17  ;;  %v2225_v0 = vld [vmem:[%s2844_s0 + $0x1c4] ss:$36 sps:$4 sm:$0xff]  }
  0x37   :  { %1953 = vmatprep.subr.bf16.mxu1 %v2169_v18  ;;  %v2236_v6 = vld [vmem:[%s2844_s0 + $0x208] ss:$36 sps:$4 sm:$0xff]  }
  0x39   :  { %1890 = vmatpush3.bf16.msra.mxu0 %v2157_v8  ;;  %v2239_v8 = vld [vmem:[%s2844_s0 + $0x20] ss:$36 sps:$4 sm:$0xff]  }
  0x3a   :  { %1891 = vmatprep.subr.bf16.mxu0 %v2165_v13  ;;  %1954 = vmatpush3.bf16.msra.mxu1 %v2170_v19  ;;  %v2244_v13 = vld [vmem:[%s2844_s0 + $0x1d0] ss:$36 sps:$4 sm:$0xff]  }
  0x3b   :  { %1095 = vmatmul.mubr.bf16.gmra.mrb[12].mxu0 %v2133_v58  ;;  %1955 = vmatprep.subr.bf16.mxu1 %v2178_v25  ;;  %v2215_v58 = vld [vmem:[%s2844_s0 + $0x130] ss:$36 sps:$4 sm:$0xff]  }
  0x3c   :  { %1192 = vmatmul.mubr.bf16.gmra.mrb[12].mxu1 %v2134_v59  ;;  %1102 = vmatprep.mubr.bf16.mxu0 %v2139_v60  ;;  %v2216_v59 = vld [vmem:[%s2844_s0 + $0x138] ss:$36 sps:$4 sm:$0xff]  }
  0x3d   :  { %1199 = vmatprep.mubr.bf16.mxu1 %v2141_v61  ;;  %1892 = vmatpush3.bf16.msra.mxu0 %v2167_v16  ;;  %v2218_v60 = vld [vmem:[%s2844_s0 + $0x17c] ss:$36 sps:$4 sm:$0xff]   ;;  %v2220_v61 = vld [vmem:[%s2844_s0 + $0x184] ss:$36 sps:$4 sm:$0xff]  }
  0x3e   :  { %1893 = vmatprep.subr.bf16.mxu0 %v2177_v24  ;;  %1956 = vmatpush3.bf16.msra.mxu1 %v2180_v27 }
  0x3f   :  { %1957 = vmatprep.subr.bf16.mxu1 %v2181_v28 }
  0x41   :  { %1894 = vmatpush3.bf16.msra.mxu0 %v2179_v26 }
  0x42   :  { %2023 = vmatprep.subr.bf16.mxu0 %v2189_v32  ;;  %1958 = vmatpush3.bf16.msra.mxu1 %v2182_v31 }
  0x43   :  { %1103 = vmatmul.mubr.bf16.gmra.mrb[16].mxu0 %v2143_v2  ;;  %2055 = vmatprep.subr.bf16.mxu1 %v2189_v32  ;;  %v2229_v2 = vld [vmem:[%s2844_s0 + $0x1c0] ss:$36 sps:$4 sm:$0xff]  }
  0x44   :  { %1200 = vmatmul.mubr.bf16.gmra.mrb[16].mxu1 %v2144_v3  ;;  %1110 = vmatprep.mubr.bf16.mxu0 %v2149_v4  ;;  %v2230_v3 = vld [vmem:[%s2844_s0 + $0x1c8] ss:$36 sps:$4 sm:$0xff]  }
  0x45   :  { %1207 = vmatprep.mubr.bf16.mxu1 %v2151_v5  ;;  %v2232_v4 = vld [vmem:[%s2844_s0 + $0x20c] ss:$36 sps:$4 sm:$0xff]   ;;  %v2234_v5 = vld [vmem:[%s2844_s0 + $0x214] ss:$36 sps:$4 sm:$0xff]  }
  0x4b   :  { %1111 = vmatmul.mubr.bf16.gmra.mrb[20].mxu0 %v2153_v10  ;;  %v2241_v10 = vld [vmem:[%s2844_s0 + $0x68] ss:$36 sps:$4 sm:$0xff]  }
  0x4c   :  { %1208 = vmatmul.mubr.bf16.gmra.mrb[20].mxu1 %v2154_v11  ;;  %1118 = vmatprep.mubr.bf16.mxu0 %v2159_v12  ;;  %v2242_v11 = vld [vmem:[%s2844_s0 + $0x188] ss:$36 sps:$4 sm:$0xff]   ;;  %v2243_v12 = vld [vmem:[%s2844_s0 + $0xb0] ss:$36 sps:$4 sm:$0xff]  }
  0x4d   :  { %1215 = vmatprep.mubr.bf16.mxu1 %v2161_v14  ;;  %v2245_v14 = vld [vmem:[%s2844_s0 + $0xf8] ss:$36 sps:$4 sm:$0xff]  }
  0x53   :  { %1119 = vmatmul.mubr.bf16.gmra.mrb[24].mxu0 %v2163_v20 }
  0x54   :  { %1216 = vmatmul.mubr.bf16.gmra.mrb[24].mxu1 %v2164_v21  ;;  %1126 = vmatprep.mubr.bf16.mxu0 %v2171_v22 }
  0x55   :  { %1223 = vmatprep.mubr.bf16.mxu1 %v2173_v23 }
  0x5b   :  { %1127 = vmatmul.mubr.bf16.gmra.mrb[28].mxu0 %v2175_v29 }
  0x5c   :  { %1224 = vmatmul.mubr.bf16.gmra.mrb[28].mxu1 %v2176_v30  ;;  %1264 = vmatprep.mubr.bf16.mxu0 %v2185_v33 }
  0x5d   :  { %1361 = vmatprep.mubr.bf16.mxu1 %v2188_v34 }
  0x63   :  { %1265 = vmatmul.mubr.bf16.vlgmr.msra.gmra.mrb[32].mxu0 %v2183_v35 }
  0x64   :  { %1362 = vmatmul.mubr.bf16.vlgmr.msra.gmra.mrb[32].mxu1 %v2186_v36  ;;  %2024 = vmatpush3.bf16.msra.mxu0 %v2189_v32 }
  0x65   :  { %1272 = vmatprep.mubr.bf16.mxu0 %v2190_v37  ;;  %1369 = vmatprep.mubr.bf16.mxu1 %v2192_v38 }
  0x66   :  { %2025 = vmatprep.subr.bf16.mxu0 %v2196_v39  ;;  %2063 = vmatpush3.bf16.msra.mxu1 %v2189_v32 }
  0x67   :  { %2056 = vmatprep.subr.bf16.mxu1 %v2196_v39 }
  0x68   :  { %2026 = vmatpush3.bf16.msra.mxu0 %v2196_v39 }
  0x69   :  { %2027 = vmatprep.subr.bf16.mxu0 %v2203_v40 }
  0x6a   :  { %2064 = vmatpush3.bf16.msra.mxu1 %v2196_v39 }
  0x6b   :  { %1273 = vmatmul.mubr.bf16.gmra.mrb[36].mxu0 %v2194_v41  ;;  %2057 = vmatprep.subr.bf16.mxu1 %v2203_v40 }
  0x6c   :  { %1370 = vmatmul.mubr.bf16.gmra.mrb[36].mxu1 %v2195_v42  ;;  %1280 = vmatprep.mubr.bf16.mxu0 %v2197_v43 }
  0x6d   :  { %1377 = vmatprep.mubr.bf16.mxu1 %v2199_v44  ;;  %2028 = vmatpush3.bf16.msra.mxu0 %v2203_v40 }
  0x6e   :  { %2029 = vmatprep.subr.bf16.mxu0 %v2210_v45  ;;  %2065 = vmatpush3.bf16.msra.mxu1 %v2203_v40 }
  0x6f   :  { %2058 = vmatprep.subr.bf16.mxu1 %v2210_v45 }
  0x71   :  { %2030 = vmatpush3.bf16.msra.mxu0 %v2210_v45 }
  0x72   :  { %2031 = vmatprep.subr.bf16.mxu0 %v2217_v46  ;;  %2066 = vmatpush3.bf16.msra.mxu1 %v2210_v45 }
  0x73   :  { %1281 = vmatmul.mubr.bf16.gmra.mrb[40].mxu0 %v2201_v47  ;;  %2059 = vmatprep.subr.bf16.mxu1 %v2217_v46 }
  0x74   :  { %1378 = vmatmul.mubr.bf16.gmra.mrb[40].mxu1 %v2202_v48  ;;  %1288 = vmatprep.mubr.bf16.mxu0 %v2204_v49 }
  0x75   :  { %1385 = vmatprep.mubr.bf16.mxu1 %v2206_v50  ;;  %2032 = vmatpush3.bf16.msra.mxu0 %v2217_v46 }
  0x76   :  { %2033 = vmatprep.subr.bf16.mxu0 %v2224_v51  ;;  %2067 = vmatpush3.bf16.msra.mxu1 %v2217_v46 }
  0x77   :  { %2060 = vmatprep.subr.bf16.mxu1 %v2224_v51 }
  0x79   :  { %2034 = vmatpush3.bf16.msra.mxu0 %v2224_v51 }
  0x7a   :  { %2035 = vmatprep.subr.bf16.mxu0 %v2231_v53  ;;  %2068 = vmatpush3.bf16.msra.mxu1 %v2224_v51 }
  0x7b   :  { %1289 = vmatmul.mubr.bf16.gmra.mrb[44].mxu0 %v2208_v52  ;;  %2061 = vmatprep.subr.bf16.mxu1 %v2231_v53 }
  0x7c   :  { %1386 = vmatmul.mubr.bf16.gmra.mrb[44].mxu1 %v2209_v54  ;;  %1296 = vmatprep.mubr.bf16.mxu0 %v2211_v55 }
  0x7d   :  { %1393 = vmatprep.mubr.bf16.mxu1 %v2213_v56  ;;  %2036 = vmatpush3.bf16.msra.mxu0 %v2231_v53 }
  0x7e   :  { %2037 = vmatprep.subr.bf16.mxu0 %v2238_v57  ;;  %2069 = vmatpush3.bf16.msra.mxu1 %v2231_v53 }
  0x7f   :  { %2062 = vmatprep.subr.bf16.mxu1 %v2238_v57 }
  0x81   :  { %2038 = vmatpush3.bf16.msra.mxu0 %v2238_v57 }
  0x82   :  { %2070 = vmatpush3.bf16.msra.mxu1 %v2238_v57 }
  0x83   :  { %1297 = vmatmul.mubr.bf16.gmra.mrb[48].mxu0 %v2215_v58 }
  0x84   :  { %1394 = vmatmul.mubr.bf16.gmra.mrb[48].mxu1 %v2216_v59  ;;  %1304 = vmatprep.mubr.bf16.mxu0 %v2218_v60 }
  0x85   :  { %1401 = vmatprep.mubr.bf16.mxu1 %v2220_v61 }
  0x8b   :  { %1305 = vmatmul.mubr.bf16.gmra.mrb[52].mxu0 %v2222_v62 }
  0x8c   :  { %1402 = vmatmul.mubr.bf16.gmra.mrb[52].mxu1 %v2223_v63  ;;  %1312 = vmatprep.mubr.bf16.mxu0 %v2225_v0 }
  0x8d   :  { %1409 = vmatprep.mubr.bf16.mxu1 %v2227_v1 }
  0x93   :  { %1313 = vmatmul.mubr.bf16.gmra.mrb[56].mxu0 %v2229_v2 }
  0x94   :  { %1410 = vmatmul.mubr.bf16.gmra.mrb[56].mxu1 %v2230_v3  ;;  %1320 = vmatprep.mubr.bf16.mxu0 %v2232_v4 }
  0x95   :  { %1417 = vmatprep.mubr.bf16.mxu1 %v2234_v5 }
  0x9b   :  { %1321 = vmatmul.mubr.bf16.gmra.mrb[60].mxu0 %v2236_v6 }
  0x9c   :  { %1418 = vmatmul.mubr.bf16.gmra.mrb[60].mxu1 %v2237_v7  ;;  %2039 = vmatprep.mubr.bf16.mxu0 %v2239_v8 }
  0x9d   :  { %2047 = vmatprep.mubr.bf16.mxu1 %v2240_v9 }
  0xa3   :  { %2040 = vmatmul.mubr.bf16.vlgmr.msra.gmra.mrb[64].mxu0 %v2241_v10 }
  0xa4   :  { %2048 = vmatmul.mubr.bf16.vlgmr.msra.gmra.mrb[64].mxu1 %v2242_v11  ;;  %2043 = vmatprep.mubr.bf16.mxu0 %v2243_v12 }
  0xa5   :  { %2051 = vmatprep.mubr.bf16.mxu1 %v2244_v13 }
  0xab   :  { %2044 = vmatmul.mubr.bf16.gmra.mrb[68].mxu0 %v2245_v14 }
  0xac   :  { %2052 = vmatmul.mubr.bf16.gmra.mrb[68].mxu1 %v2246_v15 }
  0xf6   :  { %v1767_v16 = vpop.f32.mrb[0].mxu0 }
  0xf7   :  { %v1831_v17 = vpop.f32.mrb[0].mxu1  ;;  %v1768_v18 = vpop.f32.mrb[1].mxu0 }
  0xf8   :  { %v1769_v19 = vadd.f32 %v1768_v18, %v1767_v16  ;;  %v1832_v20 = vpop.f32.mrb[1].mxu1  ;;  %v1770_v21 = vpop.f32.mrb[2].mxu0 }
  0xf9   :  { %v1833_v22 = vadd.f32 %v1832_v20, %v1831_v17  ;;  %v1834_v23 = vpop.f32.mrb[2].mxu1  ;;  %v1771_v24 = vpop.f32.mrb[3].mxu0 }
  0xfa   :  { %v1772_v25 = vadd.f32 %v1771_v24, %v1770_v21  ;;  %v1835_v26 = vpop.f32.mrb[3].mxu1 }
  0xfb   :  { %v2699_v27 = vadd.f32 %v1833_v22, %v1769_v19  ;;  %v1836_v28 = vadd.f32 %v1835_v26, %v1834_v23 }
  0xfd   :  { %v2701_v29 = vadd.f32 %v1836_v28, %v1772_v25 }
  0xfe   :  { %v1773_v30 = vpop.f32.mrb[4].mxu0 }
  0xff   :  { %v1837_v31 = vpop.f32.mrb[4].mxu1  ;;  %v1774_v32 = vpop.f32.mrb[5].mxu0 }
 0x100   :  { %v1775_v33 = vadd.f32 %v1774_v32, %v1773_v30  ;;  %v1838_v34 = vpop.f32.mrb[5].mxu1  ;;  %v1776_v35 = vpop.f32.mrb[6].mxu0 }
 0x101   :  { %v1839_v36 = vadd.f32 %v1838_v34, %v1837_v31  ;;  %v1840_v37 = vpop.f32.mrb[6].mxu1  ;;  %v1777_v38 = vpop.f32.mrb[7].mxu0 }
 0x102   :  { %v1778_v39 = vadd.f32 %v1777_v38, %v1776_v35  ;;  %v1841_v40 = vpop.f32.mrb[7].mxu1 }
 0x103   :  { %v2703_v41 = vadd.f32 %v1839_v36, %v1775_v33  ;;  %v1842_v42 = vadd.f32 %v1841_v40, %v1840_v37 }
 0x105   :  { %v2705_v43 = vadd.f32 %v1842_v42, %v1778_v39 }
 0x106   :  { %v1779_v44 = vpop.f32.mrb[8].mxu0 }
 0x107   :  { %v1843_v45 = vpop.f32.mrb[8].mxu1  ;;  %v1780_v46 = vpop.f32.mrb[9].mxu0 }
 0x108   :  { %v1781_v47 = vadd.f32 %v1780_v46, %v1779_v44  ;;  %v1844_v48 = vpop.f32.mrb[9].mxu1  ;;  %v1782_v49 = vpop.f32.mrb[10].mxu0 }
 0x109   :  { %v1845_v50 = vadd.f32 %v1844_v48, %v1843_v45  ;;  %v1846_v51 = vpop.f32.mrb[10].mxu1  ;;  %v1783_v52 = vpop.f32.mrb[11].mxu0 }
 0x10a   :  { %v1784_v53 = vadd.f32 %v1783_v52, %v1782_v49  ;;  %v1847_v54 = vpop.f32.mrb[11].mxu1 }
 0x10b   :  { %v2707_v55 = vadd.f32 %v1845_v50, %v1781_v47  ;;  %v1848_v56 = vadd.f32 %v1847_v54, %v1846_v51 }
 0x10d   :  { %v2709_v57 = vadd.f32 %v1848_v56, %v1784_v53 }
 0x10e   :  { %v1785_v58 = vpop.f32.mrb[12].mxu0 }
 0x10f   :  { %v1849_v59 = vpop.f32.mrb[12].mxu1  ;;  %v1786_v60 = vpop.f32.mrb[13].mxu0 }
 0x110   :  { %v1787_v61 = vadd.f32 %v1786_v60, %v1785_v58  ;;  %v1850_v62 = vpop.f32.mrb[13].mxu1  ;;  %v1788_v63 = vpop.f32.mrb[14].mxu0 }
 0x111   :  { %v1851_v0 = vadd.f32 %v1850_v62, %v1849_v59  ;;  %v1852_v1 = vpop.f32.mrb[14].mxu1  ;;  %v1789_v2 = vpop.f32.mrb[15].mxu0 }
 0x112   :  { %v1790_v3 = vadd.f32 %v1789_v2, %v1788_v63  ;;  %v1853_v4 = vpop.f32.mrb[15].mxu1 }
 0x113   :  { %v2711_v5 = vadd.f32 %v1851_v0, %v1787_v61  ;;  %v1854_v6 = vadd.f32 %v1853_v4, %v1852_v1 }
 0x115   :  { %v2713_v7 = vadd.f32 %v1854_v6, %v1790_v3 }
 0x116   :  { %v1791_v8 = vpop.f32.mrb[16].mxu0 }
 0x117   :  { %v1855_v9 = vpop.f32.mrb[16].mxu1  ;;  %v1792_v10 = vpop.f32.mrb[17].mxu0 }
 0x118   :  { %v1793_v11 = vadd.f32 %v1792_v10, %v1791_v8  ;;  %v1856_v12 = vpop.f32.mrb[17].mxu1  ;;  %v1794_v13 = vpop.f32.mrb[18].mxu0 }
 0x119   :  { %v1857_v14 = vadd.f32 %v1856_v12, %v1855_v9  ;;  %v1858_v15 = vpop.f32.mrb[18].mxu1  ;;  %v1795_v16 = vpop.f32.mrb[19].mxu0 }
 0x11a   :  { %v1796_v17 = vadd.f32 %v1795_v16, %v1794_v13  ;;  %v1859_v18 = vpop.f32.mrb[19].mxu1 }
 0x11b   :  { %v2715_v19 = vadd.f32 %v1857_v14, %v1793_v11  ;;  %v1860_v20 = vadd.f32 %v1859_v18, %v1858_v15 }
 0x11d   :  { %v2717_v21 = vadd.f32 %v1860_v20, %v1796_v17 }
 0x11e   :  { %v1797_v22 = vpop.f32.mrb[20].mxu0 }
 0x11f   :  { %v1861_v23 = vpop.f32.mrb[20].mxu1  ;;  %v1798_v24 = vpop.f32.mrb[21].mxu0 }
 0x120   :  { %v1799_v25 = vadd.f32 %v1798_v24, %v1797_v22  ;;  %v1862_v26 = vpop.f32.mrb[21].mxu1  ;;  %v1800_v28 = vpop.f32.mrb[22].mxu0 }
 0x121   :  { %v1863_v30 = vadd.f32 %v1862_v26, %v1861_v23  ;;  %v1864_v31 = vpop.f32.mrb[22].mxu1  ;;  %v1801_v32 = vpop.f32.mrb[23].mxu0 }
 0x122   :  { %v1802_v33 = vadd.f32 %v1801_v32, %v1800_v28  ;;  %v1865_v34 = vpop.f32.mrb[23].mxu1 }
 0x123   :  { %v2719_v35 = vadd.f32 %v1863_v30, %v1799_v25  ;;  %v1866_v36 = vadd.f32 %v1865_v34, %v1864_v31 }
 0x125   :  { %v2721_v37 = vadd.f32 %v1866_v36, %v1802_v33 }
 0x126   :  { %v1803_v38 = vpop.f32.mrb[24].mxu0 }
 0x127   :  { %v1867_v39 = vpop.f32.mrb[24].mxu1  ;;  %v1804_v40 = vpop.f32.mrb[25].mxu0 }
 0x128   :  { %v1805_v42 = vadd.f32 %v1804_v40, %v1803_v38  ;;  %v1868_v44 = vpop.f32.mrb[25].mxu1  ;;  %v1806_v45 = vpop.f32.mrb[26].mxu0 }
 0x129   :  { %v1869_v46 = vadd.f32 %v1868_v44, %v1867_v39  ;;  %v1870_v47 = vpop.f32.mrb[26].mxu1  ;;  %v1807_v48 = vpop.f32.mrb[27].mxu0 }
 0x12a   :  { %v1808_v49 = vadd.f32 %v1807_v48, %v1806_v45  ;;  %v1871_v50 = vpop.f32.mrb[27].mxu1 }
 0x12b   :  { %v2723_v51 = vadd.f32 %v1869_v46, %v1805_v42  ;;  %v1872_v52 = vadd.f32 %v1871_v50, %v1870_v47 }
 0x12d   :  { %v2725_v53 = vadd.f32 %v1872_v52, %v1808_v49 }
 0x12e   :  { %v1809_v54 = vpop.f32.mrb[28].mxu0 }
 0x12f   :  { %v1873_v56 = vpop.f32.mrb[28].mxu1  ;;  %v1810_v58 = vpop.f32.mrb[29].mxu0 }
 0x130   :  { %v1811_v59 = vadd.f32 %v1810_v58, %v1809_v54  ;;  %v1874_v60 = vpop.f32.mrb[29].mxu1  ;;  %v1812_v61 = vpop.f32.mrb[30].mxu0 }
 0x131   :  { %v1875_v62 = vadd.f32 %v1874_v60, %v1873_v56  ;;  %v1876_v63 = vpop.f32.mrb[30].mxu1  ;;  %v1813_v0 = vpop.f32.mrb[31].mxu0 }
 0x132   :  { %v1814_v1 = vadd.f32 %v1813_v0, %v1812_v61  ;;  %v1877_v2 = vpop.f32.mrb[31].mxu1 }
 0x133   :  { %v2727_v3 = vadd.f32 %v1875_v62, %v1811_v59  ;;  %v1878_v4 = vadd.f32 %v1877_v2, %v1876_v63 }
 0x135   :  { %v2729_v6 = vadd.f32 %v1878_v4, %v1814_v1 }
 0x136   :  { %v1895_v8 = vpop.f32.mrb[32].mxu0 }
 0x137   :  { %v1896_v9 = vpop.f32.mrb[33].mxu0  ;;  %v1959_v10 = vpop.f32.mrb[32].mxu1 }
 0x138   :  { %v1897_v11 = vadd.f32 %v1896_v9, %v1895_v8  ;;  %v1898_v12 = vpop.f32.mrb[34].mxu0  ;;  %v1960_v13 = vpop.f32.mrb[33].mxu1 }
 0x139   :  { %v1899_v14 = vpop.f32.mrb[35].mxu0  ;;  %v1961_v15 = vadd.f32 %v1960_v13, %v1959_v10  ;;  %v1962_v16 = vpop.f32.mrb[34].mxu1 }
 0x13a   :  { %v1267_v17 = vadd.f32 %v1897_v11, %v2699_v27  ;;  %v1900_v18 = vadd.f32 %v1899_v14, %v1898_v12  ;;  %v1963_v20 = vpop.f32.mrb[35].mxu1 }
 0x13b   :  { %v1964_v22 = vadd.f32 %v1963_v20, %v1962_v16 }
 0x13c   :  { %v1270_v23 = vadd.f32 %v1900_v18, %v2701_v29  ;;  %v2733_v24 = vadd.f32 %v1961_v15, %v1267_v17 }
 0x13e   :  { %v1901_v25 = vpop.f32.mrb[36].mxu0  ;;  %v2735_v26 = vadd.f32 %v1964_v22, %v1270_v23 }
 0x13f   :  { %v1902_v28 = vpop.f32.mrb[37].mxu0  ;;  %v1965_v30 = vpop.f32.mrb[36].mxu1 }
 0x140   :  { %v1903_v31 = vadd.f32 %v1902_v28, %v1901_v25  ;;  %v1904_v32 = vpop.f32.mrb[38].mxu0  ;;  %v1966_v33 = vpop.f32.mrb[37].mxu1 }
 0x141   :  { %v1905_v34 = vpop.f32.mrb[39].mxu0  ;;  %v1967_v36 = vadd.f32 %v1966_v33, %v1965_v30  ;;  %v1968_v38 = vpop.f32.mrb[38].mxu1 }
 0x142   :  { %v1275_v27 = vadd.f32 %v1903_v31, %v2703_v41  ;;  %v1906_v39 = vadd.f32 %v1905_v34, %v1904_v32  ;;  %v1969_v40 = vpop.f32.mrb[39].mxu1 }
 0x143   :  { %v1970_v42 = vadd.f32 %v1969_v40, %v1968_v38 }
 0x144   :  { %v1278_v29 = vadd.f32 %v1906_v39, %v2705_v43  ;;  %v2739_v44 = vadd.f32 %v1967_v36, %v1275_v27 }
 0x146   :  { %v1907_v45 = vpop.f32.mrb[40].mxu0  ;;  %v2741_v46 = vadd.f32 %v1970_v42, %v1278_v29 }
 0x147   :  { %v1908_v47 = vpop.f32.mrb[41].mxu0  ;;  %v1971_v48 = vpop.f32.mrb[40].mxu1 }
 0x148   :  { %v1909_v49 = vadd.f32 %v1908_v47, %v1907_v45  ;;  %v1910_v50 = vpop.f32.mrb[42].mxu0  ;;  %v1972_v52 = vpop.f32.mrb[41].mxu1 }
 0x149   :  { %v1911_v54 = vpop.f32.mrb[43].mxu0  ;;  %v1973_v56 = vadd.f32 %v1972_v52, %v1971_v48  ;;  %v1974_v58 = vpop.f32.mrb[42].mxu1 }
 0x14a   :  { %v1283_v41 = vadd.f32 %v1909_v49, %v2707_v55  ;;  %v1912_v59 = vadd.f32 %v1911_v54, %v1910_v50  ;;  %v1975_v60 = vpop.f32.mrb[43].mxu1 }
 0x14b   :  { %v1976_v61 = vadd.f32 %v1975_v60, %v1974_v58 }
 0x14c   :  { %v1286_v43 = vadd.f32 %v1912_v59, %v2709_v57  ;;  %v2745_v62 = vadd.f32 %v1973_v56, %v1283_v41 }
 0x14e   :  { %v1913_v63 = vpop.f32.mrb[44].mxu0  ;;  %v2747_v0 = vadd.f32 %v1976_v61, %v1286_v43 }
 0x14f   :  { %v1914_v1 = vpop.f32.mrb[45].mxu0  ;;  %v1977_v2 = vpop.f32.mrb[44].mxu1 }
 0x150   :  { %v1915_v4 = vadd.f32 %v1914_v1, %v1913_v63  ;;  %v1916_v8 = vpop.f32.mrb[46].mxu0  ;;  %v1978_v9 = vpop.f32.mrb[45].mxu1 }
 0x151   :  { %v1917_v10 = vpop.f32.mrb[47].mxu0  ;;  %v1979_v11 = vadd.f32 %v1978_v9, %v1977_v2  ;;  %v1980_v12 = vpop.f32.mrb[46].mxu1 }
 0x152   :  { %v1291_v55 = vadd.f32 %v1915_v4, %v2711_v5  ;;  %v1918_v13 = vadd.f32 %v1917_v10, %v1916_v8  ;;  %v1981_v14 = vpop.f32.mrb[47].mxu1 }
 0x153   :  { %v1982_v15 = vadd.f32 %v1981_v14, %v1980_v12 }
 0x154   :  { %v1294_v57 = vadd.f32 %v1918_v13, %v2713_v7  ;;  %v2751_v16 = vadd.f32 %v1979_v11, %v1291_v55 }
 0x156   :  { %v1919_v17 = vpop.f32.mrb[48].mxu0  ;;  %v2753_v18 = vadd.f32 %v1982_v15, %v1294_v57 }
 0x157   :  { %v1920_v20 = vpop.f32.mrb[49].mxu0  ;;  %v1983_v22 = vpop.f32.mrb[48].mxu1 }
 0x158   :  { %v1921_v23 = vadd.f32 %v1920_v20, %v1919_v17  ;;  %v1922_v25 = vpop.f32.mrb[50].mxu0  ;;  %v1984_v28 = vpop.f32.mrb[49].mxu1 }
 0x159   :  { %v1923_v30 = vpop.f32.mrb[51].mxu0  ;;  %v1985_v31 = vadd.f32 %v1984_v28, %v1983_v22  ;;  %v1986_v32 = vpop.f32.mrb[50].mxu1 }
 0x15a   :  { %v1299_v5 = vadd.f32 %v1921_v23, %v2715_v19  ;;  %v1924_v33 = vadd.f32 %v1923_v30, %v1922_v25  ;;  %v1987_v34 = vpop.f32.mrb[51].mxu1 }
 0x15b   :  { %v1988_v36 = vadd.f32 %v1987_v34, %v1986_v32 }
 0x15c   :  { %v1302_v7 = vadd.f32 %v1924_v33, %v2717_v21  ;;  %v1396_v38 = vadd.f32 %v1985_v31, %v1299_v5 }
 0x15e   :  { %v1925_v27 = vpop.f32.mrb[52].mxu0  ;;  %v2757_v39 = vadd.f32 %v1988_v36, %v1302_v7 }
 0x15f   :  { %v1926_v40 = vpop.f32.mrb[53].mxu0  ;;  %v1989_v42 = vpop.f32.mrb[52].mxu1 }
 0x160   :  { %v1927_v29 = vadd.f32 %v1926_v40, %v1925_v27  ;;  %v1928_v45 = vpop.f32.mrb[54].mxu0  ;;  %v1990_v47 = vpop.f32.mrb[53].mxu1 }
 0x161   :  { %v1929_v48 = vpop.f32.mrb[55].mxu0  ;;  %v1991_v49 = vadd.f32 %v1990_v47, %v1989_v42  ;;  %v1992_v50 = vpop.f32.mrb[54].mxu1 }
 0x162   :  { %v1307_v52 = vadd.f32 %v1927_v29, %v2719_v35  ;;  %v1930_v19 = vadd.f32 %v1929_v48, %v1928_v45  ;;  %v1993_v54 = vpop.f32.mrb[55].mxu1 }
 0x163   :  { %v1994_v56 = vadd.f32 %v1993_v54, %v1992_v50 }
 0x164   :  { %v1310_v58 = vadd.f32 %v1930_v19, %v2721_v37  ;;  %v1404_v21 = vadd.f32 %v1991_v49, %v1307_v52 }
 0x166   :  { %v1931_v41 = vpop.f32.mrb[56].mxu0  ;;  %v1407_v59 = vadd.f32 %v1994_v56, %v1310_v58 }
 0x167   :  { %v1932_v60 = vpop.f32.mrb[57].mxu0  ;;  %v1995_v61 = vpop.f32.mrb[56].mxu1 }
 0x168   :  { %v1933_v43 = vadd.f32 %v1932_v60, %v1931_v41  ;;  %v1934_v63 = vpop.f32.mrb[58].mxu0  ;;  %v1996_v1 = vpop.f32.mrb[57].mxu1 }
 0x169   :  { %v1935_v2 = vpop.f32.mrb[59].mxu0  ;;  %v1997_v4 = vadd.f32 %v1996_v1, %v1995_v61  ;;  %v1998_v8 = vpop.f32.mrb[58].mxu1 }
 0x16a   :  { %v1315_v9 = vadd.f32 %v1933_v43, %v2723_v51  ;;  %v1936_v10 = vadd.f32 %v1935_v2, %v1934_v63  ;;  %v1999_v35 = vpop.f32.mrb[59].mxu1 }
 0x16b   :  { %v2000_v11 = vadd.f32 %v1999_v35, %v1998_v8 }
 0x16c   :  { %v1318_v12 = vadd.f32 %v1936_v10, %v2725_v53  ;;  %v1412_v55 = vadd.f32 %v1997_v4, %v1315_v9 }
 0x16e   :  { %v1937_v37 = vpop.f32.mrb[60].mxu0  ;;  %v2763_v13 = vadd.f32 %v2000_v11, %v1318_v12 }
 0x16f   :  { %v1938_v14 = vpop.f32.mrb[61].mxu0  ;;  %v2001_v15 = vpop.f32.mrb[60].mxu1 }
 0x170   :  { %v1939_v57 = vadd.f32 %v1938_v14, %v1937_v37  ;;  %v1940_v17 = vpop.f32.mrb[62].mxu0  ;;  %v2002_v20 = vpop.f32.mrb[61].mxu1 }
 0x171   :  { %v1941_v22 = vpop.f32.mrb[63].mxu0  ;;  %v2003_v23 = vadd.f32 %v2002_v20, %v2001_v15  ;;  %v2004_v25 = vpop.f32.mrb[62].mxu1 }
 0x172   :  { %v1323_v28 = vadd.f32 %v1939_v57, %v2727_v3  ;;  %v1942_v51 = vadd.f32 %v1941_v22, %v1940_v17  ;;  %v2005_v30 = vpop.f32.mrb[63].mxu1 }
 0x173   :  { %v2006_v31 = vadd.f32 %v2005_v30, %v2004_v25 }
 0x174   :  { %v1326_v32 = vadd.f32 %v1942_v51, %v2729_v6  ;;  %v1420_v53 = vadd.f32 %v2003_v23, %v1323_v28 }
 0x176   :  { %v2041_v5 = vpop.f32.mrb[64].mxu0  ;;  %v1423_v33 = vadd.f32 %v2006_v31, %v1326_v32 }
 0x177   :  { %v1469_v34 = vadd.f32 %v2041_v5, %v2739_v44  ;;  %v2049_v36 = vpop.f32.mrb[64].mxu1  ;;  %v1460_v7 = vpop.f32.mrb[65].mxu0 }
 0x178   :  { %v2768_v27 = vadd.f32 %v2049_v36, %v1404_v21  ;;  %v1461_v40 = vadd.f32 %v1460_v7, %v2733_v24  ;;  %v1492_v42 = vpop.f32.mrb[65].mxu1  ;;  %v2042_v29 = vpop.f32.mrb[66].mxu0 }
 0x179   :  { %1525 = vst [vmem:[%s2845_s2 + $0x10] sm:$0xff] %v1469_v34  ;;  %v1493_v3 = vadd.f32 %v1492_v42, %v1396_v38  ;;  %v1472_v6 = vadd.f32 %v2042_v29, %v2741_v46  ;;  %v2050_v45 = vpop.f32.mrb[66].mxu1  ;;  %v1463_v47 = vpop.f32.mrb[67].mxu0  ;;  %v1563_v50 = vmul.f32 %v1469_v34, %v1469_v34 }
 0x17a   :  { %1533 = vst [vmem:[%s2845_s2 + $0x50] sm:$0xff] %v2768_v27  ;;  %1523 = vst [vmem:[%s2845_s2] sm:$0xff] %v1461_v40  ;;  %v2782_v24 = vadd.f32 %v2050_v45, %v1407_v59  ;;  %v1464_v44 = vadd.f32 %v1463_v47, %v2735_v26  ;;  %v1495_v48 = vpop.f32.mrb[67].mxu1  ;;  %v1561_v38 = vmul.f32 %v1461_v40, %v1461_v40 }
 0x17b   :  { %1531 = vst [vmem:[%s2845_s2 + $0x40] sm:$0xff] %v1493_v3  ;;  %1526 = vst [vmem:[%s2845_s2 + $0x18] sm:$0xff] %v1472_v6  ;;  %v1496_v46 = vadd.f32 %v1495_v48, %v2757_v39  ;;  %v1564_v54 = vmul.f32 %v1472_v6, %v1472_v6  ;;  %v1569_v20 = vmul.f32 %v1493_v3, %v1493_v3 }
 0x17c   :  { %1534 = vst [vmem:[%s2845_s2 + $0x58] sm:$0xff] %v2782_v24  ;;  %1524 = vst [vmem:[%s2845_s2 + $0x8] sm:$0xff] %v1464_v44  ;;  %v1539_v26 = vadd.f32 %v1464_v44, %v1461_v40  ;;  %v1562_v49 = vmul.f32 %v1464_v44, %v1464_v44  ;;  %v1571_v30 = vmul.f32 %v2768_v27, %v2768_v27 }
 0x17d   :  { %1532 = vst [vmem:[%s2845_s2 + $0x48] sm:$0xff] %v1496_v46  ;;  %v1570_v25 = vmul.f32 %v1496_v46, %v1496_v46 }
 0x17e   :  { %v1540_v52 = vadd.f32 %v1539_v26, %v1469_v34  ;;  %v1577_v19 = vadd.f32 %v1562_v49, %v1561_v38  ;;  %v2045_v39 = vpop.f32.mrb[68].mxu0 }
 0x17f   :  { %v1485_v56 = vadd.f32 %v2045_v39, %v2751_v16  ;;  %v2053_v58 = vpop.f32.mrb[68].mxu1  ;;  %v1476_v21 = vpop.f32.mrb[69].mxu0 }
 0x180   :  { %v1578_v41 = vadd.f32 %v1577_v19, %v1563_v50  ;;  %v1517_v59 = vadd.f32 %v2053_v58, %v1420_v53  ;;  %v1477_v60 = vadd.f32 %v1476_v21, %v2745_v62  ;;  %v1541_v61 = vadd.f32 %v1540_v52, %v1472_v6  ;;  %v1508_v43 = vpop.f32.mrb[69].mxu1  ;;  %v2046_v63 = vpop.f32.mrb[70].mxu0 }
 0x181   :  { %1529 = vst [vmem:[%s2845_s2 + $0x30] sm:$0xff] %v1485_v56  ;;  %v1509_v1 = vadd.f32 %v1508_v43, %v1412_v55  ;;  %v1488_v2 = vadd.f32 %v2046_v63, %v2753_v18  ;;  %v2054_v4 = vpop.f32.mrb[70].mxu1  ;;  %v1479_v8 = vpop.f32.mrb[71].mxu0  ;;  %v1567_v14 = vmul.f32 %v1485_v56, %v1485_v56  ;;  %v1572_v53 = vmul.f32 %v2782_v24, %v2782_v24 }
 0x182   :  { %1537 = vst [vmem:[%s2845_s2 + $0x70] sm:$0xff] %v1517_v59  ;;  %1527 = vst [vmem:[%s2845_s2 + $0x20] sm:$0xff] %v1477_v60  ;;  %v1542_v62 = vadd.f32 %v1541_v61, %v1477_v60  ;;  %v1565_v16 = vmul.f32 %v1477_v60, %v1477_v60  ;;  %v1579_v9 = vadd.f32 %v1578_v41, %v1564_v54  ;;  %v1511_v10 = vpop.f32.mrb[71].mxu1 }
 0x183   :  { %1535 = vst [vmem:[%s2845_s2 + $0x60] sm:$0xff] %v1509_v1  ;;  %1530 = vst [vmem:[%s2845_s2 + $0x38] sm:$0xff] %v1488_v2  ;;  %v1520_v18 = vadd.f32 %v2054_v4, %v1423_v33  ;;  %v1480_v35 = vadd.f32 %v1479_v8, %v2747_v0  ;;  %v1512_v12 = vadd.f32 %v1511_v10, %v2763_v13 }
 0x184   :  { %v1580_v11 = vadd.f32 %v1579_v9, %v1565_v16  ;;  %v1568_v57 = vmul.f32 %v1488_v2, %v1488_v2  ;;  %v1573_v34 = vmul.f32 %v1509_v1, %v1509_v1 }
 0x185   :  { %1538 = vst [vmem:[%s2845_s2 + $0x78] sm:$0xff] %v1520_v18  ;;  %1528 = vst [vmem:[%s2845_s2 + $0x28] sm:$0xff] %v1480_v35  ;;  %v1543_v55 = vadd.f32 %v1542_v62, %v1480_v35  ;;  %v1566_v37 = vmul.f32 %v1480_v35, %v1480_v35  ;;  %v1574_v42 = vmul.f32 %v1512_v12, %v1512_v12 }
 0x186   :  { %1536 = vst [vmem:[%s2845_s2 + $0x68] sm:$0xff] %v1512_v12  ;;  %v1576_v47 = vmul.f32 %v1520_v18, %v1520_v18 }
 0x187   :  { %v1544_v15 = vadd.f32 %v1543_v55, %v1485_v56  ;;  %v1581_v0 = vadd.f32 %v1580_v11, %v1566_v37 }
 0x189   :  { %v1545_v17 = vadd.f32 %v1544_v15, %v1488_v2  ;;  %v1582_v13 = vadd.f32 %v1581_v0, %v1567_v14 }
 0x18b   :  { %v1546_v22 = vadd.f32 %v1545_v17, %v1493_v3  ;;  %v1583_v23 = vadd.f32 %v1582_v13, %v1568_v57  ;;  %v1575_v3 = vmul.f32 %v1517_v59, %v1517_v59 }
 0x18d   :  { %v1584_v28 = vadd.f32 %v1583_v23, %v1569_v20  ;;  %v1547_v51 = vadd.f32 %v1546_v22, %v1496_v46 }
 0x18f   :  { %v1548_v31 = vadd.f32 %v1547_v51, %v2768_v27  ;;  %v1585_v32 = vadd.f32 %v1584_v28, %v1570_v25 }
 0x191   :  { %v1549_v5 = vadd.f32 %v1548_v31, %v2782_v24  ;;  %v1586_v33 = vadd.f32 %v1585_v32, %v1571_v30 }
 0x193   :  { %v1550_v36 = vadd.f32 %v1549_v5, %v1509_v1  ;;  %v1587_v7 = vadd.f32 %v1586_v33, %v1572_v53 }
 0x195   :  { %v1551_v40 = vadd.f32 %v1550_v36, %v1512_v12  ;;  %v1588_v29 = vadd.f32 %v1587_v7, %v1573_v34 }
 0x197   :  { %v1552_v6 = vadd.f32 %v1551_v40, %v1517_v59  ;;  %v1589_v45 = vadd.f32 %v1588_v29, %v1574_v42 }
 0x199   :  { %v1553_v44 = vadd.f32 %v1552_v6, %v1520_v18  ;;  %v1590_v48 = vadd.f32 %v1589_v45, %v1575_v3 }
 0x19b   :  { %v1554_v27 = vrot.slane %v1553_v44, 4  ;;  %v1591_v46 = vadd.f32 %v1590_v48, %v1576_v47 }
 0x19d   :  { %v1555_v38 = vadd.f32 %v1554_v27, %v1553_v44  ;;  %v1592_v26 = vrot.slane %v1591_v46, 4 }
 0x19f   :  { %v1556_v49 = vrot.slane %v1555_v38, 2  ;;  %v1593_v50 = vadd.f32 %v1592_v26, %v1591_v46 }
 0x1a1   :  { %v1557_v24 = vadd.f32 %v1556_v49, %v1555_v38  ;;  %v1594_v52 = vrot.slane %v1593_v50, 2 }
 0x1a3   :  { %v1558_v19 = vrot.slane %v1557_v24, 1  ;;  %v1595_v39 = vadd.f32 %v1594_v52, %v1593_v50 }
 0x1a5   :  { %v1559_v54 = vadd.f32 %v1558_v19, %v1557_v24  ;;  %v1596_v56 = vrot.slane %v1595_v39, 1 }
 0x1a7   :  { %1560 = vst [vmem:[%s2846_s3] sm:$0x1] %v1559_v54  ;;  %v1597_v58 = vadd.f32 %v1596_v56, %v1595_v39 }
 0x1a9   :  { %1598 = vst [vmem:[%s2846_s3 + $0x1] sm:$0x1] %v1597_v58 }

// kernel: encoder_forward.37
= control target key start
LH: loop header
LB: loop body
LE: loop exit
PB: predicated region body
PF: predicated region fallthrough
CT: control target
= control target key end

     0   :  { %s104_s0 = inlined_call_operand.vmem [shape: f32[32,128], index: 0, kind: input, shape index: {}, may-alias: {0,3}]   ;;  %s105_s1 = inlined_call_operand.vmem [shape: f32[1,128], index: 1, kind: input, shape index: {}]   ;;  %s106_s2 = inlined_call_operand.vmem [shape: f32[1,128], index: 2, kind: input, shape index: {}]   ;;  %s107_s3 = inlined_call_operand.vmem [shape: f32[32,128], index: 3, kind: output, shape index: {}, may-alias: {0,3}]  }
   0x1   :  { %v14_v0 = vld [vmem:[%s104_s0] sm:$0xff]  ;;  %v15_v4 = vld [vmem:[%s104_s0 + $0x8] sm:$0xff]  ;;  %v16_v5 = vld [vmem:[%s104_s0 + $0x10] sm:$0xff] }
   0x2   :  { %v52_v1 = vld [vmem:[%s105_s1] ss:$0 sm:$0xff]  ;;  %v17_v6 = vld [vmem:[%s104_s0 + $0x18] sm:$0xff] }
   0x3   :  { %v53_v2 = vld [vmem:[%s106_s2] ss:$0 sm:$0xff]  ;;  %v25_v3 = vmul.f32 %v52_v1, %v14_v0  ;;  %v26_v7 = vmul.f32 %v52_v1, %v15_v4  ;;  %v27_v8 = vmul.f32 %v52_v1, %v16_v5  ;;  %v28_v9 = vmul.f32 %v52_v1, %v17_v6 }
   0x5   :  { %v36_v10 = vadd.f32 %v53_v2, %v25_v3  ;;  %v37_v11 = vadd.f32 %v53_v2, %v26_v7  ;;  %v38_v12 = vadd.f32 %v53_v2, %v27_v8  ;;  %v39_v13 = vadd.f32 %v53_v2, %v28_v9 }
   0x7   :  { %v40_v14 = vmax.f32 %v36_v10, 0.0  ;;  %v41_v15 = vmax.f32 %v37_v11, 0.0  ;;  %v42_v16 = vmax.f32 %v38_v12, 0.0  ;;  %v43_v17 = vmax.f32 %v39_v13, 0.0 }
   0x9   :  { %44 = vst [vmem:[%s107_s3] sm:$0xff] %v40_v14  ;;  %45 = vst [vmem:[%s107_s3 + $0x8] sm:$0xff] %v41_v15 }
   0xa   :  { %46 = vst [vmem:[%s107_s3 + $0x10] sm:$0xff] %v42_v16  ;;  %47 = vst [vmem:[%s107_s3 + $0x18] sm:$0xff] %v43_v17 }

// kernel: encoder_forward.36
= control target key start
LH: loop header
LB: loop body
LE: loop exit
PB: predicated region body
PF: predicated region fallthrough
CT: control target
= control target key end

     0   :  { %s1621_s1 = inlined_call_operand.vmem [shape: bf16[1152,128], index: 1, kind: input, shape index: {}]   ;;  %s1622_s0 = inlined_call_operand.vmem [shape: bf16[32,1152], index: 0, kind: input, shape index: {}]   ;;  %s1623_s2 = inlined_call_operand.vmem [shape: f32[32,128], index: 2, kind: output, shape index: {0}]   ;;  %s1624_s3 = inlined_call_operand.vmem [shape: f32[1,2,128], index: 3, kind: output, shape index: {1}]  }
   0x1   :  { %v1215_v0 = vld [vmem:[%s1621_s1 + $0x40] sm:$0xff]   ;;  %v1219_v4 = vld [vmem:[%s1621_s1 + $0x48] sm:$0xff]   ;;  %v1223_v8 = vld [vmem:[%s1621_s1 + $0x50] sm:$0xff]  }
   0x2   :  { %v1216_v1 = vld [vmem:[%s1621_s1 + $0xc0] sm:$0xff]   ;;  %1073 = vmatprep.subr.bf16.mxu0 %v1215_v0  ;;  %v1220_v5 = vld [vmem:[%s1621_s1 + $0xc8] sm:$0xff]   ;;  %v1224_v9 = vld [vmem:[%s1621_s1 + $0xd0] sm:$0xff]  }
   0x3   :  { %v1217_v2 = vld [vmem:[%s1621_s1] sm:$0xff]   ;;  %1101 = vmatprep.subr.bf16.mxu1 %v1216_v1  ;;  %v1221_v6 = vld [vmem:[%s1621_s1 + $0x8] sm:$0xff]   ;;  %v1225_v10 = vld [vmem:[%s1621_s1 + $0x10] sm:$0xff]  }
   0x4   :  { %v1218_v3 = vld [vmem:[%s1621_s1 + $0x80] sm:$0xff]   ;;  %1074 = vmatpush3.bf16.msra.mxu0 %v1217_v2  ;;  %v1222_v7 = vld [vmem:[%s1621_s1 + $0x88] sm:$0xff]   ;;  %v1226_v11 = vld [vmem:[%s1621_s1 + $0x90] sm:$0xff]  }
   0x5   :  { %1102 = vmatpush3.bf16.msra.mxu1 %v1218_v3  ;;  %1075 = vmatprep.subr.bf16.mxu0 %v1219_v4  ;;  %v1227_v12 = vld [vmem:[%s1621_s1 + $0x58] sm:$0xff]   ;;  %v1231_v16 = vld [vmem:[%s1621_s1 + $0x60] sm:$0xff]   ;;  %v1235_v20 = vld [vmem:[%s1621_s1 + $0x68] sm:$0xff]  }
   0x6   :  { %1103 = vmatprep.subr.bf16.mxu1 %v1220_v5  ;;  %v1228_v13 = vld [vmem:[%s1621_s1 + $0xd8] sm:$0xff]   ;;  %v1232_v17 = vld [vmem:[%s1621_s1 + $0xe0] sm:$0xff]   ;;  %v1236_v21 = vld [vmem:[%s1621_s1 + $0xe8] sm:$0xff]  }
   0x7   :  { %v1229_v14 = vld [vmem:[%s1621_s1 + $0x18] sm:$0xff]   ;;  %v1233_v18 = vld [vmem:[%s1621_s1 + $0x20] sm:$0xff]   ;;  %v1237_v22 = vld [vmem:[%s1621_s1 + $0x28] sm:$0xff]  }
   0x8   :  { %1076 = vmatpush3.bf16.msra.mxu0 %v1221_v6  ;;  %v1230_v15 = vld [vmem:[%s1621_s1 + $0x98] sm:$0xff]   ;;  %v1234_v19 = vld [vmem:[%s1621_s1 + $0xa0] sm:$0xff]   ;;  %v1238_v23 = vld [vmem:[%s1621_s1 + $0xa8] sm:$0xff]  }
   0x9   :  { %1104 = vmatpush3.bf16.msra.mxu1 %v1222_v7  ;;  %1077 = vmatprep.subr.bf16.mxu0 %v1223_v8  ;;  %v1239_v24 = vld [vmem:[%s1621_s1 + $0x70] sm:$0xff]   ;;  %v1243_v28 = vld [vmem:[%s1621_s1 + $0x78] sm:$0xff]   ;;  %v1247_v32 = vld [vmem:[%s1622_s0] ss:$36 sps:$4 sm:$0xff]  }
   0xa   :  { %1105 = vmatprep.subr.bf16.mxu1 %v1224_v9  ;;  %v1240_v25 = vld [vmem:[%s1621_s1 + $0xf0] sm:$0xff]   ;;  %v1244_v29 = vld [vmem:[%s1621_s1 + $0xf8] sm:$0xff]   ;;  %v1249_v33 = vld [vmem:[%s1622_s0 + $0x4] ss:$36 sps:$4 sm:$0xff]  }
   0xb   :  { %v1241_v26 = vld [vmem:[%s1621_s1 + $0x30] sm:$0xff]   ;;  %v1245_v30 = vld [vmem:[%s1621_s1 + $0x38] sm:$0xff]   ;;  %v1250_v34 = vld [vmem:[%s1622_s0 + $0x8] ss:$36 sps:$4 sm:$0xff]   ;;  %734 = vmatprep.mubr.bf16.mxu0 %v1249_v33 }
   0xc   :  { %1078 = vmatpush3.bf16.msra.mxu0 %v1225_v10  ;;  %v1242_v27 = vld [vmem:[%s1621_s1 + $0xb0] sm:$0xff]   ;;  %v1246_v31 = vld [vmem:[%s1621_s1 + $0xb8] sm:$0xff]   ;;  %v1253_v36 = vld [vmem:[%s1621_s1 + $0x140] sm:$0xff]  }
   0xd   :  { %1106 = vmatpush3.bf16.msra.mxu1 %v1226_v11  ;;  %1079 = vmatprep.subr.bf16.mxu0 %v1227_v12  ;;  %v1252_v35 = vld [vmem:[%s1622_s0 + $0xc] ss:$36 sps:$4 sm:$0xff]   ;;  %v1254_v37 = vld [vmem:[%s1621_s1 + $0x100] sm:$0xff]   ;;  %v1265_v48 = vld [vmem:[%s1621_s1 + $0x158] sm:$0xff]  }
   0xe   :  { %1107 = vmatprep.subr.bf16.mxu1 %v1228_v13  ;;  %783 = vmatprep.mubr.bf16.mxu1 %v1252_v35  ;;  %v1255_v38 = vld [vmem:[%s1621_s1 + $0x1c0] sm:$0xff]   ;;  %v1257_v40 = vld [vmem:[%s1621_s1 + $0x148] sm:$0xff]   ;;  %v1261_v44 = vld [vmem:[%s1621_s1 + $0x150] sm:$0xff]  }
   0xf   :  { %v1256_v39 = vld [vmem:[%s1621_s1 + $0x180] sm:$0xff]   ;;  %v1258_v41 = vld [vmem:[%s1621_s1 + $0x108] sm:$0xff]   ;;  %v1262_v45 = vld [vmem:[%s1621_s1 + $0x110] sm:$0xff]  }
  0x10   :  { %1080 = vmatpush3.bf16.msra.mxu0 %v1229_v14  ;;  %v1259_v42 = vld [vmem:[%s1621_s1 + $0x1c8] sm:$0xff]   ;;  %v1263_v46 = vld [vmem:[%s1621_s1 + $0x1d0] sm:$0xff]   ;;  %v1266_v49 = vld [vmem:[%s1621_s1 + $0x118] sm:$0xff]  }
  0x11   :  { %1108 = vmatpush3.bf16.msra.mxu1 %v1230_v15  ;;  %1081 = vmatprep.subr.bf16.mxu0 %v1231_v16  ;;  %v1260_v43 = vld [vmem:[%s1621_s1 + $0x188] sm:$0xff]   ;;  %v1264_v47 = vld [vmem:[%s1621_s1 + $0x190] sm:$0xff]   ;;  %v1267_v50 = vld [vmem:[%s1621_s1 + $0x1d8] sm:$0xff]  }
  0x12   :  { %1109 = vmatprep.subr.bf16.mxu1 %v1232_v17  ;;  %v1268_v51 = vld [vmem:[%s1621_s1 + $0x198] sm:$0xff]   ;;  %v1269_v52 = vld [vmem:[%s1621_s1 + $0x160] sm:$0xff]   ;;  %v1273_v56 = vld [vmem:[%s1621_s1 + $0x168] sm:$0xff]  }
  0x13   :  { %v1270_v53 = vld [vmem:[%s1621_s1 + $0x120] sm:$0xff]   ;;  %v1274_v57 = vld [vmem:[%s1622_s0 + $0x4c] ss:$36 sps:$4 sm:$0xff]   ;;  %v1276_v58 = vld [vmem:[%s1622_s0 + $0x54] ss:$36 sps:$4 sm:$0xff]  }
  0x14   :  { %1082 = vmatpush3.bf16.msra.mxu0 %v1233_v18  ;;  %v1271_v54 = vld [vmem:[%s1621_s1 + $0x1e0] sm:$0xff]   ;;  %v1278_v59 = vld [vmem:[%s1621_s1 + $0x128] sm:$0xff]   ;;  %v1280_v61 = vld [vmem:[%s1622_s0 + $0x50] ss:$36 sps:$4 sm:$0xff]  }
  0x15   :  { %1110 = vmatpush3.bf16.msra.mxu1 %v1234_v19  ;;  %1083 = vmatprep.subr.bf16.mxu0 %v1235_v20  ;;  %v1272_v55 = vld [vmem:[%s1621_s1 + $0x1a0] sm:$0xff]   ;;  %v1279_v60 = vld [vmem:[%s1622_s0 + $0x48] ss:$36 sps:$4 sm:$0xff]   ;;  %v1283_v0 = vld [vmem:[%s1621_s1 + $0x170] sm:$0xff]  }
  0x16   :  { %1111 = vmatprep.subr.bf16.mxu1 %v1236_v21  ;;  %v1281_v62 = vld [vmem:[%s1621_s1 + $0x1e8] sm:$0xff]   ;;  %v1284_v1 = vld [vmem:[%s1621_s1 + $0x130] sm:$0xff]   ;;  %v1287_v4 = vld [vmem:[%s1621_s1 + $0x178] sm:$0xff]  }
  0x17   :  { %v1282_v63 = vld [vmem:[%s1621_s1 + $0x1a8] sm:$0xff]   ;;  %v1285_v2 = vld [vmem:[%s1621_s1 + $0x1f0] sm:$0xff]   ;;  %v1288_v5 = vld [vmem:[%s1621_s1 + $0x138] sm:$0xff]  }
  0x18   :  { %1084 = vmatpush3.bf16.msra.mxu0 %v1237_v22  ;;  %v1286_v3 = vld [vmem:[%s1621_s1 + $0x1b0] sm:$0xff]   ;;  %v1289_v6 = vld [vmem:[%s1621_s1 + $0x1f8] sm:$0xff]   ;;  %v1294_v10 = vld [vmem:[%s1621_s1 + $0x200] sm:$0xff]  }
  0x19   :  { %1112 = vmatpush3.bf16.msra.mxu1 %v1238_v23  ;;  %1085 = vmatprep.subr.bf16.mxu0 %v1239_v24  ;;  %v1290_v7 = vld [vmem:[%s1622_s0 + $0x10] ss:$36 sps:$4 sm:$0xff]   ;;  %v1293_v9 = vld [vmem:[%s1621_s1 + $0x1b8] sm:$0xff]   ;;  %v1298_v13 = vld [vmem:[%s1621_s1 + $0x208] sm:$0xff]  }
  0x1a   :  { %1113 = vmatprep.subr.bf16.mxu1 %v1240_v25  ;;  %v1292_v8 = vld [vmem:[%s1622_s0 + $0x14] ss:$36 sps:$4 sm:$0xff]   ;;  %v1297_v12 = vld [vmem:[%s1622_s0 + $0x1c] ss:$36 sps:$4 sm:$0xff]   ;;  %v1303_v17 = vld [vmem:[%s1622_s0 + $0x64] ss:$36 sps:$4 sm:$0xff]  }
  0x1b   :  { %v1295_v11 = vld [vmem:[%s1622_s0 + $0x18] ss:$36 sps:$4 sm:$0xff]   ;;  %v1302_v16 = vld [vmem:[%s1621_s1 + $0x210] sm:$0xff]   ;;  %v1305_v18 = vld [vmem:[%s1622_s0 + $0x60] ss:$36 sps:$4 sm:$0xff]  }
  0x1c   :  { %1086 = vmatpush3.bf16.msra.mxu0 %v1241_v26  ;;  %v1299_v14 = vld [vmem:[%s1622_s0 + $0x5c] ss:$36 sps:$4 sm:$0xff]   ;;  %v1308_v22 = vld [vmem:[%s1621_s1 + $0x228] sm:$0xff]   ;;  %v1309_v23 = vld [vmem:[%s1621_s1 + $0x230] sm:$0xff]  }
  0x1d   :  { %1114 = vmatpush3.bf16.msra.mxu1 %v1242_v27  ;;  %1087 = vmatprep.subr.bf16.mxu0 %v1243_v28  ;;  %v1301_v15 = vld [vmem:[%s1622_s0 + $0x58] ss:$36 sps:$4 sm:$0xff]   ;;  %v1307_v20 = vld [vmem:[%s1621_s1 + $0x220] sm:$0xff]   ;;  %v1312_v25 = vld [vmem:[%s1622_s0 + $0x68] ss:$36 sps:$4 sm:$0xff]  }
  0x1e   :  { %1115 = vmatprep.subr.bf16.mxu1 %v1244_v29  ;;  %v1306_v19 = vld [vmem:[%s1621_s1 + $0x218] sm:$0xff]   ;;  %v1311_v21 = vld [vmem:[%s1622_s0 + $0x20] ss:$36 sps:$4 sm:$0xff]  }
  0x1f   :  { %v1310_v24 = vld [vmem:[%s1621_s1 + $0x238] sm:$0xff]  }
  0x20   :  { %1088 = vmatpush3.bf16.msra.mxu0 %v1245_v30 }
  0x21   :  { %1116 = vmatpush3.bf16.msra.mxu1 %v1246_v31  ;;  %1129 = vmatprep.subr.bf16.mxu0 %v1253_v36 }
  0x22   :  { %1157 = vmatprep.subr.bf16.mxu1 %v1255_v38 }
  0x23   :  { %735 = vmatmul.mubr.bf16.vlgmr.msra.gmra.mrb[0].mxu0 %v1247_v32 }
  0x24   :  { %784 = vmatmul.mubr.bf16.vlgmr.msra.gmra.mrb[0].mxu1 %v1250_v34  ;;  %1130 = vmatpush3.bf16.msra.mxu0 %v1254_v37 }
  0x25   :  { %1158 = vmatpush3.bf16.msra.mxu1 %v1256_v39  ;;  %1131 = vmatprep.subr.bf16.mxu0 %v1257_v40 }
  0x26   :  { %1159 = vmatprep.subr.bf16.mxu1 %v1259_v42  ;;  %742 = vmatprep.mubr.bf16.mxu0 %v1274_v57 }
  0x27   :  { %791 = vmatprep.mubr.bf16.mxu1 %v1276_v58 }
  0x28   :  { %1132 = vmatpush3.bf16.msra.mxu0 %v1258_v41 }
  0x29   :  { %1160 = vmatpush3.bf16.msra.mxu1 %v1260_v43  ;;  %1133 = vmatprep.subr.bf16.mxu0 %v1261_v44 }
  0x2a   :  { %1161 = vmatprep.subr.bf16.mxu1 %v1263_v46 }
  0x2b   :  { %743 = vmatmul.mubr.bf16.gmra.mrb[4].mxu0 %v1279_v60 }
  0x2c   :  { %1134 = vmatpush3.bf16.msra.mxu0 %v1262_v45  ;;  %792 = vmatmul.mubr.bf16.gmra.mrb[4].mxu1 %v1280_v61 }
  0x2d   :  { %1162 = vmatpush3.bf16.msra.mxu1 %v1264_v47  ;;  %1135 = vmatprep.subr.bf16.mxu0 %v1265_v48 }
  0x2e   :  { %1163 = vmatprep.subr.bf16.mxu1 %v1267_v50  ;;  %832 = vmatprep.mubr.bf16.mxu0 %v1292_v8 }
  0x2f   :  { %881 = vmatprep.mubr.bf16.mxu1 %v1297_v12 }
  0x30   :  { %1136 = vmatpush3.bf16.msra.mxu0 %v1266_v49 }
  0x31   :  { %1164 = vmatpush3.bf16.msra.mxu1 %v1268_v51  ;;  %1137 = vmatprep.subr.bf16.mxu0 %v1269_v52 }
  0x32   :  { %1165 = vmatprep.subr.bf16.mxu1 %v1271_v54 }
  0x34   :  { %1138 = vmatpush3.bf16.msra.mxu0 %v1270_v53 }
  0x35   :  { %1166 = vmatpush3.bf16.msra.mxu1 %v1272_v55  ;;  %1139 = vmatprep.subr.bf16.mxu0 %v1273_v56 }
  0x36   :  { %1167 = vmatprep.subr.bf16.mxu1 %v1281_v62 }
  0x38   :  { %1140 = vmatpush3.bf16.msra.mxu0 %v1278_v59 }
  0x39   :  { %1168 = vmatpush3.bf16.msra.mxu1 %v1282_v63  ;;  %1141 = vmatprep.subr.bf16.mxu0 %v1283_v0 }
  0x3a   :  { %1169 = vmatprep.subr.bf16.mxu1 %v1285_v2 }
  0x3c   :  { %1142 = vmatpush3.bf16.msra.mxu0 %v1284_v1 }
  0x3d   :  { %1170 = vmatpush3.bf16.msra.mxu1 %v1286_v3  ;;  %1143 = vmatprep.subr.bf16.mxu0 %v1287_v4 }
  0x3e   :  { %1171 = vmatprep.subr.bf16.mxu1 %v1289_v6 }
  0x40   :  { %1144 = vmatpush3.bf16.msra.mxu0 %v1288_v5 }
  0x41   :  { %1172 = vmatpush3.bf16.msra.mxu1 %v1293_v9  ;;  %1195 = vmatprep.subr.bf16.mxu0 %v1294_v10 }
  0x43   :  { %833 = vmatmul.mubr.bf16.vlgmr.msra.gmra.mrb[8].mxu0 %v1290_v7 }
  0x44   :  { %1196 = vmatpush3.bf16.msra.mxu0 %v1294_v10  ;;  %882 = vmatmul.mubr.bf16.vlgmr.msra.gmra.mrb[8].mxu1 %v1295_v11 }
  0x45   :  { %1197 = vmatprep.subr.bf16.mxu0 %v1298_v13  ;;  %840 = vmatprep.mubr.bf16.mxu0 %v1299_v14 }
  0x46   :  { %889 = vmatprep.mubr.bf16.mxu1 %v1303_v17 }
  0x48   :  { %1198 = vmatpush3.bf16.msra.mxu0 %v1298_v13 }
  0x49   :  { %1199 = vmatprep.subr.bf16.mxu0 %v1302_v16 }
  0x4b   :  { %841 = vmatmul.mubr.bf16.gmra.mrb[12].mxu0 %v1301_v15 }
  0x4c   :  { %1200 = vmatpush3.bf16.msra.mxu0 %v1302_v16  ;;  %890 = vmatmul.mubr.bf16.gmra.mrb[12].mxu1 %v1305_v18 }
  0x4d   :  { %1201 = vmatprep.subr.bf16.mxu0 %v1306_v19  ;;  %1211 = vmatprep.mubr.bf16.mxu0 %v1311_v21 }
  0x50   :  { %1202 = vmatpush3.bf16.msra.mxu0 %v1306_v19 }
  0x51   :  { %1203 = vmatprep.subr.bf16.mxu0 %v1307_v20 }
  0x54   :  { %1204 = vmatpush3.bf16.msra.mxu0 %v1307_v20 }
  0x55   :  { %1205 = vmatprep.subr.bf16.mxu0 %v1308_v22 }
  0x58   :  { %1206 = vmatpush3.bf16.msra.mxu0 %v1308_v22 }
  0x59   :  { %1207 = vmatprep.subr.bf16.mxu0 %v1309_v23 }
  0x5c   :  { %1208 = vmatpush3.bf16.msra.mxu0 %v1309_v23 }
  0x5d   :  { %1209 = vmatprep.subr.bf16.mxu0 %v1310_v24 }
  0x60   :  { %1210 = vmatpush3.bf16.msra.mxu0 %v1310_v24 }
  0x63   :  { %1212 = vmatmul.mubr.bf16.vlgmr.msra.gmra.mrb[16].mxu0 %v1312_v25 }
  0xf6   :  { %v1089_v26 = vpop.f32.mrb[0].mxu0 }
  0xf7   :  { %v1117_v27 = vpop.f32.mrb[0].mxu1  ;;  %v1090_v28 = vpop.f32.mrb[1].mxu0 }
  0xf8   :  { %v1091_v29 = vadd.f32 %v1090_v28, %v1089_v26  ;;  %v1118_v30 = vpop.f32.mrb[1].mxu1  ;;  %v1092_v31 = vpop.f32.mrb[2].mxu0 }
  0xf9   :  { %v1119_v32 = vadd.f32 %v1118_v30, %v1117_v27  ;;  %v1120_v33 = vpop.f32.mrb[2].mxu1  ;;  %v1093_v34 = vpop.f32.mrb[3].mxu0 }
  0xfa   :  { %v1094_v35 = vadd.f32 %v1093_v34, %v1092_v31  ;;  %v1121_v36 = vpop.f32.mrb[3].mxu1 }
  0xfb   :  { %v786_v37 = vadd.f32 %v1119_v32, %v1091_v29  ;;  %v1122_v38 = vadd.f32 %v1121_v36, %v1120_v33 }
  0xfd   :  { %v789_v39 = vadd.f32 %v1122_v38, %v1094_v35 }
  0xfe   :  { %v1095_v40 = vpop.f32.mrb[4].mxu0 }
  0xff   :  { %v1123_v41 = vpop.f32.mrb[4].mxu1  ;;  %v1096_v42 = vpop.f32.mrb[5].mxu0 }
 0x100   :  { %v1124_v43 = vpop.f32.mrb[5].mxu1  ;;  %v1097_v44 = vadd.f32 %v1096_v42, %v1095_v40  ;;  %v1098_v46 = vpop.f32.mrb[6].mxu0 }
 0x101   :  { %v1125_v45 = vadd.f32 %v1124_v43, %v1123_v41  ;;  %v1126_v47 = vpop.f32.mrb[6].mxu1  ;;  %v1099_v48 = vpop.f32.mrb[7].mxu0 }
 0x102   :  { %v1127_v49 = vpop.f32.mrb[7].mxu1  ;;  %v1100_v51 = vadd.f32 %v1099_v48, %v1098_v46 }
 0x103   :  { %v794_v50 = vadd.f32 %v1125_v45, %v1097_v44  ;;  %v1128_v52 = vadd.f32 %v1127_v49, %v1126_v47 }
 0x105   :  { %v797_v53 = vadd.f32 %v1128_v52, %v1100_v51 }
 0x116   :  { %v1145_v54 = vpop.f32.mrb[8].mxu0 }
 0x117   :  { %v1146_v55 = vpop.f32.mrb[9].mxu0  ;;  %v1173_v58 = vpop.f32.mrb[8].mxu1 }
 0x118   :  { %v1147_v56 = vadd.f32 %v1146_v55, %v1145_v54  ;;  %v1148_v57 = vpop.f32.mrb[10].mxu0  ;;  %v1174_v62 = vpop.f32.mrb[9].mxu1 }
 0x119   :  { %v1149_v59 = vpop.f32.mrb[11].mxu0  ;;  %v1175_v63 = vadd.f32 %v1174_v62, %v1173_v58  ;;  %v1176_v0 = vpop.f32.mrb[10].mxu1 }
 0x11a   :  { %v835_v60 = vadd.f32 %v1147_v56, %v786_v37  ;;  %v1150_v61 = vadd.f32 %v1149_v59, %v1148_v57  ;;  %v1177_v2 = vpop.f32.mrb[11].mxu1 }
 0x11b   :  { %v1178_v3 = vadd.f32 %v1177_v2, %v1176_v0 }
 0x11c   :  { %v838_v1 = vadd.f32 %v1150_v61, %v789_v39  ;;  %v884_v4 = vadd.f32 %v1175_v63, %v835_v60 }
 0x11e   :  { %v1151_v5 = vpop.f32.mrb[12].mxu0  ;;  %v887_v7 = vadd.f32 %v1178_v3, %v838_v1 }
 0x11f   :  { %v1152_v6 = vpop.f32.mrb[13].mxu0  ;;  %v1179_v10 = vpop.f32.mrb[12].mxu1 }
 0x120   :  { %v1153_v8 = vadd.f32 %v1152_v6, %v1151_v5  ;;  %v1154_v9 = vpop.f32.mrb[14].mxu0  ;;  %v1180_v14 = vpop.f32.mrb[13].mxu1 }
 0x121   :  { %v1155_v11 = vpop.f32.mrb[15].mxu0  ;;  %v1181_v15 = vadd.f32 %v1180_v14, %v1179_v10  ;;  %v1182_v16 = vpop.f32.mrb[14].mxu1 }
 0x122   :  { %v843_v12 = vadd.f32 %v1153_v8, %v794_v50  ;;  %v1156_v13 = vadd.f32 %v1155_v11, %v1154_v9  ;;  %v1183_v18 = vpop.f32.mrb[15].mxu1 }
 0x123   :  { %v1184_v19 = vadd.f32 %v1183_v18, %v1182_v16 }
 0x124   :  { %v846_v17 = vadd.f32 %v1156_v13, %v797_v53  ;;  %v892_v20 = vadd.f32 %v1181_v15, %v843_v12 }
 0x126   :  { %v895_v21 = vadd.f32 %v1184_v19, %v846_v17 }
 0x136   :  { %v1213_v22 = vpop.f32.mrb[16].mxu0 }
 0x137   :  { %v941_v23 = vadd.f32 %v1213_v22, %v892_v20  ;;  %v932_v24 = vpop.f32.mrb[17].mxu0 }
 0x138   :  { %v933_v25 = vadd.f32 %v932_v24, %v884_v4  ;;  %v1214_v26 = vpop.f32.mrb[18].mxu0 }
 0x139   :  { %949 = vst [vmem:[%s1623_s2 + $0x10] sm:$0xff] %v941_v23  ;;  %v944_v27 = vadd.f32 %v1214_v26, %v895_v21  ;;  %v935_v28 = vpop.f32.mrb[19].mxu0  ;;  %v963_v33 = vmul.f32 %v941_v23, %v941_v23 }
 0x13a   :  { %947 = vst [vmem:[%s1623_s2] sm:$0xff] %v933_v25  ;;  %v936_v29 = vadd.f32 %v935_v28, %v887_v7  ;;  %v961_v30 = vmul.f32 %v933_v25, %v933_v25 }
 0x13b   :  { %950 = vst [vmem:[%s1623_s2 + $0x18] sm:$0xff] %v944_v27  ;;  %v964_v36 = vmul.f32 %v944_v27, %v944_v27 }
 0x13c   :  { %948 = vst [vmem:[%s1623_s2 + $0x8] sm:$0xff] %v936_v29  ;;  %v951_v31 = vadd.f32 %v936_v29, %v933_v25  ;;  %v962_v32 = vmul.f32 %v936_v29, %v936_v29 }
 0x13e   :  { %v952_v34 = vadd.f32 %v951_v31, %v941_v23  ;;  %v965_v35 = vadd.f32 %v962_v32, %v961_v30 }
 0x140   :  { %v953_v37 = vadd.f32 %v952_v34, %v944_v27  ;;  %v966_v38 = vadd.f32 %v965_v35, %v963_v33 }
 0x142   :  { %v954_v39 = vrot.slane %v953_v37, 4  ;;  %v967_v40 = vadd.f32 %v966_v38, %v964_v36 }
 0x144   :  { %v955_v41 = vadd.f32 %v954_v39, %v953_v37  ;;  %v968_v42 = vrot.slane %v967_v40, 4 }
 0x146   :  { %v956_v43 = vrot.slane %v955_v41, 2  ;;  %v969_v44 = vadd.f32 %v968_v42, %v967_v40 }
 0x148   :  { %v957_v45 = vadd.f32 %v956_v43, %v955_v41  ;;  %v970_v46 = vrot.slane %v969_v44, 2 }
 0x14a   :  { %v958_v47 = vrot.slane %v957_v45, 1  ;;  %v971_v48 = vadd.f32 %v970_v46, %v969_v44 }
 0x14c   :  { %v959_v49 = vadd.f32 %v958_v47, %v957_v45  ;;  %v972_v50 = vrot.slane %v971_v48, 1 }
 0x14e   :  { %960 = vst [vmem:[%s1624_s3] sm:$0x1] %v959_v49  ;;  %v973_v51 = vadd.f32 %v972_v50, %v971_v48 }
 0x150   :  { %974 = vst [vmem:[%s1624_s3 + $0x1] sm:$0x1] %v973_v51 }

// kernel: encoder_forward.41
= control target key start
LH: loop header
LB: loop body
LE: loop exit
PB: predicated region body
PF: predicated region fallthrough
CT: control target
= control target key end

     0   :  { %s71_s0 = inlined_call_operand.vmem [shape: f32[8,128], index: 0, kind: input, shape index: {}, may-alias: {0,3}]   ;;  %s72_s1 = inlined_call_operand.vmem [shape: f32[1,128], index: 1, kind: input, shape index: {}]   ;;  %s73_s2 = inlined_call_operand.vmem [shape: f32[1,128], index: 2, kind: input, shape index: {}]   ;;  %s74_s3 = inlined_call_operand.vmem [shape: f32[8,128], index: 3, kind: output, shape index: {}, may-alias: {0,3}]  }
   0x1   :  { %v14_v0 = vld [vmem:[%s71_s0] sm:$0xff] }
   0x2   :  { %v37_v1 = vld [vmem:[%s72_s1] ss:$0 sm:$0xff] }
   0x3   :  { %v38_v2 = vld [vmem:[%s73_s2] ss:$0 sm:$0xff]  ;;  %v22_v3 = vmul.f32 %v37_v1, %v14_v0 }
   0x5   :  { %v30_v4 = vadd.f32 %v38_v2, %v22_v3 }
   0x7   :  { %v31_v5 = vmax.f32 %v30_v4, 0.0 }
   0x9   :  { %32 = vst [vmem:[%s74_s3] sm:$0xff] %v31_v5 }

// kernel: encoder_forward.40
= control target key start
LH: loop header
LB: loop body
LE: loop exit
PB: predicated region body
PF: predicated region fallthrough
CT: control target
= control target key end

     0   :  { %vm1133_vm0 = vmmov 0   ;;  %s1394_s1 = inlined_call_operand.vmem [shape: bf16[1152,128], index: 1, kind: input, shape index: {}]   ;;  %s1395_s0 = inlined_call_operand.vmem [shape: bf16[8,1152], index: 0, kind: input, shape index: {}]   ;;  %s1396_s2 = inlined_call_operand.vmem [shape: f32[8,128], index: 2, kind: output, shape index: {0}]   ;;  %s1397_s3 = inlined_call_operand.vmem [shape: f32[1,2,128], index: 3, kind: output, shape index: {1}]  }
   0x1   :  { %v1051_v0 = vld [vmem:[%s1394_s1 + $0x40] sm:$0xff]   ;;  %v1055_v4 = vld [vmem:[%s1394_s1 + $0x48] sm:$0xff]   ;;  %v1059_v8 = vld [vmem:[%s1394_s1 + $0x50] sm:$0xff]  }
   0x2   :  { %v1052_v1 = vld [vmem:[%s1394_s1 + $0xc0] sm:$0xff]   ;;  %932 = vmatprep.subr.bf16.mxu0 %v1051_v0  ;;  %v1056_v5 = vld [vmem:[%s1394_s1 + $0xc8] sm:$0xff]   ;;  %v1060_v9 = vld [vmem:[%s1394_s1 + $0xd0] sm:$0xff]  }
   0x3   :  { %v1053_v2 = vld [vmem:[%s1394_s1] sm:$0xff]   ;;  %954 = vmatprep.subr.bf16.mxu1 %v1052_v1  ;;  %v1057_v6 = vld [vmem:[%s1394_s1 + $0x8] sm:$0xff]   ;;  %v1061_v10 = vld [vmem:[%s1394_s1 + $0x10] sm:$0xff]  }
   0x4   :  { %v1054_v3 = vld [vmem:[%s1394_s1 + $0x80] sm:$0xff]   ;;  %933 = vmatpush3.bf16.msra.mxu0 %v1053_v2  ;;  %v1058_v7 = vld [vmem:[%s1394_s1 + $0x88] sm:$0xff]   ;;  %v1062_v11 = vld [vmem:[%s1394_s1 + $0x90] sm:$0xff]  }
   0x5   :  { %955 = vmatpush3.bf16.msra.mxu1 %v1054_v3  ;;  %934 = vmatprep.subr.bf16.mxu0 %v1055_v4  ;;  %v1063_v12 = vld [vmem:[%s1394_s1 + $0x58] sm:$0xff]   ;;  %v1067_v16 = vld [vmem:[%s1394_s1 + $0x60] sm:$0xff]   ;;  %v1071_v20 = vld [vmem:[%s1394_s1 + $0x68] sm:$0xff]  }
   0x6   :  { %956 = vmatprep.subr.bf16.mxu1 %v1056_v5  ;;  %v1064_v13 = vld [vmem:[%s1394_s1 + $0xd8] sm:$0xff]   ;;  %v1068_v17 = vld [vmem:[%s1394_s1 + $0xe0] sm:$0xff]   ;;  %v1072_v21 = vld [vmem:[%s1394_s1 + $0xe8] sm:$0xff]  }
   0x7   :  { %v1065_v14 = vld [vmem:[%s1394_s1 + $0x18] sm:$0xff]   ;;  %v1069_v18 = vld [vmem:[%s1394_s1 + $0x20] sm:$0xff]   ;;  %v1073_v22 = vld [vmem:[%s1394_s1 + $0x28] sm:$0xff]  }
   0x8   :  { %935 = vmatpush3.bf16.msra.mxu0 %v1057_v6  ;;  %v1066_v15 = vld [vmem:[%s1394_s1 + $0x98] sm:$0xff]   ;;  %v1070_v19 = vld [vmem:[%s1394_s1 + $0xa0] sm:$0xff]   ;;  %v1074_v23 = vld [vmem:[%s1394_s1 + $0xa8] sm:$0xff]  }
   0x9   :  { %957 = vmatpush3.bf16.msra.mxu1 %v1058_v7  ;;  %936 = vmatprep.subr.bf16.mxu0 %v1059_v8  ;;  %v1075_v24 = vld [vmem:[%s1394_s1 + $0x70] sm:$0xff]   ;;  %v1079_v28 = vld [vmem:[%s1394_s1 + $0x78] sm:$0xff]   ;;  %v14_v32 = vld [vmem:[%s1395_s0] sm:$0xff] }
   0xa   :  { %958 = vmatprep.subr.bf16.mxu1 %v1060_v9  ;;  %v1076_v25 = vld [vmem:[%s1394_s1 + $0xf0] sm:$0xff]   ;;  %v1080_v29 = vld [vmem:[%s1394_s1 + $0xf8] sm:$0xff]   ;;  %v15_v33 = vld [vmem:[%s1395_s0 + $0x8] sm:$0xff]  ;;  %v851_v34 = vcombine.low %v14_v32, %v14_v32  ;;  %v852_v35 = vcombine.high %v14_v32, %v14_v32 }
   0xb   :  { %v1077_v26 = vld [vmem:[%s1394_s1 + $0x30] sm:$0xff]   ;;  %v1081_v30 = vld [vmem:[%s1394_s1 + $0x38] sm:$0xff]   ;;  %v853_v36 = vcombine.low %v15_v33, %v15_v33  ;;  %v854_v37 = vcombine.high %v15_v33, %v15_v33  ;;  %v1087_v38 = vld [vmem:[%s1394_s1 + $0x140] sm:$0xff]  }
   0xc   :  { %937 = vmatpush3.bf16.msra.mxu0 %v1061_v10  ;;  %v1078_v27 = vld [vmem:[%s1394_s1 + $0xb0] sm:$0xff]   ;;  %v1082_v31 = vld [vmem:[%s1394_s1 + $0xb8] sm:$0xff]   ;;  %v1088_v39 = vld [vmem:[%s1394_s1 + $0x100] sm:$0xff]   ;;  %659 = vmatprep.mubr.bf16.mxu0 %v852_v35 }
   0xd   :  { %959 = vmatpush3.bf16.msra.mxu1 %v1062_v11  ;;  %938 = vmatprep.subr.bf16.mxu0 %v1063_v12  ;;  %v1089_v40 = vld [vmem:[%s1394_s1 + $0x1c0] sm:$0xff]   ;;  %v1091_v42 = vld [vmem:[%s1394_s1 + $0x148] sm:$0xff]   ;;  %v1095_v46 = vld [vmem:[%s1394_s1 + $0x150] sm:$0xff]  }
   0xe   :  { %960 = vmatprep.subr.bf16.mxu1 %v1064_v13  ;;  %699 = vmatprep.mubr.bf16.mxu1 %v854_v37  ;;  %v1090_v41 = vld [vmem:[%s1394_s1 + $0x180] sm:$0xff]   ;;  %v1092_v43 = vld [vmem:[%s1394_s1 + $0x108] sm:$0xff]   ;;  %v1096_v47 = vld [vmem:[%s1394_s1 + $0x110] sm:$0xff]   ;;  %v1132_v13 = vmov 0.0  }
   0xf   :  { %v1093_v44 = vld [vmem:[%s1394_s1 + $0x1c8] sm:$0xff]   ;;  %v1097_v48 = vld [vmem:[%s1394_s1 + $0x1d0] sm:$0xff]   ;;  %v1099_v50 = vld [vmem:[%s1394_s1 + $0x158] sm:$0xff]  }
  0x10   :  { %939 = vmatpush3.bf16.msra.mxu0 %v1065_v14  ;;  %v1094_v45 = vld [vmem:[%s1394_s1 + $0x188] sm:$0xff]   ;;  %v1098_v49 = vld [vmem:[%s1394_s1 + $0x190] sm:$0xff]   ;;  %v1100_v51 = vld [vmem:[%s1394_s1 + $0x118] sm:$0xff]  }
  0x11   :  { %961 = vmatpush3.bf16.msra.mxu1 %v1066_v15  ;;  %940 = vmatprep.subr.bf16.mxu0 %v1067_v16  ;;  %v1101_v52 = vld [vmem:[%s1394_s1 + $0x1d8] sm:$0xff]   ;;  %v1103_v54 = vld [vmem:[%s1394_s1 + $0x160] sm:$0xff]   ;;  %v1107_v58 = vld [vmem:[%s1394_s1 + $0x168] sm:$0xff]  }
  0x12   :  { %962 = vmatprep.subr.bf16.mxu1 %v1068_v17  ;;  %v1102_v53 = vld [vmem:[%s1394_s1 + $0x198] sm:$0xff]   ;;  %v1104_v55 = vld [vmem:[%s1394_s1 + $0x120] sm:$0xff]   ;;  %v1108_v59 = vld [vmem:[%s1394_s1 + $0x128] sm:$0xff]  }
  0x13   :  { %v1105_v56 = vld [vmem:[%s1394_s1 + $0x1e0] sm:$0xff]   ;;  %v1109_v60 = vld [vmem:[%s1394_s1 + $0x1e8] sm:$0xff]   ;;  %v1111_v62 = vld [vmem:[%s1394_s1 + $0x170] sm:$0xff]  }
  0x14   :  { %941 = vmatpush3.bf16.msra.mxu0 %v1069_v18  ;;  %v1106_v57 = vld [vmem:[%s1394_s1 + $0x1a0] sm:$0xff]   ;;  %v1110_v61 = vld [vmem:[%s1394_s1 + $0x1a8] sm:$0xff]   ;;  %v1112_v63 = vld [vmem:[%s1394_s1 + $0x130] sm:$0xff]  }
  0x15   :  { %963 = vmatpush3.bf16.msra.mxu1 %v1070_v19  ;;  %942 = vmatprep.subr.bf16.mxu0 %v1071_v20  ;;  %v1113_v0 = vld [vmem:[%s1394_s1 + $0x1f0] sm:$0xff]   ;;  %v1115_v2 = vld [vmem:[%s1394_s1 + $0x178] sm:$0xff]   ;;  %v1123_v12 = vld [vmem:[%s1394_s1 + $0x200] sm:$0xff]  }
  0x16   :  { %964 = vmatprep.subr.bf16.mxu1 %v1072_v21  ;;  %v1114_v1 = vld [vmem:[%s1394_s1 + $0x1b0] sm:$0xff]   ;;  %v1116_v3 = vld [vmem:[%s1394_s1 + $0x138] sm:$0xff]   ;;  %v1124_v14 = vld [vmem:[%s1394_s1 + $0x208] sm:$0xff]  }
  0x17   :  { %v1117_v4 = vld [vmem:[%s1394_s1 + $0x1f8] sm:$0xff]   ;;  %v16_v5 = vld [vmem:[%s1395_s0 + $0x10] sm:$0xff]  ;;  %v1127_v17 = vld [vmem:[%s1394_s1 + $0x220] sm:$0xff]  }
  0x18   :  { %943 = vmatpush3.bf16.msra.mxu0 %v1073_v22  ;;  %v856_v6 = vcombine.high %v16_v5, %v16_v5  ;;  %v1120_v7 = vld [vmem:[%s1394_s1 + $0x1b8] sm:$0xff]   ;;  %v855_v8 = vcombine.low %v16_v5, %v16_v5  ;;  %v1125_v15 = vld [vmem:[%s1394_s1 + $0x210] sm:$0xff]   ;;  %v1128_v18 = vld [vmem:[%s1394_s1 + $0x228] sm:$0xff]  }
  0x19   :  { %965 = vmatpush3.bf16.msra.mxu1 %v1074_v23  ;;  %944 = vmatprep.subr.bf16.mxu0 %v1075_v24  ;;  %v17_v9 = vld [vmem:[%s1395_s0 + $0x18] sm:$0xff]  ;;  %v1129_v19 = vld [vmem:[%s1394_s1 + $0x230] sm:$0xff]   ;;  %v1131_v21 = vld [vmem:[%s1395_s0 + $0x20] ss:$0 sps:$4 sm:$0xff]  }
  0x1a   :  { %966 = vmatprep.subr.bf16.mxu1 %v1076_v25  ;;  %v857_v10 = vcombine.low %v17_v9, %v17_v9  ;;  %v858_v11 = vcombine.high %v17_v9, %v17_v9  ;;  %v1126_v16 = vld [vmem:[%s1394_s1 + $0x218] sm:$0xff]  }
  0x1b   :  { %v1130_v20 = vld [vmem:[%s1394_s1 + $0x238] sm:$0xff]  }
  0x1c   :  { %945 = vmatpush3.bf16.msra.mxu0 %v1077_v26 }
  0x1d   :  { %967 = vmatpush3.bf16.msra.mxu1 %v1078_v27  ;;  %946 = vmatprep.subr.bf16.mxu0 %v1079_v28 }
  0x1e   :  { %968 = vmatprep.subr.bf16.mxu1 %v1080_v29 }
  0x20   :  { %947 = vmatpush3.bf16.msra.mxu0 %v1081_v30 }
  0x21   :  { %969 = vmatpush3.bf16.msra.mxu1 %v1082_v31  ;;  %976 = vmatprep.subr.bf16.mxu0 %v1087_v38 }
  0x22   :  { %998 = vmatprep.subr.bf16.mxu1 %v1089_v40 }
  0x23   :  { %660 = vmatmul.mubr.bf16.vlgmr.msra.gmra.mrb[0].mxu0 %v851_v34 }
  0x24   :  { %700 = vmatmul.mubr.bf16.vlgmr.msra.gmra.mrb[0].mxu1 %v853_v36  ;;  %977 = vmatpush3.bf16.msra.mxu0 %v1088_v39 }
  0x25   :  { %999 = vmatpush3.bf16.msra.mxu1 %v1090_v41  ;;  %978 = vmatprep.subr.bf16.mxu0 %v1091_v42 }
  0x26   :  { %1000 = vmatprep.subr.bf16.mxu1 %v1093_v44  ;;  %739 = vmatprep.mubr.bf16.mxu0 %v856_v6 }
  0x27   :  { %779 = vmatprep.mubr.bf16.mxu1 %v858_v11 }
  0x28   :  { %979 = vmatpush3.bf16.msra.mxu0 %v1092_v43 }
  0x29   :  { %1001 = vmatpush3.bf16.msra.mxu1 %v1094_v45  ;;  %980 = vmatprep.subr.bf16.mxu0 %v1095_v46 }
  0x2a   :  { %1002 = vmatprep.subr.bf16.mxu1 %v1097_v48 }
  0x2c   :  { %981 = vmatpush3.bf16.msra.mxu0 %v1096_v47 }
  0x2d   :  { %1003 = vmatpush3.bf16.msra.mxu1 %v1098_v49  ;;  %982 = vmatprep.subr.bf16.mxu0 %v1099_v50 }
  0x2e   :  { %1004 = vmatprep.subr.bf16.mxu1 %v1101_v52 }
  0x30   :  { %983 = vmatpush3.bf16.msra.mxu0 %v1100_v51 }
  0x31   :  { %1005 = vmatpush3.bf16.msra.mxu1 %v1102_v53  ;;  %984 = vmatprep.subr.bf16.mxu0 %v1103_v54 }
  0x32   :  { %1006 = vmatprep.subr.bf16.mxu1 %v1105_v56 }
  0x34   :  { %985 = vmatpush3.bf16.msra.mxu0 %v1104_v55 }
  0x35   :  { %1007 = vmatpush3.bf16.msra.mxu1 %v1106_v57  ;;  %986 = vmatprep.subr.bf16.mxu0 %v1107_v58 }
  0x36   :  { %1008 = vmatprep.subr.bf16.mxu1 %v1109_v60 }
  0x38   :  { %987 = vmatpush3.bf16.msra.mxu0 %v1108_v59 }
  0x39   :  { %1009 = vmatpush3.bf16.msra.mxu1 %v1110_v61  ;;  %988 = vmatprep.subr.bf16.mxu0 %v1111_v62 }
  0x3a   :  { %1010 = vmatprep.subr.bf16.mxu1 %v1113_v0 }
  0x3c   :  { %989 = vmatpush3.bf16.msra.mxu0 %v1112_v63 }
  0x3d   :  { %1011 = vmatpush3.bf16.msra.mxu1 %v1114_v1  ;;  %990 = vmatprep.subr.bf16.mxu0 %v1115_v2 }
  0x3e   :  { %1012 = vmatprep.subr.bf16.mxu1 %v1117_v4 }
  0x40   :  { %991 = vmatpush3.bf16.msra.mxu0 %v1116_v3 }
  0x41   :  { %1013 = vmatpush3.bf16.msra.mxu1 %v1120_v7  ;;  %1029 = vmatprep.subr.bf16.mxu0 %v1132_v13 }
  0x43   :  { %740 = vmatmul.mubr.bf16.vlgmr.msra.gmra.mrb[4].mxu0 %v855_v8 }
  0x44   :  { %1030 = vmatpush3.bf16.msra.mxu0 %v1123_v12  ;;  %780 = vmatmul.mubr.bf16.vlgmr.msra.gmra.mrb[4].mxu1 %v857_v10 }
  0x45   :  { %1031 = vmatprep.subr.bf16.mxu0 %v1132_v13  ;;  %1045 = vmatprep.mubr.msk.bf16.mxu0 %vm1133_vm0, %v1132_v13 }
  0x48   :  { %1032 = vmatpush3.bf16.msra.mxu0 %v1124_v14 }
  0x49   :  { %1033 = vmatprep.subr.bf16.mxu0 %v1132_v13 }
  0x4c   :  { %1034 = vmatpush3.bf16.msra.mxu0 %v1125_v15 }
  0x4d   :  { %1035 = vmatprep.subr.bf16.mxu0 %v1132_v13 }
  0x50   :  { %1036 = vmatpush3.bf16.msra.mxu0 %v1126_v16 }
  0x51   :  { %1037 = vmatprep.subr.bf16.mxu0 %v1132_v13 }
  0x54   :  { %1038 = vmatpush3.bf16.msra.mxu0 %v1127_v17 }
  0x55   :  { %1039 = vmatprep.subr.bf16.mxu0 %v1132_v13 }
  0x58   :  { %1040 = vmatpush3.bf16.msra.mxu0 %v1128_v18 }
  0x59   :  { %1041 = vmatprep.subr.bf16.mxu0 %v1132_v13 }
  0x5c   :  { %1042 = vmatpush3.bf16.msra.mxu0 %v1129_v19 }
  0x5d   :  { %1043 = vmatprep.subr.bf16.mxu0 %v1132_v13 }
  0x60   :  { %1044 = vmatpush3.bf16.msra.mxu0 %v1130_v20 }
  0x63   :  { %1046 = vmatmul.mubr.bf16.vlgmr.msra.gmra.mrb[8].mxu0 %v1131_v21 }
  0xf6   :  { %v948_v22 = vpop.f32.mrb[0].mxu0 }
  0xf7   :  { %v970_v23 = vpop.f32.mrb[0].mxu1  ;;  %v949_v24 = vpop.f32.mrb[1].mxu0 }
  0xf8   :  { %v971_v25 = vpop.f32.mrb[1].mxu1  ;;  %v950_v26 = vadd.f32 %v949_v24, %v948_v22  ;;  %v951_v28 = vpop.f32.mrb[2].mxu0 }
  0xf9   :  { %v972_v27 = vadd.f32 %v971_v25, %v970_v23  ;;  %v973_v29 = vpop.f32.mrb[2].mxu1  ;;  %v952_v30 = vpop.f32.mrb[3].mxu0 }
  0xfa   :  { %v974_v31 = vpop.f32.mrb[3].mxu1 }
  0xfb   :  { %v702_v32 = vadd.f32 %v972_v27, %v950_v26 }
 0x116   :  { %v992_v33 = vpop.f32.mrb[4].mxu0 }
 0x117   :  { %v993_v34 = vpop.f32.mrb[5].mxu0  ;;  %v1014_v35 = vpop.f32.mrb[4].mxu1 }
 0x118   :  { %v994_v36 = vadd.f32 %v993_v34, %v992_v33  ;;  %v995_v37 = vpop.f32.mrb[6].mxu0  ;;  %v1015_v38 = vpop.f32.mrb[5].mxu1 }
 0x119   :  { %v996_v39 = vpop.f32.mrb[7].mxu0  ;;  %v1016_v40 = vadd.f32 %v1015_v38, %v1014_v35  ;;  %v1017_v41 = vpop.f32.mrb[6].mxu1 }
 0x11a   :  { %v742_v42 = vadd.f32 %v994_v36, %v702_v32  ;;  %v1018_v43 = vpop.f32.mrb[7].mxu1 }
 0x11c   :  { %v782_v44 = vadd.f32 %v1016_v40, %v742_v42 }
 0x136   :  { %v821_v45 = vpop.f32.mrb[8].mxu0 }
 0x137   :  { %v822_v46 = vadd.f32 %v821_v45, %v782_v44  ;;  %v1047_v47 = vpop.f32.mrb[9].mxu0 }
 0x138   :  { %v824_v48 = vpop.f32.mrb[10].mxu0 }
 0x139   :  { %827 = vst [vmem:[%s1396_s2] sm:$0xff] %v822_v46  ;;  %v828_v49 = vrot.slane %v822_v46, 4  ;;  %v835_v50 = vmul.f32 %v822_v46, %v822_v46  ;;  %v1048_v51 = vpop.f32.mrb[11].mxu0 }
 0x13b   :  { %v829_v52 = vadd.f32 %v828_v49, %v822_v46  ;;  %v836_v53 = vrot.slane %v835_v50, 4 }
 0x13d   :  { %v830_v54 = vrot.slane %v829_v52, 2  ;;  %v837_v55 = vadd.f32 %v836_v53, %v835_v50 }
 0x13f   :  { %v831_v56 = vadd.f32 %v830_v54, %v829_v52  ;;  %v838_v57 = vrot.slane %v837_v55, 2 }
 0x141   :  { %v832_v58 = vrot.slane %v831_v56, 1  ;;  %v839_v59 = vadd.f32 %v838_v57, %v837_v55 }
 0x143   :  { %v833_v60 = vadd.f32 %v832_v58, %v831_v56  ;;  %v840_v61 = vrot.slane %v839_v59, 1 }
 0x145   :  { %834 = vst [vmem:[%s1397_s3] sm:$0x1] %v833_v60  ;;  %v841_v62 = vadd.f32 %v840_v61, %v839_v59 }
 0x147   :  { %842 = vst [vmem:[%s1397_s3 + $0x1] sm:$0x1] %v841_v62 }

// kernel: encoder_forward.45
= control target key start
LH: loop header
LB: loop body
LE: loop exit
PB: predicated region body
PF: predicated region fallthrough
CT: control target
= control target key end

     0   :  { %s71_s0 = inlined_call_operand.vmem [shape: f32[2,128], index: 0, kind: input, shape index: {}, may-alias: {0,3}]   ;;  %s72_s1 = inlined_call_operand.vmem [shape: f32[1,128], index: 1, kind: input, shape index: {}]   ;;  %s73_s2 = inlined_call_operand.vmem [shape: f32[1,128], index: 2, kind: input, shape index: {}]   ;;  %s74_s3 = inlined_call_operand.vmem [shape: f32[2,128], index: 3, kind: output, shape index: {}, may-alias: {0,3}]  }
   0x1   :  { %v14_v0 = vld [vmem:[%s71_s0] sm:$0x3] }
   0x2   :  { %v37_v1 = vld [vmem:[%s72_s1] ss:$0 sm:$0xff] }
   0x3   :  { %v38_v2 = vld [vmem:[%s73_s2] ss:$0 sm:$0xff]  ;;  %v22_v3 = vmul.f32 %v37_v1, %v14_v0 }
   0x5   :  { %v30_v4 = vadd.f32 %v38_v2, %v22_v3 }
   0x7   :  { %v31_v5 = vmax.f32 %v30_v4, 0.0 }
   0x9   :  { %32 = vst [vmem:[%s74_s3] sm:$0x3] %v31_v5 }

// kernel: encoder_forward.44
= control target key start
LH: loop header
LB: loop body
LE: loop exit
PB: predicated region body
PF: predicated region fallthrough
CT: control target
= control target key end

     0   :  { %v1159_v22 = vmov 1966171168   ;;  %v166_v24 = vlaneseq  ;;  %vm1161_vm0 = vmmov 0   ;;  %vm867_vm1 = vcmask 1041408   ;;  %s1427_s1 = inlined_call_operand.vmem [shape: bf16[1152,128], index: 1, kind: input, shape index: {}]   ;;  %s1428_s0 = inlined_call_operand.vmem [shape: bf16[2,1152], index: 0, kind: input, shape index: {}]   ;;  %s1429_s2 = inlined_call_operand.vmem [shape: f32[2,128], index: 2, kind: output, shape index: {0}]   ;;  %s1430_s3 = inlined_call_operand.vmem [shape: f32[1,2,128], index: 3, kind: output, shape index: {1}]  }
   0x1   :  { %v1086_v0 = vld [vmem:[%s1427_s1 + $0x40] sm:$0xff]   ;;  %v1090_v4 = vld [vmem:[%s1427_s1 + $0x48] sm:$0xff]   ;;  %v1094_v8 = vld [vmem:[%s1427_s1 + $0x50] sm:$0xff]   ;;  %v164_v23 = vunpack.c.l.s4 %v1159_v22 }
   0x2   :  { %v1087_v1 = vld [vmem:[%s1427_s1 + $0xc0] sm:$0xff]   ;;  %966 = vmatprep.subr.bf16.mxu0 %v1086_v0  ;;  %v1091_v5 = vld [vmem:[%s1427_s1 + $0xc8] sm:$0xff]   ;;  %v1095_v9 = vld [vmem:[%s1427_s1 + $0xd0] sm:$0xff]   ;;  %v167_v30 = vshrl.u32 %v166_v24, 7 }
   0x3   :  { %v1088_v2 = vld [vmem:[%s1427_s1] sm:$0xff]   ;;  %988 = vmatprep.subr.bf16.mxu1 %v1087_v1  ;;  %v1092_v6 = vld [vmem:[%s1427_s1 + $0x8] sm:$0xff]   ;;  %v1096_v10 = vld [vmem:[%s1427_s1 + $0x10] sm:$0xff]   ;;  %v165_v29 = vunpack.c.0.s8 %v164_v23 }
   0x4   :  { %v1089_v3 = vld [vmem:[%s1427_s1 + $0x80] sm:$0xff]   ;;  %967 = vmatpush3.bf16.msra.mxu0 %v1088_v2  ;;  %v1093_v7 = vld [vmem:[%s1427_s1 + $0x88] sm:$0xff]   ;;  %v1097_v11 = vld [vmem:[%s1427_s1 + $0x90] sm:$0xff]  }
   0x5   :  { %989 = vmatpush3.bf16.msra.mxu1 %v1089_v3  ;;  %968 = vmatprep.subr.bf16.mxu0 %v1090_v4  ;;  %v1098_v12 = vld [vmem:[%s1427_s1 + $0x58] sm:$0xff]   ;;  %v1102_v16 = vld [vmem:[%s1427_s1 + $0x60] sm:$0xff]   ;;  %v1106_v20 = vld [vmem:[%s1427_s1 + $0x68] sm:$0xff]   ;;  %v1272_v35 = vsub.s32 %v165_v29, %v167_v30 }
   0x6   :  { %990 = vmatprep.subr.bf16.mxu1 %v1091_v5  ;;  %v1099_v13 = vld [vmem:[%s1427_s1 + $0xd8] sm:$0xff]   ;;  %v1103_v17 = vld [vmem:[%s1427_s1 + $0xe0] sm:$0xff]   ;;  %v1107_v21 = vld [vmem:[%s1427_s1 + $0xe8] sm:$0xff]  }
   0x7   :  { %v1100_v14 = vld [vmem:[%s1427_s1 + $0x18] sm:$0xff]   ;;  %v1104_v18 = vld [vmem:[%s1427_s1 + $0x20] sm:$0xff]   ;;  %v1108_v25 = vld [vmem:[%s1427_s1 + $0x28] sm:$0xff]  }
   0x8   :  { %969 = vmatpush3.bf16.msra.mxu0 %v1092_v6  ;;  %v1101_v15 = vld [vmem:[%s1427_s1 + $0x98] sm:$0xff]   ;;  %v1105_v19 = vld [vmem:[%s1427_s1 + $0xa0] sm:$0xff]   ;;  %v1109_v26 = vld [vmem:[%s1427_s1 + $0xa8] sm:$0xff]  }
   0x9   :  { %991 = vmatpush3.bf16.msra.mxu1 %v1093_v7  ;;  %970 = vmatprep.subr.bf16.mxu0 %v1094_v8  ;;  %v1110_v27 = vld [vmem:[%s1427_s1 + $0x70] sm:$0xff]   ;;  %v1114_v33 = vld [vmem:[%s1427_s1 + $0x78] sm:$0xff]   ;;  %v14_v38 = vld [vmem:[%s1428_s0] sm:$0xff] }
   0xa   :  { %992 = vmatprep.subr.bf16.mxu1 %v1095_v9  ;;  %v1111_v28 = vld [vmem:[%s1427_s1 + $0xf0] sm:$0xff]   ;;  %v1115_v34 = vld [vmem:[%s1427_s1 + $0xf8] sm:$0xff]   ;;  %v162_v39 = vcombine.high %v14_v38, %v14_v38  ;;  %v169_v40 = vrot.slane %v14_v38, %v1272_v35  ;;  %v1119_v41 = vld [vmem:[%s1427_s1 + $0x140] sm:$0xff]  }
   0xb   :  { %v1112_v31 = vld [vmem:[%s1427_s1 + $0x30] sm:$0xff]   ;;  %v1116_v36 = vld [vmem:[%s1427_s1 + $0x38] sm:$0xff]   ;;  %v1121_v44 = vld [vmem:[%s1427_s1 + $0x1c0] sm:$0xff]  }
   0xc   :  { %971 = vmatpush3.bf16.msra.mxu0 %v1096_v10  ;;  %v1113_v32 = vld [vmem:[%s1427_s1 + $0xb0] sm:$0xff]   ;;  %v1117_v37 = vld [vmem:[%s1427_s1 + $0xb8] sm:$0xff]   ;;  %v177_v42 = vcombine.high %v169_v40, %v169_v40  ;;  %v185_v43 = vrot.slane %v169_v40, %v1272_v35  ;;  %v1292_v45 = vrot.slane %v162_v39, %v1272_v35  ;;  %v1120_v47 = vld [vmem:[%s1427_s1 + $0x100] sm:$0xff]  }
   0xd   :  { %993 = vmatpush3.bf16.msra.mxu1 %v1097_v11  ;;  %972 = vmatprep.subr.bf16.mxu0 %v1098_v12  ;;  %v1123_v50 = vld [vmem:[%s1427_s1 + $0x148] sm:$0xff]   ;;  %v1122_v52 = vld [vmem:[%s1427_s1 + $0x180] sm:$0xff]   ;;  %v1127_v57 = vld [vmem:[%s1427_s1 + $0x150] sm:$0xff]  }
   0xe   :  { %994 = vmatprep.subr.bf16.mxu1 %v1099_v13  ;;  %v199_v46 = vrot.slane %v177_v42, %v1272_v35  ;;  %v178_v48 = vcombine.high %v1292_v45, %v1292_v45  ;;  %v207_v49 = vcombine.high %v185_v43, %v185_v43  ;;  %v1125_v54 = vld [vmem:[%s1427_s1 + $0x1c8] sm:$0xff]   ;;  %v1129_v59 = vld [vmem:[%s1427_s1 + $0x1d0] sm:$0xff]   ;;  %v1131_v61 = vld [vmem:[%s1427_s1 + $0x158] sm:$0xff]  }
   0xf   :  { %v1124_v55 = vld [vmem:[%s1427_s1 + $0x108] sm:$0xff]   ;;  %v1128_v60 = vld [vmem:[%s1427_s1 + $0x110] sm:$0xff]   ;;  %v1133_v63 = vld [vmem:[%s1427_s1 + $0x1d8] sm:$0xff]  }
  0x10   :  { %973 = vmatpush3.bf16.msra.mxu0 %v1100_v14  ;;  %698 = vmatprep.mubr.bf16.mxu0 %v199_v46  ;;  %v209_v51 = vcombine.high %v199_v46, %v199_v46  ;;  %v206_v53 = vrot.slane %v178_v48, %v1272_v35  ;;  %v1126_v58 = vld [vmem:[%s1427_s1 + $0x188] sm:$0xff]   ;;  %v1130_v62 = vld [vmem:[%s1427_s1 + $0x190] sm:$0xff]   ;;  %v1132_v0 = vld [vmem:[%s1427_s1 + $0x118] sm:$0xff]  }
  0x11   :  { %995 = vmatpush3.bf16.msra.mxu1 %v1101_v15  ;;  %974 = vmatprep.subr.bf16.mxu0 %v1102_v16  ;;  %v1135_v1 = vld [vmem:[%s1427_s1 + $0x160] sm:$0xff]   ;;  %v1134_v2 = vld [vmem:[%s1427_s1 + $0x198] sm:$0xff]   ;;  %v1139_v5 = vld [vmem:[%s1427_s1 + $0x168] sm:$0xff]  }
  0x12   :  { %996 = vmatprep.subr.bf16.mxu1 %v1103_v17  ;;  %738 = vmatprep.mubr.bf16.mxu1 %v209_v51  ;;  %v210_v56 = vcombine.high %v206_v53, %v206_v53  ;;  %v1137_v3 = vld [vmem:[%s1427_s1 + $0x1e0] sm:$0xff]   ;;  %v1141_v7 = vld [vmem:[%s1427_s1 + $0x1e8] sm:$0xff]   ;;  %v1143_v9 = vld [vmem:[%s1427_s1 + $0x170] sm:$0xff]   ;;  %v192_v17 = vrot.slane %v1292_v45, %v1272_v35 }
  0x13   :  { %v1136_v4 = vld [vmem:[%s1427_s1 + $0x120] sm:$0xff]   ;;  %v1140_v8 = vld [vmem:[%s1427_s1 + $0x128] sm:$0xff]   ;;  %v1145_v11 = vld [vmem:[%s1427_s1 + $0x1f0] sm:$0xff]  }
  0x14   :  { %975 = vmatpush3.bf16.msra.mxu0 %v1104_v18  ;;  %v1138_v6 = vld [vmem:[%s1427_s1 + $0x1a0] sm:$0xff]   ;;  %v1142_v10 = vld [vmem:[%s1427_s1 + $0x1a8] sm:$0xff]   ;;  %v1144_v12 = vld [vmem:[%s1427_s1 + $0x130] sm:$0xff]  }
  0x15   :  { %997 = vmatpush3.bf16.msra.mxu1 %v1105_v19  ;;  %976 = vmatprep.subr.bf16.mxu0 %v1106_v20  ;;  %v1147_v13 = vld [vmem:[%s1427_s1 + $0x178] sm:$0xff]   ;;  %v1146_v14 = vld [vmem:[%s1427_s1 + $0x1b0] sm:$0xff]   ;;  %v1151_v19 = vld [vmem:[%s1427_s1 + $0x200] sm:$0xff]   ;;  %v1160_v20 = vmov 0.0  }
  0x16   :  { %998 = vmatprep.subr.bf16.mxu1 %v1107_v21  ;;  %v1149_v15 = vld [vmem:[%s1427_s1 + $0x1f8] sm:$0xff]   ;;  %v208_v21 = vcombine.high %v192_v17, %v192_v17  ;;  %v893_v22 = vld.sshfl [vmem:[%s1428_s0 + $0x8] sm:$0x1 pattern:$0x75316420]  ;;  %v1157_v29 = vld [vmem:[%s1427_s1 + $0x230] sm:$0xff]  }
  0x17   :  { %v1148_v16 = vld [vmem:[%s1427_s1 + $0x138] sm:$0xff]   ;;  %v1152_v23 = vld [vmem:[%s1427_s1 + $0x208] sm:$0xff]   ;;  %v224_v24 = vrot.slane %v893_v22, %v1272_v35 }
  0x18   :  { %977 = vmatpush3.bf16.msra.mxu0 %v1108_v25  ;;  %v1150_v18 = vld [vmem:[%s1427_s1 + $0x1b8] sm:$0xff]   ;;  %v1153_v25 = vld [vmem:[%s1427_s1 + $0x210] sm:$0xff]  }
  0x19   :  { %999 = vmatpush3.bf16.msra.mxu1 %v1109_v26  ;;  %978 = vmatprep.subr.bf16.mxu0 %v1110_v27  ;;  %v1154_v26 = vld [vmem:[%s1427_s1 + $0x218] sm:$0xff]   ;;  %v1155_v27 = vld [vmem:[%s1427_s1 + $0x220] sm:$0xff]  }
  0x1a   :  { %1000 = vmatprep.subr.bf16.mxu1 %v1111_v28  ;;  %v1156_v28 = vld [vmem:[%s1427_s1 + $0x228] sm:$0xff]   ;;  %v1158_v30 = vld [vmem:[%s1427_s1 + $0x238] sm:$0xff]  }
  0x1c   :  { %979 = vmatpush3.bf16.msra.mxu0 %v1112_v31 }
  0x1d   :  { %1001 = vmatpush3.bf16.msra.mxu1 %v1113_v32  ;;  %980 = vmatprep.subr.bf16.mxu0 %v1114_v33 }
  0x1e   :  { %1002 = vmatprep.subr.bf16.mxu1 %v1115_v34 }
  0x20   :  { %981 = vmatpush3.bf16.msra.mxu0 %v1116_v36 }
  0x21   :  { %1003 = vmatpush3.bf16.msra.mxu1 %v1117_v37  ;;  %1010 = vmatprep.subr.bf16.mxu0 %v1119_v41 }
  0x22   :  { %1032 = vmatprep.subr.bf16.mxu1 %v1121_v44 }
  0x23   :  { %699 = vmatmul.mubr.bf16.vlgmr.msra.gmra.mrb[0].mxu0 %v185_v43 }
  0x24   :  { %1011 = vmatpush3.bf16.msra.mxu0 %v1120_v47  ;;  %739 = vmatmul.mubr.bf16.vlgmr.msra.gmra.mrb[0].mxu1 %v207_v49 }
  0x25   :  { %1012 = vmatprep.subr.bf16.mxu0 %v1123_v50  ;;  %1033 = vmatpush3.bf16.msra.mxu1 %v1122_v52 }
  0x26   :  { %778 = vmatprep.mubr.bf16.mxu0 %v206_v53  ;;  %1034 = vmatprep.subr.bf16.mxu1 %v1125_v54 }
  0x27   :  { %818 = vmatprep.mubr.bf16.mxu1 %v210_v56 }
  0x28   :  { %1013 = vmatpush3.bf16.msra.mxu0 %v1124_v55 }
  0x29   :  { %1014 = vmatprep.subr.bf16.mxu0 %v1127_v57  ;;  %1035 = vmatpush3.bf16.msra.mxu1 %v1126_v58 }
  0x2a   :  { %1036 = vmatprep.subr.bf16.mxu1 %v1129_v59 }
  0x2c   :  { %1015 = vmatpush3.bf16.msra.mxu0 %v1128_v60 }
  0x2d   :  { %1016 = vmatprep.subr.bf16.mxu0 %v1131_v61  ;;  %1037 = vmatpush3.bf16.msra.mxu1 %v1130_v62 }
  0x2e   :  { %1038 = vmatprep.subr.bf16.mxu1 %v1133_v63 }
  0x30   :  { %1017 = vmatpush3.bf16.msra.mxu0 %v1132_v0 }
  0x31   :  { %1018 = vmatprep.subr.bf16.mxu0 %v1135_v1  ;;  %1039 = vmatpush3.bf16.msra.mxu1 %v1134_v2 }
  0x32   :  { %1040 = vmatprep.subr.bf16.mxu1 %v1137_v3 }
  0x34   :  { %1019 = vmatpush3.bf16.msra.mxu0 %v1136_v4 }
  0x35   :  { %1020 = vmatprep.subr.bf16.mxu0 %v1139_v5  ;;  %1041 = vmatpush3.bf16.msra.mxu1 %v1138_v6 }
  0x36   :  { %1042 = vmatprep.subr.bf16.mxu1 %v1141_v7 }
  0x38   :  { %1021 = vmatpush3.bf16.msra.mxu0 %v1140_v8 }
  0x39   :  { %1022 = vmatprep.subr.bf16.mxu0 %v1143_v9  ;;  %1043 = vmatpush3.bf16.msra.mxu1 %v1142_v10 }
  0x3a   :  { %1044 = vmatprep.subr.bf16.mxu1 %v1145_v11 }
  0x3c   :  { %1023 = vmatpush3.bf16.msra.mxu0 %v1144_v12 }
  0x3d   :  { %1024 = vmatprep.subr.bf16.mxu0 %v1147_v13  ;;  %1045 = vmatpush3.bf16.msra.mxu1 %v1146_v14 }
  0x3e   :  { %1046 = vmatprep.subr.bf16.mxu1 %v1149_v15 }
  0x40   :  { %1025 = vmatpush3.bf16.msra.mxu0 %v1148_v16 }
  0x41   :  { %1063 = vmatprep.subr.bf16.mxu0 %v1160_v20  ;;  %1047 = vmatpush3.bf16.msra.mxu1 %v1150_v18 }
  0x43   :  { %779 = vmatmul.mubr.bf16.vlgmr.msra.gmra.mrb[4].mxu0 %v192_v17 }
  0x44   :  { %1064 = vmatpush3.bf16.msra.mxu0 %v1151_v19  ;;  %1079 = vmatprep.mubr.msk.bf16.mxu0 %vm1161_vm0, %v1160_v20 }
  0x45   :  { %819 = vmatmul.mubr.bf16.vlgmr.msra.gmra.mrb[4].mxu1 %v208_v21  ;;  %1065 = vmatprep.subr.bf16.mxu0 %v1160_v20 }
  0x48   :  { %1066 = vmatpush3.bf16.msra.mxu0 %v1152_v23 }
  0x49   :  { %1067 = vmatprep.subr.bf16.mxu0 %v1160_v20 }
  0x4c   :  { %1068 = vmatpush3.bf16.msra.mxu0 %v1153_v25 }
  0x4d   :  { %1069 = vmatprep.subr.bf16.mxu0 %v1160_v20 }
  0x50   :  { %1070 = vmatpush3.bf16.msra.mxu0 %v1154_v26 }
  0x51   :  { %1071 = vmatprep.subr.bf16.mxu0 %v1160_v20 }
  0x54   :  { %1072 = vmatpush3.bf16.msra.mxu0 %v1155_v27 }
  0x55   :  { %1073 = vmatprep.subr.bf16.mxu0 %v1160_v20 }
  0x58   :  { %1074 = vmatpush3.bf16.msra.mxu0 %v1156_v28 }
  0x59   :  { %1075 = vmatprep.subr.bf16.mxu0 %v1160_v20 }
  0x5c   :  { %1076 = vmatpush3.bf16.msra.mxu0 %v1157_v29 }
  0x5d   :  { %1077 = vmatprep.subr.bf16.mxu0 %v1160_v20 }
  0x60   :  { %1078 = vmatpush3.bf16.msra.mxu0 %v1158_v30 }
  0x63   :  { %1080 = vmatmul.mubr.bf16.vlgmr.msra.gmra.mrb[8].mxu0 %v224_v24 }
  0xf6   :  { %v982_v31 = vpop.f32.mrb[0].mxu0 }
  0xf7   :  { %v983_v32 = vpop.f32.mrb[1].mxu0  ;;  %v1004_v33 = vpop.f32.mrb[0].mxu1 }
  0xf8   :  { %v984_v34 = vadd.f32 %v983_v32, %v982_v31  ;;  %v985_v35 = vpop.f32.mrb[2].mxu0  ;;  %v1005_v36 = vpop.f32.mrb[1].mxu1 }
  0xf9   :  { %v986_v37 = vpop.f32.mrb[3].mxu0  ;;  %v1006_v38 = vadd.f32 %v1005_v36, %v1004_v33  ;;  %v1007_v39 = vpop.f32.mrb[2].mxu1 }
  0xfa   :  { %v1008_v40 = vpop.f32.mrb[3].mxu1 }
  0xfb   :  { %v741_v41 = vadd.f32 %v1006_v38, %v984_v34 }
 0x116   :  { %v1026_v42 = vpop.f32.mrb[4].mxu0 }
 0x117   :  { %v1027_v43 = vpop.f32.mrb[5].mxu0 }
 0x118   :  { %v1028_v44 = vadd.f32 %v1027_v43, %v1026_v42  ;;  %v1029_v45 = vpop.f32.mrb[6].mxu0  ;;  %v1048_v46 = vpop.f32.mrb[4].mxu1 }
 0x119   :  { %v1030_v47 = vpop.f32.mrb[7].mxu0  ;;  %v1049_v48 = vpop.f32.mrb[5].mxu1 }
 0x11a   :  { %v781_v49 = vadd.f32 %v1028_v44, %v741_v41  ;;  %v1050_v50 = vadd.f32 %v1049_v48, %v1048_v46  ;;  %v1051_v51 = vpop.f32.mrb[6].mxu1 }
 0x11b   :  { %v1052_v52 = vpop.f32.mrb[7].mxu1 }
 0x11c   :  { %v821_v53 = vadd.f32 %v1050_v50, %v781_v49 }
 0x136   :  { %v860_v54 = vpop.f32.mrb[8].mxu0 }
 0x137   :  { %v861_v55 = vadd.f32 %v860_v54, %v821_v53  ;;  %v1081_v56 = vpop.f32.mrb[9].mxu0 }
 0x138   :  { %v863_v57 = vpop.f32.mrb[10].mxu0 }
 0x139   :  { %866 = vst [vmem:[%s1429_s2] sm:$0x3] %v861_v55  ;;  %v868_v58 = vsel %vm867_vm1, %v861_v55, 0.0  ;;  %v876_v59 = vmul.f32 %v861_v55, %v861_v55  ;;  %v1082_v60 = vpop.f32.mrb[11].mxu0 }
 0x13a   :  { %v869_v61 = vrot.slane %v868_v58, 4 }
 0x13b   :  { %v877_v62 = vsel %vm867_vm1, %v876_v59, 0.0 }
 0x13c   :  { %v870_v63 = vadd.f32 %v869_v61, %v868_v58  ;;  %v878_v0 = vrot.slane %v877_v62, 4 }
 0x13e   :  { %v871_v1 = vrot.slane %v870_v63, 2  ;;  %v879_v2 = vadd.f32 %v878_v0, %v877_v62 }
 0x140   :  { %v872_v3 = vadd.f32 %v871_v1, %v870_v63  ;;  %v880_v4 = vrot.slane %v879_v2, 2 }
 0x142   :  { %v873_v5 = vrot.slane %v872_v3, 1  ;;  %v881_v6 = vadd.f32 %v880_v4, %v879_v2 }
 0x144   :  { %v874_v7 = vadd.f32 %v873_v5, %v872_v3  ;;  %v882_v8 = vrot.slane %v881_v6, 1 }
 0x146   :  { %875 = vst [vmem:[%s1430_s3] sm:$0x1] %v874_v7  ;;  %v883_v9 = vadd.f32 %v882_v8, %v881_v6 }
 0x148   :  { %884 = vst [vmem:[%s1430_s3 + $0x1] sm:$0x1] %v883_v9 }

</bundles_post_ra>
